<compile_context>
chip_gen: v7x
topology: tpu7x:2x2x1
jax: 0.10.0
libtpu: 0.0.40
codegen_flags: <defaults>
</compile_context>

<pallas_src>
import math

import jax
import jax.numpy as jnp
import numpy as np
from jax import lax
from jax.experimental import pallas as pl
from jax.experimental.pallas import tpu as pltpu

# ----------------------------- config ---------------------------------------
BLOCKS = (2, 1, 1, 1)          # scaled down from (3, 8, 36, 3)
WIDTHS = (8, 16, 32, 64)       # scaled down from (64, 128, 256, 512)
EXPANSION = 4
INPLANES = WIDTHS[0]
BN_EPS = 1e-5

MAX_TM = 512                   # GEMM row-tile cap (sublane dim, multiple of 16)
MAX_TK = 512                   # GEMM reduction-tile cap
VMEM_LIMIT = 64 * 1024 * 1024  # headroom for real-size layers


def _ceil_to(x, m):
    return ((x + m - 1) // m) * m


def _pad2d(a, mp, np_):
    m, n = a.shape
    return jnp.pad(a, ((0, mp - m), (0, np_ - n)))


# ----------------------------- Pallas GEMM -----------------------------------
def gemm_bn_act(x, w, scale, shift, residual=None, relu=True):
    """y = act((x @ w) * scale + shift [+ residual]) as a tiled Pallas GEMM.

    x/w are cast to bf16 (MXU inputs); accumulation + BN/residual/ReLU epilogue
    run in f32.  Grid = (M tiles, N tiles, K tiles); K is the last ("arbitrary")
    reduction axis with a VMEM f32 accumulator: init at k==0, epilogue + lane-dense
    store only at k==last.  M/N are "parallel".
    """
    M, K = x.shape
    _, N = w.shape

    TM = min(MAX_TM, _ceil_to(M, 16))
    Np = _ceil_to(N, 128)
    TN = 512 if (Np % 512 == 0) else 128
    K16 = _ceil_to(K, 16)
    if K16 <= MAX_TK:
        TK, Kp = K16, K16                       # single full-extent K block
    else:
        TK, Kp = MAX_TK, _ceil_to(K, MAX_TK)    # K-tiled accumulation
    Mp = _ceil_to(M, TM)

    xp = _pad2d(x.astype(jnp.bfloat16), Mp, Kp)
    wp = _pad2d(w.astype(jnp.bfloat16), Kp, Np)
    sp = _pad2d(scale.astype(jnp.float32).reshape(1, N), 1, Np)
    bp = _pad2d(shift.astype(jnp.float32).reshape(1, N), 1, Np)
    has_res = residual is not None

    args = [xp, wp, sp, bp]
    in_specs = [
        pl.BlockSpec((TM, TK), lambda i, j, k: (i, k)),
        pl.BlockSpec((TK, TN), lambda i, j, k: (k, j)),
        pl.BlockSpec((1, TN), lambda i, j, k: (0, j)),
        pl.BlockSpec((1, TN), lambda i, j, k: (0, j)),
    ]
    if has_res:
        args.append(_pad2d(residual.astype(jnp.float32), Mp, Np))
        in_specs.append(pl.BlockSpec((TM, TN), lambda i, j, k: (i, j)))

    def kernel(*refs):
        if has_res:
            x_ref, w_ref, s_ref, b_ref, r_ref, o_ref, acc_ref = refs
        else:
            x_ref, w_ref, s_ref, b_ref, o_ref, acc_ref = refs
            r_ref = None
        k = pl.program_id(2)

        @pl.when(k == 0)
        def _():
            acc_ref[...] = jnp.zeros_like(acc_ref)

        acc_ref[...] += jnp.dot(x_ref[...], w_ref[...],
                                preferred_element_type=jnp.float32)

        @pl.when(k == pl.num_programs(2) - 1)
        def _():
            y = acc_ref[...] * s_ref[...] + b_ref[...]      # fused BN (eval mode)
            if has_res:
                y = y + r_ref[...]                          # fused residual add
            if relu:
                y = jnp.maximum(y, 0.0)                     # fused ReLU
            o_ref[...] = y.astype(o_ref.dtype)

    out = pl.pallas_call(
        kernel,
        out_shape=jax.ShapeDtypeStruct((Mp, Np), jnp.float32),
        grid=(Mp // TM, Np // TN, Kp // TK),
        in_specs=in_specs,
        out_specs=pl.BlockSpec((TM, TN), lambda i, j, k: (i, j)),
        scratch_shapes=[pltpu.VMEM((TM, TN), jnp.float32)],
        compiler_params=pltpu.CompilerParams(
            dimension_semantics=("parallel", "parallel", "arbitrary"),
            vmem_limit_bytes=VMEM_LIMIT),
    )(*args)
    return out[:M, :N]


# ----------------------------- Pallas pooling kernels -------------------------
def maxpool_3x3_s2(x):
    """nn.MaxPool2d(kernel_size=3, stride=2, padding=1) on NHWC.

    Taps are laid out leading -> (9, M, C): each in-kernel load is a dense,
    lane-aligned (TM, Cp) tile and the 9-way max is an unrolled VPU chain.
    # TODO(synk): fully-fused variant would read the padded map directly and form
    # the 9 shifted taps in-kernel to avoid the 9x HBM patch expansion.
    """
    B, H, W, C = x.shape
    Ho = (H + 2 - 3) // 2 + 1
    Wo = (W + 2 - 3) // 2 + 1
    xp = jnp.pad(x, ((0, 0), (1, 1), (1, 1), (0, 0)), constant_values=-jnp.inf)
    taps = []
    for i in range(3):
        for j in range(3):
            taps.append(
                xp[:, i:i + 2 * Ho:2, j:j + 2 * Wo:2, :].reshape(B * Ho * Wo, C))
    t = jnp.stack(taps, axis=0)                               # (9, M, C), taps leading
    M = B * Ho * Wo
    TMp = min(MAX_TM, _ceil_to(M, 8))
    Mp, Cp = _ceil_to(M, TMp), _ceil_to(C, 128)
    tp = jnp.pad(t, ((0, 0), (0, Mp - M), (0, Cp - C)))

    def mp_kernel(x_ref, o_ref):
        m = x_ref[0]
        for tap in range(1, 9):
            m = jnp.maximum(m, x_ref[tap])
        o_ref[...] = m

    out = pl.pallas_call(
        mp_kernel,
        out_shape=jax.ShapeDtypeStruct((Mp, Cp), jnp.float32),
        grid=(Mp // TMp,),
        in_specs=[pl.BlockSpec((9, TMp, Cp), lambda i: (0, i, 0))],
        out_specs=pl.BlockSpec((TMp, Cp), lambda i: (i, 0)),
        compiler_params=pltpu.CompilerParams(dimension_semantics=("parallel",)),
    )(tp)
    return out[:M, :C].reshape(B, Ho, Wo, C)


def global_avgpool(x):
    """nn.AdaptiveAvgPool2d((1,1)) on NHWC via a Pallas mean reduction."""
    B, H, W, C = x.shape
    xr = x.reshape(B, H * W, C)
    Cp = _ceil_to(C, 128)
    xp = jnp.pad(xr, ((0, 0), (0, 0), (0, Cp - C)))

    def ap_kernel(x_ref, o_ref):
        o_ref[...] = jnp.mean(x_ref[...], axis=1)

    out = pl.pallas_call(
        ap_kernel,
        out_shape=jax.ShapeDtypeStruct((B, Cp), jnp.float32),
        grid=(1,),
        in_specs=[pl.BlockSpec((B, H * W, Cp), lambda i: (0, 0, 0))],
        out_specs=pl.BlockSpec((B, Cp), lambda i: (0, 0)),
    )(xp)
    return out[:, :C]


# ----------------------------- JAX glue --------------------------------------
def extract_patches(x, kh, kw, stride, pad, pad_value):
    """im2col: NHWC -> (B, Ho, Wo, kh*kw, C).  Pure reshape/slice glue (bf16)."""
    B, H, W, C = x.shape
    xp = jnp.pad(x, ((0, 0), (pad, pad), (pad, pad), (0, 0)),
                 constant_values=pad_value)
    Ho = (H + 2 * pad - kh) // stride + 1
    Wo = (W + 2 * pad - kw) // stride + 1
    cols = []
    for i in range(kh):
        for j in range(kw):
            cols.append(xp[:, i:i + stride * Ho:stride, j:j + stride * Wo:stride, :])
    patches = jnp.stack(cols, axis=3)   # (B, Ho, Wo, kh*kw, C)
    return patches, Ho, Wo


def conv_bn(x, p, stride, pad, relu=True, residual=None):
    B, H, W, Cin = x.shape
    kh, kw, _, Cout = p["w"].shape
    xb = x.astype(jnp.bfloat16)                       # bf16 operands into the MXU
    if kh == 1 and kw == 1 and pad == 0:
        # 1x1 conv: no patch extraction at all (pure GEMM on the feature map).
        if stride != 1:
            xb = xb[:, ::stride, ::stride, :]
        Ho, Wo = xb.shape[1], xb.shape[2]
        xmat = xb.reshape(B * Ho * Wo, Cin)
    else:
        # TODO(synk): stream taps from the un-expanded padded map inside the kernel
        # (per-tap accumulating GEMM) to fully avoid the kh*kw im2col HBM expansion;
        # the bf16 cast above already halves the materialized patch traffic.
        patches, Ho, Wo = extract_patches(xb, kh, kw, stride, pad, 0.0)
        xmat = patches.reshape(B * Ho * Wo, kh * kw * Cin)
    M = B * Ho * Wo
    wmat = p["w"].astype(jnp.bfloat16).reshape(kh * kw * Cin, Cout)
    res = residual.reshape(M, Cout) if residual is not None else None
    y = gemm_bn_act(xmat, wmat, p["scale"], p["shift"], res, relu)
    return y.reshape(B, Ho, Wo, Cout)


def bottleneck(x, blk):
    stride = blk["stride"]
    identity = x
    out = conv_bn(x, blk["conv1"], stride=1, pad=0, relu=True)
    out = conv_bn(out, blk["conv2"], stride=stride, pad=1, relu=True)
    if "downsample" in blk:
        identity = conv_bn(x, blk["downsample"], stride=stride, pad=0, relu=False)
    # out = relu(bn3(conv3(out)) + identity) -- residual + relu fused in epilogue
    out = conv_bn(out, blk["conv3"], stride=1, pad=0, relu=True, residual=identity)
    return out


def resnet_feature_forward(x_nchw, params):
    """Equivalent of ImageNetResNetFeature.forward (output_dim='2048')."""
    x = jnp.transpose(x_nchw, (0, 2, 3, 1)).astype(jnp.float32)   # NCHW -> NHWC
    x = conv_bn(x, params["conv1"], stride=2, pad=3, relu=True)   # conv1+bn1+relu
    x = maxpool_3x3_s2(x)                                         # maxpool
    for blocks in params["layers"]:                               # layer1..layer4
        for blk in blocks:
            x = bottleneck(x, blk)
    feat = global_avgpool(x)                                      # avgpool -> (B, C)
    B, C = feat.shape
    return jnp.squeeze(feat.reshape(B, C, 1, 1))                  # mimic .squeeze()


# ----------------------------- parameters ------------------------------------
def make_conv_bn(key, kh, kw, cin, cout):
    k1, k2, k3, k4, k5 = jax.random.split(key, 5)
    w = jax.random.normal(k1, (kh, kw, cin, cout), jnp.float32) / math.sqrt(kh * kw * cin)
    gamma = 1.0 + 0.1 * jax.random.normal(k2, (cout,), jnp.float32)
    beta = 0.1 * jax.random.normal(k3, (cout,), jnp.float32)
    mean = 0.1 * jax.random.normal(k4, (cout,), jnp.float32)
    var = 1.0 + 0.1 * jnp.abs(jax.random.normal(k5, (cout,), jnp.float32))
    scale = gamma / jnp.sqrt(var + BN_EPS)      # BN (eval mode) folded to scale/shift
    shift = beta - mean * scale
    return {"w": w, "scale": scale, "shift": shift}


def build_params(key):
    params = {}
    key, k0 = jax.random.split(key)
    params["conv1"] = make_conv_bn(k0, 7, 7, 3, INPLANES)
    in_ch = INPLANES
    layers = []
    for li, (nblocks, planes) in enumerate(zip(BLOCKS, WIDTHS)):
        layer_stride = 1 if li == 0 else 2
        blocks = []
        for bi in range(nblocks):
            s = layer_stride if bi == 0 else 1
            key, k1, k2, k3, k4 = jax.random.split(key, 5)
            blk = {
                "conv1": make_conv_bn(k1, 1, 1, in_ch, planes),
                "conv2": make_conv_bn(k2, 3, 3, planes, planes),
                "conv3": make_conv_bn(k3, 1, 1, planes, planes * EXPANSION),
                "stride": s,
            }
            if s != 1 or in_ch != planes * EXPANSION:
                blk["downsample"] = make_conv_bn(k4, 1, 1, in_ch, planes * EXPANSION)
            blocks.append(blk)
            in_ch = planes * EXPANSION
        layers.append(blocks)
    params["layers"] = layers
    return params


# ----------------------------- pure-JAX reference ----------------------------
def _ref_conv_bn(x, p, stride, pad, relu=True, residual=None):
    # Same numerics as the Pallas path: bf16 matmul operands, f32 accumulate/epilogue.
    y = lax.conv_general_dilated(
        x.astype(jnp.bfloat16), p["w"].astype(jnp.bfloat16),
        (stride, stride), [(pad, pad), (pad, pad)],
        dimension_numbers=("NHWC", "HWIO", "NHWC"),
        preferred_element_type=jnp.float32)
    y = y * p["scale"] + p["shift"]
    if residual is not None:
        y = y + residual
    if relu:
        y = jnp.maximum(y, 0.0)
    return y


def ref_forward(x_nchw, params):
    x = jnp.transpose(x_nchw, (0, 2, 3, 1)).astype(jnp.float32)
    x = _ref_conv_bn(x, params["conv1"], 2, 3, True)
    x = lax.reduce_window(x, -jnp.inf, lax.max, (1, 3, 3, 1), (1, 2, 2, 1),
                          [(0, 0), (1, 1), (1, 1), (0, 0)])
    for blocks in params["layers"]:
        for blk in blocks:
            s = blk["stride"]
            identity = x
            out = _ref_conv_bn(x, blk["conv1"], 1, 0, True)
            out = _ref_conv_bn(out, blk["conv2"], s, 1, True)
            if "downsample" in blk:
                identity = _ref_conv_bn(x, blk["downsample"], s, 0, False)
            x = _ref_conv_bn(out, blk["conv3"], 1, 0, True, residual=identity)
    feat = jnp.mean(x, axis=(1, 2))
    B, C = feat.shape
    return jnp.squeeze(feat.reshape(B, C, 1, 1))


# ----------------------------- main -------------------------------------------
if __name__ == "__main__":
    key = jax.random.PRNGKey(0)
    kx, kp = jax.random.split(key)
    x = jax.random.normal(kx, (2, 3, 16, 16), jnp.float32)   # NCHW, like PyTorch
    params = build_params(kp)

    fwd = jax.jit(lambda inp: resnet_feature_forward(inp, params))
    ref_fn = jax.jit(lambda inp: ref_forward(inp, params))

    out = jax.block_until_ready(fwd(x))
    ref = jax.block_until_ready(ref_fn(x))

    assert out.shape == ref.shape, (out.shape, ref.shape)
    np.testing.assert_allclose(np.asarray(out), np.asarray(ref), rtol=5e-3, atol=5e-3)

    print("KERNEL_OK")
</pallas_src>

<mosaic_0001>
module attributes {stable_mosaic.version = 11 : i64} {
  func.func @kernel(%arg0: i32, %arg1: i32, %arg2: i32, %arg3: memref<128x160xbf16, #tpu.memory_space<vmem>>, %arg4: memref<160x128xbf16, #tpu.memory_space<vmem>>, %arg5: memref<1x128xf32, #tpu.memory_space<vmem>>, %arg6: memref<1x128xf32, #tpu.memory_space<vmem>>, %arg7: memref<128x128xf32, #tpu.memory_space<vmem>>, %arg8: memref<128x128xf32, #tpu.memory_space<vmem>>) attributes {dimension_semantics = [#tpu.dimension_semantics<parallel>, #tpu.dimension_semantics<parallel>, #tpu.dimension_semantics<arbitrary>], iteration_bounds = array<i64: 1, 1, 1>, scalar_prefetch = 0 : i64, scratch_operands = 1 : i64, tpu.core_type = #tpu.core_type<tc>, window_params = [{transform_indices = @transform_0, window_bounds = array<i64: 128, 160>}, {transform_indices = @transform_1, window_bounds = array<i64: 160, 128>}, {transform_indices = @transform_2, window_bounds = array<i64: 1, 128>}, {transform_indices = @transform_3, window_bounds = array<i64: 1, 128>}, {transform_indices = @transform_4, window_bounds = array<i64: 128, 128>}]} {
    %c0_i32 = arith.constant 0 : i32
    %0 = arith.cmpi eq, %arg2, %c0_i32 : i32
    %1 = arith.extui %0 : i1 to i32
    %c0_i32_0 = arith.constant 0 : i32
    %2 = arith.cmpi ne, %1, %c0_i32_0 : i32
    scf.if %2 {
      %cst_10 = arith.constant 0.000000e+00 : f32
      %12 = vector.broadcast %cst_10 : f32 to vector<128x128xf32>
      %c0_11 = arith.constant 0 : index
      %c0_12 = arith.constant 0 : index
      %13 = vector.load %arg8[%c0_11, %c0_12] : memref<128x128xf32, #tpu.memory_space<vmem>>, vector<128x128xf32>
      tpu.vector_store %arg8[%c0_11, %c0_12], %12 {strides = array<i32>} : memref<128x128xf32, #tpu.memory_space<vmem>>, vector<128x128xf32>,
    } else {
    }
    %c0 = arith.constant 0 : index
    %c0_1 = arith.constant 0 : index
    %3 = vector.load %arg8[%c0, %c0_1] : memref<128x128xf32, #tpu.memory_space<vmem>>, vector<128x128xf32>
    %c0_2 = arith.constant 0 : index
    %c0_3 = arith.constant 0 : index
    %4 = vector.load %arg3[%c0_2, %c0_3] : memref<128x160xbf16, #tpu.memory_space<vmem>>, vector<128x160xbf16>
    %c0_4 = arith.constant 0 : index
    %c0_5 = arith.constant 0 : index
    %5 = vector.load %arg4[%c0_4, %c0_5] : memref<160x128xbf16, #tpu.memory_space<vmem>>, vector<160x128xbf16>
    %cst = arith.constant dense<0.000000e+00> : vector<128x128xf32>
    %6 = tpu.matmul %4, %5, %cst {dimension_numbers = #tpu.dot_dimension_numbers<[1], [0], [0], [1], [0, 0, 1, 1], [], []>} : vector<128x160xbf16>, vector<160x128xbf16>, vector<128x128xf32> -> vector<128x128xf32>
    %7 = arith.addf %3, %6 : vector<128x128xf32>
    %c0_6 = arith.constant 0 : index
    %c0_7 = arith.constant 0 : index
    %8 = vector.load %arg8[%c0_6, %c0_7] : memref<128x128xf32, #tpu.memory_space<vmem>>, vector<128x128xf32>
    tpu.vector_store %arg8[%c0_6, %c0_7], %7 {strides = array<i32>} : memref<128x128xf32, #tpu.memory_space<vmem>>, vector<128x128xf32>,
    %c0_i32_8 = arith.constant 0 : i32
    %9 = arith.cmpi eq, %arg2, %c0_i32_8 : i32
    %10 = arith.extui %9 : i1 to i32
    %c0_i32_9 = arith.constant 0 : i32
    %11 = arith.cmpi ne, %10, %c0_i32_9 : i32
    scf.if %11 {
      %c0_10 = arith.constant 0 : index
      %c0_11 = arith.constant 0 : index
      %12 = vector.load %arg8[%c0_10, %c0_11] : memref<128x128xf32, #tpu.memory_space<vmem>>, vector<128x128xf32>
      %c0_12 = arith.constant 0 : index
      %c0_13 = arith.constant 0 : index
      %13 = vector.load %arg5[%c0_12, %c0_13] : memref<1x128xf32, #tpu.memory_space<vmem>>, vector<1x128xf32>
      %14 = vector.broadcast %13 : vector<1x128xf32> to vector<128x128xf32>
      %15 = arith.mulf %12, %14 : vector<128x128xf32>
      %c0_14 = arith.constant 0 : index
      %c0_15 = arith.constant 0 : index
      %16 = vector.load %arg6[%c0_14, %c0_15] : memref<1x128xf32, #tpu.memory_space<vmem>>, vector<1x128xf32>
      %17 = vector.broadcast %16 : vector<1x128xf32> to vector<128x128xf32>
      %18 = arith.addf %15, %17 : vector<128x128xf32>
      %cst_16 = arith.constant 0.000000e+00 : f32
      %19 = vector.broadcast %cst_16 : f32 to vector<128x128xf32>
      %20 = arith.maximumf %18, %19 : vector<128x128xf32>
      %c0_17 = arith.constant 0 : index
      %c0_18 = arith.constant 0 : index
      %21 = vector.load %arg7[%c0_17, %c0_18] : memref<128x128xf32, #tpu.memory_space<vmem>>, vector<128x128xf32>
      tpu.vector_store %arg7[%c0_17, %c0_18], %20 {strides = array<i32>} : memref<128x128xf32, #tpu.memory_space<vmem>>, vector<128x128xf32>,
    } else {
    }
    return
  }
  func.func @transform_0(%arg0: i32, %arg1: i32, %arg2: i32) -> (i32, i32) {
    %c0_i32 = arith.constant 0 : i32
    return %arg0, %arg2 : i32, i32
  }
  func.func @transform_1(%arg0: i32, %arg1: i32, %arg2: i32) -> (i32, i32) {
    %c0_i32 = arith.constant 0 : i32
    return %arg2, %arg1 : i32, i32
  }
  func.func @transform_2(%arg0: i32, %arg1: i32, %arg2: i32) -> (i32, i32) {
    %c0_i32 = arith.constant 0 : i32
    %c0_i32_0 = arith.constant 0 : i32
    return %c0_i32, %arg1 : i32, i32
  }
  func.func @transform_3(%arg0: i32, %arg1: i32, %arg2: i32) -> (i32, i32) {
    %c0_i32 = arith.constant 0 : i32
    %c0_i32_0 = arith.constant 0 : i32
    return %c0_i32, %arg1 : i32, i32
  }
  func.func @transform_4(%arg0: i32, %arg1: i32, %arg2: i32) -> (i32, i32) {
    %c0_i32 = arith.constant 0 : i32
    return %arg0, %arg1 : i32, i32
  }
}

module attributes {stable_mosaic.version = 11 : i64} {
  func.func @mp_kernel(%arg0: i32, %arg1: memref<9x32x128xf32, #tpu.memory_space<vmem>>, %arg2: memref<32x128xf32, #tpu.memory_space<vmem>>) attributes {dimension_semantics = [#tpu.dimension_semantics<parallel>], iteration_bounds = array<i64: 1>, scalar_prefetch = 0 : i64, scratch_operands = 0 : i64, tpu.core_type = #tpu.core_type<tc>, window_params = [{transform_indices = @transform_0, window_bounds = array<i64: 9, 32, 128>}, {transform_indices = @transform_1, window_bounds = array<i64: 32, 128>}]} {
    %c0 = arith.constant 0 : index
    %c0_0 = arith.constant 0 : index
    %c0_1 = arith.constant 0 : index
    %0 = vector.load %arg1[%c0, %c0_0, %c0_1] : memref<9x32x128xf32, #tpu.memory_space<vmem>>, vector<1x32x128xf32>
    %1 = vector.shape_cast %0 : vector<1x32x128xf32> to vector<32x128xf32>
    %c1 = arith.constant 1 : index
    %c0_2 = arith.constant 0 : index
    %c0_3 = arith.constant 0 : index
    %2 = vector.load %arg1[%c1, %c0_2, %c0_3] : memref<9x32x128xf32, #tpu.memory_space<vmem>>, vector<1x32x128xf32>
    %3 = vector.shape_cast %2 : vector<1x32x128xf32> to vector<32x128xf32>
    %4 = arith.maximumf %1, %3 : vector<32x128xf32>
    %c2 = arith.constant 2 : index
    %c0_4 = arith.constant 0 : index
    %c0_5 = arith.constant 0 : index
    %5 = vector.load %arg1[%c2, %c0_4, %c0_5] : memref<9x32x128xf32, #tpu.memory_space<vmem>>, vector<1x32x128xf32>
    %6 = vector.shape_cast %5 : vector<1x32x128xf32> to vector<32x128xf32>
    %7 = arith.maximumf %4, %6 : vector<32x128xf32>
    %c3 = arith.constant 3 : index
    %c0_6 = arith.constant 0 : index
    %c0_7 = arith.constant 0 : index
    %8 = vector.load %arg1[%c3, %c0_6, %c0_7] : memref<9x32x128xf32, #tpu.memory_space<vmem>>, vector<1x32x128xf32>
    %9 = vector.shape_cast %8 : vector<1x32x128xf32> to vector<32x128xf32>
    %10 = arith.maximumf %7, %9 : vector<32x128xf32>
    %c4 = arith.constant 4 : index
    %c0_8 = arith.constant 0 : index
    %c0_9 = arith.constant 0 : index
    %11 = vector.load %arg1[%c4, %c0_8, %c0_9] : memref<9x32x128xf32, #tpu.memory_space<vmem>>, vector<1x32x128xf32>
    %12 = vector.shape_cast %11 : vector<1x32x128xf32> to vector<32x128xf32>
    %13 = arith.maximumf %10, %12 : vector<32x128xf32>
    %c5 = arith.constant 5 : index
    %c0_10 = arith.constant 0 : index
    %c0_11 = arith.constant 0 : index
    %14 = vector.load %arg1[%c5, %c0_10, %c0_11] : memref<9x32x128xf32, #tpu.memory_space<vmem>>, vector<1x32x128xf32>
    %15 = vector.shape_cast %14 : vector<1x32x128xf32> to vector<32x128xf32>
    %16 = arith.maximumf %13, %15 : vector<32x128xf32>
    %c6 = arith.constant 6 : index
    %c0_12 = arith.constant 0 : index
    %c0_13 = arith.constant 0 : index
    %17 = vector.load %arg1[%c6, %c0_12, %c0_13] : memref<9x32x128xf32, #tpu.memory_space<vmem>>, vector<1x32x128xf32>
    %18 = vector.shape_cast %17 : vector<1x32x128xf32> to vector<32x128xf32>
    %19 = arith.maximumf %16, %18 : vector<32x128xf32>
    %c7 = arith.constant 7 : index
    %c0_14 = arith.constant 0 : index
    %c0_15 = arith.constant 0 : index
    %20 = vector.load %arg1[%c7, %c0_14, %c0_15] : memref<9x32x128xf32, #tpu.memory_space<vmem>>, vector<1x32x128xf32>
    %21 = vector.shape_cast %20 : vector<1x32x128xf32> to vector<32x128xf32>
    %22 = arith.maximumf %19, %21 : vector<32x128xf32>
    %c8 = arith.constant 8 : index
    %c0_16 = arith.constant 0 : index
    %c0_17 = arith.constant 0 : index
    %23 = vector.load %arg1[%c8, %c0_16, %c0_17] : memref<9x32x128xf32, #tpu.memory_space<vmem>>, vector<1x32x128xf32>
    %24 = vector.shape_cast %23 : vector<1x32x128xf32> to vector<32x128xf32>
    %25 = arith.maximumf %22, %24 : vector<32x128xf32>
    %c0_18 = arith.constant 0 : index
    %c0_19 = arith.constant 0 : index
    %26 = vector.load %arg2[%c0_18, %c0_19] : memref<32x128xf32, #tpu.memory_space<vmem>>, vector<32x128xf32>
    tpu.vector_store %arg2[%c0_18, %c0_19], %25 {strides = array<i32>} : memref<32x128xf32, #tpu.memory_space<vmem>>, vector<32x128xf32>,
    return
  }
  func.func @transform_0(%arg0: i32) -> (i32, i32, i32) {
    %c0_i32 = arith.constant 0 : i32
    %c0_i32_0 = arith.constant 0 : i32
    %c0_i32_1 = arith.constant 0 : i32
    return %c0_i32, %arg0, %c0_i32_0 : i32, i32, i32
  }
  func.func @transform_1(%arg0: i32) -> (i32, i32) {
    %c0_i32 = arith.constant 0 : i32
    %c0_i32_0 = arith.constant 0 : i32
    return %arg0, %c0_i32 : i32, i32
  }
}

module attributes {stable_mosaic.version = 11 : i64} {
  func.func @kernel(%arg0: i32, %arg1: i32, %arg2: i32, %arg3: memref<32x16xbf16, #tpu.memory_space<vmem>>, %arg4: memref<16x128xbf16, #tpu.memory_space<vmem>>, %arg5: memref<1x128xf32, #tpu.memory_space<vmem>>, %arg6: memref<1x128xf32, #tpu.memory_space<vmem>>, %arg7: memref<32x128xf32, #tpu.memory_space<vmem>>, %arg8: memref<32x128xf32, #tpu.memory_space<vmem>>) attributes {dimension_semantics = [#tpu.dimension_semantics<parallel>, #tpu.dimension_semantics<parallel>, #tpu.dimension_semantics<arbitrary>], iteration_bounds = array<i64: 1, 1, 1>, scalar_prefetch = 0 : i64, scratch_operands = 1 : i64, tpu.core_type = #tpu.core_type<tc>, window_params = [{transform_indices = @transform_0, window_bounds = array<i64: 32, 16>}, {transform_indices = @transform_1, window_bounds = array<i64: 16, 128>}, {transform_indices = @transform_2, window_bounds = array<i64: 1, 128>}, {transform_indices = @transform_3, window_bounds = array<i64: 1, 128>}, {transform_indices = @transform_4, window_bounds = array<i64: 32, 128>}]} {
    %c0_i32 = arith.constant 0 : i32
    %0 = arith.cmpi eq, %arg2, %c0_i32 : i32
    %1 = arith.extui %0 : i1 to i32
    %c0_i32_0 = arith.constant 0 : i32
    %2 = arith.cmpi ne, %1, %c0_i32_0 : i32
    scf.if %2 {
      %cst_10 = arith.constant 0.000000e+00 : f32
      %12 = vector.broadcast %cst_10 : f32 to vector<32x128xf32>
      %c0_11 = arith.constant 0 : index
      %c0_12 = arith.constant 0 : index
      %13 = vector.load %arg8[%c0_11, %c0_12] : memref<32x128xf32, #tpu.memory_space<vmem>>, vector<32x128xf32>
      tpu.vector_store %arg8[%c0_11, %c0_12], %12 {strides = array<i32>} : memref<32x128xf32, #tpu.memory_space<vmem>>, vector<32x128xf32>,
    } else {
    }
    %c0 = arith.constant 0 : index
    %c0_1 = arith.constant 0 : index
    %3 = vector.load %arg8[%c0, %c0_1] : memref<32x128xf32, #tpu.memory_space<vmem>>, vector<32x128xf32>
    %c0_2 = arith.constant 0 : index
    %c0_3 = arith.constant 0 : index
    %4 = vector.load %arg3[%c0_2, %c0_3] : memref<32x16xbf16, #tpu.memory_space<vmem>>, vector<32x16xbf16>
    %c0_4 = arith.constant 0 : index
    %c0_5 = arith.constant 0 : index
    %5 = vector.load %arg4[%c0_4, %c0_5] : memref<16x128xbf16, #tpu.memory_space<vmem>>, vector<16x128xbf16>
    %cst = arith.constant dense<0.000000e+00> : vector<32x128xf32>
    %6 = tpu.matmul %4, %5, %cst {dimension_numbers = #tpu.dot_dimension_numbers<[1], [0], [0], [1], [0, 0, 1, 1], [], []>} : vector<32x16xbf16>, vector<16x128xbf16>, vector<32x128xf32> -> vector<32x128xf32>
    %7 = arith.addf %3, %6 : vector<32x128xf32>
    %c0_6 = arith.constant 0 : index
    %c0_7 = arith.constant 0 : index
    %8 = vector.load %arg8[%c0_6, %c0_7] : memref<32x128xf32, #tpu.memory_space<vmem>>, vector<32x128xf32>
    tpu.vector_store %arg8[%c0_6, %c0_7], %7 {strides = array<i32>} : memref<32x128xf32, #tpu.memory_space<vmem>>, vector<32x128xf32>,
    %c0_i32_8 = arith.constant 0 : i32
    %9 = arith.cmpi eq, %arg2, %c0_i32_8 : i32
    %10 = arith.extui %9 : i1 to i32
    %c0_i32_9 = arith.constant 0 : i32
    %11 = arith.cmpi ne, %10, %c0_i32_9 : i32
    scf.if %11 {
      %c0_10 = arith.constant 0 : index
      %c0_11 = arith.constant 0 : index
      %12 = vector.load %arg8[%c0_10, %c0_11] : memref<32x128xf32, #tpu.memory_space<vmem>>, vector<32x128xf32>
      %c0_12 = arith.constant 0 : index
      %c0_13 = arith.constant 0 : index
      %13 = vector.load %arg5[%c0_12, %c0_13] : memref<1x128xf32, #tpu.memory_space<vmem>>, vector<1x128xf32>
      %14 = vector.broadcast %13 : vector<1x128xf32> to vector<32x128xf32>
      %15 = arith.mulf %12, %14 : vector<32x128xf32>
      %c0_14 = arith.constant 0 : index
      %c0_15 = arith.constant 0 : index
      %16 = vector.load %arg6[%c0_14, %c0_15] : memref<1x128xf32, #tpu.memory_space<vmem>>, vector<1x128xf32>
      %17 = vector.broadcast %16 : vector<1x128xf32> to vector<32x128xf32>
      %18 = arith.addf %15, %17 : vector<32x128xf32>
      %cst_16 = arith.constant 0.000000e+00 : f32
      %19 = vector.broadcast %cst_16 : f32 to vector<32x128xf32>
      %20 = arith.maximumf %18, %19 : vector<32x128xf32>
      %c0_17 = arith.constant 0 : index
      %c0_18 = arith.constant 0 : index
      %21 = vector.load %arg7[%c0_17, %c0_18] : memref<32x128xf32, #tpu.memory_space<vmem>>, vector<32x128xf32>
      tpu.vector_store %arg7[%c0_17, %c0_18], %20 {strides = array<i32>} : memref<32x128xf32, #tpu.memory_space<vmem>>, vector<32x128xf32>,
    } else {
    }
    return
  }
  func.func @transform_0(%arg0: i32, %arg1: i32, %arg2: i32) -> (i32, i32) {
    %c0_i32 = arith.constant 0 : i32
    return %arg0, %arg2 : i32, i32
  }
  func.func @transform_1(%arg0: i32, %arg1: i32, %arg2: i32) -> (i32, i32) {
    %c0_i32 = arith.constant 0 : i32
    return %arg2, %arg1 : i32, i32
  }
  func.func @transform_2(%arg0: i32, %arg1: i32, %arg2: i32) -> (i32, i32) {
    %c0_i32 = arith.constant 0 : i32
    %c0_i32_0 = arith.constant 0 : i32
    return %c0_i32, %arg1 : i32, i32
  }
  func.func @transform_3(%arg0: i32, %arg1: i32, %arg2: i32) -> (i32, i32) {
    %c0_i32 = arith.constant 0 : i32
    %c0_i32_0 = arith.constant 0 : i32
    return %c0_i32, %arg1 : i32, i32
  }
  func.func @transform_4(%arg0: i32, %arg1: i32, %arg2: i32) -> (i32, i32) {
    %c0_i32 = arith.constant 0 : i32
    return %arg0, %arg1 : i32, i32
  }
}

module attributes {stable_mosaic.version = 11 : i64} {
  func.func @kernel(%arg0: i32, %arg1: i32, %arg2: i32, %arg3: memref<32x80xbf16, #tpu.memory_space<vmem>>, %arg4: memref<80x128xbf16, #tpu.memory_space<vmem>>, %arg5: memref<1x128xf32, #tpu.memory_space<vmem>>, %arg6: memref<1x128xf32, #tpu.memory_space<vmem>>, %arg7: memref<32x128xf32, #tpu.memory_space<vmem>>, %arg8: memref<32x128xf32, #tpu.memory_space<vmem>>) attributes {dimension_semantics = [#tpu.dimension_semantics<parallel>, #tpu.dimension_semantics<parallel>, #tpu.dimension_semantics<arbitrary>], iteration_bounds = array<i64: 1, 1, 1>, scalar_prefetch = 0 : i64, scratch_operands = 1 : i64, tpu.core_type = #tpu.core_type<tc>, window_params = [{transform_indices = @transform_0, window_bounds = array<i64: 32, 80>}, {transform_indices = @transform_1, window_bounds = array<i64: 80, 128>}, {transform_indices = @transform_2, window_bounds = array<i64: 1, 128>}, {transform_indices = @transform_3, window_bounds = array<i64: 1, 128>}, {transform_indices = @transform_4, window_bounds = array<i64: 32, 128>}]} {
    %c0_i32 = arith.constant 0 : i32
    %0 = arith.cmpi eq, %arg2, %c0_i32 : i32
    %1 = arith.extui %0 : i1 to i32
    %c0_i32_0 = arith.constant 0 : i32
    %2 = arith.cmpi ne, %1, %c0_i32_0 : i32
    scf.if %2 {
      %cst_10 = arith.constant 0.000000e+00 : f32
      %12 = vector.broadcast %cst_10 : f32 to vector<32x128xf32>
      %c0_11 = arith.constant 0 : index
      %c0_12 = arith.constant 0 : index
      %13 = vector.load %arg8[%c0_11, %c0_12] : memref<32x128xf32, #tpu.memory_space<vmem>>, vector<32x128xf32>
      tpu.vector_store %arg8[%c0_11, %c0_12], %12 {strides = array<i32>} : memref<32x128xf32, #tpu.memory_space<vmem>>, vector<32x128xf32>,
    } else {
    }
    %c0 = arith.constant 0 : index
    %c0_1 = arith.constant 0 : index
    %3 = vector.load %arg8[%c0, %c0_1] : memref<32x128xf32, #tpu.memory_space<vmem>>, vector<32x128xf32>
    %c0_2 = arith.constant 0 : index
    %c0_3 = arith.constant 0 : index
    %4 = vector.load %arg3[%c0_2, %c0_3] : memref<32x80xbf16, #tpu.memory_space<vmem>>, vector<32x80xbf16>
    %c0_4 = arith.constant 0 : index
    %c0_5 = arith.constant 0 : index
    %5 = vector.load %arg4[%c0_4, %c0_5] : memref<80x128xbf16, #tpu.memory_space<vmem>>, vector<80x128xbf16>
    %cst = arith.constant dense<0.000000e+00> : vector<32x128xf32>
    %6 = tpu.matmul %4, %5, %cst {dimension_numbers = #tpu.dot_dimension_numbers<[1], [0], [0], [1], [0, 0, 1, 1], [], []>} : vector<32x80xbf16>, vector<80x128xbf16>, vector<32x128xf32> -> vector<32x128xf32>
    %7 = arith.addf %3, %6 : vector<32x128xf32>
    %c0_6 = arith.constant 0 : index
    %c0_7 = arith.constant 0 : index
    %8 = vector.load %arg8[%c0_6, %c0_7] : memref<32x128xf32, #tpu.memory_space<vmem>>, vector<32x128xf32>
    tpu.vector_store %arg8[%c0_6, %c0_7], %7 {strides = array<i32>} : memref<32x128xf32, #tpu.memory_space<vmem>>, vector<32x128xf32>,
    %c0_i32_8 = arith.constant 0 : i32
    %9 = arith.cmpi eq, %arg2, %c0_i32_8 : i32
    %10 = arith.extui %9 : i1 to i32
    %c0_i32_9 = arith.constant 0 : i32
    %11 = arith.cmpi ne, %10, %c0_i32_9 : i32
    scf.if %11 {
      %c0_10 = arith.constant 0 : index
      %c0_11 = arith.constant 0 : index
      %12 = vector.load %arg8[%c0_10, %c0_11] : memref<32x128xf32, #tpu.memory_space<vmem>>, vector<32x128xf32>
      %c0_12 = arith.constant 0 : index
      %c0_13 = arith.constant 0 : index
      %13 = vector.load %arg5[%c0_12, %c0_13] : memref<1x128xf32, #tpu.memory_space<vmem>>, vector<1x128xf32>
      %14 = vector.broadcast %13 : vector<1x128xf32> to vector<32x128xf32>
      %15 = arith.mulf %12, %14 : vector<32x128xf32>
      %c0_14 = arith.constant 0 : index
      %c0_15 = arith.constant 0 : index
      %16 = vector.load %arg6[%c0_14, %c0_15] : memref<1x128xf32, #tpu.memory_space<vmem>>, vector<1x128xf32>
      %17 = vector.broadcast %16 : vector<1x128xf32> to vector<32x128xf32>
      %18 = arith.addf %15, %17 : vector<32x128xf32>
      %cst_16 = arith.constant 0.000000e+00 : f32
      %19 = vector.broadcast %cst_16 : f32 to vector<32x128xf32>
      %20 = arith.maximumf %18, %19 : vector<32x128xf32>
      %c0_17 = arith.constant 0 : index
      %c0_18 = arith.constant 0 : index
      %21 = vector.load %arg7[%c0_17, %c0_18] : memref<32x128xf32, #tpu.memory_space<vmem>>, vector<32x128xf32>
      tpu.vector_store %arg7[%c0_17, %c0_18], %20 {strides = array<i32>} : memref<32x128xf32, #tpu.memory_space<vmem>>, vector<32x128xf32>,
    } else {
    }
    return
  }
  func.func @transform_0(%arg0: i32, %arg1: i32, %arg2: i32) -> (i32, i32) {
    %c0_i32 = arith.constant 0 : i32
    return %arg0, %arg2 : i32, i32
  }
  func.func @transform_1(%arg0: i32, %arg1: i32, %arg2: i32) -> (i32, i32) {
    %c0_i32 = arith.constant 0 : i32
    return %arg2, %arg1 : i32, i32
  }
  func.func @transform_2(%arg0: i32, %arg1: i32, %arg2: i32) -> (i32, i32) {
    %c0_i32 = arith.constant 0 : i32
    %c0_i32_0 = arith.constant 0 : i32
    return %c0_i32, %arg1 : i32, i32
  }
  func.func @transform_3(%arg0: i32, %arg1: i32, %arg2: i32) -> (i32, i32) {
    %c0_i32 = arith.constant 0 : i32
    %c0_i32_0 = arith.constant 0 : i32
    return %c0_i32, %arg1 : i32, i32
  }
  func.func @transform_4(%arg0: i32, %arg1: i32, %arg2: i32) -> (i32, i32) {
    %c0_i32 = arith.constant 0 : i32
    return %arg0, %arg1 : i32, i32
  }
}

module attributes {stable_mosaic.version = 11 : i64} {
  func.func @kernel(%arg0: i32, %arg1: i32, %arg2: i32, %arg3: memref<32x16xbf16, #tpu.memory_space<vmem>>, %arg4: memref<16x128xbf16, #tpu.memory_space<vmem>>, %arg5: memref<1x128xf32, #tpu.memory_space<vmem>>, %arg6: memref<1x128xf32, #tpu.memory_space<vmem>>, %arg7: memref<32x128xf32, #tpu.memory_space<vmem>>, %arg8: memref<32x128xf32, #tpu.memory_space<vmem>>, %arg9: memref<32x128xf32, #tpu.memory_space<vmem>>) attributes {dimension_semantics = [#tpu.dimension_semantics<parallel>, #tpu.dimension_semantics<parallel>, #tpu.dimension_semantics<arbitrary>], iteration_bounds = array<i64: 1, 1, 1>, scalar_prefetch = 0 : i64, scratch_operands = 1 : i64, tpu.core_type = #tpu.core_type<tc>, window_params = [{transform_indices = @transform_0, window_bounds = array<i64: 32, 16>}, {transform_indices = @transform_1, window_bounds = array<i64: 16, 128>}, {transform_indices = @transform_2, window_bounds = array<i64: 1, 128>}, {transform_indices = @transform_3, window_bounds = array<i64: 1, 128>}, {transform_indices = @transform_4, window_bounds = array<i64: 32, 128>}, {transform_indices = @transform_5, window_bounds = array<i64: 32, 128>}]} {
    %c0_i32 = arith.constant 0 : i32
    %0 = arith.cmpi eq, %arg2, %c0_i32 : i32
    %1 = arith.extui %0 : i1 to i32
    %c0_i32_0 = arith.constant 0 : i32
    %2 = arith.cmpi ne, %1, %c0_i32_0 : i32
    scf.if %2 {
      %cst_10 = arith.constant 0.000000e+00 : f32
      %12 = vector.broadcast %cst_10 : f32 to vector<32x128xf32>
      %c0_11 = arith.constant 0 : index
      %c0_12 = arith.constant 0 : index
      %13 = vector.load %arg9[%c0_11, %c0_12] : memref<32x128xf32, #tpu.memory_space<vmem>>, vector<32x128xf32>
      tpu.vector_store %arg9[%c0_11, %c0_12], %12 {strides = array<i32>} : memref<32x128xf32, #tpu.memory_space<vmem>>, vector<32x128xf32>,
    } else {
    }
    %c0 = arith.constant 0 : index
    %c0_1 = arith.constant 0 : index
    %3 = vector.load %arg9[%c0, %c0_1] : memref<32x128xf32, #tpu.memory_space<vmem>>, vector<32x128xf32>
    %c0_2 = arith.constant 0 : index
    %c0_3 = arith.constant 0 : index
    %4 = vector.load %arg3[%c0_2, %c0_3] : memref<32x16xbf16, #tpu.memory_space<vmem>>, vector<32x16xbf16>
    %c0_4 = arith.constant 0 : index
    %c0_5 = arith.constant 0 : index
    %5 = vector.load %arg4[%c0_4, %c0_5] : memref<16x128xbf16, #tpu.memory_space<vmem>>, vector<16x128xbf16>
    %cst = arith.constant dense<0.000000e+00> : vector<32x128xf32>
    %6 = tpu.matmul %4, %5, %cst {dimension_numbers = #tpu.dot_dimension_numbers<[1], [0], [0], [1], [0, 0, 1, 1], [], []>} : vector<32x16xbf16>, vector<16x128xbf16>, vector<32x128xf32> -> vector<32x128xf32>
    %7 = arith.addf %3, %6 : vector<32x128xf32>
    %c0_6 = arith.constant 0 : index
    %c0_7 = arith.constant 0 : index
    %8 = vector.load %arg9[%c0_6, %c0_7] : memref<32x128xf32, #tpu.memory_space<vmem>>, vector<32x128xf32>
    tpu.vector_store %arg9[%c0_6, %c0_7], %7 {strides = array<i32>} : memref<32x128xf32, #tpu.memory_space<vmem>>, vector<32x128xf32>,
    %c0_i32_8 = arith.constant 0 : i32
    %9 = arith.cmpi eq, %arg2, %c0_i32_8 : i32
    %10 = arith.extui %9 : i1 to i32
    %c0_i32_9 = arith.constant 0 : i32
    %11 = arith.cmpi ne, %10, %c0_i32_9 : i32
    scf.if %11 {
      %c0_10 = arith.constant 0 : index
      %c0_11 = arith.constant 0 : index
      %12 = vector.load %arg9[%c0_10, %c0_11] : memref<32x128xf32, #tpu.memory_space<vmem>>, vector<32x128xf32>
      %c0_12 = arith.constant 0 : index
      %c0_13 = arith.constant 0 : index
      %13 = vector.load %arg5[%c0_12, %c0_13] : memref<1x128xf32, #tpu.memory_space<vmem>>, vector<1x128xf32>
      %14 = vector.broadcast %13 : vector<1x128xf32> to vector<32x128xf32>
      %15 = arith.mulf %12, %14 : vector<32x128xf32>
      %c0_14 = arith.constant 0 : index
      %c0_15 = arith.constant 0 : index
      %16 = vector.load %arg6[%c0_14, %c0_15] : memref<1x128xf32, #tpu.memory_space<vmem>>, vector<1x128xf32>
      %17 = vector.broadcast %16 : vector<1x128xf32> to vector<32x128xf32>
      %18 = arith.addf %15, %17 : vector<32x128xf32>
      %c0_16 = arith.constant 0 : index
      %c0_17 = arith.constant 0 : index
      %19 = vector.load %arg7[%c0_16, %c0_17] : memref<32x128xf32, #tpu.memory_space<vmem>>, vector<32x128xf32>
      %20 = arith.addf %18, %19 : vector<32x128xf32>
      %cst_18 = arith.constant 0.000000e+00 : f32
      %21 = vector.broadcast %cst_18 : f32 to vector<32x128xf32>
      %22 = arith.maximumf %20, %21 : vector<32x128xf32>
      %c0_19 = arith.constant 0 : index
      %c0_20 = arith.constant 0 : index
      %23 = vector.load %arg8[%c0_19, %c0_20] : memref<32x128xf32, #tpu.memory_space<vmem>>, vector<32x128xf32>
      tpu.vector_store %arg8[%c0_19, %c0_20], %22 {strides = array<i32>} : memref<32x128xf32, #tpu.memory_space<vmem>>, vector<32x128xf32>,
    } else {
    }
    return
  }
  func.func @transform_0(%arg0: i32, %arg1: i32, %arg2: i32) -> (i32, i32) {
    %c0_i32 = arith.constant 0 : i32
    return %arg0, %arg2 : i32, i32
  }
  func.func @transform_1(%arg0: i32, %arg1: i32, %arg2: i32) -> (i32, i32) {
    %c0_i32 = arith.constant 0 : i32
    return %arg2, %arg1 : i32, i32
  }
  func.func @transform_2(%arg0: i32, %arg1: i32, %arg2: i32) -> (i32, i32) {
    %c0_i32 = arith.constant 0 : i32
    %c0_i32_0 = arith.constant 0 : i32
    return %c0_i32, %arg1 : i32, i32
  }
  func.func @transform_3(%arg0: i32, %arg1: i32, %arg2: i32) -> (i32, i32) {
    %c0_i32 = arith.constant 0 : i32
    %c0_i32_0 = arith.constant 0 : i32
    return %c0_i32, %arg1 : i32, i32
  }
  func.func @transform_4(%arg0: i32, %arg1: i32, %arg2: i32) -> (i32, i32) {
    %c0_i32 = arith.constant 0 : i32
    return %arg0, %arg1 : i32, i32
  }
  func.func @transform_5(%arg0: i32, %arg1: i32, %arg2: i32) -> (i32, i32) {
    %c0_i32 = arith.constant 0 : i32
    return %arg0, %arg1 : i32, i32
  }
}

module attributes {stable_mosaic.version = 11 : i64} {
  func.func @kernel(%arg0: i32, %arg1: i32, %arg2: i32, %arg3: memref<32x16xbf16, #tpu.memory_space<vmem>>, %arg4: memref<16x128xbf16, #tpu.memory_space<vmem>>, %arg5: memref<1x128xf32, #tpu.memory_space<vmem>>, %arg6: memref<1x128xf32, #tpu.memory_space<vmem>>, %arg7: memref<32x128xf32, #tpu.memory_space<vmem>>, %arg8: memref<32x128xf32, #tpu.memory_space<vmem>>) attributes {dimension_semantics = [#tpu.dimension_semantics<parallel>, #tpu.dimension_semantics<parallel>, #tpu.dimension_semantics<arbitrary>], iteration_bounds = array<i64: 1, 1, 1>, scalar_prefetch = 0 : i64, scratch_operands = 1 : i64, tpu.core_type = #tpu.core_type<tc>, window_params = [{transform_indices = @transform_0, window_bounds = array<i64: 32, 16>}, {transform_indices = @transform_1, window_bounds = array<i64: 16, 128>}, {transform_indices = @transform_2, window_bounds = array<i64: 1, 128>}, {transform_indices = @transform_3, window_bounds = array<i64: 1, 128>}, {transform_indices = @transform_4, window_bounds = array<i64: 32, 128>}]} {
    %c0_i32 = arith.constant 0 : i32
    %0 = arith.cmpi eq, %arg2, %c0_i32 : i32
    %1 = arith.extui %0 : i1 to i32
    %c0_i32_0 = arith.constant 0 : i32
    %2 = arith.cmpi ne, %1, %c0_i32_0 : i32
    scf.if %2 {
      %cst_10 = arith.constant 0.000000e+00 : f32
      %12 = vector.broadcast %cst_10 : f32 to vector<32x128xf32>
      %c0_11 = arith.constant 0 : index
      %c0_12 = arith.constant 0 : index
      %13 = vector.load %arg8[%c0_11, %c0_12] : memref<32x128xf32, #tpu.memory_space<vmem>>, vector<32x128xf32>
      tpu.vector_store %arg8[%c0_11, %c0_12], %12 {strides = array<i32>} : memref<32x128xf32, #tpu.memory_space<vmem>>, vector<32x128xf32>,
    } else {
    }
    %c0 = arith.constant 0 : index
    %c0_1 = arith.constant 0 : index
    %3 = vector.load %arg8[%c0, %c0_1] : memref<32x128xf32, #tpu.memory_space<vmem>>, vector<32x128xf32>
    %c0_2 = arith.constant 0 : index
    %c0_3 = arith.constant 0 : index
    %4 = vector.load %arg3[%c0_2, %c0_3] : memref<32x16xbf16, #tpu.memory_space<vmem>>, vector<32x16xbf16>
    %c0_4 = arith.constant 0 : index
    %c0_5 = arith.constant 0 : index
    %5 = vector.load %arg4[%c0_4, %c0_5] : memref<16x128xbf16, #tpu.memory_space<vmem>>, vector<16x128xbf16>
    %cst = arith.constant dense<0.000000e+00> : vector<32x128xf32>
    %6 = tpu.matmul %4, %5, %cst {dimension_numbers = #tpu.dot_dimension_numbers<[1], [0], [0], [1], [0, 0, 1, 1], [], []>} : vector<32x16xbf16>, vector<16x128xbf16>, vector<32x128xf32> -> vector<32x128xf32>
    %7 = arith.addf %3, %6 : vector<32x128xf32>
    %c0_6 = arith.constant 0 : index
    %c0_7 = arith.constant 0 : index
    %8 = vector.load %arg8[%c0_6, %c0_7] : memref<32x128xf32, #tpu.memory_space<vmem>>, vector<32x128xf32>
    tpu.vector_store %arg8[%c0_6, %c0_7], %7 {strides = array<i32>} : memref<32x128xf32, #tpu.memory_space<vmem>>, vector<32x128xf32>,
    %c0_i32_8 = arith.constant 0 : i32
    %9 = arith.cmpi eq, %arg2, %c0_i32_8 : i32
    %10 = arith.extui %9 : i1 to i32
    %c0_i32_9 = arith.constant 0 : i32
    %11 = arith.cmpi ne, %10, %c0_i32_9 : i32
    scf.if %11 {
      %c0_10 = arith.constant 0 : index
      %c0_11 = arith.constant 0 : index
      %12 = vector.load %arg8[%c0_10, %c0_11] : memref<32x128xf32, #tpu.memory_space<vmem>>, vector<32x128xf32>
      %c0_12 = arith.constant 0 : index
      %c0_13 = arith.constant 0 : index
      %13 = vector.load %arg5[%c0_12, %c0_13] : memref<1x128xf32, #tpu.memory_space<vmem>>, vector<1x128xf32>
      %14 = vector.broadcast %13 : vector<1x128xf32> to vector<32x128xf32>
      %15 = arith.mulf %12, %14 : vector<32x128xf32>
      %c0_14 = arith.constant 0 : index
      %c0_15 = arith.constant 0 : index
      %16 = vector.load %arg6[%c0_14, %c0_15] : memref<1x128xf32, #tpu.memory_space<vmem>>, vector<1x128xf32>
      %17 = vector.broadcast %16 : vector<1x128xf32> to vector<32x128xf32>
      %18 = arith.addf %15, %17 : vector<32x128xf32>
      %c0_16 = arith.constant 0 : index
      %c0_17 = arith.constant 0 : index
      %19 = vector.load %arg7[%c0_16, %c0_17] : memref<32x128xf32, #tpu.memory_space<vmem>>, vector<32x128xf32>
      tpu.vector_store %arg7[%c0_16, %c0_17], %18 {strides = array<i32>} : memref<32x128xf32, #tpu.memory_space<vmem>>, vector<32x128xf32>,
    } else {
    }
    return
  }
  func.func @transform_0(%arg0: i32, %arg1: i32, %arg2: i32) -> (i32, i32) {
    %c0_i32 = arith.constant 0 : i32
    return %arg0, %arg2 : i32, i32
  }
  func.func @transform_1(%arg0: i32, %arg1: i32, %arg2: i32) -> (i32, i32) {
    %c0_i32 = arith.constant 0 : i32
    return %arg2, %arg1 : i32, i32
  }
  func.func @transform_2(%arg0: i32, %arg1: i32, %arg2: i32) -> (i32, i32) {
    %c0_i32 = arith.constant 0 : i32
    %c0_i32_0 = arith.constant 0 : i32
    return %c0_i32, %arg1 : i32, i32
  }
  func.func @transform_3(%arg0: i32, %arg1: i32, %arg2: i32) -> (i32, i32) {
    %c0_i32 = arith.constant 0 : i32
    %c0_i32_0 = arith.constant 0 : i32
    return %c0_i32, %arg1 : i32, i32
  }
  func.func @transform_4(%arg0: i32, %arg1: i32, %arg2: i32) -> (i32, i32) {
    %c0_i32 = arith.constant 0 : i32
    return %arg0, %arg1 : i32, i32
  }
}

module attributes {stable_mosaic.version = 11 : i64} {
  func.func @kernel(%arg0: i32, %arg1: i32, %arg2: i32, %arg3: memref<32x32xbf16, #tpu.memory_space<vmem>>, %arg4: memref<32x128xbf16, #tpu.memory_space<vmem>>, %arg5: memref<1x128xf32, #tpu.memory_space<vmem>>, %arg6: memref<1x128xf32, #tpu.memory_space<vmem>>, %arg7: memref<32x128xf32, #tpu.memory_space<vmem>>, %arg8: memref<32x128xf32, #tpu.memory_space<vmem>>) attributes {dimension_semantics = [#tpu.dimension_semantics<parallel>, #tpu.dimension_semantics<parallel>, #tpu.dimension_semantics<arbitrary>], iteration_bounds = array<i64: 1, 1, 1>, scalar_prefetch = 0 : i64, scratch_operands = 1 : i64, tpu.core_type = #tpu.core_type<tc>, window_params = [{transform_indices = @transform_0, window_bounds = array<i64: 32, 32>}, {transform_indices = @transform_1, window_bounds = array<i64: 32, 128>}, {transform_indices = @transform_2, window_bounds = array<i64: 1, 128>}, {transform_indices = @transform_3, window_bounds = array<i64: 1, 128>}, {transform_indices = @transform_4, window_bounds = array<i64: 32, 128>}]} {
    %c0_i32 = arith.constant 0 : i32
    %0 = arith.cmpi eq, %arg2, %c0_i32 : i32
    %1 = arith.extui %0 : i1 to i32
    %c0_i32_0 = arith.constant 0 : i32
    %2 = arith.cmpi ne, %1, %c0_i32_0 : i32
    scf.if %2 {
      %cst_10 = arith.constant 0.000000e+00 : f32
      %12 = vector.broadcast %cst_10 : f32 to vector<32x128xf32>
      %c0_11 = arith.constant 0 : index
      %c0_12 = arith.constant 0 : index
      %13 = vector.load %arg8[%c0_11, %c0_12] : memref<32x128xf32, #tpu.memory_space<vmem>>, vector<32x128xf32>
      tpu.vector_store %arg8[%c0_11, %c0_12], %12 {strides = array<i32>} : memref<32x128xf32, #tpu.memory_space<vmem>>, vector<32x128xf32>,
    } else {
    }
    %c0 = arith.constant 0 : index
    %c0_1 = arith.constant 0 : index
    %3 = vector.load %arg8[%c0, %c0_1] : memref<32x128xf32, #tpu.memory_space<vmem>>, vector<32x128xf32>
    %c0_2 = arith.constant 0 : index
    %c0_3 = arith.constant 0 : index
    %4 = vector.load %arg3[%c0_2, %c0_3] : memref<32x32xbf16, #tpu.memory_space<vmem>>, vector<32x32xbf16>
    %c0_4 = arith.constant 0 : index
    %c0_5 = arith.constant 0 : index
    %5 = vector.load %arg4[%c0_4, %c0_5] : memref<32x128xbf16, #tpu.memory_space<vmem>>, vector<32x128xbf16>
    %cst = arith.constant dense<0.000000e+00> : vector<32x128xf32>
    %6 = tpu.matmul %4, %5, %cst {dimension_numbers = #tpu.dot_dimension_numbers<[1], [0], [0], [1], [0, 0, 1, 1], [], []>} : vector<32x32xbf16>, vector<32x128xbf16>, vector<32x128xf32> -> vector<32x128xf32>
    %7 = arith.addf %3, %6 : vector<32x128xf32>
    %c0_6 = arith.constant 0 : index
    %c0_7 = arith.constant 0 : index
    %8 = vector.load %arg8[%c0_6, %c0_7] : memref<32x128xf32, #tpu.memory_space<vmem>>, vector<32x128xf32>
    tpu.vector_store %arg8[%c0_6, %c0_7], %7 {strides = array<i32>} : memref<32x128xf32, #tpu.memory_space<vmem>>, vector<32x128xf32>,
    %c0_i32_8 = arith.constant 0 : i32
    %9 = arith.cmpi eq, %arg2, %c0_i32_8 : i32
    %10 = arith.extui %9 : i1 to i32
    %c0_i32_9 = arith.constant 0 : i32
    %11 = arith.cmpi ne, %10, %c0_i32_9 : i32
    scf.if %11 {
      %c0_10 = arith.constant 0 : index
      %c0_11 = arith.constant 0 : index
      %12 = vector.load %arg8[%c0_10, %c0_11] : memref<32x128xf32, #tpu.memory_space<vmem>>, vector<32x128xf32>
      %c0_12 = arith.constant 0 : index
      %c0_13 = arith.constant 0 : index
      %13 = vector.load %arg5[%c0_12, %c0_13] : memref<1x128xf32, #tpu.memory_space<vmem>>, vector<1x128xf32>
      %14 = vector.broadcast %13 : vector<1x128xf32> to vector<32x128xf32>
      %15 = arith.mulf %12, %14 : vector<32x128xf32>
      %c0_14 = arith.constant 0 : index
      %c0_15 = arith.constant 0 : index
      %16 = vector.load %arg6[%c0_14, %c0_15] : memref<1x128xf32, #tpu.memory_space<vmem>>, vector<1x128xf32>
      %17 = vector.broadcast %16 : vector<1x128xf32> to vector<32x128xf32>
      %18 = arith.addf %15, %17 : vector<32x128xf32>
      %cst_16 = arith.constant 0.000000e+00 : f32
      %19 = vector.broadcast %cst_16 : f32 to vector<32x128xf32>
      %20 = arith.maximumf %18, %19 : vector<32x128xf32>
      %c0_17 = arith.constant 0 : index
      %c0_18 = arith.constant 0 : index
      %21 = vector.load %arg7[%c0_17, %c0_18] : memref<32x128xf32, #tpu.memory_space<vmem>>, vector<32x128xf32>
      tpu.vector_store %arg7[%c0_17, %c0_18], %20 {strides = array<i32>} : memref<32x128xf32, #tpu.memory_space<vmem>>, vector<32x128xf32>,
    } else {
    }
    return
  }
  func.func @transform_0(%arg0: i32, %arg1: i32, %arg2: i32) -> (i32, i32) {
    %c0_i32 = arith.constant 0 : i32
    return %arg0, %arg2 : i32, i32
  }
  func.func @transform_1(%arg0: i32, %arg1: i32, %arg2: i32) -> (i32, i32) {
    %c0_i32 = arith.constant 0 : i32
    return %arg2, %arg1 : i32, i32
  }
  func.func @transform_2(%arg0: i32, %arg1: i32, %arg2: i32) -> (i32, i32) {
    %c0_i32 = arith.constant 0 : i32
    %c0_i32_0 = arith.constant 0 : i32
    return %c0_i32, %arg1 : i32, i32
  }
  func.func @transform_3(%arg0: i32, %arg1: i32, %arg2: i32) -> (i32, i32) {
    %c0_i32 = arith.constant 0 : i32
    %c0_i32_0 = arith.constant 0 : i32
    return %c0_i32, %arg1 : i32, i32
  }
  func.func @transform_4(%arg0: i32, %arg1: i32, %arg2: i32) -> (i32, i32) {
    %c0_i32 = arith.constant 0 : i32
    return %arg0, %arg1 : i32, i32
  }
}

module attributes {stable_mosaic.version = 11 : i64} {
  func.func @kernel(%arg0: i32, %arg1: i32, %arg2: i32, %arg3: memref<16x144xbf16, #tpu.memory_space<vmem>>, %arg4: memref<144x128xbf16, #tpu.memory_space<vmem>>, %arg5: memref<1x128xf32, #tpu.memory_space<vmem>>, %arg6: memref<1x128xf32, #tpu.memory_space<vmem>>, %arg7: memref<16x128xf32, #tpu.memory_space<vmem>>, %arg8: memref<16x128xf32, #tpu.memory_space<vmem>>) attributes {dimension_semantics = [#tpu.dimension_semantics<parallel>, #tpu.dimension_semantics<parallel>, #tpu.dimension_semantics<arbitrary>], iteration_bounds = array<i64: 1, 1, 1>, scalar_prefetch = 0 : i64, scratch_operands = 1 : i64, tpu.core_type = #tpu.core_type<tc>, window_params = [{transform_indices = @transform_0, window_bounds = array<i64: 16, 144>}, {transform_indices = @transform_1, window_bounds = array<i64: 144, 128>}, {transform_indices = @transform_2, window_bounds = array<i64: 1, 128>}, {transform_indices = @transform_3, window_bounds = array<i64: 1, 128>}, {transform_indices = @transform_4, window_bounds = array<i64: 16, 128>}]} {
    %c0_i32 = arith.constant 0 : i32
    %0 = arith.cmpi eq, %arg2, %c0_i32 : i32
    %1 = arith.extui %0 : i1 to i32
    %c0_i32_0 = arith.constant 0 : i32
    %2 = arith.cmpi ne, %1, %c0_i32_0 : i32
    scf.if %2 {
      %cst_10 = arith.constant 0.000000e+00 : f32
      %12 = vector.broadcast %cst_10 : f32 to vector<16x128xf32>
      %c0_11 = arith.constant 0 : index
      %c0_12 = arith.constant 0 : index
      %13 = vector.load %arg8[%c0_11, %c0_12] : memref<16x128xf32, #tpu.memory_space<vmem>>, vector<16x128xf32>
      tpu.vector_store %arg8[%c0_11, %c0_12], %12 {strides = array<i32>} : memref<16x128xf32, #tpu.memory_space<vmem>>, vector<16x128xf32>,
    } else {
    }
    %c0 = arith.constant 0 : index
    %c0_1 = arith.constant 0 : index
    %3 = vector.load %arg8[%c0, %c0_1] : memref<16x128xf32, #tpu.memory_space<vmem>>, vector<16x128xf32>
    %c0_2 = arith.constant 0 : index
    %c0_3 = arith.constant 0 : index
    %4 = vector.load %arg3[%c0_2, %c0_3] : memref<16x144xbf16, #tpu.memory_space<vmem>>, vector<16x144xbf16>
    %c0_4 = arith.constant 0 : index
    %c0_5 = arith.constant 0 : index
    %5 = vector.load %arg4[%c0_4, %c0_5] : memref<144x128xbf16, #tpu.memory_space<vmem>>, vector<144x128xbf16>
    %cst = arith.constant dense<0.000000e+00> : vector<16x128xf32>
    %6 = tpu.matmul %4, %5, %cst {dimension_numbers = #tpu.dot_dimension_numbers<[1], [0], [0], [1], [0, 0, 1, 1], [], []>} : vector<16x144xbf16>, vector<144x128xbf16>, vector<16x128xf32> -> vector<16x128xf32>
    %7 = arith.addf %3, %6 : vector<16x128xf32>
    %c0_6 = arith.constant 0 : index
    %c0_7 = arith.constant 0 : index
    %8 = vector.load %arg8[%c0_6, %c0_7] : memref<16x128xf32, #tpu.memory_space<vmem>>, vector<16x128xf32>
    tpu.vector_store %arg8[%c0_6, %c0_7], %7 {strides = array<i32>} : memref<16x128xf32, #tpu.memory_space<vmem>>, vector<16x128xf32>,
    %c0_i32_8 = arith.constant 0 : i32
    %9 = arith.cmpi eq, %arg2, %c0_i32_8 : i32
    %10 = arith.extui %9 : i1 to i32
    %c0_i32_9 = arith.constant 0 : i32
    %11 = arith.cmpi ne, %10, %c0_i32_9 : i32
    scf.if %11 {
      %c0_10 = arith.constant 0 : index
      %c0_11 = arith.constant 0 : index
      %12 = vector.load %arg8[%c0_10, %c0_11] : memref<16x128xf32, #tpu.memory_space<vmem>>, vector<16x128xf32>
      %c0_12 = arith.constant 0 : index
      %c0_13 = arith.constant 0 : index
      %13 = vector.load %arg5[%c0_12, %c0_13] : memref<1x128xf32, #tpu.memory_space<vmem>>, vector<1x128xf32>
      %14 = vector.broadcast %13 : vector<1x128xf32> to vector<16x128xf32>
      %15 = arith.mulf %12, %14 : vector<16x128xf32>
      %c0_14 = arith.constant 0 : index
      %c0_15 = arith.constant 0 : index
      %16 = vector.load %arg6[%c0_14, %c0_15] : memref<1x128xf32, #tpu.memory_space<vmem>>, vector<1x128xf32>
      %17 = vector.broadcast %16 : vector<1x128xf32> to vector<16x128xf32>
      %18 = arith.addf %15, %17 : vector<16x128xf32>
      %cst_16 = arith.constant 0.000000e+00 : f32
      %19 = vector.broadcast %cst_16 : f32 to vector<16x128xf32>
      %20 = arith.maximumf %18, %19 : vector<16x128xf32>
      %c0_17 = arith.constant 0 : index
      %c0_18 = arith.constant 0 : index
      %21 = vector.load %arg7[%c0_17, %c0_18] : memref<16x128xf32, #tpu.memory_space<vmem>>, vector<16x128xf32>
      tpu.vector_store %arg7[%c0_17, %c0_18], %20 {strides = array<i32>} : memref<16x128xf32, #tpu.memory_space<vmem>>, vector<16x128xf32>,
    } else {
    }
    return
  }
  func.func @transform_0(%arg0: i32, %arg1: i32, %arg2: i32) -> (i32, i32) {
    %c0_i32 = arith.constant 0 : i32
    return %arg0, %arg2 : i32, i32
  }
  func.func @transform_1(%arg0: i32, %arg1: i32, %arg2: i32) -> (i32, i32) {
    %c0_i32 = arith.constant 0 : i32
    return %arg2, %arg1 : i32, i32
  }
  func.func @transform_2(%arg0: i32, %arg1: i32, %arg2: i32) -> (i32, i32) {
    %c0_i32 = arith.constant 0 : i32
    %c0_i32_0 = arith.constant 0 : i32
    return %c0_i32, %arg1 : i32, i32
  }
  func.func @transform_3(%arg0: i32, %arg1: i32, %arg2: i32) -> (i32, i32) {
    %c0_i32 = arith.constant 0 : i32
    %c0_i32_0 = arith.constant 0 : i32
    return %c0_i32, %arg1 : i32, i32
  }
  func.func @transform_4(%arg0: i32, %arg1: i32, %arg2: i32) -> (i32, i32) {
    %c0_i32 = arith.constant 0 : i32
    return %arg0, %arg1 : i32, i32
  }
}

module attributes {stable_mosaic.version = 11 : i64} {
  func.func @kernel(%arg0: i32, %arg1: i32, %arg2: i32, %arg3: memref<16x32xbf16, #tpu.memory_space<vmem>>, %arg4: memref<32x128xbf16, #tpu.memory_space<vmem>>, %arg5: memref<1x128xf32, #tpu.memory_space<vmem>>, %arg6: memref<1x128xf32, #tpu.memory_space<vmem>>, %arg7: memref<16x128xf32, #tpu.memory_space<vmem>>, %arg8: memref<16x128xf32, #tpu.memory_space<vmem>>) attributes {dimension_semantics = [#tpu.dimension_semantics<parallel>, #tpu.dimension_semantics<parallel>, #tpu.dimension_semantics<arbitrary>], iteration_bounds = array<i64: 1, 1, 1>, scalar_prefetch = 0 : i64, scratch_operands = 1 : i64, tpu.core_type = #tpu.core_type<tc>, window_params = [{transform_indices = @transform_0, window_bounds = array<i64: 16, 32>}, {transform_indices = @transform_1, window_bounds = array<i64: 32, 128>}, {transform_indices = @transform_2, window_bounds = array<i64: 1, 128>}, {transform_indices = @transform_3, window_bounds = array<i64: 1, 128>}, {transform_indices = @transform_4, window_bounds = array<i64: 16, 128>}]} {
    %c0_i32 = arith.constant 0 : i32
    %0 = arith.cmpi eq, %arg2, %c0_i32 : i32
    %1 = arith.extui %0 : i1 to i32
    %c0_i32_0 = arith.constant 0 : i32
    %2 = arith.cmpi ne, %1, %c0_i32_0 : i32
    scf.if %2 {
      %cst_10 = arith.constant 0.000000e+00 : f32
      %12 = vector.broadcast %cst_10 : f32 to vector<16x128xf32>
      %c0_11 = arith.constant 0 : index
      %c0_12 = arith.constant 0 : index
      %13 = vector.load %arg8[%c0_11, %c0_12] : memref<16x128xf32, #tpu.memory_space<vmem>>, vector<16x128xf32>
      tpu.vector_store %arg8[%c0_11, %c0_12], %12 {strides = array<i32>} : memref<16x128xf32, #tpu.memory_space<vmem>>, vector<16x128xf32>,
    } else {
    }
    %c0 = arith.constant 0 : index
    %c0_1 = arith.constant 0 : index
    %3 = vector.load %arg8[%c0, %c0_1] : memref<16x128xf32, #tpu.memory_space<vmem>>, vector<16x128xf32>
    %c0_2 = arith.constant 0 : index
    %c0_3 = arith.constant 0 : index
    %4 = vector.load %arg3[%c0_2, %c0_3] : memref<16x32xbf16, #tpu.memory_space<vmem>>, vector<16x32xbf16>
    %c0_4 = arith.constant 0 : index
    %c0_5 = arith.constant 0 : index
    %5 = vector.load %arg4[%c0_4, %c0_5] : memref<32x128xbf16, #tpu.memory_space<vmem>>, vector<32x128xbf16>
    %cst = arith.constant dense<0.000000e+00> : vector<16x128xf32>
    %6 = tpu.matmul %4, %5, %cst {dimension_numbers = #tpu.dot_dimension_numbers<[1], [0], [0], [1], [0, 0, 1, 1], [], []>} : vector<16x32xbf16>, vector<32x128xbf16>, vector<16x128xf32> -> vector<16x128xf32>
    %7 = arith.addf %3, %6 : vector<16x128xf32>
    %c0_6 = arith.constant 0 : index
    %c0_7 = arith.constant 0 : index
    %8 = vector.load %arg8[%c0_6, %c0_7] : memref<16x128xf32, #tpu.memory_space<vmem>>, vector<16x128xf32>
    tpu.vector_store %arg8[%c0_6, %c0_7], %7 {strides = array<i32>} : memref<16x128xf32, #tpu.memory_space<vmem>>, vector<16x128xf32>,
    %c0_i32_8 = arith.constant 0 : i32
    %9 = arith.cmpi eq, %arg2, %c0_i32_8 : i32
    %10 = arith.extui %9 : i1 to i32
    %c0_i32_9 = arith.constant 0 : i32
    %11 = arith.cmpi ne, %10, %c0_i32_9 : i32
    scf.if %11 {
      %c0_10 = arith.constant 0 : index
      %c0_11 = arith.constant 0 : index
      %12 = vector.load %arg8[%c0_10, %c0_11] : memref<16x128xf32, #tpu.memory_space<vmem>>, vector<16x128xf32>
      %c0_12 = arith.constant 0 : index
      %c0_13 = arith.constant 0 : index
      %13 = vector.load %arg5[%c0_12, %c0_13] : memref<1x128xf32, #tpu.memory_space<vmem>>, vector<1x128xf32>
      %14 = vector.broadcast %13 : vector<1x128xf32> to vector<16x128xf32>
      %15 = arith.mulf %12, %14 : vector<16x128xf32>
      %c0_14 = arith.constant 0 : index
      %c0_15 = arith.constant 0 : index
      %16 = vector.load %arg6[%c0_14, %c0_15] : memref<1x128xf32, #tpu.memory_space<vmem>>, vector<1x128xf32>
      %17 = vector.broadcast %16 : vector<1x128xf32> to vector<16x128xf32>
      %18 = arith.addf %15, %17 : vector<16x128xf32>
      %c0_16 = arith.constant 0 : index
      %c0_17 = arith.constant 0 : index
      %19 = vector.load %arg7[%c0_16, %c0_17] : memref<16x128xf32, #tpu.memory_space<vmem>>, vector<16x128xf32>
      tpu.vector_store %arg7[%c0_16, %c0_17], %18 {strides = array<i32>} : memref<16x128xf32, #tpu.memory_space<vmem>>, vector<16x128xf32>,
    } else {
    }
    return
  }
  func.func @transform_0(%arg0: i32, %arg1: i32, %arg2: i32) -> (i32, i32) {
    %c0_i32 = arith.constant 0 : i32
    return %arg0, %arg2 : i32, i32
  }
  func.func @transform_1(%arg0: i32, %arg1: i32, %arg2: i32) -> (i32, i32) {
    %c0_i32 = arith.constant 0 : i32
    return %arg2, %arg1 : i32, i32
  }
  func.func @transform_2(%arg0: i32, %arg1: i32, %arg2: i32) -> (i32, i32) {
    %c0_i32 = arith.constant 0 : i32
    %c0_i32_0 = arith.constant 0 : i32
    return %c0_i32, %arg1 : i32, i32
  }
  func.func @transform_3(%arg0: i32, %arg1: i32, %arg2: i32) -> (i32, i32) {
    %c0_i32 = arith.constant 0 : i32
    %c0_i32_0 = arith.constant 0 : i32
    return %c0_i32, %arg1 : i32, i32
  }
  func.func @transform_4(%arg0: i32, %arg1: i32, %arg2: i32) -> (i32, i32) {
    %c0_i32 = arith.constant 0 : i32
    return %arg0, %arg1 : i32, i32
  }
}

module attributes {stable_mosaic.version = 11 : i64} {
  func.func @kernel(%arg0: i32, %arg1: i32, %arg2: i32, %arg3: memref<16x16xbf16, #tpu.memory_space<vmem>>, %arg4: memref<16x128xbf16, #tpu.memory_space<vmem>>, %arg5: memref<1x128xf32, #tpu.memory_space<vmem>>, %arg6: memref<1x128xf32, #tpu.memory_space<vmem>>, %arg7: memref<16x128xf32, #tpu.memory_space<vmem>>, %arg8: memref<16x128xf32, #tpu.memory_space<vmem>>, %arg9: memref<16x128xf32, #tpu.memory_space<vmem>>) attributes {dimension_semantics = [#tpu.dimension_semantics<parallel>, #tpu.dimension_semantics<parallel>, #tpu.dimension_semantics<arbitrary>], iteration_bounds = array<i64: 1, 1, 1>, scalar_prefetch = 0 : i64, scratch_operands = 1 : i64, tpu.core_type = #tpu.core_type<tc>, window_params = [{transform_indices = @transform_0, window_bounds = array<i64: 16, 16>}, {transform_indices = @transform_1, window_bounds = array<i64: 16, 128>}, {transform_indices = @transform_2, window_bounds = array<i64: 1, 128>}, {transform_indices = @transform_3, window_bounds = array<i64: 1, 128>}, {transform_indices = @transform_4, window_bounds = array<i64: 16, 128>}, {transform_indices = @transform_5, window_bounds = array<i64: 16, 128>}]} {
    %c0_i32 = arith.constant 0 : i32
    %0 = arith.cmpi eq, %arg2, %c0_i32 : i32
    %1 = arith.extui %0 : i1 to i32
    %c0_i32_0 = arith.constant 0 : i32
    %2 = arith.cmpi ne, %1, %c0_i32_0 : i32
    scf.if %2 {
      %cst_10 = arith.constant 0.000000e+00 : f32
      %12 = vector.broadcast %cst_10 : f32 to vector<16x128xf32>
      %c0_11 = arith.constant 0 : index
      %c0_12 = arith.constant 0 : index
      %13 = vector.load %arg9[%c0_11, %c0_12] : memref<16x128xf32, #tpu.memory_space<vmem>>, vector<16x128xf32>
      tpu.vector_store %arg9[%c0_11, %c0_12], %12 {strides = array<i32>} : memref<16x128xf32, #tpu.memory_space<vmem>>, vector<16x128xf32>,
    } else {
    }
    %c0 = arith.constant 0 : index
    %c0_1 = arith.constant 0 : index
    %3 = vector.load %arg9[%c0, %c0_1] : memref<16x128xf32, #tpu.memory_space<vmem>>, vector<16x128xf32>
    %c0_2 = arith.constant 0 : index
    %c0_3 = arith.constant 0 : index
    %4 = vector.load %arg3[%c0_2, %c0_3] : memref<16x16xbf16, #tpu.memory_space<vmem>>, vector<16x16xbf16>
    %c0_4 = arith.constant 0 : index
    %c0_5 = arith.constant 0 : index
    %5 = vector.load %arg4[%c0_4, %c0_5] : memref<16x128xbf16, #tpu.memory_space<vmem>>, vector<16x128xbf16>
    %cst = arith.constant dense<0.000000e+00> : vector<16x128xf32>
    %6 = tpu.matmul %4, %5, %cst {dimension_numbers = #tpu.dot_dimension_numbers<[1], [0], [0], [1], [0, 0, 1, 1], [], []>} : vector<16x16xbf16>, vector<16x128xbf16>, vector<16x128xf32> -> vector<16x128xf32>
    %7 = arith.addf %3, %6 : vector<16x128xf32>
    %c0_6 = arith.constant 0 : index
    %c0_7 = arith.constant 0 : index
    %8 = vector.load %arg9[%c0_6, %c0_7] : memref<16x128xf32, #tpu.memory_space<vmem>>, vector<16x128xf32>
    tpu.vector_store %arg9[%c0_6, %c0_7], %7 {strides = array<i32>} : memref<16x128xf32, #tpu.memory_space<vmem>>, vector<16x128xf32>,
    %c0_i32_8 = arith.constant 0 : i32
    %9 = arith.cmpi eq, %arg2, %c0_i32_8 : i32
    %10 = arith.extui %9 : i1 to i32
    %c0_i32_9 = arith.constant 0 : i32
    %11 = arith.cmpi ne, %10, %c0_i32_9 : i32
    scf.if %11 {
      %c0_10 = arith.constant 0 : index
      %c0_11 = arith.constant 0 : index
      %12 = vector.load %arg9[%c0_10, %c0_11] : memref<16x128xf32, #tpu.memory_space<vmem>>, vector<16x128xf32>
      %c0_12 = arith.constant 0 : index
      %c0_13 = arith.constant 0 : index
      %13 = vector.load %arg5[%c0_12, %c0_13] : memref<1x128xf32, #tpu.memory_space<vmem>>, vector<1x128xf32>
      %14 = vector.broadcast %13 : vector<1x128xf32> to vector<16x128xf32>
      %15 = arith.mulf %12, %14 : vector<16x128xf32>
      %c0_14 = arith.constant 0 : index
      %c0_15 = arith.constant 0 : index
      %16 = vector.load %arg6[%c0_14, %c0_15] : memref<1x128xf32, #tpu.memory_space<vmem>>, vector<1x128xf32>
      %17 = vector.broadcast %16 : vector<1x128xf32> to vector<16x128xf32>
      %18 = arith.addf %15, %17 : vector<16x128xf32>
      %c0_16 = arith.constant 0 : index
      %c0_17 = arith.constant 0 : index
      %19 = vector.load %arg7[%c0_16, %c0_17] : memref<16x128xf32, #tpu.memory_space<vmem>>, vector<16x128xf32>
      %20 = arith.addf %18, %19 : vector<16x128xf32>
      %cst_18 = arith.constant 0.000000e+00 : f32
      %21 = vector.broadcast %cst_18 : f32 to vector<16x128xf32>
      %22 = arith.maximumf %20, %21 : vector<16x128xf32>
      %c0_19 = arith.constant 0 : index
      %c0_20 = arith.constant 0 : index
      %23 = vector.load %arg8[%c0_19, %c0_20] : memref<16x128xf32, #tpu.memory_space<vmem>>, vector<16x128xf32>
      tpu.vector_store %arg8[%c0_19, %c0_20], %22 {strides = array<i32>} : memref<16x128xf32, #tpu.memory_space<vmem>>, vector<16x128xf32>,
    } else {
    }
    return
  }
  func.func @transform_0(%arg0: i32, %arg1: i32, %arg2: i32) -> (i32, i32) {
    %c0_i32 = arith.constant 0 : i32
    return %arg0, %arg2 : i32, i32
  }
  func.func @transform_1(%arg0: i32, %arg1: i32, %arg2: i32) -> (i32, i32) {
    %c0_i32 = arith.constant 0 : i32
    return %arg2, %arg1 : i32, i32
  }
  func.func @transform_2(%arg0: i32, %arg1: i32, %arg2: i32) -> (i32, i32) {
    %c0_i32 = arith.constant 0 : i32
    %c0_i32_0 = arith.constant 0 : i32
    return %c0_i32, %arg1 : i32, i32
  }
  func.func @transform_3(%arg0: i32, %arg1: i32, %arg2: i32) -> (i32, i32) {
    %c0_i32 = arith.constant 0 : i32
    %c0_i32_0 = arith.constant 0 : i32
    return %c0_i32, %arg1 : i32, i32
  }
  func.func @transform_4(%arg0: i32, %arg1: i32, %arg2: i32) -> (i32, i32) {
    %c0_i32 = arith.constant 0 : i32
    return %arg0, %arg1 : i32, i32
  }
  func.func @transform_5(%arg0: i32, %arg1: i32, %arg2: i32) -> (i32, i32) {
    %c0_i32 = arith.constant 0 : i32
    return %arg0, %arg1 : i32, i32
  }
}

module attributes {stable_mosaic.version = 11 : i64} {
  func.func @kernel(%arg0: i32, %arg1: i32, %arg2: i32, %arg3: memref<16x64xbf16, #tpu.memory_space<vmem>>, %arg4: memref<64x128xbf16, #tpu.memory_space<vmem>>, %arg5: memref<1x128xf32, #tpu.memory_space<vmem>>, %arg6: memref<1x128xf32, #tpu.memory_space<vmem>>, %arg7: memref<16x128xf32, #tpu.memory_space<vmem>>, %arg8: memref<16x128xf32, #tpu.memory_space<vmem>>) attributes {dimension_semantics = [#tpu.dimension_semantics<parallel>, #tpu.dimension_semantics<parallel>, #tpu.dimension_semantics<arbitrary>], iteration_bounds = array<i64: 1, 1, 1>, scalar_prefetch = 0 : i64, scratch_operands = 1 : i64, tpu.core_type = #tpu.core_type<tc>, window_params = [{transform_indices = @transform_0, window_bounds = array<i64: 16, 64>}, {transform_indices = @transform_1, window_bounds = array<i64: 64, 128>}, {transform_indices = @transform_2, window_bounds = array<i64: 1, 128>}, {transform_indices = @transform_3, window_bounds = array<i64: 1, 128>}, {transform_indices = @transform_4, window_bounds = array<i64: 16, 128>}]} {
    %c0_i32 = arith.constant 0 : i32
    %0 = arith.cmpi eq, %arg2, %c0_i32 : i32
    %1 = arith.extui %0 : i1 to i32
    %c0_i32_0 = arith.constant 0 : i32
    %2 = arith.cmpi ne, %1, %c0_i32_0 : i32
    scf.if %2 {
      %cst_10 = arith.constant 0.000000e+00 : f32
      %12 = vector.broadcast %cst_10 : f32 to vector<16x128xf32>
      %c0_11 = arith.constant 0 : index
      %c0_12 = arith.constant 0 : index
      %13 = vector.load %arg8[%c0_11, %c0_12] : memref<16x128xf32, #tpu.memory_space<vmem>>, vector<16x128xf32>
      tpu.vector_store %arg8[%c0_11, %c0_12], %12 {strides = array<i32>} : memref<16x128xf32, #tpu.memory_space<vmem>>, vector<16x128xf32>,
    } else {
    }
    %c0 = arith.constant 0 : index
    %c0_1 = arith.constant 0 : index
    %3 = vector.load %arg8[%c0, %c0_1] : memref<16x128xf32, #tpu.memory_space<vmem>>, vector<16x128xf32>
    %c0_2 = arith.constant 0 : index
    %c0_3 = arith.constant 0 : index
    %4 = vector.load %arg3[%c0_2, %c0_3] : memref<16x64xbf16, #tpu.memory_space<vmem>>, vector<16x64xbf16>
    %c0_4 = arith.constant 0 : index
    %c0_5 = arith.constant 0 : index
    %5 = vector.load %arg4[%c0_4, %c0_5] : memref<64x128xbf16, #tpu.memory_space<vmem>>, vector<64x128xbf16>
    %cst = arith.constant dense<0.000000e+00> : vector<16x128xf32>
    %6 = tpu.matmul %4, %5, %cst {dimension_numbers = #tpu.dot_dimension_numbers<[1], [0], [0], [1], [0, 0, 1, 1], [], []>} : vector<16x64xbf16>, vector<64x128xbf16>, vector<16x128xf32> -> vector<16x128xf32>
    %7 = arith.addf %3, %6 : vector<16x128xf32>
    %c0_6 = arith.constant 0 : index
    %c0_7 = arith.constant 0 : index
    %8 = vector.load %arg8[%c0_6, %c0_7] : memref<16x128xf32, #tpu.memory_space<vmem>>, vector<16x128xf32>
    tpu.vector_store %arg8[%c0_6, %c0_7], %7 {strides = array<i32>} : memref<16x128xf32, #tpu.memory_space<vmem>>, vector<16x128xf32>,
    %c0_i32_8 = arith.constant 0 : i32
    %9 = arith.cmpi eq, %arg2, %c0_i32_8 : i32
    %10 = arith.extui %9 : i1 to i32
    %c0_i32_9 = arith.constant 0 : i32
    %11 = arith.cmpi ne, %10, %c0_i32_9 : i32
    scf.if %11 {
      %c0_10 = arith.constant 0 : index
      %c0_11 = arith.constant 0 : index
      %12 = vector.load %arg8[%c0_10, %c0_11] : memref<16x128xf32, #tpu.memory_space<vmem>>, vector<16x128xf32>
      %c0_12 = arith.constant 0 : index
      %c0_13 = arith.constant 0 : index
      %13 = vector.load %arg5[%c0_12, %c0_13] : memref<1x128xf32, #tpu.memory_space<vmem>>, vector<1x128xf32>
      %14 = vector.broadcast %13 : vector<1x128xf32> to vector<16x128xf32>
      %15 = arith.mulf %12, %14 : vector<16x128xf32>
      %c0_14 = arith.constant 0 : index
      %c0_15 = arith.constant 0 : index
      %16 = vector.load %arg6[%c0_14, %c0_15] : memref<1x128xf32, #tpu.memory_space<vmem>>, vector<1x128xf32>
      %17 = vector.broadcast %16 : vector<1x128xf32> to vector<16x128xf32>
      %18 = arith.addf %15, %17 : vector<16x128xf32>
      %cst_16 = arith.constant 0.000000e+00 : f32
      %19 = vector.broadcast %cst_16 : f32 to vector<16x128xf32>
      %20 = arith.maximumf %18, %19 : vector<16x128xf32>
      %c0_17 = arith.constant 0 : index
      %c0_18 = arith.constant 0 : index
      %21 = vector.load %arg7[%c0_17, %c0_18] : memref<16x128xf32, #tpu.memory_space<vmem>>, vector<16x128xf32>
      tpu.vector_store %arg7[%c0_17, %c0_18], %20 {strides = array<i32>} : memref<16x128xf32, #tpu.memory_space<vmem>>, vector<16x128xf32>,
    } else {
    }
    return
  }
  func.func @transform_0(%arg0: i32, %arg1: i32, %arg2: i32) -> (i32, i32) {
    %c0_i32 = arith.constant 0 : i32
    return %arg0, %arg2 : i32, i32
  }
  func.func @transform_1(%arg0: i32, %arg1: i32, %arg2: i32) -> (i32, i32) {
    %c0_i32 = arith.constant 0 : i32
    return %arg2, %arg1 : i32, i32
  }
  func.func @transform_2(%arg0: i32, %arg1: i32, %arg2: i32) -> (i32, i32) {
    %c0_i32 = arith.constant 0 : i32
    %c0_i32_0 = arith.constant 0 : i32
    return %c0_i32, %arg1 : i32, i32
  }
  func.func @transform_3(%arg0: i32, %arg1: i32, %arg2: i32) -> (i32, i32) {
    %c0_i32 = arith.constant 0 : i32
    %c0_i32_0 = arith.constant 0 : i32
    return %c0_i32, %arg1 : i32, i32
  }
  func.func @transform_4(%arg0: i32, %arg1: i32, %arg2: i32) -> (i32, i32) {
    %c0_i32 = arith.constant 0 : i32
    return %arg0, %arg1 : i32, i32
  }
}

module attributes {stable_mosaic.version = 11 : i64} {
  func.func @kernel(%arg0: i32, %arg1: i32, %arg2: i32, %arg3: memref<16x64xbf16, #tpu.memory_space<vmem>>, %arg4: memref<64x128xbf16, #tpu.memory_space<vmem>>, %arg5: memref<1x128xf32, #tpu.memory_space<vmem>>, %arg6: memref<1x128xf32, #tpu.memory_space<vmem>>, %arg7: memref<16x128xf32, #tpu.memory_space<vmem>>, %arg8: memref<16x128xf32, #tpu.memory_space<vmem>>) attributes {dimension_semantics = [#tpu.dimension_semantics<parallel>, #tpu.dimension_semantics<parallel>, #tpu.dimension_semantics<arbitrary>], iteration_bounds = array<i64: 1, 1, 1>, scalar_prefetch = 0 : i64, scratch_operands = 1 : i64, tpu.core_type = #tpu.core_type<tc>, window_params = [{transform_indices = @transform_0, window_bounds = array<i64: 16, 64>}, {transform_indices = @transform_1, window_bounds = array<i64: 64, 128>}, {transform_indices = @transform_2, window_bounds = array<i64: 1, 128>}, {transform_indices = @transform_3, window_bounds = array<i64: 1, 128>}, {transform_indices = @transform_4, window_bounds = array<i64: 16, 128>}]} {
    %c0_i32 = arith.constant 0 : i32
    %0 = arith.cmpi eq, %arg2, %c0_i32 : i32
    %1 = arith.extui %0 : i1 to i32
    %c0_i32_0 = arith.constant 0 : i32
    %2 = arith.cmpi ne, %1, %c0_i32_0 : i32
    scf.if %2 {
      %cst_10 = arith.constant 0.000000e+00 : f32
      %12 = vector.broadcast %cst_10 : f32 to vector<16x128xf32>
      %c0_11 = arith.constant 0 : index
      %c0_12 = arith.constant 0 : index
      %13 = vector.load %arg8[%c0_11, %c0_12] : memref<16x128xf32, #tpu.memory_space<vmem>>, vector<16x128xf32>
      tpu.vector_store %arg8[%c0_11, %c0_12], %12 {strides = array<i32>} : memref<16x128xf32, #tpu.memory_space<vmem>>, vector<16x128xf32>,
    } else {
    }
    %c0 = arith.constant 0 : index
    %c0_1 = arith.constant 0 : index
    %3 = vector.load %arg8[%c0, %c0_1] : memref<16x128xf32, #tpu.memory_space<vmem>>, vector<16x128xf32>
    %c0_2 = arith.constant 0 : index
    %c0_3 = arith.constant 0 : index
    %4 = vector.load %arg3[%c0_2, %c0_3] : memref<16x64xbf16, #tpu.memory_space<vmem>>, vector<16x64xbf16>
    %c0_4 = arith.constant 0 : index
    %c0_5 = arith.constant 0 : index
    %5 = vector.load %arg4[%c0_4, %c0_5] : memref<64x128xbf16, #tpu.memory_space<vmem>>, vector<64x128xbf16>
    %cst = arith.constant dense<0.000000e+00> : vector<16x128xf32>
    %6 = tpu.matmul %4, %5, %cst {dimension_numbers = #tpu.dot_dimension_numbers<[1], [0], [0], [1], [0, 0, 1, 1], [], []>} : vector<16x64xbf16>, vector<64x128xbf16>, vector<16x128xf32> -> vector<16x128xf32>
    %7 = arith.addf %3, %6 : vector<16x128xf32>
    %c0_6 = arith.constant 0 : index
    %c0_7 = arith.constant 0 : index
    %8 = vector.load %arg8[%c0_6, %c0_7] : memref<16x128xf32, #tpu.memory_space<vmem>>, vector<16x128xf32>
    tpu.vector_store %arg8[%c0_6, %c0_7], %7 {strides = array<i32>} : memref<16x128xf32, #tpu.memory_space<vmem>>, vector<16x128xf32>,
    %c0_i32_8 = arith.constant 0 : i32
    %9 = arith.cmpi eq, %arg2, %c0_i32_8 : i32
    %10 = arith.extui %9 : i1 to i32
    %c0_i32_9 = arith.constant 0 : i32
    %11 = arith.cmpi ne, %10, %c0_i32_9 : i32
    scf.if %11 {
      %c0_10 = arith.constant 0 : index
      %c0_11 = arith.constant 0 : index
      %12 = vector.load %arg8[%c0_10, %c0_11] : memref<16x128xf32, #tpu.memory_space<vmem>>, vector<16x128xf32>
      %c0_12 = arith.constant 0 : index
      %c0_13 = arith.constant 0 : index
      %13 = vector.load %arg5[%c0_12, %c0_13] : memref<1x128xf32, #tpu.memory_space<vmem>>, vector<1x128xf32>
      %14 = vector.broadcast %13 : vector<1x128xf32> to vector<16x128xf32>
      %15 = arith.mulf %12, %14 : vector<16x128xf32>
      %c0_14 = arith.constant 0 : index
      %c0_15 = arith.constant 0 : index
      %16 = vector.load %arg6[%c0_14, %c0_15] : memref<1x128xf32, #tpu.memory_space<vmem>>, vector<1x128xf32>
      %17 = vector.broadcast %16 : vector<1x128xf32> to vector<16x128xf32>
      %18 = arith.addf %15, %17 : vector<16x128xf32>
      %c0_16 = arith.constant 0 : index
      %c0_17 = arith.constant 0 : index
      %19 = vector.load %arg7[%c0_16, %c0_17] : memref<16x128xf32, #tpu.memory_space<vmem>>, vector<16x128xf32>
      tpu.vector_store %arg7[%c0_16, %c0_17], %18 {strides = array<i32>} : memref<16x128xf32, #tpu.memory_space<vmem>>, vector<16x128xf32>,
    } else {
    }
    return
  }
  func.func @transform_0(%arg0: i32, %arg1: i32, %arg2: i32) -> (i32, i32) {
    %c0_i32 = arith.constant 0 : i32
    return %arg0, %arg2 : i32, i32
  }
  func.func @transform_1(%arg0: i32, %arg1: i32, %arg2: i32) -> (i32, i32) {
    %c0_i32 = arith.constant 0 : i32
    return %arg2, %arg1 : i32, i32
  }
  func.func @transform_2(%arg0: i32, %arg1: i32, %arg2: i32) -> (i32, i32) {
    %c0_i32 = arith.constant 0 : i32
    %c0_i32_0 = arith.constant 0 : i32
    return %c0_i32, %arg1 : i32, i32
  }
  func.func @transform_3(%arg0: i32, %arg1: i32, %arg2: i32) -> (i32, i32) {
    %c0_i32 = arith.constant 0 : i32
    %c0_i32_0 = arith.constant 0 : i32
    return %c0_i32, %arg1 : i32, i32
  }
  func.func @transform_4(%arg0: i32, %arg1: i32, %arg2: i32) -> (i32, i32) {
    %c0_i32 = arith.constant 0 : i32
    return %arg0, %arg1 : i32, i32
  }
}

module attributes {stable_mosaic.version = 11 : i64} {
  func.func @kernel(%arg0: i32, %arg1: i32, %arg2: i32, %arg3: memref<16x288xbf16, #tpu.memory_space<vmem>>, %arg4: memref<288x128xbf16, #tpu.memory_space<vmem>>, %arg5: memref<1x128xf32, #tpu.memory_space<vmem>>, %arg6: memref<1x128xf32, #tpu.memory_space<vmem>>, %arg7: memref<16x128xf32, #tpu.memory_space<vmem>>, %arg8: memref<16x128xf32, #tpu.memory_space<vmem>>) attributes {dimension_semantics = [#tpu.dimension_semantics<parallel>, #tpu.dimension_semantics<parallel>, #tpu.dimension_semantics<arbitrary>], iteration_bounds = array<i64: 1, 1, 1>, scalar_prefetch = 0 : i64, scratch_operands = 1 : i64, tpu.core_type = #tpu.core_type<tc>, window_params = [{transform_indices = @transform_0, window_bounds = array<i64: 16, 288>}, {transform_indices = @transform_1, window_bounds = array<i64: 288, 128>}, {transform_indices = @transform_2, window_bounds = array<i64: 1, 128>}, {transform_indices = @transform_3, window_bounds = array<i64: 1, 128>}, {transform_indices = @transform_4, window_bounds = array<i64: 16, 128>}]} {
    %c0_i32 = arith.constant 0 : i32
    %0 = arith.cmpi eq, %arg2, %c0_i32 : i32
    %1 = arith.extui %0 : i1 to i32
    %c0_i32_0 = arith.constant 0 : i32
    %2 = arith.cmpi ne, %1, %c0_i32_0 : i32
    scf.if %2 {
      %cst_10 = arith.constant 0.000000e+00 : f32
      %12 = vector.broadcast %cst_10 : f32 to vector<16x128xf32>
      %c0_11 = arith.constant 0 : index
      %c0_12 = arith.constant 0 : index
      %13 = vector.load %arg8[%c0_11, %c0_12] : memref<16x128xf32, #tpu.memory_space<vmem>>, vector<16x128xf32>
      tpu.vector_store %arg8[%c0_11, %c0_12], %12 {strides = array<i32>} : memref<16x128xf32, #tpu.memory_space<vmem>>, vector<16x128xf32>,
    } else {
    }
    %c0 = arith.constant 0 : index
    %c0_1 = arith.constant 0 : index
    %3 = vector.load %arg8[%c0, %c0_1] : memref<16x128xf32, #tpu.memory_space<vmem>>, vector<16x128xf32>
    %c0_2 = arith.constant 0 : index
    %c0_3 = arith.constant 0 : index
    %4 = vector.load %arg3[%c0_2, %c0_3] : memref<16x288xbf16, #tpu.memory_space<vmem>>, vector<16x288xbf16>
    %c0_4 = arith.constant 0 : index
    %c0_5 = arith.constant 0 : index
    %5 = vector.load %arg4[%c0_4, %c0_5] : memref<288x128xbf16, #tpu.memory_space<vmem>>, vector<288x128xbf16>
    %cst = arith.constant dense<0.000000e+00> : vector<16x128xf32>
    %6 = tpu.matmul %4, %5, %cst {dimension_numbers = #tpu.dot_dimension_numbers<[1], [0], [0], [1], [0, 0, 1, 1], [], []>} : vector<16x288xbf16>, vector<288x128xbf16>, vector<16x128xf32> -> vector<16x128xf32>
    %7 = arith.addf %3, %6 : vector<16x128xf32>
    %c0_6 = arith.constant 0 : index
    %c0_7 = arith.constant 0 : index
    %8 = vector.load %arg8[%c0_6, %c0_7] : memref<16x128xf32, #tpu.memory_space<vmem>>, vector<16x128xf32>
    tpu.vector_store %arg8[%c0_6, %c0_7], %7 {strides = array<i32>} : memref<16x128xf32, #tpu.memory_space<vmem>>, vector<16x128xf32>,
    %c0_i32_8 = arith.constant 0 : i32
    %9 = arith.cmpi eq, %arg2, %c0_i32_8 : i32
    %10 = arith.extui %9 : i1 to i32
    %c0_i32_9 = arith.constant 0 : i32
    %11 = arith.cmpi ne, %10, %c0_i32_9 : i32
    scf.if %11 {
      %c0_10 = arith.constant 0 : index
      %c0_11 = arith.constant 0 : index
      %12 = vector.load %arg8[%c0_10, %c0_11] : memref<16x128xf32, #tpu.memory_space<vmem>>, vector<16x128xf32>
      %c0_12 = arith.constant 0 : index
      %c0_13 = arith.constant 0 : index
      %13 = vector.load %arg5[%c0_12, %c0_13] : memref<1x128xf32, #tpu.memory_space<vmem>>, vector<1x128xf32>
      %14 = vector.broadcast %13 : vector<1x128xf32> to vector<16x128xf32>
      %15 = arith.mulf %12, %14 : vector<16x128xf32>
      %c0_14 = arith.constant 0 : index
      %c0_15 = arith.constant 0 : index
      %16 = vector.load %arg6[%c0_14, %c0_15] : memref<1x128xf32, #tpu.memory_space<vmem>>, vector<1x128xf32>
      %17 = vector.broadcast %16 : vector<1x128xf32> to vector<16x128xf32>
      %18 = arith.addf %15, %17 : vector<16x128xf32>
      %cst_16 = arith.constant 0.000000e+00 : f32
      %19 = vector.broadcast %cst_16 : f32 to vector<16x128xf32>
      %20 = arith.maximumf %18, %19 : vector<16x128xf32>
      %c0_17 = arith.constant 0 : index
      %c0_18 = arith.constant 0 : index
      %21 = vector.load %arg7[%c0_17, %c0_18] : memref<16x128xf32, #tpu.memory_space<vmem>>, vector<16x128xf32>
      tpu.vector_store %arg7[%c0_17, %c0_18], %20 {strides = array<i32>} : memref<16x128xf32, #tpu.memory_space<vmem>>, vector<16x128xf32>,
    } else {
    }
    return
  }
  func.func @transform_0(%arg0: i32, %arg1: i32, %arg2: i32) -> (i32, i32) {
    %c0_i32 = arith.constant 0 : i32
    return %arg0, %arg2 : i32, i32
  }
  func.func @transform_1(%arg0: i32, %arg1: i32, %arg2: i32) -> (i32, i32) {
    %c0_i32 = arith.constant 0 : i32
    return %arg2, %arg1 : i32, i32
  }
  func.func @transform_2(%arg0: i32, %arg1: i32, %arg2: i32) -> (i32, i32) {
    %c0_i32 = arith.constant 0 : i32
    %c0_i32_0 = arith.constant 0 : i32
    return %c0_i32, %arg1 : i32, i32
  }
  func.func @transform_3(%arg0: i32, %arg1: i32, %arg2: i32) -> (i32, i32) {
    %c0_i32 = arith.constant 0 : i32
    %c0_i32_0 = arith.constant 0 : i32
    return %c0_i32, %arg1 : i32, i32
  }
  func.func @transform_4(%arg0: i32, %arg1: i32, %arg2: i32) -> (i32, i32) {
    %c0_i32 = arith.constant 0 : i32
    return %arg0, %arg1 : i32, i32
  }
}

module attributes {stable_mosaic.version = 11 : i64} {
  func.func @kernel(%arg0: i32, %arg1: i32, %arg2: i32, %arg3: memref<16x32xbf16, #tpu.memory_space<vmem>>, %arg4: memref<32x128xbf16, #tpu.memory_space<vmem>>, %arg5: memref<1x128xf32, #tpu.memory_space<vmem>>, %arg6: memref<1x128xf32, #tpu.memory_space<vmem>>, %arg7: memref<16x128xf32, #tpu.memory_space<vmem>>, %arg8: memref<16x128xf32, #tpu.memory_space<vmem>>, %arg9: memref<16x128xf32, #tpu.memory_space<vmem>>) attributes {dimension_semantics = [#tpu.dimension_semantics<parallel>, #tpu.dimension_semantics<parallel>, #tpu.dimension_semantics<arbitrary>], iteration_bounds = array<i64: 1, 1, 1>, scalar_prefetch = 0 : i64, scratch_operands = 1 : i64, tpu.core_type = #tpu.core_type<tc>, window_params = [{transform_indices = @transform_0, window_bounds = array<i64: 16, 32>}, {transform_indices = @transform_1, window_bounds = array<i64: 32, 128>}, {transform_indices = @transform_2, window_bounds = array<i64: 1, 128>}, {transform_indices = @transform_3, window_bounds = array<i64: 1, 128>}, {transform_indices = @transform_4, window_bounds = array<i64: 16, 128>}, {transform_indices = @transform_5, window_bounds = array<i64: 16, 128>}]} {
    %c0_i32 = arith.constant 0 : i32
    %0 = arith.cmpi eq, %arg2, %c0_i32 : i32
    %1 = arith.extui %0 : i1 to i32
    %c0_i32_0 = arith.constant 0 : i32
    %2 = arith.cmpi ne, %1, %c0_i32_0 : i32
    scf.if %2 {
      %cst_10 = arith.constant 0.000000e+00 : f32
      %12 = vector.broadcast %cst_10 : f32 to vector<16x128xf32>
      %c0_11 = arith.constant 0 : index
      %c0_12 = arith.constant 0 : index
      %13 = vector.load %arg9[%c0_11, %c0_12] : memref<16x128xf32, #tpu.memory_space<vmem>>, vector<16x128xf32>
      tpu.vector_store %arg9[%c0_11, %c0_12], %12 {strides = array<i32>} : memref<16x128xf32, #tpu.memory_space<vmem>>, vector<16x128xf32>,
    } else {
    }
    %c0 = arith.constant 0 : index
    %c0_1 = arith.constant 0 : index
    %3 = vector.load %arg9[%c0, %c0_1] : memref<16x128xf32, #tpu.memory_space<vmem>>, vector<16x128xf32>
    %c0_2 = arith.constant 0 : index
    %c0_3 = arith.constant 0 : index
    %4 = vector.load %arg3[%c0_2, %c0_3] : memref<16x32xbf16, #tpu.memory_space<vmem>>, vector<16x32xbf16>
    %c0_4 = arith.constant 0 : index
    %c0_5 = arith.constant 0 : index
    %5 = vector.load %arg4[%c0_4, %c0_5] : memref<32x128xbf16, #tpu.memory_space<vmem>>, vector<32x128xbf16>
    %cst = arith.constant dense<0.000000e+00> : vector<16x128xf32>
    %6 = tpu.matmul %4, %5, %cst {dimension_numbers = #tpu.dot_dimension_numbers<[1], [0], [0], [1], [0, 0, 1, 1], [], []>} : vector<16x32xbf16>, vector<32x128xbf16>, vector<16x128xf32> -> vector<16x128xf32>
    %7 = arith.addf %3, %6 : vector<16x128xf32>
    %c0_6 = arith.constant 0 : index
    %c0_7 = arith.constant 0 : index
    %8 = vector.load %arg9[%c0_6, %c0_7] : memref<16x128xf32, #tpu.memory_space<vmem>>, vector<16x128xf32>
    tpu.vector_store %arg9[%c0_6, %c0_7], %7 {strides = array<i32>} : memref<16x128xf32, #tpu.memory_space<vmem>>, vector<16x128xf32>,
    %c0_i32_8 = arith.constant 0 : i32
    %9 = arith.cmpi eq, %arg2, %c0_i32_8 : i32
    %10 = arith.extui %9 : i1 to i32
    %c0_i32_9 = arith.constant 0 : i32
    %11 = arith.cmpi ne, %10, %c0_i32_9 : i32
    scf.if %11 {
      %c0_10 = arith.constant 0 : index
      %c0_11 = arith.constant 0 : index
      %12 = vector.load %arg9[%c0_10, %c0_11] : memref<16x128xf32, #tpu.memory_space<vmem>>, vector<16x128xf32>
      %c0_12 = arith.constant 0 : index
      %c0_13 = arith.constant 0 : index
      %13 = vector.load %arg5[%c0_12, %c0_13] : memref<1x128xf32, #tpu.memory_space<vmem>>, vector<1x128xf32>
      %14 = vector.broadcast %13 : vector<1x128xf32> to vector<16x128xf32>
      %15 = arith.mulf %12, %14 : vector<16x128xf32>
      %c0_14 = arith.constant 0 : index
      %c0_15 = arith.constant 0 : index
      %16 = vector.load %arg6[%c0_14, %c0_15] : memref<1x128xf32, #tpu.memory_space<vmem>>, vector<1x128xf32>
      %17 = vector.broadcast %16 : vector<1x128xf32> to vector<16x128xf32>
      %18 = arith.addf %15, %17 : vector<16x128xf32>
      %c0_16 = arith.constant 0 : index
      %c0_17 = arith.constant 0 : index
      %19 = vector.load %arg7[%c0_16, %c0_17] : memref<16x128xf32, #tpu.memory_space<vmem>>, vector<16x128xf32>
      %20 = arith.addf %18, %19 : vector<16x128xf32>
      %cst_18 = arith.constant 0.000000e+00 : f32
      %21 = vector.broadcast %cst_18 : f32 to vector<16x128xf32>
      %22 = arith.maximumf %20, %21 : vector<16x128xf32>
      %c0_19 = arith.constant 0 : index
      %c0_20 = arith.constant 0 : index
      %23 = vector.load %arg8[%c0_19, %c0_20] : memref<16x128xf32, #tpu.memory_space<vmem>>, vector<16x128xf32>
      tpu.vector_store %arg8[%c0_19, %c0_20], %22 {strides = array<i32>} : memref<16x128xf32, #tpu.memory_space<vmem>>, vector<16x128xf32>,
    } else {
    }
    return
  }
  func.func @transform_0(%arg0: i32, %arg1: i32, %arg2: i32) -> (i32, i32) {
    %c0_i32 = arith.constant 0 : i32
    return %arg0, %arg2 : i32, i32
  }
  func.func @transform_1(%arg0: i32, %arg1: i32, %arg2: i32) -> (i32, i32) {
    %c0_i32 = arith.constant 0 : i32
    return %arg2, %arg1 : i32, i32
  }
  func.func @transform_2(%arg0: i32, %arg1: i32, %arg2: i32) -> (i32, i32) {
    %c0_i32 = arith.constant 0 : i32
    %c0_i32_0 = arith.constant 0 : i32
    return %c0_i32, %arg1 : i32, i32
  }
  func.func @transform_3(%arg0: i32, %arg1: i32, %arg2: i32) -> (i32, i32) {
    %c0_i32 = arith.constant 0 : i32
    %c0_i32_0 = arith.constant 0 : i32
    return %c0_i32, %arg1 : i32, i32
  }
  func.func @transform_4(%arg0: i32, %arg1: i32, %arg2: i32) -> (i32, i32) {
    %c0_i32 = arith.constant 0 : i32
    return %arg0, %arg1 : i32, i32
  }
  func.func @transform_5(%arg0: i32, %arg1: i32, %arg2: i32) -> (i32, i32) {
    %c0_i32 = arith.constant 0 : i32
    return %arg0, %arg1 : i32, i32
  }
}

module attributes {stable_mosaic.version = 11 : i64} {
  func.func @kernel(%arg0: i32, %arg1: i32, %arg2: i32, %arg3: memref<16x128xbf16, #tpu.memory_space<vmem>>, %arg4: memref<128x128xbf16, #tpu.memory_space<vmem>>, %arg5: memref<1x128xf32, #tpu.memory_space<vmem>>, %arg6: memref<1x128xf32, #tpu.memory_space<vmem>>, %arg7: memref<16x128xf32, #tpu.memory_space<vmem>>, %arg8: memref<16x128xf32, #tpu.memory_space<vmem>>) attributes {dimension_semantics = [#tpu.dimension_semantics<parallel>, #tpu.dimension_semantics<parallel>, #tpu.dimension_semantics<arbitrary>], iteration_bounds = array<i64: 1, 2, 1>, scalar_prefetch = 0 : i64, scratch_operands = 1 : i64, tpu.core_type = #tpu.core_type<tc>, window_params = [{transform_indices = @transform_0, window_bounds = array<i64: 16, 128>}, {transform_indices = @transform_1, window_bounds = array<i64: 128, 128>}, {transform_indices = @transform_2, window_bounds = array<i64: 1, 128>}, {transform_indices = @transform_3, window_bounds = array<i64: 1, 128>}, {transform_indices = @transform_4, window_bounds = array<i64: 16, 128>}]} {
    %c0_i32 = arith.constant 0 : i32
    %0 = arith.cmpi eq, %arg2, %c0_i32 : i32
    %1 = arith.extui %0 : i1 to i32
    %c0_i32_0 = arith.constant 0 : i32
    %2 = arith.cmpi ne, %1, %c0_i32_0 : i32
    scf.if %2 {
      %cst_10 = arith.constant 0.000000e+00 : f32
      %12 = vector.broadcast %cst_10 : f32 to vector<16x128xf32>
      %c0_11 = arith.constant 0 : index
      %c0_12 = arith.constant 0 : index
      %13 = vector.load %arg8[%c0_11, %c0_12] : memref<16x128xf32, #tpu.memory_space<vmem>>, vector<16x128xf32>
      tpu.vector_store %arg8[%c0_11, %c0_12], %12 {strides = array<i32>} : memref<16x128xf32, #tpu.memory_space<vmem>>, vector<16x128xf32>,
    } else {
    }
    %c0 = arith.constant 0 : index
    %c0_1 = arith.constant 0 : index
    %3 = vector.load %arg8[%c0, %c0_1] : memref<16x128xf32, #tpu.memory_space<vmem>>, vector<16x128xf32>
    %c0_2 = arith.constant 0 : index
    %c0_3 = arith.constant 0 : index
    %4 = vector.load %arg3[%c0_2, %c0_3] : memref<16x128xbf16, #tpu.memory_space<vmem>>, vector<16x128xbf16>
    %c0_4 = arith.constant 0 : index
    %c0_5 = arith.constant 0 : index
    %5 = vector.load %arg4[%c0_4, %c0_5] : memref<128x128xbf16, #tpu.memory_space<vmem>>, vector<128x128xbf16>
    %cst = arith.constant dense<0.000000e+00> : vector<16x128xf32>
    %6 = tpu.matmul %4, %5, %cst {dimension_numbers = #tpu.dot_dimension_numbers<[1], [0], [0], [1], [0, 0, 1, 1], [], []>} : vector<16x128xbf16>, vector<128x128xbf16>, vector<16x128xf32> -> vector<16x128xf32>
    %7 = arith.addf %3, %6 : vector<16x128xf32>
    %c0_6 = arith.constant 0 : index
    %c0_7 = arith.constant 0 : index
    %8 = vector.load %arg8[%c0_6, %c0_7] : memref<16x128xf32, #tpu.memory_space<vmem>>, vector<16x128xf32>
    tpu.vector_store %arg8[%c0_6, %c0_7], %7 {strides = array<i32>} : memref<16x128xf32, #tpu.memory_space<vmem>>, vector<16x128xf32>,
    %c0_i32_8 = arith.constant 0 : i32
    %9 = arith.cmpi eq, %arg2, %c0_i32_8 : i32
    %10 = arith.extui %9 : i1 to i32
    %c0_i32_9 = arith.constant 0 : i32
    %11 = arith.cmpi ne, %10, %c0_i32_9 : i32
    scf.if %11 {
      %c0_10 = arith.constant 0 : index
      %c0_11 = arith.constant 0 : index
      %12 = vector.load %arg8[%c0_10, %c0_11] : memref<16x128xf32, #tpu.memory_space<vmem>>, vector<16x128xf32>
      %c0_12 = arith.constant 0 : index
      %c0_13 = arith.constant 0 : index
      %13 = vector.load %arg5[%c0_12, %c0_13] : memref<1x128xf32, #tpu.memory_space<vmem>>, vector<1x128xf32>
      %14 = vector.broadcast %13 : vector<1x128xf32> to vector<16x128xf32>
      %15 = arith.mulf %12, %14 : vector<16x128xf32>
      %c0_14 = arith.constant 0 : index
      %c0_15 = arith.constant 0 : index
      %16 = vector.load %arg6[%c0_14, %c0_15] : memref<1x128xf32, #tpu.memory_space<vmem>>, vector<1x128xf32>
      %17 = vector.broadcast %16 : vector<1x128xf32> to vector<16x128xf32>
      %18 = arith.addf %15, %17 : vector<16x128xf32>
      %c0_16 = arith.constant 0 : index
      %c0_17 = arith.constant 0 : index
      %19 = vector.load %arg7[%c0_16, %c0_17] : memref<16x128xf32, #tpu.memory_space<vmem>>, vector<16x128xf32>
      tpu.vector_store %arg7[%c0_16, %c0_17], %18 {strides = array<i32>} : memref<16x128xf32, #tpu.memory_space<vmem>>, vector<16x128xf32>,
    } else {
    }
    return
  }
  func.func @transform_0(%arg0: i32, %arg1: i32, %arg2: i32) -> (i32, i32) {
    %c0_i32 = arith.constant 0 : i32
    return %arg0, %arg2 : i32, i32
  }
  func.func @transform_1(%arg0: i32, %arg1: i32, %arg2: i32) -> (i32, i32) {
    %c0_i32 = arith.constant 0 : i32
    return %arg2, %arg1 : i32, i32
  }
  func.func @transform_2(%arg0: i32, %arg1: i32, %arg2: i32) -> (i32, i32) {
    %c0_i32 = arith.constant 0 : i32
    %c0_i32_0 = arith.constant 0 : i32
    return %c0_i32, %arg1 : i32, i32
  }
  func.func @transform_3(%arg0: i32, %arg1: i32, %arg2: i32) -> (i32, i32) {
    %c0_i32 = arith.constant 0 : i32
    %c0_i32_0 = arith.constant 0 : i32
    return %c0_i32, %arg1 : i32, i32
  }
  func.func @transform_4(%arg0: i32, %arg1: i32, %arg2: i32) -> (i32, i32) {
    %c0_i32 = arith.constant 0 : i32
    return %arg0, %arg1 : i32, i32
  }
}

module attributes {stable_mosaic.version = 11 : i64} {
  func.func @kernel(%arg0: i32, %arg1: i32, %arg2: i32, %arg3: memref<16x128xbf16, #tpu.memory_space<vmem>>, %arg4: memref<128x128xbf16, #tpu.memory_space<vmem>>, %arg5: memref<1x128xf32, #tpu.memory_space<vmem>>, %arg6: memref<1x128xf32, #tpu.memory_space<vmem>>, %arg7: memref<16x128xf32, #tpu.memory_space<vmem>>, %arg8: memref<16x128xf32, #tpu.memory_space<vmem>>) attributes {dimension_semantics = [#tpu.dimension_semantics<parallel>, #tpu.dimension_semantics<parallel>, #tpu.dimension_semantics<arbitrary>], iteration_bounds = array<i64: 1, 1, 1>, scalar_prefetch = 0 : i64, scratch_operands = 1 : i64, tpu.core_type = #tpu.core_type<tc>, window_params = [{transform_indices = @transform_0, window_bounds = array<i64: 16, 128>}, {transform_indices = @transform_1, window_bounds = array<i64: 128, 128>}, {transform_indices = @transform_2, window_bounds = array<i64: 1, 128>}, {transform_indices = @transform_3, window_bounds = array<i64: 1, 128>}, {transform_indices = @transform_4, window_bounds = array<i64: 16, 128>}]} {
    %c0_i32 = arith.constant 0 : i32
    %0 = arith.cmpi eq, %arg2, %c0_i32 : i32
    %1 = arith.extui %0 : i1 to i32
    %c0_i32_0 = arith.constant 0 : i32
    %2 = arith.cmpi ne, %1, %c0_i32_0 : i32
    scf.if %2 {
      %cst_10 = arith.constant 0.000000e+00 : f32
      %12 = vector.broadcast %cst_10 : f32 to vector<16x128xf32>
      %c0_11 = arith.constant 0 : index
      %c0_12 = arith.constant 0 : index
      %13 = vector.load %arg8[%c0_11, %c0_12] : memref<16x128xf32, #tpu.memory_space<vmem>>, vector<16x128xf32>
      tpu.vector_store %arg8[%c0_11, %c0_12], %12 {strides = array<i32>} : memref<16x128xf32, #tpu.memory_space<vmem>>, vector<16x128xf32>,
    } else {
    }
    %c0 = arith.constant 0 : index
    %c0_1 = arith.constant 0 : index
    %3 = vector.load %arg8[%c0, %c0_1] : memref<16x128xf32, #tpu.memory_space<vmem>>, vector<16x128xf32>
    %c0_2 = arith.constant 0 : index
    %c0_3 = arith.constant 0 : index
    %4 = vector.load %arg3[%c0_2, %c0_3] : memref<16x128xbf16, #tpu.memory_space<vmem>>, vector<16x128xbf16>
    %c0_4 = arith.constant 0 : index
    %c0_5 = arith.constant 0 : index
    %5 = vector.load %arg4[%c0_4, %c0_5] : memref<128x128xbf16, #tpu.memory_space<vmem>>, vector<128x128xbf16>
    %cst = arith.constant dense<0.000000e+00> : vector<16x128xf32>
    %6 = tpu.matmul %4, %5, %cst {dimension_numbers = #tpu.dot_dimension_numbers<[1], [0], [0], [1], [0, 0, 1, 1], [], []>} : vector<16x128xbf16>, vector<128x128xbf16>, vector<16x128xf32> -> vector<16x128xf32>
    %7 = arith.addf %3, %6 : vector<16x128xf32>
    %c0_6 = arith.constant 0 : index
    %c0_7 = arith.constant 0 : index
    %8 = vector.load %arg8[%c0_6, %c0_7] : memref<16x128xf32, #tpu.memory_space<vmem>>, vector<16x128xf32>
    tpu.vector_store %arg8[%c0_6, %c0_7], %7 {strides = array<i32>} : memref<16x128xf32, #tpu.memory_space<vmem>>, vector<16x128xf32>,
    %c0_i32_8 = arith.constant 0 : i32
    %9 = arith.cmpi eq, %arg2, %c0_i32_8 : i32
    %10 = arith.extui %9 : i1 to i32
    %c0_i32_9 = arith.constant 0 : i32
    %11 = arith.cmpi ne, %10, %c0_i32_9 : i32
    scf.if %11 {
      %c0_10 = arith.constant 0 : index
      %c0_11 = arith.constant 0 : index
      %12 = vector.load %arg8[%c0_10, %c0_11] : memref<16x128xf32, #tpu.memory_space<vmem>>, vector<16x128xf32>
      %c0_12 = arith.constant 0 : index
      %c0_13 = arith.constant 0 : index
      %13 = vector.load %arg5[%c0_12, %c0_13] : memref<1x128xf32, #tpu.memory_space<vmem>>, vector<1x128xf32>
      %14 = vector.broadcast %13 : vector<1x128xf32> to vector<16x128xf32>
      %15 = arith.mulf %12, %14 : vector<16x128xf32>
      %c0_14 = arith.constant 0 : index
      %c0_15 = arith.constant 0 : index
      %16 = vector.load %arg6[%c0_14, %c0_15] : memref<1x128xf32, #tpu.memory_space<vmem>>, vector<1x128xf32>
      %17 = vector.broadcast %16 : vector<1x128xf32> to vector<16x128xf32>
      %18 = arith.addf %15, %17 : vector<16x128xf32>
      %cst_16 = arith.constant 0.000000e+00 : f32
      %19 = vector.broadcast %cst_16 : f32 to vector<16x128xf32>
      %20 = arith.maximumf %18, %19 : vector<16x128xf32>
      %c0_17 = arith.constant 0 : index
      %c0_18 = arith.constant 0 : index
      %21 = vector.load %arg7[%c0_17, %c0_18] : memref<16x128xf32, #tpu.memory_space<vmem>>, vector<16x128xf32>
      tpu.vector_store %arg7[%c0_17, %c0_18], %20 {strides = array<i32>} : memref<16x128xf32, #tpu.memory_space<vmem>>, vector<16x128xf32>,
    } else {
    }
    return
  }
  func.func @transform_0(%arg0: i32, %arg1: i32, %arg2: i32) -> (i32, i32) {
    %c0_i32 = arith.constant 0 : i32
    return %arg0, %arg2 : i32, i32
  }
  func.func @transform_1(%arg0: i32, %arg1: i32, %arg2: i32) -> (i32, i32) {
    %c0_i32 = arith.constant 0 : i32
    return %arg2, %arg1 : i32, i32
  }
  func.func @transform_2(%arg0: i32, %arg1: i32, %arg2: i32) -> (i32, i32) {
    %c0_i32 = arith.constant 0 : i32
    %c0_i32_0 = arith.constant 0 : i32
    return %c0_i32, %arg1 : i32, i32
  }
  func.func @transform_3(%arg0: i32, %arg1: i32, %arg2: i32) -> (i32, i32) {
    %c0_i32 = arith.constant 0 : i32
    %c0_i32_0 = arith.constant 0 : i32
    return %c0_i32, %arg1 : i32, i32
  }
  func.func @transform_4(%arg0: i32, %arg1: i32, %arg2: i32) -> (i32, i32) {
    %c0_i32 = arith.constant 0 : i32
    return %arg0, %arg1 : i32, i32
  }
}

module attributes {stable_mosaic.version = 11 : i64} {
  func.func @kernel(%arg0: i32, %arg1: i32, %arg2: i32, %arg3: memref<16x512xbf16, #tpu.memory_space<vmem>>, %arg4: memref<512x128xbf16, #tpu.memory_space<vmem>>, %arg5: memref<1x128xf32, #tpu.memory_space<vmem>>, %arg6: memref<1x128xf32, #tpu.memory_space<vmem>>, %arg7: memref<16x128xf32, #tpu.memory_space<vmem>>, %arg8: memref<16x128xf32, #tpu.memory_space<vmem>>) attributes {dimension_semantics = [#tpu.dimension_semantics<parallel>, #tpu.dimension_semantics<parallel>, #tpu.dimension_semantics<arbitrary>], iteration_bounds = array<i64: 1, 1, 2>, scalar_prefetch = 0 : i64, scratch_operands = 1 : i64, tpu.core_type = #tpu.core_type<tc>, window_params = [{transform_indices = @transform_0, window_bounds = array<i64: 16, 512>}, {transform_indices = @transform_1, window_bounds = array<i64: 512, 128>}, {transform_indices = @transform_2, window_bounds = array<i64: 1, 128>}, {transform_indices = @transform_3, window_bounds = array<i64: 1, 128>}, {transform_indices = @transform_4, window_bounds = array<i64: 16, 128>}]} {
    %c0_i32 = arith.constant 0 : i32
    %0 = arith.cmpi eq, %arg2, %c0_i32 : i32
    %1 = arith.extui %0 : i1 to i32
    %c0_i32_0 = arith.constant 0 : i32
    %2 = arith.cmpi ne, %1, %c0_i32_0 : i32
    scf.if %2 {
      %cst_9 = arith.constant 0.000000e+00 : f32
      %12 = vector.broadcast %cst_9 : f32 to vector<16x128xf32>
      %c0_10 = arith.constant 0 : index
      %c0_11 = arith.constant 0 : index
      %13 = vector.load %arg8[%c0_10, %c0_11] : memref<16x128xf32, #tpu.memory_space<vmem>>, vector<16x128xf32>
      tpu.vector_store %arg8[%c0_10, %c0_11], %12 {strides = array<i32>} : memref<16x128xf32, #tpu.memory_space<vmem>>, vector<16x128xf32>,
    } else {
    }
    %c0 = arith.constant 0 : index
    %c0_1 = arith.constant 0 : index
    %3 = vector.load %arg8[%c0, %c0_1] : memref<16x128xf32, #tpu.memory_space<vmem>>, vector<16x128xf32>
    %c0_2 = arith.constant 0 : index
    %c0_3 = arith.constant 0 : index
    %4 = vector.load %arg3[%c0_2, %c0_3] : memref<16x512xbf16, #tpu.memory_space<vmem>>, vector<16x512xbf16>
    %c0_4 = arith.constant 0 : index
    %c0_5 = arith.constant 0 : index
    %5 = vector.load %arg4[%c0_4, %c0_5] : memref<512x128xbf16, #tpu.memory_space<vmem>>, vector<512x128xbf16>
    %cst = arith.constant dense<0.000000e+00> : vector<16x128xf32>
    %6 = tpu.matmul %4, %5, %cst {dimension_numbers = #tpu.dot_dimension_numbers<[1], [0], [0], [1], [0, 0, 1, 1], [], []>} : vector<16x512xbf16>, vector<512x128xbf16>, vector<16x128xf32> -> vector<16x128xf32>
    %7 = arith.addf %3, %6 : vector<16x128xf32>
    %c0_6 = arith.constant 0 : index
    %c0_7 = arith.constant 0 : index
    %8 = vector.load %arg8[%c0_6, %c0_7] : memref<16x128xf32, #tpu.memory_space<vmem>>, vector<16x128xf32>
    tpu.vector_store %arg8[%c0_6, %c0_7], %7 {strides = array<i32>} : memref<16x128xf32, #tpu.memory_space<vmem>>, vector<16x128xf32>,
    %c1_i32 = arith.constant 1 : i32
    %9 = arith.cmpi eq, %arg2, %c1_i32 : i32
    %10 = arith.extui %9 : i1 to i32
    %c0_i32_8 = arith.constant 0 : i32
    %11 = arith.cmpi ne, %10, %c0_i32_8 : i32
    scf.if %11 {
      %c0_9 = arith.constant 0 : index
      %c0_10 = arith.constant 0 : index
      %12 = vector.load %arg8[%c0_9, %c0_10] : memref<16x128xf32, #tpu.memory_space<vmem>>, vector<16x128xf32>
      %c0_11 = arith.constant 0 : index
      %c0_12 = arith.constant 0 : index
      %13 = vector.load %arg5[%c0_11, %c0_12] : memref<1x128xf32, #tpu.memory_space<vmem>>, vector<1x128xf32>
      %14 = vector.broadcast %13 : vector<1x128xf32> to vector<16x128xf32>
      %15 = arith.mulf %12, %14 : vector<16x128xf32>
      %c0_13 = arith.constant 0 : index
      %c0_14 = arith.constant 0 : index
      %16 = vector.load %arg6[%c0_13, %c0_14] : memref<1x128xf32, #tpu.memory_space<vmem>>, vector<1x128xf32>
      %17 = vector.broadcast %16 : vector<1x128xf32> to vector<16x128xf32>
      %18 = arith.addf %15, %17 : vector<16x128xf32>
      %cst_15 = arith.constant 0.000000e+00 : f32
      %19 = vector.broadcast %cst_15 : f32 to vector<16x128xf32>
      %20 = arith.maximumf %18, %19 : vector<16x128xf32>
      %c0_16 = arith.constant 0 : index
      %c0_17 = arith.constant 0 : index
      %21 = vector.load %arg7[%c0_16, %c0_17] : memref<16x128xf32, #tpu.memory_space<vmem>>, vector<16x128xf32>
      tpu.vector_store %arg7[%c0_16, %c0_17], %20 {strides = array<i32>} : memref<16x128xf32, #tpu.memory_space<vmem>>, vector<16x128xf32>,
    } else {
    }
    return
  }
  func.func @transform_0(%arg0: i32, %arg1: i32, %arg2: i32) -> (i32, i32) {
    %c0_i32 = arith.constant 0 : i32
    return %arg0, %arg2 : i32, i32
  }
  func.func @transform_1(%arg0: i32, %arg1: i32, %arg2: i32) -> (i32, i32) {
    %c0_i32 = arith.constant 0 : i32
    return %arg2, %arg1 : i32, i32
  }
  func.func @transform_2(%arg0: i32, %arg1: i32, %arg2: i32) -> (i32, i32) {
    %c0_i32 = arith.constant 0 : i32
    %c0_i32_0 = arith.constant 0 : i32
    return %c0_i32, %arg1 : i32, i32
  }
  func.func @transform_3(%arg0: i32, %arg1: i32, %arg2: i32) -> (i32, i32) {
    %c0_i32 = arith.constant 0 : i32
    %c0_i32_0 = arith.constant 0 : i32
    return %c0_i32, %arg1 : i32, i32
  }
  func.func @transform_4(%arg0: i32, %arg1: i32, %arg2: i32) -> (i32, i32) {
    %c0_i32 = arith.constant 0 : i32
    return %arg0, %arg1 : i32, i32
  }
}

module attributes {stable_mosaic.version = 11 : i64} {
  func.func @kernel(%arg0: i32, %arg1: i32, %arg2: i32, %arg3: memref<16x64xbf16, #tpu.memory_space<vmem>>, %arg4: memref<64x128xbf16, #tpu.memory_space<vmem>>, %arg5: memref<1x128xf32, #tpu.memory_space<vmem>>, %arg6: memref<1x128xf32, #tpu.memory_space<vmem>>, %arg7: memref<16x128xf32, #tpu.memory_space<vmem>>, %arg8: memref<16x128xf32, #tpu.memory_space<vmem>>, %arg9: memref<16x128xf32, #tpu.memory_space<vmem>>) attributes {dimension_semantics = [#tpu.dimension_semantics<parallel>, #tpu.dimension_semantics<parallel>, #tpu.dimension_semantics<arbitrary>], iteration_bounds = array<i64: 1, 2, 1>, scalar_prefetch = 0 : i64, scratch_operands = 1 : i64, tpu.core_type = #tpu.core_type<tc>, window_params = [{transform_indices = @transform_0, window_bounds = array<i64: 16, 64>}, {transform_indices = @transform_1, window_bounds = array<i64: 64, 128>}, {transform_indices = @transform_2, window_bounds = array<i64: 1, 128>}, {transform_indices = @transform_3, window_bounds = array<i64: 1, 128>}, {transform_indices = @transform_4, window_bounds = array<i64: 16, 128>}, {transform_indices = @transform_5, window_bounds = array<i64: 16, 128>}]} {
    %c0_i32 = arith.constant 0 : i32
    %0 = arith.cmpi eq, %arg2, %c0_i32 : i32
    %1 = arith.extui %0 : i1 to i32
    %c0_i32_0 = arith.constant 0 : i32
    %2 = arith.cmpi ne, %1, %c0_i32_0 : i32
    scf.if %2 {
      %cst_10 = arith.constant 0.000000e+00 : f32
      %12 = vector.broadcast %cst_10 : f32 to vector<16x128xf32>
      %c0_11 = arith.constant 0 : index
      %c0_12 = arith.constant 0 : index
      %13 = vector.load %arg9[%c0_11, %c0_12] : memref<16x128xf32, #tpu.memory_space<vmem>>, vector<16x128xf32>
      tpu.vector_store %arg9[%c0_11, %c0_12], %12 {strides = array<i32>} : memref<16x128xf32, #tpu.memory_space<vmem>>, vector<16x128xf32>,
    } else {
    }
    %c0 = arith.constant 0 : index
    %c0_1 = arith.constant 0 : index
    %3 = vector.load %arg9[%c0, %c0_1] : memref<16x128xf32, #tpu.memory_space<vmem>>, vector<16x128xf32>
    %c0_2 = arith.constant 0 : index
    %c0_3 = arith.constant 0 : index
    %4 = vector.load %arg3[%c0_2, %c0_3] : memref<16x64xbf16, #tpu.memory_space<vmem>>, vector<16x64xbf16>
    %c0_4 = arith.constant 0 : index
    %c0_5 = arith.constant 0 : index
    %5 = vector.load %arg4[%c0_4, %c0_5] : memref<64x128xbf16, #tpu.memory_space<vmem>>, vector<64x128xbf16>
    %cst = arith.constant dense<0.000000e+00> : vector<16x128xf32>
    %6 = tpu.matmul %4, %5, %cst {dimension_numbers = #tpu.dot_dimension_numbers<[1], [0], [0], [1], [0, 0, 1, 1], [], []>} : vector<16x64xbf16>, vector<64x128xbf16>, vector<16x128xf32> -> vector<16x128xf32>
    %7 = arith.addf %3, %6 : vector<16x128xf32>
    %c0_6 = arith.constant 0 : index
    %c0_7 = arith.constant 0 : index
    %8 = vector.load %arg9[%c0_6, %c0_7] : memref<16x128xf32, #tpu.memory_space<vmem>>, vector<16x128xf32>
    tpu.vector_store %arg9[%c0_6, %c0_7], %7 {strides = array<i32>} : memref<16x128xf32, #tpu.memory_space<vmem>>, vector<16x128xf32>,
    %c0_i32_8 = arith.constant 0 : i32
    %9 = arith.cmpi eq, %arg2, %c0_i32_8 : i32
    %10 = arith.extui %9 : i1 to i32
    %c0_i32_9 = arith.constant 0 : i32
    %11 = arith.cmpi ne, %10, %c0_i32_9 : i32
    scf.if %11 {
      %c0_10 = arith.constant 0 : index
      %c0_11 = arith.constant 0 : index
      %12 = vector.load %arg9[%c0_10, %c0_11] : memref<16x128xf32, #tpu.memory_space<vmem>>, vector<16x128xf32>
      %c0_12 = arith.constant 0 : index
      %c0_13 = arith.constant 0 : index
      %13 = vector.load %arg5[%c0_12, %c0_13] : memref<1x128xf32, #tpu.memory_space<vmem>>, vector<1x128xf32>
      %14 = vector.broadcast %13 : vector<1x128xf32> to vector<16x128xf32>
      %15 = arith.mulf %12, %14 : vector<16x128xf32>
      %c0_14 = arith.constant 0 : index
      %c0_15 = arith.constant 0 : index
      %16 = vector.load %arg6[%c0_14, %c0_15] : memref<1x128xf32, #tpu.memory_space<vmem>>, vector<1x128xf32>
      %17 = vector.broadcast %16 : vector<1x128xf32> to vector<16x128xf32>
      %18 = arith.addf %15, %17 : vector<16x128xf32>
      %c0_16 = arith.constant 0 : index
      %c0_17 = arith.constant 0 : index
      %19 = vector.load %arg7[%c0_16, %c0_17] : memref<16x128xf32, #tpu.memory_space<vmem>>, vector<16x128xf32>
      %20 = arith.addf %18, %19 : vector<16x128xf32>
      %cst_18 = arith.constant 0.000000e+00 : f32
      %21 = vector.broadcast %cst_18 : f32 to vector<16x128xf32>
      %22 = arith.maximumf %20, %21 : vector<16x128xf32>
      %c0_19 = arith.constant 0 : index
      %c0_20 = arith.constant 0 : index
      %23 = vector.load %arg8[%c0_19, %c0_20] : memref<16x128xf32, #tpu.memory_space<vmem>>, vector<16x128xf32>
      tpu.vector_store %arg8[%c0_19, %c0_20], %22 {strides = array<i32>} : memref<16x128xf32, #tpu.memory_space<vmem>>, vector<16x128xf32>,
    } else {
    }
    return
  }
  func.func @transform_0(%arg0: i32, %arg1: i32, %arg2: i32) -> (i32, i32) {
    %c0_i32 = arith.constant 0 : i32
    return %arg0, %arg2 : i32, i32
  }
  func.func @transform_1(%arg0: i32, %arg1: i32, %arg2: i32) -> (i32, i32) {
    %c0_i32 = arith.constant 0 : i32
    return %arg2, %arg1 : i32, i32
  }
  func.func @transform_2(%arg0: i32, %arg1: i32, %arg2: i32) -> (i32, i32) {
    %c0_i32 = arith.constant 0 : i32
    %c0_i32_0 = arith.constant 0 : i32
    return %c0_i32, %arg1 : i32, i32
  }
  func.func @transform_3(%arg0: i32, %arg1: i32, %arg2: i32) -> (i32, i32) {
    %c0_i32 = arith.constant 0 : i32
    %c0_i32_0 = arith.constant 0 : i32
    return %c0_i32, %arg1 : i32, i32
  }
  func.func @transform_4(%arg0: i32, %arg1: i32, %arg2: i32) -> (i32, i32) {
    %c0_i32 = arith.constant 0 : i32
    return %arg0, %arg1 : i32, i32
  }
  func.func @transform_5(%arg0: i32, %arg1: i32, %arg2: i32) -> (i32, i32) {
    %c0_i32 = arith.constant 0 : i32
    return %arg0, %arg1 : i32, i32
  }
}

module attributes {stable_mosaic.version = 11 : i64} {
  func.func @ap_kernel(%arg0: i32, %arg1: memref<2x1x256xf32, #tpu.memory_space<vmem>>, %arg2: memref<2x256xf32, #tpu.memory_space<vmem>>) attributes {dimension_semantics = [#tpu.dimension_semantics<arbitrary>], iteration_bounds = array<i64: 1>, scalar_prefetch = 0 : i64, scratch_operands = 0 : i64, tpu.core_type = #tpu.core_type<tc>, window_params = [{pipeline_mode = #tpu.pipeline_mode<synchronous>, transform_indices = @transform_0, window_bounds = array<i64: 2, 1, 256>}, {pipeline_mode = #tpu.pipeline_mode<synchronous>, transform_indices = @transform_1, window_bounds = array<i64: 2, 256>}]} {
    %c0 = arith.constant 0 : index
    %c0_0 = arith.constant 0 : index
    %c0_1 = arith.constant 0 : index
    %0 = vector.load %arg1[%c0, %c0_0, %c0_1] : memref<2x1x256xf32, #tpu.memory_space<vmem>>, vector<2x1x256xf32>
    %cst = arith.constant dense<0.000000e+00> : vector<2x256xf32>
    %1 = vector.multi_reduction <add>, %0, %cst [1] : vector<2x1x256xf32> to vector<2x256xf32>
    %cst_2 = arith.constant 1.000000e+00 : f32
    %2 = vector.broadcast %cst_2 : f32 to vector<2x256xf32>
    %3 = arith.divf %1, %2 : vector<2x256xf32>
    %c0_3 = arith.constant 0 : index
    %c0_4 = arith.constant 0 : index
    %4 = vector.load %arg2[%c0_3, %c0_4] : memref<2x256xf32, #tpu.memory_space<vmem>>, vector<2x256xf32>
    tpu.vector_store %arg2[%c0_3, %c0_4], %3 {strides = array<i32>} : memref<2x256xf32, #tpu.memory_space<vmem>>, vector<2x256xf32>,
    return
  }
  func.func @transform_0(%arg0: i32) -> (i32, i32, i32) {
    %c0_i32 = arith.constant 0 : i32
    %c0_i32_0 = arith.constant 0 : i32
    %c0_i32_1 = arith.constant 0 : i32
    %c0_i32_2 = arith.constant 0 : i32
    return %c0_i32, %c0_i32_0, %c0_i32_1 : i32, i32, i32
  }
  func.func @transform_1(%arg0: i32) -> (i32, i32) {
    %c0_i32 = arith.constant 0 : i32
    %c0_i32_0 = arith.constant 0 : i32
    %c0_i32_1 = arith.constant 0 : i32
    return %c0_i32, %c0_i32_0 : i32, i32
  }
}

</mosaic_0001>

<bundles_post_ra>
// kernel: _lambda_.22
= control target key start
LH: loop header
LB: loop body
LE: loop exit
PB: predicated region body
PF: predicated region fallthrough
CT: control target
= control target key end

     0   :  { %9 = vsyncpa [#allocation4], 0  ;;  %s907_s0 = inlined_call_operand.hbm [shape: bf16[128,160], index: 0, kind: input, shape index: {}]   ;;  %s908_s1 = inlined_call_operand.hbm [shape: bf16[160,128], index: 1, kind: input, shape index: {}]   ;;  %s909_s2 = inlined_call_operand.hbm [shape: f32[1,128], index: 2, kind: input, shape index: {}]   ;;  %s910_s3 = inlined_call_operand.hbm [shape: f32[1,128], index: 3, kind: input, shape index: {}]   ;;  %s911_s4 = inlined_call_operand.hbm [shape: f32[128,128], index: 4, kind: output, shape index: {}]  }
   0x1   :  { %10 = vsyncpa [#allocation7], 0 }
   0x2   :  { %11 = vsyncpa [#allocation10], 0 }
   0x3   :  { %12 = vsyncpa [#allocation5], 0  ;;  %s762_s15 = smov [#allocation6]   ;;  %s644_s19 = scalar_lea.hbm %s908_s1, 1280 }
   0x4   :  { %s30_s16 = sshll.u32 %s762_s15, 4  ;;  %p645_p0 = scmp.ne.s32.totalorder %s908_s1, %s644_s19  ;;  %s31_s16 = int_to_ptr.vmem [resolvable:$true] %s30_s16 }
   0x5   :  { %p648_p1 = scmp.lt.u32.totalorder %s644_s19, %s908_s1 }
   0x7   :  { %p650_p2 = pnand %p648_p1, %p645_p0 }
   0x9   :  { %653 = shalt.err (!%p650_p2)
}
   0xa   :  { %s654_s24 = scalar_lea.vmem %s31_s16, 1280  ;;  %p659_p4 = scmp.lt.s32.totalorder %s31_s16, %s31_s16 }
   0xb   :  { %p655_p3 = scmp.ne.s32.totalorder %s31_s16, %s654_s24  ;;  %p660_p5 = scmp.lt.s32.totalorder %s654_s24, %s654_s24 }
   0xd   :  { %p661_p6 = por %p660_p5, %p659_p4 }
   0xf   :  { %p662_p7 = pnand %p661_p6, %p655_p3 }
  0x11   :  { %665 = shalt.err (!%p662_p7)
}
  0x12   :  { %s763_s25 = smov 64   ;;  %s764_s26 = smov 4  }
  0x13   :  { %36 = dma.hbm_to_vmem [thread:$0]  %s908_s1, 1280, %s31_s16, [#allocation7], %s763_s25, %s763_s25, %s764_s26  }
  0x14   :  { %s765_s29 = smov [#allocation3]   ;;  %s666_s7 = scalar_lea.hbm %s907_s0, 2048 }
  0x15   :  { %s18_s30 = sshll.u32 %s765_s29, 4  ;;  %p667_p8 = scmp.ne.s32.totalorder %s907_s0, %s666_s7  ;;  %s19_s30 = int_to_ptr.vmem [resolvable:$true] %s18_s30 }
  0x16   :  { %p670_p9 = scmp.lt.u32.totalorder %s666_s7, %s907_s0 }
  0x18   :  { %p672_p10 = pnand %p670_p9, %p667_p8 }
  0x1a   :  { %675 = shalt.err (!%p672_p10)
}
  0x1b   :  { %s676_s12 = scalar_lea.vmem %s19_s30, 2048  ;;  %p681_p12 = scmp.lt.s32.totalorder %s19_s30, %s19_s30 }
  0x1c   :  { %p677_p11 = scmp.ne.s32.totalorder %s19_s30, %s676_s12  ;;  %p682_p13 = scmp.lt.s32.totalorder %s676_s12, %s676_s12 }
  0x1e   :  { %p683_p0 = por %p682_p13, %p681_p12 }
  0x20   :  { %p684_p1 = pnand %p683_p0, %p677_p11 }
  0x22   :  { %687 = shalt.err (!%p684_p1)
}
  0x23   :  { %s766_s1 = smov 128   ;;  %s767_s13 = smov 8  }
  0x24   :  { %24 = dma.hbm_to_vmem [thread:$0]  %s907_s0, 2048, %s19_s30, [#allocation4], %s766_s1, %s766_s1, %s767_s13  }
  0x25   :  { %s768_s16 = smov [#allocation8]   ;;  %s769_s18 = smov [#allocation9]  }
  0x26   :  { %s43_s17 = sshll.u32 %s768_s16, 4  ;;  %s53_s19 = sshll.u32 %s769_s18, 4  ;;  %s44_s17 = int_to_ptr.vmem [resolvable:$true] %s43_s17  ;;  %s54_s19 = int_to_ptr.vmem [resolvable:$true] %s53_s19 }
  0x27   :  { %s688_s22 = scalar_lea.hbm %s909_s2, 16 }
  0x28   :  { %p689_p2 = scmp.ne.s32.totalorder %s909_s2, %s688_s22  ;;  %p692_p3 = scmp.lt.u32.totalorder %s688_s22, %s909_s2 }
  0x2a   :  { %p694_p4 = pnand %p692_p3, %p689_p2 }
  0x2c   :  { %697 = shalt.err (!%p694_p4)
}
  0x2d   :  { %s698_s0 = scalar_lea.vmem %s44_s17, 16  ;;  %s702_s27 = scalar_lea.vmem %s44_s17, 32 }
  0x2e   :  { %p699_p5 = scmp.ne.s32.totalorder %s44_s17, %s698_s0  ;;  %p703_p6 = scmp.lt.s32.totalorder %s44_s17, %s44_s17 }
  0x2f   :  { %p704_p7 = scmp.lt.s32.totalorder %s702_s27, %s698_s0 }
  0x31   :  { %p705_p8 = por %p704_p7, %p703_p6 }
  0x33   :  { %p706_p9 = pnand %p705_p8, %p699_p5 }
  0x35   :  { %709 = shalt.err (!%p706_p9)
}
  0x36   :  { %46 = dma.hbm_to_vmem [thread:$0]  %s909_s2, 16, %s44_s17, [#allocation7]  }
  0x37   :  { %s710_s6 = scalar_lea.hbm %s910_s3, 16 }
  0x38   :  { %p711_p10 = scmp.ne.s32.totalorder %s910_s3, %s710_s6  ;;  %p714_p11 = scmp.lt.u32.totalorder %s710_s6, %s910_s3 }
  0x3a   :  { %p716_p12 = pnand %p714_p11, %p711_p10 }
  0x3c   :  { %719 = shalt.err (!%p716_p12)
}
  0x3d   :  { %s720_s11 = scalar_lea.vmem %s54_s19, 16  ;;  %s724_s12 = scalar_lea.vmem %s54_s19, 32 }
  0x3e   :  { %p721_p13 = scmp.ne.s32.totalorder %s54_s19, %s720_s11  ;;  %p725_p0 = scmp.lt.s32.totalorder %s54_s19, %s54_s19 }
  0x3f   :  { %p726_p1 = scmp.lt.s32.totalorder %s724_s12, %s720_s11 }
  0x41   :  { %p727_p2 = por %p726_p1, %p725_p0 }
  0x43   :  { %p728_p3 = pnand %p727_p2, %p721_p13 }
  0x45   :  { %731 = shalt.err (!%p728_p3)
}
  0x46   :  { %56 = dma.hbm_to_vmem [thread:$0]  %s910_s3, 16, %s54_s19, [#allocation10]  }
  0x47   :  { %754 = dma.done.wait [#allocation4], 2048  }
  0x48   :  { %755 = vsyncadd [#allocation4], 4294965248 }
  0x49   :  { %756 = dma.done.wait [#allocation7], 1296  }
  0x4a   :  { %757 = vsyncadd [#allocation7], 4294966000 }
  0x4b   :  { %758 = dma.done.wait [#allocation10], 16  }
  0x4c   :  { %759 = vsyncadd [#allocation10], 4294967280  ;;  %v770_v0 = vmov 0   ;;  %v610_v1 = vld [vmem:[#allocation6] sm:$0xff]   ;;  %v611_v2 = vld [vmem:[#allocation6 + $0x8] sm:$0xff]   ;;  %vm274_vm0 = vcmask 261120  }
  0x4d   :  { %299 = vmatprep.subr.bf16.mxu0 %v770_v0  ;;  %580 = vmatprep.subr.bf16.mxu1 %v770_v0  ;;  %v612_v3 = vld [vmem:[#allocation6 + $0x10] sm:$0xff]   ;;  %v613_v4 = vld [vmem:[#allocation6 + $0x18] sm:$0xff]   ;;  %v622_v5 = vld [vmem:[#allocation3 + $0x4] ss:$8 sps:$4 sm:$0xff]   ;;  %s771_s3 = smov [#allocation11]  }
  0x4e   :  { %300 = vmatpush1.bf16.msra.mxu0 %v610_v1  ;;  %590 = vmatpush1.bf16.msra.mxu1 %v610_v1  ;;  %v625_v6 = vld [vmem:[#allocation3 + $0x44] ss:$8 sps:$4 sm:$0xff]   ;;  %v616_v9 = vld [vmem:[#allocation6 + $0x30] sm:$0xff]   ;;  %v617_v10 = vld [vmem:[#allocation6 + $0x38] sm:$0xff]   ;;  %s530_s15 = sshll.u32 %s771_s3, 4  ;;  %s531_s15 = int_to_ptr.vmem [resolvable:$true] %s530_s15 }
  0x4f   :  { %301 = vmatprep.subr.bf16.mxu0 %v770_v0  ;;  %581 = vmatprep.subr.bf16.mxu1 %v770_v0  ;;  %v614_v7 = vld [vmem:[#allocation6 + $0x20] sm:$0xff]   ;;  %v615_v8 = vld [vmem:[#allocation6 + $0x28] sm:$0xff]   ;;  %v626_v15 = vld [vmem:[#allocation3 + $0x14] ss:$8 sps:$4 sm:$0xff]   ;;  %s732_s16 = scalar_lea.vmem %s531_s15, 2048  ;;  %p737_p5 = scmp.lt.s32.totalorder %s531_s15, %s531_s15 }
  0x50   :  { %570 = vmatprep.mubr.msk.bf16.mxu0 %vm274_vm0, %v622_v5  ;;  %574 = vmatprep.mubr.msk.bf16.mxu1 %vm274_vm0, %v625_v6  ;;  %v618_v11 = vld [vmem:[#allocation6 + $0x40] sm:$0xff]   ;;  %v619_v12 = vld [vmem:[#allocation6 + $0x48] sm:$0xff]   ;;  %v628_v16 = vld [vmem:[#allocation3 + $0x54] ss:$8 sps:$4 sm:$0xff]   ;;  %p733_p4 = scmp.ne.s32.totalorder %s531_s15, %s732_s16  ;;  %p738_p6 = scmp.lt.s32.totalorder %s732_s16, %s732_s16 }
  0x51   :  { %v620_v13 = vld [vmem:[#allocation3] ss:$8 sps:$4 sm:$0xff]   ;;  %v630_v17 = vld [vmem:[#allocation3 + $0x10] ss:$8 sps:$4 sm:$0xff]   ;;  %v632_v19 = vld [vmem:[#allocation3 + $0x24] ss:$8 sps:$4 sm:$0xff]  }
  0x52   :  { %302 = vmatpush1.bf16.msra.mxu0 %v611_v2  ;;  %591 = vmatpush1.bf16.msra.mxu1 %v611_v2  ;;  %v623_v14 = vld [vmem:[#allocation3 + $0x40] ss:$8 sps:$4 sm:$0xff]   ;;  %v631_v18 = vld [vmem:[#allocation3 + $0x50] ss:$8 sps:$4 sm:$0xff]   ;;  %v634_v20 = vld [vmem:[#allocation3 + $0x64] ss:$8 sps:$4 sm:$0xff]   ;;  %p739_p7 = por %p738_p6, %p737_p5 }
  0x53   :  { %303 = vmatprep.subr.bf16.mxu0 %v770_v0  ;;  %582 = vmatprep.subr.bf16.mxu1 %v770_v0  ;;  %v636_v21 = vld [vmem:[#allocation3 + $0x20] ss:$8 sps:$4 sm:$0xff]   ;;  %v638_v23 = vld [vmem:[#allocation3 + $0x34] ss:$8 sps:$4 sm:$0xff]   ;;  %v642_v25 = vld [vmem:[#allocation3 + $0x30] ss:$8 sps:$4 sm:$0xff]  }
  0x54   :  { %v637_v22 = vld [vmem:[#allocation3 + $0x60] ss:$8 sps:$4 sm:$0xff]   ;;  %v640_v24 = vld [vmem:[#allocation3 + $0x74] ss:$8 sps:$4 sm:$0xff]   ;;  %v643_v26 = vld [vmem:[#allocation3 + $0x70] ss:$8 sps:$4 sm:$0xff]   ;;  %p740_p8 = pnand %p739_p7, %p733_p4 }
  0x55   :  { %v856_v27 = vld [vmem:[#allocation8] ss:$0 sm:$0xff]  ;;  %v858_v29 = vld [vmem:[#allocation9] ss:$0 sm:$0xff] }
  0x56   :  { %304 = vmatpush1.bf16.msra.mxu0 %v612_v3  ;;  %592 = vmatpush1.bf16.msra.mxu1 %v612_v3 }
  0x57   :  { %305 = vmatprep.subr.bf16.mxu0 %v770_v0  ;;  %583 = vmatprep.subr.bf16.mxu1 %v770_v0 }
  0x5a   :  { %306 = vmatpush1.bf16.msra.mxu0 %v613_v4  ;;  %593 = vmatpush1.bf16.msra.mxu1 %v613_v4 }
  0x5b   :  { %307 = vmatprep.subr.bf16.mxu0 %v770_v0  ;;  %584 = vmatprep.subr.bf16.mxu1 %v770_v0 }
  0x5e   :  { %308 = vmatpush1.bf16.msra.mxu0 %v614_v7  ;;  %594 = vmatpush1.bf16.msra.mxu1 %v614_v7 }
  0x5f   :  { %309 = vmatprep.subr.bf16.mxu0 %v770_v0  ;;  %585 = vmatprep.subr.bf16.mxu1 %v770_v0 }
  0x62   :  { %310 = vmatpush1.bf16.msra.mxu0 %v615_v8  ;;  %595 = vmatpush1.bf16.msra.mxu1 %v615_v8 }
  0x63   :  { %311 = vmatprep.subr.bf16.mxu0 %v770_v0  ;;  %586 = vmatprep.subr.bf16.mxu1 %v770_v0 }
  0x66   :  { %312 = vmatpush1.bf16.msra.mxu0 %v616_v9  ;;  %596 = vmatpush1.bf16.msra.mxu1 %v616_v9 }
  0x67   :  { %313 = vmatprep.subr.bf16.mxu0 %v770_v0  ;;  %587 = vmatprep.subr.bf16.mxu1 %v770_v0 }
  0x6a   :  { %314 = vmatpush1.bf16.msra.mxu0 %v617_v10  ;;  %597 = vmatpush1.bf16.msra.mxu1 %v617_v10 }
  0x6b   :  { %315 = vmatprep.subr.bf16.mxu0 %v770_v0  ;;  %588 = vmatprep.subr.bf16.mxu1 %v770_v0 }
  0x6e   :  { %316 = vmatpush1.bf16.msra.mxu0 %v618_v11  ;;  %598 = vmatpush1.bf16.msra.mxu1 %v618_v11 }
  0x6f   :  { %317 = vmatprep.subr.bf16.mxu0 %v770_v0  ;;  %589 = vmatprep.subr.bf16.mxu1 %v770_v0 }
  0x72   :  { %318 = vmatpush1.bf16.msra.mxu0 %v619_v12  ;;  %599 = vmatpush1.bf16.msra.mxu1 %v619_v12 }
  0x75   :  { %332 = vmatmul.mubr.bf16.vlgmr.msra.gmra.mrb[0].mxu0 %v620_v13  ;;  %364 = vmatmul.mubr.bf16.vlgmr.msra.gmra.mrb[0].mxu1 %v623_v14 }
  0x76   :  { %571 = vmatprep.mubr.msk.bf16.mxu0 %vm274_vm0, %v626_v15  ;;  %575 = vmatprep.mubr.msk.bf16.mxu1 %vm274_vm0, %v628_v16 }
  0x7d   :  { %340 = vmatmul.mubr.bf16.gmra.mrb[4].mxu0 %v630_v17  ;;  %372 = vmatmul.mubr.bf16.gmra.mrb[4].mxu1 %v631_v18 }
  0x7e   :  { %572 = vmatprep.mubr.msk.bf16.mxu0 %vm274_vm0, %v632_v19  ;;  %576 = vmatprep.mubr.msk.bf16.mxu1 %vm274_vm0, %v634_v20 }
  0x85   :  { %348 = vmatmul.mubr.bf16.gmra.mrb[8].mxu0 %v636_v21  ;;  %380 = vmatmul.mubr.bf16.gmra.mrb[8].mxu1 %v637_v22 }
  0x86   :  { %573 = vmatprep.mubr.msk.bf16.mxu0 %vm274_vm0, %v638_v23  ;;  %577 = vmatprep.mubr.msk.bf16.mxu1 %vm274_vm0, %v640_v24 }
  0x8d   :  { %356 = vmatmul.mubr.bf16.gmra.mrb[12].mxu0 %v642_v25  ;;  %388 = vmatmul.mubr.bf16.gmra.mrb[12].mxu1 %v643_v26 }
 0x148   :  { %v333_v28 = vpop.f32.mrb[0].mxu0  ;;  %v365_v30 = vpop.f32.mrb[0].mxu1 }
 0x149   :  { %v454_v31 = vmul.f32 %v856_v27, %v333_v28  ;;  %v462_v32 = vmul.f32 %v856_v27, %v365_v30  ;;  %v335_v33 = vpop.f32.mrb[1].mxu0  ;;  %v367_v34 = vpop.f32.mrb[1].mxu1 }
 0x14a   :  { %v336_v35 = vpop.f32.mrb[2].mxu0  ;;  %v368_v36 = vpop.f32.mrb[2].mxu1 }
 0x14b   :  { %v477_v37 = vadd.f32 %v858_v29, %v454_v31  ;;  %v485_v38 = vadd.f32 %v858_v29, %v462_v32  ;;  %v455_v39 = vmul.f32 %v856_v27, %v336_v35  ;;  %v463_v40 = vmul.f32 %v856_v27, %v368_v36  ;;  %v338_v41 = vpop.f32.mrb[3].mxu0  ;;  %v370_v42 = vpop.f32.mrb[3].mxu1 }
 0x14d   :  { %v493_v43 = vmax.f32 %v477_v37, 0.0  ;;  %v501_v44 = vmax.f32 %v485_v38, 0.0  ;;  %v478_v45 = vadd.f32 %v858_v29, %v455_v39  ;;  %v486_v46 = vadd.f32 %v858_v29, %v463_v40 }
 0x14f   :  { %509 = vst [vmem:[#allocation11] sm:$0xff] %v493_v43  ;;  %517 = vst [vmem:[#allocation11 + $0x40] sm:$0xff] %v501_v44  ;;  %v494_v47 = vmax.f32 %v478_v45, 0.0  ;;  %v502_v48 = vmax.f32 %v486_v46, 0.0 }
 0x150   :  { %v341_v49 = vpop.f32.mrb[4].mxu0  ;;  %v373_v50 = vpop.f32.mrb[4].mxu1 }
 0x151   :  { %510 = vst [vmem:[#allocation11 + $0x8] sm:$0xff] %v494_v47  ;;  %518 = vst [vmem:[#allocation11 + $0x48] sm:$0xff] %v502_v48  ;;  %v456_v51 = vmul.f32 %v856_v27, %v341_v49  ;;  %v464_v52 = vmul.f32 %v856_v27, %v373_v50  ;;  %v343_v53 = vpop.f32.mrb[5].mxu0  ;;  %v375_v54 = vpop.f32.mrb[5].mxu1 }
 0x152   :  { %v344_v55 = vpop.f32.mrb[6].mxu0  ;;  %v376_v56 = vpop.f32.mrb[6].mxu1 }
 0x153   :  { %v479_v57 = vadd.f32 %v858_v29, %v456_v51  ;;  %v487_v58 = vadd.f32 %v858_v29, %v464_v52  ;;  %v457_v59 = vmul.f32 %v856_v27, %v344_v55  ;;  %v465_v60 = vmul.f32 %v856_v27, %v376_v56  ;;  %v346_v61 = vpop.f32.mrb[7].mxu0  ;;  %v378_v62 = vpop.f32.mrb[7].mxu1 }
 0x155   :  { %v495_v63 = vmax.f32 %v479_v57, 0.0  ;;  %v503_v0 = vmax.f32 %v487_v58, 0.0  ;;  %v480_v1 = vadd.f32 %v858_v29, %v457_v59  ;;  %v488_v2 = vadd.f32 %v858_v29, %v465_v60 }
 0x157   :  { %511 = vst [vmem:[#allocation11 + $0x10] sm:$0xff] %v495_v63  ;;  %519 = vst [vmem:[#allocation11 + $0x50] sm:$0xff] %v503_v0  ;;  %v496_v3 = vmax.f32 %v480_v1, 0.0  ;;  %v504_v4 = vmax.f32 %v488_v2, 0.0 }
 0x158   :  { %v349_v5 = vpop.f32.mrb[8].mxu0  ;;  %v381_v6 = vpop.f32.mrb[8].mxu1 }
 0x159   :  { %512 = vst [vmem:[#allocation11 + $0x18] sm:$0xff] %v496_v3  ;;  %520 = vst [vmem:[#allocation11 + $0x58] sm:$0xff] %v504_v4  ;;  %v458_v7 = vmul.f32 %v856_v27, %v349_v5  ;;  %v466_v8 = vmul.f32 %v856_v27, %v381_v6  ;;  %v351_v9 = vpop.f32.mrb[9].mxu0  ;;  %v383_v10 = vpop.f32.mrb[9].mxu1 }
 0x15a   :  { %v352_v11 = vpop.f32.mrb[10].mxu0  ;;  %v384_v12 = vpop.f32.mrb[10].mxu1 }
 0x15b   :  { %v481_v13 = vadd.f32 %v858_v29, %v458_v7  ;;  %v489_v14 = vadd.f32 %v858_v29, %v466_v8  ;;  %v459_v15 = vmul.f32 %v856_v27, %v352_v11  ;;  %v467_v16 = vmul.f32 %v856_v27, %v384_v12  ;;  %v354_v17 = vpop.f32.mrb[11].mxu0  ;;  %v386_v18 = vpop.f32.mrb[11].mxu1 }
 0x15d   :  { %v497_v19 = vmax.f32 %v481_v13, 0.0  ;;  %v505_v20 = vmax.f32 %v489_v14, 0.0  ;;  %v482_v21 = vadd.f32 %v858_v29, %v459_v15  ;;  %v490_v22 = vadd.f32 %v858_v29, %v467_v16 }
 0x15f   :  { %513 = vst [vmem:[#allocation11 + $0x20] sm:$0xff] %v497_v19  ;;  %521 = vst [vmem:[#allocation11 + $0x60] sm:$0xff] %v505_v20  ;;  %v498_v23 = vmax.f32 %v482_v21, 0.0  ;;  %v506_v24 = vmax.f32 %v490_v22, 0.0 }
 0x160   :  { %v357_v25 = vpop.f32.mrb[12].mxu0  ;;  %v389_v26 = vpop.f32.mrb[12].mxu1 }
 0x161   :  { %514 = vst [vmem:[#allocation11 + $0x28] sm:$0xff] %v498_v23  ;;  %522 = vst [vmem:[#allocation11 + $0x68] sm:$0xff] %v506_v24  ;;  %v460_v28 = vmul.f32 %v856_v27, %v357_v25  ;;  %v468_v30 = vmul.f32 %v856_v27, %v389_v26  ;;  %v359_v31 = vpop.f32.mrb[13].mxu0  ;;  %v391_v32 = vpop.f32.mrb[13].mxu1 }
 0x162   :  { %v360_v33 = vpop.f32.mrb[14].mxu0  ;;  %v392_v34 = vpop.f32.mrb[14].mxu1 }
 0x163   :  { %v483_v35 = vadd.f32 %v858_v29, %v460_v28  ;;  %v491_v36 = vadd.f32 %v858_v29, %v468_v30  ;;  %v461_v37 = vmul.f32 %v856_v27, %v360_v33  ;;  %v469_v38 = vmul.f32 %v856_v27, %v392_v34  ;;  %v362_v39 = vpop.f32.mrb[15].mxu0  ;;  %v394_v40 = vpop.f32.mrb[15].mxu1 }
 0x165   :  { %v499_v41 = vmax.f32 %v483_v35, 0.0  ;;  %v507_v42 = vmax.f32 %v491_v36, 0.0  ;;  %v484_v43 = vadd.f32 %v858_v29, %v461_v37  ;;  %v492_v44 = vadd.f32 %v858_v29, %v469_v38 }
 0x167   :  { %515 = vst [vmem:[#allocation11 + $0x30] sm:$0xff] %v499_v41  ;;  %523 = vst [vmem:[#allocation11 + $0x70] sm:$0xff] %v507_v42  ;;  %v500_v45 = vmax.f32 %v484_v43, 0.0  ;;  %v508_v46 = vmax.f32 %v492_v44, 0.0 }
 0x169   :  { %516 = vst [vmem:[#allocation11 + $0x38] sm:$0xff] %v500_v45  ;;  %524 = vst [vmem:[#allocation11 + $0x78] sm:$0xff] %v508_v46 }
 0x16a   :  { %743 = shalt.err (!%p740_p8)
}
 0x16b   :  { %s744_s19 = scalar_lea.hbm %s911_s4, 2048 }
 0x16c   :  { %p745_p9 = scmp.ne.s32.totalorder %s911_s4, %s744_s19  ;;  %p748_p10 = scmp.lt.u32.totalorder %s744_s19, %s911_s4 }
 0x16e   :  { %p750_p11 = pnand %p748_p10, %p745_p9 }
 0x170   :  { %753 = shalt.err (!%p750_p11)
}
 0x171   :  { %536 = dma.vmem_to_hbm [thread:$0]  %s531_s15, 2048, %s911_s4, [#allocation5], %s766_s1, %s766_s1, %s767_s13  }
 0x172   :  { %760 = dma.done.wait [#allocation5], 2048  }
 0x173   :  { %761 = vsyncadd [#allocation5], 4294965248 }
 0x174   :  { %540 = vsyncpa [#allocation4], 1 }
 0x175   :  { %541 = vsyncpa [#allocation7], 1 }
 0x176   :  { %542 = vsyncpa [#allocation10], 1 }
 0x177   :  { %543 = vsyncpa [#allocation5], 1 }

// kernel: _lambda_.23
= control target key start
LH: loop header
LB: loop body
LE: loop exit
PB: predicated region body
PF: predicated region fallthrough
CT: control target
= control target key end

     0   :  { %s254_s0 = inlined_call_operand.vmem [shape: f32[9,32,128], index: 0, kind: input, shape index: {}]   ;;  %s255_s1 = inlined_call_operand.vmem [shape: f32[32,128], index: 1, kind: output, shape index: {}]  }
   0x1   :  { %v8_v0 = vld [vmem:[%s254_s0] sm:$0xff]  ;;  %v9_v6 = vld [vmem:[%s254_s0 + $0x8] sm:$0xff]  ;;  %v10_v15 = vld [vmem:[%s254_s0 + $0x10] sm:$0xff] }
   0x2   :  { %v92_v1 = vld [vmem:[%s254_s0 + $0x20] sm:$0xff]  ;;  %v93_v7 = vld [vmem:[%s254_s0 + $0x28] sm:$0xff]  ;;  %v94_v16 = vld [vmem:[%s254_s0 + $0x30] sm:$0xff] }
   0x3   :  { %v96_v2 = vld [vmem:[%s254_s0 + $0x40] sm:$0xff]  ;;  %v17_v3 = vmax.f32 %v8_v0, %v92_v1  ;;  %v97_v8 = vld [vmem:[%s254_s0 + $0x48] sm:$0xff]  ;;  %v18_v10 = vmax.f32 %v9_v6, %v93_v7  ;;  %v98_v17 = vld [vmem:[%s254_s0 + $0x50] sm:$0xff]  ;;  %v19_v20 = vmax.f32 %v10_v15, %v94_v16 }
   0x4   :  { %v100_v4 = vld [vmem:[%s254_s0 + $0x60] sm:$0xff]  ;;  %v101_v13 = vld [vmem:[%s254_s0 + $0x68] sm:$0xff]  ;;  %v102_v24 = vld [vmem:[%s254_s0 + $0x70] sm:$0xff] }
   0x5   :  { %v26_v5 = vmax.f32 %v17_v3, %v96_v2  ;;  %v104_v9 = vld [vmem:[%s254_s0 + $0x80] sm:$0xff]  ;;  %v27_v14 = vmax.f32 %v18_v10, %v97_v8  ;;  %v105_v19 = vld [vmem:[%s254_s0 + $0x88] sm:$0xff]  ;;  %v28_v26 = vmax.f32 %v19_v20, %v98_v17  ;;  %v11_v27 = vld [vmem:[%s254_s0 + $0x18] sm:$0xff] }
   0x6   :  { %v108_v12 = vld [vmem:[%s254_s0 + $0xa0] sm:$0xff]  ;;  %v109_v23 = vld [vmem:[%s254_s0 + $0xa8] sm:$0xff]  ;;  %v95_v28 = vld [vmem:[%s254_s0 + $0x38] sm:$0xff] }
   0x7   :  { %v35_v11 = vmax.f32 %v26_v5, %v100_v4  ;;  %v112_v21 = vld [vmem:[%s254_s0 + $0xc0] sm:$0xff]  ;;  %v36_v22 = vmax.f32 %v27_v14, %v101_v13  ;;  %v99_v29 = vld [vmem:[%s254_s0 + $0x58] sm:$0xff]  ;;  %v106_v32 = vld [vmem:[%s254_s0 + $0x90] sm:$0xff]  ;;  %v20_v33 = vmax.f32 %v11_v27, %v95_v28  ;;  %v37_v36 = vmax.f32 %v28_v26, %v102_v24 }
   0x8   :  { %v116_v30 = vld [vmem:[%s254_s0 + $0xe0] sm:$0xff]  ;;  %v113_v35 = vld [vmem:[%s254_s0 + $0xc8] sm:$0xff]  ;;  %v103_v37 = vld [vmem:[%s254_s0 + $0x78] sm:$0xff] }
   0x9   :  { %v44_v18 = vmax.f32 %v35_v11, %v104_v9  ;;  %v45_v31 = vmax.f32 %v36_v22, %v105_v19  ;;  %v120_v38 = vld [vmem:[%s254_s0 + $0x100] sm:$0xff]  ;;  %v110_v40 = vld [vmem:[%s254_s0 + $0xb0] sm:$0xff]  ;;  %v29_v41 = vmax.f32 %v20_v33, %v99_v29  ;;  %v117_v43 = vld [vmem:[%s254_s0 + $0xe8] sm:$0xff]  ;;  %v46_v44 = vmax.f32 %v37_v36, %v106_v32 }
   0xa   :  { %v107_v45 = vld [vmem:[%s254_s0 + $0x98] sm:$0xff]  ;;  %v114_v47 = vld [vmem:[%s254_s0 + $0xd0] sm:$0xff]  ;;  %v121_v50 = vld [vmem:[%s254_s0 + $0x108] sm:$0xff] }
   0xb   :  { %v53_v25 = vmax.f32 %v44_v18, %v108_v12  ;;  %v54_v39 = vmax.f32 %v45_v31, %v109_v23  ;;  %v38_v48 = vmax.f32 %v29_v41, %v103_v37  ;;  %v55_v51 = vmax.f32 %v46_v44, %v110_v40  ;;  %v111_v52 = vld [vmem:[%s254_s0 + $0xb8] sm:$0xff]  ;;  %v118_v54 = vld [vmem:[%s254_s0 + $0xf0] sm:$0xff] }
   0xc   :  { %v115_v57 = vld [vmem:[%s254_s0 + $0xd8] sm:$0xff]  ;;  %v122_v59 = vld [vmem:[%s254_s0 + $0x110] sm:$0xff] }
   0xd   :  { %v62_v34 = vmax.f32 %v53_v25, %v112_v21  ;;  %v63_v46 = vmax.f32 %v54_v39, %v113_v35  ;;  %v47_v55 = vmax.f32 %v38_v48, %v107_v45  ;;  %v64_v56 = vmax.f32 %v55_v51, %v114_v47  ;;  %v119_v62 = vld [vmem:[%s254_s0 + $0xf8] sm:$0xff] }
   0xe   :  { %v123_v1 = vld [vmem:[%s254_s0 + $0x118] sm:$0xff] }
   0xf   :  { %v71_v42 = vmax.f32 %v62_v34, %v116_v30  ;;  %v72_v53 = vmax.f32 %v63_v46, %v117_v43  ;;  %v56_v60 = vmax.f32 %v47_v55, %v111_v52  ;;  %v73_v61 = vmax.f32 %v64_v56, %v118_v54 }
  0x11   :  { %v80_v49 = vmax.f32 %v71_v42, %v120_v38  ;;  %v81_v58 = vmax.f32 %v72_v53, %v121_v50  ;;  %v65_v63 = vmax.f32 %v56_v60, %v115_v57  ;;  %v82_v0 = vmax.f32 %v73_v61, %v122_v59 }
  0x13   :  { %84 = vst [vmem:[%s255_s1] sm:$0xff] %v80_v49  ;;  %85 = vst [vmem:[%s255_s1 + $0x8] sm:$0xff] %v81_v58  ;;  %v74_v2 = vmax.f32 %v65_v63, %v119_v62 }
  0x14   :  { %86 = vst [vmem:[%s255_s1 + $0x10] sm:$0xff] %v82_v0 }
  0x15   :  { %v83_v3 = vmax.f32 %v74_v2, %v123_v1 }
  0x17   :  { %87 = vst [vmem:[%s255_s1 + $0x18] sm:$0xff] %v83_v3 }

// kernel: _lambda_.24
= control target key start
LH: loop header
LB: loop body
LE: loop exit
PB: predicated region body
PF: predicated region fallthrough
CT: control target
= control target key end

     0   :  { %9 = vsyncpa [#allocation4], 0  ;;  %s471_s0 = inlined_call_operand.hbm [shape: bf16[32,16], index: 0, kind: input, shape index: {}]   ;;  %s472_s1 = inlined_call_operand.hbm [shape: bf16[16,128], index: 1, kind: input, shape index: {}]   ;;  %s473_s2 = inlined_call_operand.hbm [shape: f32[1,128], index: 2, kind: input, shape index: {}]   ;;  %s474_s3 = inlined_call_operand.hbm [shape: f32[1,128], index: 3, kind: input, shape index: {}]   ;;  %s475_s4 = inlined_call_operand.hbm [shape: f32[32,128], index: 4, kind: output, shape index: {}]  }
   0x1   :  { %10 = vsyncpa [#allocation7], 0 }
   0x2   :  { %11 = vsyncpa [#allocation10], 0 }
   0x3   :  { %12 = vsyncpa [#allocation5], 0  ;;  %s370_s15 = smov [#allocation6]   ;;  %s371_s17 = smov [#allocation3]  }
   0x4   :  { %s30_s16 = sshll.u32 %s370_s15, 4  ;;  %s18_s18 = sshll.u32 %s371_s17, 4  ;;  %s31_s16 = int_to_ptr.vmem [resolvable:$true] %s30_s16  ;;  %s404_s18 = int_to_ptr.vmem [resolvable:$true] %s18_s18 }
   0x5   :  { %s252_s21 = scalar_lea.hbm %s472_s1, 128 }
   0x6   :  { %p253_p0 = scmp.ne.s32.totalorder %s472_s1, %s252_s21  ;;  %p256_p1 = scmp.lt.u32.totalorder %s252_s21, %s472_s1 }
   0x8   :  { %p258_p2 = pnand %p256_p1, %p253_p0 }
   0xa   :  { %261 = shalt.err (!%p258_p2)
}
   0xb   :  { %s262_s26 = scalar_lea.vmem %s31_s16, 128  ;;  %p267_p4 = scmp.lt.s32.totalorder %s31_s16, %s31_s16 }
   0xc   :  { %p263_p3 = scmp.ne.s32.totalorder %s31_s16, %s262_s26  ;;  %p268_p5 = scmp.lt.s32.totalorder %s262_s26, %s262_s26 }
   0xe   :  { %p269_p6 = por %p268_p5, %p267_p4 }
  0x10   :  { %p270_p7 = pnand %p269_p6, %p263_p3 }
  0x12   :  { %273 = shalt.err (!%p270_p7)
}
  0x13   :  { %s372_s27 = smov 64   ;;  %s373_s28 = smov 4  }
  0x14   :  { %36 = dma.hbm_to_vmem [thread:$0]  %s472_s1, 128, %s31_s16, [#allocation7], %s372_s27, %s372_s27, %s373_s28  }
  0x15   :  { %s274_s7 = scalar_lea.hbm %s471_s0, 256 }
  0x16   :  { %p275_p8 = scmp.ne.s32.totalorder %s471_s0, %s274_s7  ;;  %p278_p9 = scmp.lt.u32.totalorder %s274_s7, %s471_s0 }
  0x18   :  { %p280_p10 = pnand %p278_p9, %p275_p8 }
  0x1a   :  { %283 = shalt.err (!%p280_p10)
}
  0x1b   :  { %s284_s12 = scalar_lea.vmem %s404_s18, 256  ;;  %p289_p12 = scmp.lt.s32.totalorder %s404_s18, %s404_s18 }
  0x1c   :  { %p285_p11 = scmp.ne.s32.totalorder %s404_s18, %s284_s12  ;;  %p290_p13 = scmp.lt.s32.totalorder %s284_s12, %s284_s12 }
  0x1e   :  { %p291_p0 = por %p290_p13, %p289_p12 }
  0x20   :  { %p292_p1 = pnand %p291_p0, %p285_p11 }
  0x22   :  { %295 = shalt.err (!%p292_p1)
}
  0x23   :  { %24 = dma.hbm_to_vmem [thread:$0]  %s471_s0, 256, %s404_s18, [#allocation4], %s372_s27, %s372_s27, %s373_s28  }
  0x24   :  { %s374_s14 = smov [#allocation8]   ;;  %s375_s16 = smov [#allocation9]  }
  0x25   :  { %s43_s15 = sshll.u32 %s374_s14, 4  ;;  %s53_s17 = sshll.u32 %s375_s16, 4  ;;  %s44_s15 = int_to_ptr.vmem [resolvable:$true] %s43_s15  ;;  %s54_s17 = int_to_ptr.vmem [resolvable:$true] %s53_s17 }
  0x26   :  { %s296_s21 = scalar_lea.hbm %s473_s2, 16 }
  0x27   :  { %p297_p2 = scmp.ne.s32.totalorder %s473_s2, %s296_s21  ;;  %p300_p3 = scmp.lt.u32.totalorder %s296_s21, %s473_s2 }
  0x29   :  { %p302_p4 = pnand %p300_p3, %p297_p2 }
  0x2b   :  { %305 = shalt.err (!%p302_p4)
}
  0x2c   :  { %s306_s0 = scalar_lea.vmem %s44_s15, 16  ;;  %s310_s18 = scalar_lea.vmem %s44_s15, 32 }
  0x2d   :  { %p307_p5 = scmp.ne.s32.totalorder %s44_s15, %s306_s0  ;;  %p311_p6 = scmp.lt.s32.totalorder %s44_s15, %s44_s15 }
  0x2e   :  { %p312_p7 = scmp.lt.s32.totalorder %s310_s18, %s306_s0 }
  0x30   :  { %p313_p8 = por %p312_p7, %p311_p6 }
  0x32   :  { %p314_p9 = pnand %p313_p8, %p307_p5 }
  0x34   :  { %317 = shalt.err (!%p314_p9)
}
  0x35   :  { %46 = dma.hbm_to_vmem [thread:$0]  %s473_s2, 16, %s44_s15, [#allocation7]  }
  0x36   :  { %s318_s30 = scalar_lea.hbm %s474_s3, 16 }
  0x37   :  { %p319_p10 = scmp.ne.s32.totalorder %s474_s3, %s318_s30  ;;  %p322_p11 = scmp.lt.u32.totalorder %s318_s30, %s474_s3 }
  0x39   :  { %p324_p12 = pnand %p322_p11, %p319_p10 }
  0x3b   :  { %327 = shalt.err (!%p324_p12)
}
  0x3c   :  { %s328_s9 = scalar_lea.vmem %s54_s17, 16  ;;  %s332_s10 = scalar_lea.vmem %s54_s17, 32 }
  0x3d   :  { %p329_p13 = scmp.ne.s32.totalorder %s54_s17, %s328_s9  ;;  %p333_p0 = scmp.lt.s32.totalorder %s54_s17, %s54_s17 }
  0x3e   :  { %p334_p1 = scmp.lt.s32.totalorder %s332_s10, %s328_s9 }
  0x40   :  { %p335_p2 = por %p334_p1, %p333_p0 }
  0x42   :  { %p336_p3 = pnand %p335_p2, %p329_p13 }
  0x44   :  { %339 = shalt.err (!%p336_p3)
}
  0x45   :  { %56 = dma.hbm_to_vmem [thread:$0]  %s474_s3, 16, %s54_s17, [#allocation10]  }
  0x46   :  { %362 = dma.done.wait [#allocation4], 256  }
  0x47   :  { %363 = vsyncadd [#allocation4], 4294967040 }
  0x48   :  { %364 = dma.done.wait [#allocation7], 144  }
  0x49   :  { %365 = vsyncadd [#allocation7], 4294967152 }
  0x4a   :  { %366 = dma.done.wait [#allocation10], 16  }
  0x4b   :  { %367 = vsyncadd [#allocation10], 4294967280  ;;  %v249_v0 = vld [vmem:[#allocation6] sm:$0xff]   ;;  %vm104_vm0 = vcmask 130048   ;;  %v250_v1 = vld [vmem:[#allocation3] sm:$0xff]   ;;  %s376_s3 = smov [#allocation11]  }
  0x4c   :  { %234 = vmatprep.subr.bf16.mxu0 %v249_v0  ;;  %v251_v2 = vld [vmem:[#allocation3 + $0x8] sm:$0xff]   ;;  %236 = vmatprep.mubr.msk.bf16.mxu0 %vm104_vm0, %v250_v1  ;;  %v229_v3 = vld [vmem:[#allocation8] ss:$0 sm:$0xff]  ;;  %v230_v5 = vld [vmem:[#allocation9] ss:$0 sm:$0xff]  ;;  %s210_s12 = sshll.u32 %s376_s3, 4  ;;  %s211_s12 = int_to_ptr.vmem [resolvable:$true] %s210_s12 }
  0x4d   :  { %235 = vmatpush3.bf16.msra.mxu0 %v249_v0  ;;  %s340_s1 = scalar_lea.vmem %s211_s12, 512  ;;  %p345_p5 = scmp.lt.s32.totalorder %s211_s12, %s211_s12 }
  0x4e   :  { %p341_p4 = scmp.ne.s32.totalorder %s211_s12, %s340_s1  ;;  %p346_p6 = scmp.lt.s32.totalorder %s340_s1, %s340_s1 }
  0x50   :  { %237 = vmatmul.mubr.msk.bf16.vlgmr.msra.gmra.mrb[0].mxu0 %vm104_vm0, %v251_v2  ;;  %p347_p7 = por %p346_p6, %p345_p5 }
  0x52   :  { %p348_p8 = pnand %p347_p7, %p341_p4 }
 0x123   :  { %v238_v4 = vpop.f32.mrb[0].mxu0 }
 0x124   :  { %v184_v6 = vmul.f32 %v238_v4, %v229_v3  ;;  %v145_v7 = vpop.f32.mrb[1].mxu0 }
 0x125   :  { %v182_v8 = vmul.f32 %v229_v3, %v145_v7  ;;  %v239_v9 = vpop.f32.mrb[2].mxu0 }
 0x126   :  { %v195_v10 = vadd.f32 %v230_v5, %v184_v6  ;;  %v185_v11 = vmul.f32 %v239_v9, %v229_v3  ;;  %v148_v12 = vpop.f32.mrb[3].mxu0 }
 0x127   :  { %v193_v13 = vadd.f32 %v230_v5, %v182_v8  ;;  %v183_v14 = vmul.f32 %v229_v3, %v148_v12 }
 0x128   :  { %v199_v15 = vmax.f32 %v195_v10, 0.0  ;;  %v196_v16 = vadd.f32 %v230_v5, %v185_v11 }
 0x129   :  { %v197_v17 = vmax.f32 %v193_v13, 0.0  ;;  %v194_v18 = vadd.f32 %v230_v5, %v183_v14 }
 0x12a   :  { %203 = vst [vmem:[#allocation11 + $0x10] sm:$0xff] %v199_v15  ;;  %v200_v19 = vmax.f32 %v196_v16, 0.0 }
 0x12b   :  { %201 = vst [vmem:[#allocation11] sm:$0xff] %v197_v17  ;;  %v198_v20 = vmax.f32 %v194_v18, 0.0 }
 0x12c   :  { %204 = vst [vmem:[#allocation11 + $0x18] sm:$0xff] %v200_v19 }
 0x12d   :  { %202 = vst [vmem:[#allocation11 + $0x8] sm:$0xff] %v198_v20 }
 0x12e   :  { %351 = shalt.err (!%p348_p8)
}
 0x12f   :  { %s352_s15 = scalar_lea.hbm %s475_s4, 512 }
 0x130   :  { %p353_p9 = scmp.ne.s32.totalorder %s475_s4, %s352_s15  ;;  %p356_p10 = scmp.lt.u32.totalorder %s352_s15, %s475_s4 }
 0x132   :  { %p358_p11 = pnand %p356_p10, %p353_p9 }
 0x134   :  { %361 = shalt.err (!%p358_p11)
}
 0x135   :  { %s377_s21 = smov 128   ;;  %s378_s22 = smov 8  }
 0x136   :  { %216 = dma.vmem_to_hbm [thread:$0]  %s211_s12, 512, %s475_s4, [#allocation5], %s377_s21, %s377_s21, %s378_s22  }
 0x137   :  { %368 = dma.done.wait [#allocation5], 512  }
 0x138   :  { %369 = vsyncadd [#allocation5], 4294966784 }
 0x139   :  { %220 = vsyncpa [#allocation4], 1 }
 0x13a   :  { %221 = vsyncpa [#allocation7], 1 }
 0x13b   :  { %222 = vsyncpa [#allocation10], 1 }
 0x13c   :  { %223 = vsyncpa [#allocation5], 1 }

// kernel: _lambda_.27
= control target key start
LH: loop header
LB: loop body
LE: loop exit
PB: predicated region body
PF: predicated region fallthrough
CT: control target
= control target key end

     0   :  { %10 = vsyncpa [#allocation4], 0  ;;  %s549_s0 = inlined_call_operand.hbm [shape: bf16[32,16], index: 0, kind: input, shape index: {}]   ;;  %s550_s1 = inlined_call_operand.hbm [shape: bf16[16,128], index: 1, kind: input, shape index: {}]   ;;  %s551_s2 = inlined_call_operand.hbm [shape: f32[1,128], index: 2, kind: input, shape index: {}]   ;;  %s552_s3 = inlined_call_operand.hbm [shape: f32[1,128], index: 3, kind: input, shape index: {}]   ;;  %s553_s4 = inlined_call_operand.hbm [shape: f32[32,128], index: 4, kind: input, shape index: {}]   ;;  %s554_s5 = inlined_call_operand.hbm [shape: f32[32,128], index: 5, kind: output, shape index: {}]  }
   0x1   :  { %11 = vsyncpa [#allocation7], 0 }
   0x2   :  { %12 = vsyncpa [#allocation10], 0 }
   0x3   :  { %13 = vsyncpa [#allocation5], 0  ;;  %s417_s18 = smov [#allocation6]   ;;  %s418_s20 = smov [#allocation9]  }
   0x4   :  { %s31_s19 = sshll.u32 %s417_s18, 4  ;;  %s54_s21 = sshll.u32 %s418_s20, 4  ;;  %s32_s19 = int_to_ptr.vmem [resolvable:$true] %s31_s19  ;;  %s457_s21 = int_to_ptr.vmem [resolvable:$true] %s54_s21 }
   0x5   :  { %s277_s24 = scalar_lea.hbm %s550_s1, 128 }
   0x6   :  { %p278_p0 = scmp.ne.s32.totalorder %s550_s1, %s277_s24  ;;  %p281_p1 = scmp.lt.u32.totalorder %s277_s24, %s550_s1 }
   0x8   :  { %p283_p2 = pnand %p281_p1, %p278_p0 }
   0xa   :  { %286 = shalt.err (!%p283_p2)
}
   0xb   :  { %s287_s29 = scalar_lea.vmem %s32_s19, 128  ;;  %p292_p4 = scmp.lt.s32.totalorder %s32_s19, %s32_s19 }
   0xc   :  { %p288_p3 = scmp.ne.s32.totalorder %s32_s19, %s287_s29  ;;  %p293_p5 = scmp.lt.s32.totalorder %s287_s29, %s287_s29 }
   0xe   :  { %p294_p6 = por %p293_p5, %p292_p4 }
  0x10   :  { %p295_p7 = pnand %p294_p6, %p288_p3 }
  0x12   :  { %298 = shalt.err (!%p295_p7)
}
  0x13   :  { %s419_s30 = smov 64   ;;  %s420_s6 = smov 4  }
  0x14   :  { %37 = dma.hbm_to_vmem [thread:$0]  %s550_s1, 128, %s32_s19, [#allocation7], %s419_s30, %s419_s30, %s420_s6  }
  0x15   :  { %s299_s11 = scalar_lea.hbm %s552_s3, 16 }
  0x16   :  { %p300_p8 = scmp.ne.s32.totalorder %s552_s3, %s299_s11  ;;  %p303_p9 = scmp.lt.u32.totalorder %s299_s11, %s552_s3 }
  0x18   :  { %p305_p10 = pnand %p303_p9, %p300_p8 }
  0x1a   :  { %308 = shalt.err (!%p305_p10)
}
  0x1b   :  { %s309_s16 = scalar_lea.vmem %s457_s21, 16  ;;  %s313_s1 = scalar_lea.vmem %s457_s21, 32 }
  0x1c   :  { %p310_p11 = scmp.ne.s32.totalorder %s457_s21, %s309_s16  ;;  %p314_p12 = scmp.lt.s32.totalorder %s457_s21, %s457_s21 }
  0x1d   :  { %p315_p13 = scmp.lt.s32.totalorder %s313_s1, %s309_s16 }
  0x1f   :  { %p316_p0 = por %p315_p13, %p314_p12 }
  0x21   :  { %p317_p1 = pnand %p316_p0, %p310_p11 }
  0x23   :  { %320 = shalt.err (!%p317_p1)
}
  0x24   :  { %57 = dma.hbm_to_vmem [thread:$0]  %s552_s3, 16, %s457_s21, [#allocation10]  }
  0x25   :  { %s421_s19 = smov [#allocation3]   ;;  %s422_s22 = smov [#allocation8]  }
  0x26   :  { %s19_s20 = sshll.u32 %s421_s19, 4  ;;  %s44_s23 = sshll.u32 %s422_s22, 4  ;;  %s20_s20 = int_to_ptr.vmem [resolvable:$true] %s19_s20  ;;  %s45_s23 = int_to_ptr.vmem [resolvable:$true] %s44_s23 }
  0x27   :  { %s321_s26 = scalar_lea.hbm %s549_s0, 256 }
  0x28   :  { %p322_p2 = scmp.ne.s32.totalorder %s549_s0, %s321_s26  ;;  %p325_p3 = scmp.lt.u32.totalorder %s321_s26, %s549_s0 }
  0x2a   :  { %p327_p4 = pnand %p325_p3, %p322_p2 }
  0x2c   :  { %330 = shalt.err (!%p327_p4)
}
  0x2d   :  { %s331_s3 = scalar_lea.vmem %s20_s20, 256  ;;  %p336_p6 = scmp.lt.s32.totalorder %s20_s20, %s20_s20 }
  0x2e   :  { %p332_p5 = scmp.ne.s32.totalorder %s20_s20, %s331_s3  ;;  %p337_p7 = scmp.lt.s32.totalorder %s331_s3, %s331_s3 }
  0x30   :  { %p338_p8 = por %p337_p7, %p336_p6 }
  0x32   :  { %p339_p9 = pnand %p338_p8, %p332_p5 }
  0x34   :  { %342 = shalt.err (!%p339_p9)
}
  0x35   :  { %25 = dma.hbm_to_vmem [thread:$0]  %s549_s0, 256, %s20_s20, [#allocation4], %s419_s30, %s419_s30, %s420_s6  }
  0x36   :  { %s343_s11 = scalar_lea.hbm %s551_s2, 16 }
  0x37   :  { %p344_p10 = scmp.ne.s32.totalorder %s551_s2, %s343_s11  ;;  %p347_p11 = scmp.lt.u32.totalorder %s343_s11, %s551_s2 }
  0x39   :  { %p349_p12 = pnand %p347_p11, %p344_p10 }
  0x3b   :  { %352 = shalt.err (!%p349_p12)
}
  0x3c   :  { %s353_s16 = scalar_lea.vmem %s45_s23, 16  ;;  %s357_s1 = scalar_lea.vmem %s45_s23, 32 }
  0x3d   :  { %p354_p13 = scmp.ne.s32.totalorder %s45_s23, %s353_s16  ;;  %p358_p0 = scmp.lt.s32.totalorder %s45_s23, %s45_s23 }
  0x3e   :  { %p359_p1 = scmp.lt.s32.totalorder %s357_s1, %s353_s16 }
  0x40   :  { %p360_p2 = por %p359_p1, %p358_p0 }
  0x42   :  { %p361_p3 = pnand %p360_p2, %p354_p13 }
  0x44   :  { %364 = shalt.err (!%p361_p3)
}
  0x45   :  { %47 = dma.hbm_to_vmem [thread:$0]  %s551_s2, 16, %s45_s23, [#allocation7]  }
  0x46   :  { %s423_s6 = smov [#allocation11]   ;;  %s365_s20 = scalar_lea.hbm %s553_s4, 512 }
  0x47   :  { %s63_s17 = sshll.u32 %s423_s6, 4  ;;  %p366_p4 = scmp.ne.s32.totalorder %s553_s4, %s365_s20  ;;  %s64_s17 = int_to_ptr.vmem [resolvable:$true] %s63_s17 }
  0x48   :  { %p369_p5 = scmp.lt.u32.totalorder %s365_s20, %s553_s4 }
  0x4a   :  { %p371_p6 = pnand %p369_p5, %p366_p4 }
  0x4c   :  { %374 = shalt.err (!%p371_p6)
}
  0x4d   :  { %s375_s27 = scalar_lea.vmem %s64_s17, 512  ;;  %p380_p8 = scmp.lt.s32.totalorder %s64_s17, %s64_s17 }
  0x4e   :  { %p376_p7 = scmp.ne.s32.totalorder %s64_s17, %s375_s27  ;;  %p381_p9 = scmp.lt.s32.totalorder %s375_s27, %s375_s27 }
  0x50   :  { %p382_p10 = por %p381_p9, %p380_p8 }
  0x52   :  { %p383_p11 = pnand %p382_p10, %p376_p7 }
  0x54   :  { %386 = shalt.err (!%p383_p11)
}
  0x55   :  { %s424_s2 = smov 128   ;;  %s425_s23 = smov 8  }
  0x56   :  { %69 = dma.hbm_to_vmem [thread:$0]  %s553_s4, 512, %s64_s17, [#allocation10], %s424_s2, %s424_s2, %s425_s23  }
  0x57   :  { %409 = dma.done.wait [#allocation4], 256  }
  0x58   :  { %410 = vsyncadd [#allocation4], 4294967040 }
  0x59   :  { %411 = dma.done.wait [#allocation7], 144  }
  0x5a   :  { %412 = vsyncadd [#allocation7], 4294967152 }
  0x5b   :  { %413 = dma.done.wait [#allocation10], 528  }
  0x5c   :  { %414 = vsyncadd [#allocation10], 4294966768  ;;  %v274_v0 = vld [vmem:[#allocation6] sm:$0xff]   ;;  %vm120_vm0 = vcmask 130048   ;;  %v275_v1 = vld [vmem:[#allocation3] sm:$0xff]   ;;  %s426_s4 = smov [#allocation12]  }
  0x5d   :  { %258 = vmatprep.subr.bf16.mxu0 %v274_v0  ;;  %v276_v2 = vld [vmem:[#allocation3 + $0x8] sm:$0xff]   ;;  %260 = vmatprep.mubr.msk.bf16.mxu0 %vm120_vm0, %v275_v1  ;;  %v253_v3 = vld [vmem:[#allocation8] ss:$0 sm:$0xff]  ;;  %v254_v5 = vld [vmem:[#allocation9] ss:$0 sm:$0xff]  ;;  %s234_s7 = sshll.u32 %s426_s4, 4  ;;  %s235_s7 = int_to_ptr.vmem [resolvable:$true] %s234_s7 }
  0x5e   :  { %259 = vmatpush3.bf16.msra.mxu0 %v274_v0  ;;  %v215_v8 = vld [vmem:[#allocation11 + $0x10] sm:$0xff]  ;;  %v213_v12 = vld [vmem:[#allocation11] sm:$0xff]  ;;  %v216_v16 = vld [vmem:[#allocation11 + $0x18] sm:$0xff]  ;;  %s387_s3 = scalar_lea.vmem %s235_s7, 512  ;;  %p392_p13 = scmp.lt.s32.totalorder %s235_s7, %s235_s7 }
  0x5f   :  { %v214_v20 = vld [vmem:[#allocation11 + $0x8] sm:$0xff]  ;;  %p388_p12 = scmp.ne.s32.totalorder %s235_s7, %s387_s3  ;;  %p393_p0 = scmp.lt.s32.totalorder %s387_s3, %s387_s3 }
  0x61   :  { %261 = vmatmul.mubr.msk.bf16.vlgmr.msra.gmra.mrb[0].mxu0 %vm120_vm0, %v276_v2  ;;  %p394_p1 = por %p393_p0, %p392_p13 }
  0x63   :  { %p395_p2 = pnand %p394_p1, %p388_p12 }
 0x134   :  { %v262_v4 = vpop.f32.mrb[0].mxu0 }
 0x135   :  { %v200_v6 = vmul.f32 %v262_v4, %v253_v3  ;;  %v161_v7 = vpop.f32.mrb[1].mxu0 }
 0x136   :  { %v198_v9 = vmul.f32 %v253_v3, %v161_v7  ;;  %v263_v10 = vpop.f32.mrb[2].mxu0 }
 0x137   :  { %v211_v11 = vadd.f32 %v254_v5, %v200_v6  ;;  %v201_v13 = vmul.f32 %v263_v10, %v253_v3  ;;  %v164_v14 = vpop.f32.mrb[3].mxu0 }
 0x138   :  { %v209_v15 = vadd.f32 %v254_v5, %v198_v9  ;;  %v199_v17 = vmul.f32 %v253_v3, %v164_v14 }
 0x139   :  { %v219_v18 = vadd.f32 %v215_v8, %v211_v11  ;;  %v212_v19 = vadd.f32 %v254_v5, %v201_v13 }
 0x13a   :  { %v217_v21 = vadd.f32 %v213_v12, %v209_v15  ;;  %v210_v22 = vadd.f32 %v254_v5, %v199_v17 }
 0x13b   :  { %v223_v23 = vmax.f32 %v219_v18, 0.0  ;;  %v220_v24 = vadd.f32 %v216_v16, %v212_v19 }
 0x13c   :  { %v221_v25 = vmax.f32 %v217_v21, 0.0  ;;  %v218_v26 = vadd.f32 %v214_v20, %v210_v22 }
 0x13d   :  { %227 = vst [vmem:[#allocation12 + $0x10] sm:$0xff] %v223_v23  ;;  %v224_v27 = vmax.f32 %v220_v24, 0.0 }
 0x13e   :  { %225 = vst [vmem:[#allocation12] sm:$0xff] %v221_v25  ;;  %v222_v28 = vmax.f32 %v218_v26, 0.0 }
 0x13f   :  { %228 = vst [vmem:[#allocation12 + $0x18] sm:$0xff] %v224_v27 }
 0x140   :  { %226 = vst [vmem:[#allocation12 + $0x8] sm:$0xff] %v222_v28 }
 0x141   :  { %398 = shalt.err (!%p395_p2)
}
 0x142   :  { %s399_s9 = scalar_lea.hbm %s554_s5, 512 }
 0x143   :  { %p400_p3 = scmp.ne.s32.totalorder %s554_s5, %s399_s9  ;;  %p403_p4 = scmp.lt.u32.totalorder %s399_s9, %s554_s5 }
 0x145   :  { %p405_p5 = pnand %p403_p4, %p400_p3 }
 0x147   :  { %408 = shalt.err (!%p405_p5)
}
 0x148   :  { %240 = dma.vmem_to_hbm [thread:$0]  %s235_s7, 512, %s554_s5, [#allocation5], %s424_s2, %s424_s2, %s425_s23  }
 0x149   :  { %415 = dma.done.wait [#allocation5], 512  }
 0x14a   :  { %416 = vsyncadd [#allocation5], 4294966784 }
 0x14b   :  { %244 = vsyncpa [#allocation4], 1 }
 0x14c   :  { %245 = vsyncpa [#allocation7], 1 }
 0x14d   :  { %246 = vsyncpa [#allocation10], 1 }
 0x14e   :  { %247 = vsyncpa [#allocation5], 1 }

// kernel: _lambda_.25
= control target key start
LH: loop header
LB: loop body
LE: loop exit
PB: predicated region body
PF: predicated region fallthrough
CT: control target
= control target key end

     0   :  { %9 = vsyncpa [#allocation4], 0  ;;  %s523_s0 = inlined_call_operand.hbm [shape: bf16[32,80], index: 0, kind: input, shape index: {}]   ;;  %s524_s1 = inlined_call_operand.hbm [shape: bf16[80,128], index: 1, kind: input, shape index: {}]   ;;  %s525_s2 = inlined_call_operand.hbm [shape: f32[1,128], index: 2, kind: input, shape index: {}]   ;;  %s526_s3 = inlined_call_operand.hbm [shape: f32[1,128], index: 3, kind: input, shape index: {}]   ;;  %s527_s4 = inlined_call_operand.hbm [shape: f32[32,128], index: 4, kind: output, shape index: {}]  }
   0x1   :  { %10 = vsyncpa [#allocation7], 0 }
   0x2   :  { %11 = vsyncpa [#allocation10], 0 }
   0x3   :  { %12 = vsyncpa [#allocation5], 0  ;;  %s422_s15 = smov [#allocation6]   ;;  %s423_s17 = smov [#allocation3]  }
   0x4   :  { %s30_s16 = sshll.u32 %s422_s15, 4  ;;  %s18_s18 = sshll.u32 %s423_s17, 4  ;;  %s31_s16 = int_to_ptr.vmem [resolvable:$true] %s30_s16  ;;  %s456_s18 = int_to_ptr.vmem [resolvable:$true] %s18_s18 }
   0x5   :  { %s304_s21 = scalar_lea.hbm %s524_s1, 640 }
   0x6   :  { %p305_p0 = scmp.ne.s32.totalorder %s524_s1, %s304_s21  ;;  %p308_p1 = scmp.lt.u32.totalorder %s304_s21, %s524_s1 }
   0x8   :  { %p310_p2 = pnand %p308_p1, %p305_p0 }
   0xa   :  { %313 = shalt.err (!%p310_p2)
}
   0xb   :  { %s314_s26 = scalar_lea.vmem %s31_s16, 640  ;;  %p319_p4 = scmp.lt.s32.totalorder %s31_s16, %s31_s16 }
   0xc   :  { %p315_p3 = scmp.ne.s32.totalorder %s31_s16, %s314_s26  ;;  %p320_p5 = scmp.lt.s32.totalorder %s314_s26, %s314_s26 }
   0xe   :  { %p321_p6 = por %p320_p5, %p319_p4 }
  0x10   :  { %p322_p7 = pnand %p321_p6, %p315_p3 }
  0x12   :  { %325 = shalt.err (!%p322_p7)
}
  0x13   :  { %s424_s27 = smov 64   ;;  %s425_s28 = smov 4  }
  0x14   :  { %36 = dma.hbm_to_vmem [thread:$0]  %s524_s1, 640, %s31_s16, [#allocation7], %s424_s27, %s424_s27, %s425_s28  }
  0x15   :  { %s326_s7 = scalar_lea.hbm %s523_s0, 256 }
  0x16   :  { %p327_p8 = scmp.ne.s32.totalorder %s523_s0, %s326_s7  ;;  %p330_p9 = scmp.lt.u32.totalorder %s326_s7, %s523_s0 }
  0x18   :  { %p332_p10 = pnand %p330_p9, %p327_p8 }
  0x1a   :  { %335 = shalt.err (!%p332_p10)
}
  0x1b   :  { %s336_s12 = scalar_lea.vmem %s456_s18, 256  ;;  %p341_p12 = scmp.lt.s32.totalorder %s456_s18, %s456_s18 }
  0x1c   :  { %p337_p11 = scmp.ne.s32.totalorder %s456_s18, %s336_s12  ;;  %p342_p13 = scmp.lt.s32.totalorder %s336_s12, %s336_s12 }
  0x1e   :  { %p343_p0 = por %p342_p13, %p341_p12 }
  0x20   :  { %p344_p1 = pnand %p343_p0, %p337_p11 }
  0x22   :  { %347 = shalt.err (!%p344_p1)
}
  0x23   :  { %24 = dma.hbm_to_vmem [thread:$0]  %s523_s0, 256, %s456_s18, [#allocation4], %s424_s27, %s424_s27, %s425_s28  }
  0x24   :  { %s426_s14 = smov [#allocation8]   ;;  %s427_s16 = smov [#allocation9]  }
  0x25   :  { %s43_s15 = sshll.u32 %s426_s14, 4  ;;  %s53_s17 = sshll.u32 %s427_s16, 4  ;;  %s44_s15 = int_to_ptr.vmem [resolvable:$true] %s43_s15  ;;  %s54_s17 = int_to_ptr.vmem [resolvable:$true] %s53_s17 }
  0x26   :  { %s348_s21 = scalar_lea.hbm %s525_s2, 16 }
  0x27   :  { %p349_p2 = scmp.ne.s32.totalorder %s525_s2, %s348_s21  ;;  %p352_p3 = scmp.lt.u32.totalorder %s348_s21, %s525_s2 }
  0x29   :  { %p354_p4 = pnand %p352_p3, %p349_p2 }
  0x2b   :  { %357 = shalt.err (!%p354_p4)
}
  0x2c   :  { %s358_s0 = scalar_lea.vmem %s44_s15, 16  ;;  %s362_s18 = scalar_lea.vmem %s44_s15, 32 }
  0x2d   :  { %p359_p5 = scmp.ne.s32.totalorder %s44_s15, %s358_s0  ;;  %p363_p6 = scmp.lt.s32.totalorder %s44_s15, %s44_s15 }
  0x2e   :  { %p364_p7 = scmp.lt.s32.totalorder %s362_s18, %s358_s0 }
  0x30   :  { %p365_p8 = por %p364_p7, %p363_p6 }
  0x32   :  { %p366_p9 = pnand %p365_p8, %p359_p5 }
  0x34   :  { %369 = shalt.err (!%p366_p9)
}
  0x35   :  { %46 = dma.hbm_to_vmem [thread:$0]  %s525_s2, 16, %s44_s15, [#allocation7]  }
  0x36   :  { %s370_s30 = scalar_lea.hbm %s526_s3, 16 }
  0x37   :  { %p371_p10 = scmp.ne.s32.totalorder %s526_s3, %s370_s30  ;;  %p374_p11 = scmp.lt.u32.totalorder %s370_s30, %s526_s3 }
  0x39   :  { %p376_p12 = pnand %p374_p11, %p371_p10 }
  0x3b   :  { %379 = shalt.err (!%p376_p12)
}
  0x3c   :  { %s380_s9 = scalar_lea.vmem %s54_s17, 16  ;;  %s384_s10 = scalar_lea.vmem %s54_s17, 32 }
  0x3d   :  { %p381_p13 = scmp.ne.s32.totalorder %s54_s17, %s380_s9  ;;  %p385_p0 = scmp.lt.s32.totalorder %s54_s17, %s54_s17 }
  0x3e   :  { %p386_p1 = scmp.lt.s32.totalorder %s384_s10, %s380_s9 }
  0x40   :  { %p387_p2 = por %p386_p1, %p385_p0 }
  0x42   :  { %p388_p3 = pnand %p387_p2, %p381_p13 }
  0x44   :  { %391 = shalt.err (!%p388_p3)
}
  0x45   :  { %56 = dma.hbm_to_vmem [thread:$0]  %s526_s3, 16, %s54_s17, [#allocation10]  }
  0x46   :  { %414 = dma.done.wait [#allocation4], 256  }
  0x47   :  { %415 = vsyncadd [#allocation4], 4294967040 }
  0x48   :  { %416 = dma.done.wait [#allocation7], 656  }
  0x49   :  { %417 = vsyncadd [#allocation7], 4294966640 }
  0x4a   :  { %418 = dma.done.wait [#allocation10], 16  }
  0x4b   :  { %419 = vsyncadd [#allocation10], 4294967280  ;;  %v297_v0 = vld [vmem:[#allocation6] sm:$0xff]   ;;  %v298_v1 = vld [vmem:[#allocation6 + $0x8] sm:$0xff]   ;;  %vm136_vm0 = vcmask 654336   ;;  %s428_s3 = smov [#allocation11]  }
  0x4c   :  { %274 = vmatprep.subr.bf16.mxu0 %v297_v0  ;;  %v299_v2 = vld [vmem:[#allocation6 + $0x10] sm:$0xff]   ;;  %v300_v4 = vld [vmem:[#allocation6 + $0x18] sm:$0xff]   ;;  %v301_v5 = vld [vmem:[#allocation6 + $0x20] sm:$0xff]   ;;  %s242_s12 = sshll.u32 %s428_s3, 4  ;;  %s243_s12 = int_to_ptr.vmem [resolvable:$true] %s242_s12 }
  0x4d   :  { %275 = vmatpush3.bf16.msra.mxu0 %v297_v0  ;;  %v302_v3 = vld [vmem:[#allocation3] sm:$0xff]   ;;  %v303_v6 = vld [vmem:[#allocation3 + $0x8] sm:$0xff]   ;;  %v265_v7 = vld [vmem:[#allocation8] ss:$0 sm:$0xff]  ;;  %s392_s1 = scalar_lea.vmem %s243_s12, 512  ;;  %p397_p5 = scmp.lt.s32.totalorder %s243_s12, %s243_s12 }
  0x4e   :  { %276 = vmatprep.subr.bf16.mxu0 %v298_v1  ;;  %284 = vmatprep.mubr.msk.bf16.mxu0 %vm136_vm0, %v302_v3  ;;  %v266_v9 = vld [vmem:[#allocation9] ss:$0 sm:$0xff]  ;;  %p393_p4 = scmp.ne.s32.totalorder %s243_s12, %s392_s1  ;;  %p398_p6 = scmp.lt.s32.totalorder %s392_s1, %s392_s1 }
  0x50   :  { %p399_p7 = por %p398_p6, %p397_p5 }
  0x51   :  { %277 = vmatpush3.bf16.msra.mxu0 %v298_v1 }
  0x52   :  { %278 = vmatprep.subr.bf16.mxu0 %v299_v2  ;;  %p400_p8 = pnand %p399_p7, %p393_p4 }
  0x55   :  { %279 = vmatpush3.bf16.msra.mxu0 %v299_v2 }
  0x56   :  { %280 = vmatprep.subr.bf16.mxu0 %v300_v4 }
  0x59   :  { %281 = vmatpush3.bf16.msra.mxu0 %v300_v4 }
  0x5a   :  { %282 = vmatprep.subr.bf16.mxu0 %v301_v5 }
  0x5d   :  { %283 = vmatpush3.bf16.msra.mxu0 %v301_v5 }
  0x60   :  { %285 = vmatmul.mubr.msk.bf16.vlgmr.msra.gmra.mrb[0].mxu0 %vm136_vm0, %v303_v6 }
 0x133   :  { %v286_v8 = vpop.f32.mrb[0].mxu0 }
 0x134   :  { %v216_v10 = vmul.f32 %v286_v8, %v265_v7  ;;  %v177_v11 = vpop.f32.mrb[1].mxu0 }
 0x135   :  { %v214_v12 = vmul.f32 %v265_v7, %v177_v11  ;;  %v287_v13 = vpop.f32.mrb[2].mxu0 }
 0x136   :  { %v227_v14 = vadd.f32 %v266_v9, %v216_v10  ;;  %v217_v15 = vmul.f32 %v287_v13, %v265_v7  ;;  %v180_v16 = vpop.f32.mrb[3].mxu0 }
 0x137   :  { %v225_v17 = vadd.f32 %v266_v9, %v214_v12  ;;  %v215_v18 = vmul.f32 %v265_v7, %v180_v16 }
 0x138   :  { %v231_v19 = vmax.f32 %v227_v14, 0.0  ;;  %v228_v20 = vadd.f32 %v266_v9, %v217_v15 }
 0x139   :  { %v229_v21 = vmax.f32 %v225_v17, 0.0  ;;  %v226_v22 = vadd.f32 %v266_v9, %v215_v18 }
 0x13a   :  { %235 = vst [vmem:[#allocation11 + $0x10] sm:$0xff] %v231_v19  ;;  %v232_v23 = vmax.f32 %v228_v20, 0.0 }
 0x13b   :  { %233 = vst [vmem:[#allocation11] sm:$0xff] %v229_v21  ;;  %v230_v24 = vmax.f32 %v226_v22, 0.0 }
 0x13c   :  { %236 = vst [vmem:[#allocation11 + $0x18] sm:$0xff] %v232_v23 }
 0x13d   :  { %234 = vst [vmem:[#allocation11 + $0x8] sm:$0xff] %v230_v24 }
 0x13e   :  { %403 = shalt.err (!%p400_p8)
}
 0x13f   :  { %s404_s15 = scalar_lea.hbm %s527_s4, 512 }
 0x140   :  { %p405_p9 = scmp.ne.s32.totalorder %s527_s4, %s404_s15  ;;  %p408_p10 = scmp.lt.u32.totalorder %s404_s15, %s527_s4 }
 0x142   :  { %p410_p11 = pnand %p408_p10, %p405_p9 }
 0x144   :  { %413 = shalt.err (!%p410_p11)
}
 0x145   :  { %s429_s21 = smov 128   ;;  %s430_s22 = smov 8  }
 0x146   :  { %248 = dma.vmem_to_hbm [thread:$0]  %s243_s12, 512, %s527_s4, [#allocation5], %s429_s21, %s429_s21, %s430_s22  }
 0x147   :  { %420 = dma.done.wait [#allocation5], 512  }
 0x148   :  { %421 = vsyncadd [#allocation5], 4294966784 }
 0x149   :  { %252 = vsyncpa [#allocation4], 1 }
 0x14a   :  { %253 = vsyncpa [#allocation7], 1 }
 0x14b   :  { %254 = vsyncpa [#allocation10], 1 }
 0x14c   :  { %255 = vsyncpa [#allocation5], 1 }

// kernel: _lambda_.26
= control target key start
LH: loop header
LB: loop body
LE: loop exit
PB: predicated region body
PF: predicated region fallthrough
CT: control target
= control target key end

     0   :  { %9 = vsyncpa [#allocation4], 0  ;;  %s467_s0 = inlined_call_operand.hbm [shape: bf16[32,16], index: 0, kind: input, shape index: {}]   ;;  %s468_s1 = inlined_call_operand.hbm [shape: bf16[16,128], index: 1, kind: input, shape index: {}]   ;;  %s469_s2 = inlined_call_operand.hbm [shape: f32[1,128], index: 2, kind: input, shape index: {}]   ;;  %s470_s3 = inlined_call_operand.hbm [shape: f32[1,128], index: 3, kind: input, shape index: {}]   ;;  %s471_s4 = inlined_call_operand.hbm [shape: f32[32,128], index: 4, kind: output, shape index: {}]  }
   0x1   :  { %10 = vsyncpa [#allocation7], 0 }
   0x2   :  { %11 = vsyncpa [#allocation10], 0 }
   0x3   :  { %12 = vsyncpa [#allocation5], 0  ;;  %s366_s15 = smov [#allocation6]   ;;  %s367_s17 = smov [#allocation3]  }
   0x4   :  { %s30_s16 = sshll.u32 %s366_s15, 4  ;;  %s18_s18 = sshll.u32 %s367_s17, 4  ;;  %s31_s16 = int_to_ptr.vmem [resolvable:$true] %s30_s16  ;;  %s400_s18 = int_to_ptr.vmem [resolvable:$true] %s18_s18 }
   0x5   :  { %s248_s21 = scalar_lea.hbm %s468_s1, 128 }
   0x6   :  { %p249_p0 = scmp.ne.s32.totalorder %s468_s1, %s248_s21  ;;  %p252_p1 = scmp.lt.u32.totalorder %s248_s21, %s468_s1 }
   0x8   :  { %p254_p2 = pnand %p252_p1, %p249_p0 }
   0xa   :  { %257 = shalt.err (!%p254_p2)
}
   0xb   :  { %s258_s26 = scalar_lea.vmem %s31_s16, 128  ;;  %p263_p4 = scmp.lt.s32.totalorder %s31_s16, %s31_s16 }
   0xc   :  { %p259_p3 = scmp.ne.s32.totalorder %s31_s16, %s258_s26  ;;  %p264_p5 = scmp.lt.s32.totalorder %s258_s26, %s258_s26 }
   0xe   :  { %p265_p6 = por %p264_p5, %p263_p4 }
  0x10   :  { %p266_p7 = pnand %p265_p6, %p259_p3 }
  0x12   :  { %269 = shalt.err (!%p266_p7)
}
  0x13   :  { %s368_s27 = smov 64   ;;  %s369_s28 = smov 4  }
  0x14   :  { %36 = dma.hbm_to_vmem [thread:$0]  %s468_s1, 128, %s31_s16, [#allocation7], %s368_s27, %s368_s27, %s369_s28  }
  0x15   :  { %s270_s7 = scalar_lea.hbm %s467_s0, 256 }
  0x16   :  { %p271_p8 = scmp.ne.s32.totalorder %s467_s0, %s270_s7  ;;  %p274_p9 = scmp.lt.u32.totalorder %s270_s7, %s467_s0 }
  0x18   :  { %p276_p10 = pnand %p274_p9, %p271_p8 }
  0x1a   :  { %279 = shalt.err (!%p276_p10)
}
  0x1b   :  { %s280_s12 = scalar_lea.vmem %s400_s18, 256  ;;  %p285_p12 = scmp.lt.s32.totalorder %s400_s18, %s400_s18 }
  0x1c   :  { %p281_p11 = scmp.ne.s32.totalorder %s400_s18, %s280_s12  ;;  %p286_p13 = scmp.lt.s32.totalorder %s280_s12, %s280_s12 }
  0x1e   :  { %p287_p0 = por %p286_p13, %p285_p12 }
  0x20   :  { %p288_p1 = pnand %p287_p0, %p281_p11 }
  0x22   :  { %291 = shalt.err (!%p288_p1)
}
  0x23   :  { %24 = dma.hbm_to_vmem [thread:$0]  %s467_s0, 256, %s400_s18, [#allocation4], %s368_s27, %s368_s27, %s369_s28  }
  0x24   :  { %s370_s14 = smov [#allocation8]   ;;  %s371_s16 = smov [#allocation9]  }
  0x25   :  { %s43_s15 = sshll.u32 %s370_s14, 4  ;;  %s53_s17 = sshll.u32 %s371_s16, 4  ;;  %s44_s15 = int_to_ptr.vmem [resolvable:$true] %s43_s15  ;;  %s54_s17 = int_to_ptr.vmem [resolvable:$true] %s53_s17 }
  0x26   :  { %s292_s21 = scalar_lea.hbm %s469_s2, 16 }
  0x27   :  { %p293_p2 = scmp.ne.s32.totalorder %s469_s2, %s292_s21  ;;  %p296_p3 = scmp.lt.u32.totalorder %s292_s21, %s469_s2 }
  0x29   :  { %p298_p4 = pnand %p296_p3, %p293_p2 }
  0x2b   :  { %301 = shalt.err (!%p298_p4)
}
  0x2c   :  { %s302_s0 = scalar_lea.vmem %s44_s15, 16  ;;  %s306_s18 = scalar_lea.vmem %s44_s15, 32 }
  0x2d   :  { %p303_p5 = scmp.ne.s32.totalorder %s44_s15, %s302_s0  ;;  %p307_p6 = scmp.lt.s32.totalorder %s44_s15, %s44_s15 }
  0x2e   :  { %p308_p7 = scmp.lt.s32.totalorder %s306_s18, %s302_s0 }
  0x30   :  { %p309_p8 = por %p308_p7, %p307_p6 }
  0x32   :  { %p310_p9 = pnand %p309_p8, %p303_p5 }
  0x34   :  { %313 = shalt.err (!%p310_p9)
}
  0x35   :  { %46 = dma.hbm_to_vmem [thread:$0]  %s469_s2, 16, %s44_s15, [#allocation7]  }
  0x36   :  { %s314_s30 = scalar_lea.hbm %s470_s3, 16 }
  0x37   :  { %p315_p10 = scmp.ne.s32.totalorder %s470_s3, %s314_s30  ;;  %p318_p11 = scmp.lt.u32.totalorder %s314_s30, %s470_s3 }
  0x39   :  { %p320_p12 = pnand %p318_p11, %p315_p10 }
  0x3b   :  { %323 = shalt.err (!%p320_p12)
}
  0x3c   :  { %s324_s9 = scalar_lea.vmem %s54_s17, 16  ;;  %s328_s10 = scalar_lea.vmem %s54_s17, 32 }
  0x3d   :  { %p325_p13 = scmp.ne.s32.totalorder %s54_s17, %s324_s9  ;;  %p329_p0 = scmp.lt.s32.totalorder %s54_s17, %s54_s17 }
  0x3e   :  { %p330_p1 = scmp.lt.s32.totalorder %s328_s10, %s324_s9 }
  0x40   :  { %p331_p2 = por %p330_p1, %p329_p0 }
  0x42   :  { %p332_p3 = pnand %p331_p2, %p325_p13 }
  0x44   :  { %335 = shalt.err (!%p332_p3)
}
  0x45   :  { %56 = dma.hbm_to_vmem [thread:$0]  %s470_s3, 16, %s54_s17, [#allocation10]  }
  0x46   :  { %358 = dma.done.wait [#allocation4], 256  }
  0x47   :  { %359 = vsyncadd [#allocation4], 4294967040 }
  0x48   :  { %360 = dma.done.wait [#allocation7], 144  }
  0x49   :  { %361 = vsyncadd [#allocation7], 4294967152 }
  0x4a   :  { %362 = dma.done.wait [#allocation10], 16  }
  0x4b   :  { %363 = vsyncadd [#allocation10], 4294967280  ;;  %v245_v0 = vld [vmem:[#allocation6] sm:$0xff]   ;;  %vm104_vm0 = vcmask 130048   ;;  %v246_v1 = vld [vmem:[#allocation3] sm:$0xff]   ;;  %s372_s3 = smov [#allocation11]  }
  0x4c   :  { %230 = vmatprep.subr.bf16.mxu0 %v245_v0  ;;  %v247_v2 = vld [vmem:[#allocation3 + $0x8] sm:$0xff]   ;;  %232 = vmatprep.mubr.msk.bf16.mxu0 %vm104_vm0, %v246_v1  ;;  %v225_v3 = vld [vmem:[#allocation8] ss:$0 sm:$0xff]  ;;  %v226_v5 = vld [vmem:[#allocation9] ss:$0 sm:$0xff]  ;;  %s206_s12 = sshll.u32 %s372_s3, 4  ;;  %s207_s12 = int_to_ptr.vmem [resolvable:$true] %s206_s12 }
  0x4d   :  { %231 = vmatpush3.bf16.msra.mxu0 %v245_v0  ;;  %s336_s1 = scalar_lea.vmem %s207_s12, 512  ;;  %p341_p5 = scmp.lt.s32.totalorder %s207_s12, %s207_s12 }
  0x4e   :  { %p337_p4 = scmp.ne.s32.totalorder %s207_s12, %s336_s1  ;;  %p342_p6 = scmp.lt.s32.totalorder %s336_s1, %s336_s1 }
  0x50   :  { %233 = vmatmul.mubr.msk.bf16.vlgmr.msra.gmra.mrb[0].mxu0 %vm104_vm0, %v247_v2  ;;  %p343_p7 = por %p342_p6, %p341_p5 }
  0x52   :  { %p344_p8 = pnand %p343_p7, %p337_p4 }
 0x123   :  { %v234_v4 = vpop.f32.mrb[0].mxu0 }
 0x124   :  { %v184_v6 = vmul.f32 %v234_v4, %v225_v3  ;;  %v145_v7 = vpop.f32.mrb[1].mxu0 }
 0x125   :  { %v182_v8 = vmul.f32 %v225_v3, %v145_v7  ;;  %v235_v9 = vpop.f32.mrb[2].mxu0 }
 0x126   :  { %v195_v10 = vadd.f32 %v226_v5, %v184_v6  ;;  %v185_v11 = vmul.f32 %v235_v9, %v225_v3  ;;  %v148_v12 = vpop.f32.mrb[3].mxu0 }
 0x127   :  { %v193_v13 = vadd.f32 %v226_v5, %v182_v8  ;;  %v183_v14 = vmul.f32 %v225_v3, %v148_v12 }
 0x128   :  { %199 = vst [vmem:[#allocation11 + $0x10] sm:$0xff] %v195_v10  ;;  %v196_v15 = vadd.f32 %v226_v5, %v185_v11 }
 0x129   :  { %197 = vst [vmem:[#allocation11] sm:$0xff] %v193_v13  ;;  %v194_v16 = vadd.f32 %v226_v5, %v183_v14 }
 0x12a   :  { %200 = vst [vmem:[#allocation11 + $0x18] sm:$0xff] %v196_v15 }
 0x12b   :  { %198 = vst [vmem:[#allocation11 + $0x8] sm:$0xff] %v194_v16 }
 0x12c   :  { %347 = shalt.err (!%p344_p8)
}
 0x12d   :  { %s348_s15 = scalar_lea.hbm %s471_s4, 512 }
 0x12e   :  { %p349_p9 = scmp.ne.s32.totalorder %s471_s4, %s348_s15  ;;  %p352_p10 = scmp.lt.u32.totalorder %s348_s15, %s471_s4 }
 0x130   :  { %p354_p11 = pnand %p352_p10, %p349_p9 }
 0x132   :  { %357 = shalt.err (!%p354_p11)
}
 0x133   :  { %s373_s21 = smov 128   ;;  %s374_s22 = smov 8  }
 0x134   :  { %212 = dma.vmem_to_hbm [thread:$0]  %s207_s12, 512, %s471_s4, [#allocation5], %s373_s21, %s373_s21, %s374_s22  }
 0x135   :  { %364 = dma.done.wait [#allocation5], 512  }
 0x136   :  { %365 = vsyncadd [#allocation5], 4294966784 }
 0x137   :  { %216 = vsyncpa [#allocation4], 1 }
 0x138   :  { %217 = vsyncpa [#allocation7], 1 }
 0x139   :  { %218 = vsyncpa [#allocation10], 1 }
 0x13a   :  { %219 = vsyncpa [#allocation5], 1 }

// kernel: _lambda_.28
= control target key start
LH: loop header
LB: loop body
LE: loop exit
PB: predicated region body
PF: predicated region fallthrough
CT: control target
= control target key end

     0   :  { %9 = vsyncpa [#allocation4], 0  ;;  %s484_s0 = inlined_call_operand.hbm [shape: bf16[32,32], index: 0, kind: input, shape index: {}]   ;;  %s485_s1 = inlined_call_operand.hbm [shape: bf16[32,128], index: 1, kind: input, shape index: {}]   ;;  %s486_s2 = inlined_call_operand.hbm [shape: f32[1,128], index: 2, kind: input, shape index: {}]   ;;  %s487_s3 = inlined_call_operand.hbm [shape: f32[1,128], index: 3, kind: input, shape index: {}]   ;;  %s488_s4 = inlined_call_operand.hbm [shape: f32[32,128], index: 4, kind: output, shape index: {}]  }
   0x1   :  { %10 = vsyncpa [#allocation7], 0 }
   0x2   :  { %11 = vsyncpa [#allocation10], 0 }
   0x3   :  { %12 = vsyncpa [#allocation5], 0  ;;  %s383_s15 = smov [#allocation6]   ;;  %s384_s17 = smov [#allocation3]  }
   0x4   :  { %s30_s16 = sshll.u32 %s383_s15, 4  ;;  %s18_s18 = sshll.u32 %s384_s17, 4  ;;  %s31_s16 = int_to_ptr.vmem [resolvable:$true] %s30_s16  ;;  %s417_s18 = int_to_ptr.vmem [resolvable:$true] %s18_s18 }
   0x5   :  { %s265_s21 = scalar_lea.hbm %s485_s1, 256 }
   0x6   :  { %p266_p0 = scmp.ne.s32.totalorder %s485_s1, %s265_s21  ;;  %p269_p1 = scmp.lt.u32.totalorder %s265_s21, %s485_s1 }
   0x8   :  { %p271_p2 = pnand %p269_p1, %p266_p0 }
   0xa   :  { %274 = shalt.err (!%p271_p2)
}
   0xb   :  { %s275_s26 = scalar_lea.vmem %s31_s16, 256  ;;  %p280_p4 = scmp.lt.s32.totalorder %s31_s16, %s31_s16 }
   0xc   :  { %p276_p3 = scmp.ne.s32.totalorder %s31_s16, %s275_s26  ;;  %p281_p5 = scmp.lt.s32.totalorder %s275_s26, %s275_s26 }
   0xe   :  { %p282_p6 = por %p281_p5, %p280_p4 }
  0x10   :  { %p283_p7 = pnand %p282_p6, %p276_p3 }
  0x12   :  { %286 = shalt.err (!%p283_p7)
}
  0x13   :  { %s385_s27 = smov 64   ;;  %s386_s28 = smov 4  }
  0x14   :  { %36 = dma.hbm_to_vmem [thread:$0]  %s485_s1, 256, %s31_s16, [#allocation7], %s385_s27, %s385_s27, %s386_s28  }
  0x15   :  { %s287_s7 = scalar_lea.hbm %s484_s0, 256 }
  0x16   :  { %p288_p8 = scmp.ne.s32.totalorder %s484_s0, %s287_s7  ;;  %p291_p9 = scmp.lt.u32.totalorder %s287_s7, %s484_s0 }
  0x18   :  { %p293_p10 = pnand %p291_p9, %p288_p8 }
  0x1a   :  { %296 = shalt.err (!%p293_p10)
}
  0x1b   :  { %s297_s12 = scalar_lea.vmem %s417_s18, 256  ;;  %p302_p12 = scmp.lt.s32.totalorder %s417_s18, %s417_s18 }
  0x1c   :  { %p298_p11 = scmp.ne.s32.totalorder %s417_s18, %s297_s12  ;;  %p303_p13 = scmp.lt.s32.totalorder %s297_s12, %s297_s12 }
  0x1e   :  { %p304_p0 = por %p303_p13, %p302_p12 }
  0x20   :  { %p305_p1 = pnand %p304_p0, %p298_p11 }
  0x22   :  { %308 = shalt.err (!%p305_p1)
}
  0x23   :  { %24 = dma.hbm_to_vmem [thread:$0]  %s484_s0, 256, %s417_s18, [#allocation4], %s385_s27, %s385_s27, %s386_s28  }
  0x24   :  { %s387_s14 = smov [#allocation8]   ;;  %s388_s16 = smov [#allocation9]  }
  0x25   :  { %s43_s15 = sshll.u32 %s387_s14, 4  ;;  %s53_s17 = sshll.u32 %s388_s16, 4  ;;  %s44_s15 = int_to_ptr.vmem [resolvable:$true] %s43_s15  ;;  %s54_s17 = int_to_ptr.vmem [resolvable:$true] %s53_s17 }
  0x26   :  { %s309_s21 = scalar_lea.hbm %s486_s2, 16 }
  0x27   :  { %p310_p2 = scmp.ne.s32.totalorder %s486_s2, %s309_s21  ;;  %p313_p3 = scmp.lt.u32.totalorder %s309_s21, %s486_s2 }
  0x29   :  { %p315_p4 = pnand %p313_p3, %p310_p2 }
  0x2b   :  { %318 = shalt.err (!%p315_p4)
}
  0x2c   :  { %s319_s0 = scalar_lea.vmem %s44_s15, 16  ;;  %s323_s18 = scalar_lea.vmem %s44_s15, 32 }
  0x2d   :  { %p320_p5 = scmp.ne.s32.totalorder %s44_s15, %s319_s0  ;;  %p324_p6 = scmp.lt.s32.totalorder %s44_s15, %s44_s15 }
  0x2e   :  { %p325_p7 = scmp.lt.s32.totalorder %s323_s18, %s319_s0 }
  0x30   :  { %p326_p8 = por %p325_p7, %p324_p6 }
  0x32   :  { %p327_p9 = pnand %p326_p8, %p320_p5 }
  0x34   :  { %330 = shalt.err (!%p327_p9)
}
  0x35   :  { %46 = dma.hbm_to_vmem [thread:$0]  %s486_s2, 16, %s44_s15, [#allocation7]  }
  0x36   :  { %s331_s30 = scalar_lea.hbm %s487_s3, 16 }
  0x37   :  { %p332_p10 = scmp.ne.s32.totalorder %s487_s3, %s331_s30  ;;  %p335_p11 = scmp.lt.u32.totalorder %s331_s30, %s487_s3 }
  0x39   :  { %p337_p12 = pnand %p335_p11, %p332_p10 }
  0x3b   :  { %340 = shalt.err (!%p337_p12)
}
  0x3c   :  { %s341_s9 = scalar_lea.vmem %s54_s17, 16  ;;  %s345_s10 = scalar_lea.vmem %s54_s17, 32 }
  0x3d   :  { %p342_p13 = scmp.ne.s32.totalorder %s54_s17, %s341_s9  ;;  %p346_p0 = scmp.lt.s32.totalorder %s54_s17, %s54_s17 }
  0x3e   :  { %p347_p1 = scmp.lt.s32.totalorder %s345_s10, %s341_s9 }
  0x40   :  { %p348_p2 = por %p347_p1, %p346_p0 }
  0x42   :  { %p349_p3 = pnand %p348_p2, %p342_p13 }
  0x44   :  { %352 = shalt.err (!%p349_p3)
}
  0x45   :  { %56 = dma.hbm_to_vmem [thread:$0]  %s487_s3, 16, %s54_s17, [#allocation10]  }
  0x46   :  { %375 = dma.done.wait [#allocation4], 256  }
  0x47   :  { %376 = vsyncadd [#allocation4], 4294967040 }
  0x48   :  { %377 = dma.done.wait [#allocation7], 272  }
  0x49   :  { %378 = vsyncadd [#allocation7], 4294967024 }
  0x4a   :  { %379 = dma.done.wait [#allocation10], 16  }
  0x4b   :  { %380 = vsyncadd [#allocation10], 4294967280  ;;  %v261_v0 = vld [vmem:[#allocation6] sm:$0xff]   ;;  %v262_v1 = vld [vmem:[#allocation6 + $0x8] sm:$0xff]   ;;  %vm112_vm0 = vcmask 261120   ;;  %s389_s3 = smov [#allocation11]  }
  0x4c   :  { %244 = vmatprep.subr.bf16.mxu0 %v261_v0  ;;  %v263_v2 = vld [vmem:[#allocation3] sm:$0xff]   ;;  %v264_v3 = vld [vmem:[#allocation3 + $0x8] sm:$0xff]   ;;  %s218_s12 = sshll.u32 %s389_s3, 4  ;;  %s219_s12 = int_to_ptr.vmem [resolvable:$true] %s218_s12 }
  0x4d   :  { %245 = vmatpush3.bf16.msra.mxu0 %v261_v0  ;;  %248 = vmatprep.mubr.msk.bf16.mxu0 %vm112_vm0, %v263_v2  ;;  %v238_v4 = vld [vmem:[#allocation8] ss:$0 sm:$0xff]  ;;  %v239_v6 = vld [vmem:[#allocation9] ss:$0 sm:$0xff]  ;;  %s353_s1 = scalar_lea.vmem %s219_s12, 512  ;;  %p358_p5 = scmp.lt.s32.totalorder %s219_s12, %s219_s12 }
  0x4e   :  { %246 = vmatprep.subr.bf16.mxu0 %v262_v1  ;;  %p354_p4 = scmp.ne.s32.totalorder %s219_s12, %s353_s1  ;;  %p359_p6 = scmp.lt.s32.totalorder %s353_s1, %s353_s1 }
  0x50   :  { %p360_p7 = por %p359_p6, %p358_p5 }
  0x51   :  { %247 = vmatpush3.bf16.msra.mxu0 %v262_v1 }
  0x52   :  { %p361_p8 = pnand %p360_p7, %p354_p4 }
  0x54   :  { %249 = vmatmul.mubr.msk.bf16.vlgmr.msra.gmra.mrb[0].mxu0 %vm112_vm0, %v264_v3 }
 0x127   :  { %v250_v5 = vpop.f32.mrb[0].mxu0 }
 0x128   :  { %v192_v7 = vmul.f32 %v250_v5, %v238_v4  ;;  %v153_v8 = vpop.f32.mrb[1].mxu0 }
 0x129   :  { %v190_v9 = vmul.f32 %v238_v4, %v153_v8  ;;  %v251_v10 = vpop.f32.mrb[2].mxu0 }
 0x12a   :  { %v203_v11 = vadd.f32 %v239_v6, %v192_v7  ;;  %v193_v12 = vmul.f32 %v251_v10, %v238_v4  ;;  %v156_v13 = vpop.f32.mrb[3].mxu0 }
 0x12b   :  { %v201_v14 = vadd.f32 %v239_v6, %v190_v9  ;;  %v191_v15 = vmul.f32 %v238_v4, %v156_v13 }
 0x12c   :  { %v207_v16 = vmax.f32 %v203_v11, 0.0  ;;  %v204_v17 = vadd.f32 %v239_v6, %v193_v12 }
 0x12d   :  { %v205_v18 = vmax.f32 %v201_v14, 0.0  ;;  %v202_v19 = vadd.f32 %v239_v6, %v191_v15 }
 0x12e   :  { %211 = vst [vmem:[#allocation11 + $0x10] sm:$0xff] %v207_v16  ;;  %v208_v20 = vmax.f32 %v204_v17, 0.0 }
 0x12f   :  { %209 = vst [vmem:[#allocation11] sm:$0xff] %v205_v18  ;;  %v206_v21 = vmax.f32 %v202_v19, 0.0 }
 0x130   :  { %212 = vst [vmem:[#allocation11 + $0x18] sm:$0xff] %v208_v20 }
 0x131   :  { %210 = vst [vmem:[#allocation11 + $0x8] sm:$0xff] %v206_v21 }
 0x132   :  { %364 = shalt.err (!%p361_p8)
}
 0x133   :  { %s365_s15 = scalar_lea.hbm %s488_s4, 512 }
 0x134   :  { %p366_p9 = scmp.ne.s32.totalorder %s488_s4, %s365_s15  ;;  %p369_p10 = scmp.lt.u32.totalorder %s365_s15, %s488_s4 }
 0x136   :  { %p371_p11 = pnand %p369_p10, %p366_p9 }
 0x138   :  { %374 = shalt.err (!%p371_p11)
}
 0x139   :  { %s390_s21 = smov 128   ;;  %s391_s22 = smov 8  }
 0x13a   :  { %224 = dma.vmem_to_hbm [thread:$0]  %s219_s12, 512, %s488_s4, [#allocation5], %s390_s21, %s390_s21, %s391_s22  }
 0x13b   :  { %381 = dma.done.wait [#allocation5], 512  }
 0x13c   :  { %382 = vsyncadd [#allocation5], 4294966784 }
 0x13d   :  { %228 = vsyncpa [#allocation4], 1 }
 0x13e   :  { %229 = vsyncpa [#allocation7], 1 }
 0x13f   :  { %230 = vsyncpa [#allocation10], 1 }
 0x140   :  { %231 = vsyncpa [#allocation5], 1 }

// kernel: _lambda_.32
= control target key start
LH: loop header
LB: loop body
LE: loop exit
PB: predicated region body
PF: predicated region fallthrough
CT: control target
= control target key end

     0   :  { %9 = vsyncpa [#allocation4], 0  ;;  %s511_s0 = inlined_call_operand.hbm [shape: bf16[16,144], index: 0, kind: input, shape index: {}]   ;;  %s512_s1 = inlined_call_operand.hbm [shape: bf16[144,128], index: 1, kind: input, shape index: {}]   ;;  %s513_s2 = inlined_call_operand.hbm [shape: f32[1,128], index: 2, kind: input, shape index: {}]   ;;  %s514_s3 = inlined_call_operand.hbm [shape: f32[1,128], index: 3, kind: input, shape index: {}]   ;;  %s515_s4 = inlined_call_operand.hbm [shape: f32[16,128], index: 4, kind: output, shape index: {}]  }
   0x1   :  { %10 = vsyncpa [#allocation7], 0 }
   0x2   :  { %11 = vsyncpa [#allocation10], 0 }
   0x3   :  { %12 = vsyncpa [#allocation5], 0  ;;  %s410_s15 = smov [#allocation6]   ;;  %s292_s19 = scalar_lea.hbm %s512_s1, 1152 }
   0x4   :  { %s30_s16 = sshll.u32 %s410_s15, 4  ;;  %p293_p0 = scmp.ne.s32.totalorder %s512_s1, %s292_s19  ;;  %s31_s16 = int_to_ptr.vmem [resolvable:$true] %s30_s16 }
   0x5   :  { %p296_p1 = scmp.lt.u32.totalorder %s292_s19, %s512_s1 }
   0x7   :  { %p298_p2 = pnand %p296_p1, %p293_p0 }
   0x9   :  { %301 = shalt.err (!%p298_p2)
}
   0xa   :  { %s302_s24 = scalar_lea.vmem %s31_s16, 1152  ;;  %p307_p4 = scmp.lt.s32.totalorder %s31_s16, %s31_s16 }
   0xb   :  { %p303_p3 = scmp.ne.s32.totalorder %s31_s16, %s302_s24  ;;  %p308_p5 = scmp.lt.s32.totalorder %s302_s24, %s302_s24 }
   0xd   :  { %p309_p6 = por %p308_p5, %p307_p4 }
   0xf   :  { %p310_p7 = pnand %p309_p6, %p303_p3 }
  0x11   :  { %313 = shalt.err (!%p310_p7)
}
  0x12   :  { %s411_s25 = smov 64   ;;  %s412_s26 = smov 4  }
  0x13   :  { %36 = dma.hbm_to_vmem [thread:$0]  %s512_s1, 1152, %s31_s16, [#allocation7], %s411_s25, %s411_s25, %s412_s26  }
  0x14   :  { %s413_s29 = smov [#allocation3]   ;;  %s314_s7 = scalar_lea.hbm %s511_s0, 256 }
  0x15   :  { %s18_s30 = sshll.u32 %s413_s29, 4  ;;  %p315_p8 = scmp.ne.s32.totalorder %s511_s0, %s314_s7  ;;  %s19_s30 = int_to_ptr.vmem [resolvable:$true] %s18_s30 }
  0x16   :  { %p318_p9 = scmp.lt.u32.totalorder %s314_s7, %s511_s0 }
  0x18   :  { %p320_p10 = pnand %p318_p9, %p315_p8 }
  0x1a   :  { %323 = shalt.err (!%p320_p10)
}
  0x1b   :  { %s324_s12 = scalar_lea.vmem %s19_s30, 256  ;;  %p329_p12 = scmp.lt.s32.totalorder %s19_s30, %s19_s30 }
  0x1c   :  { %p325_p11 = scmp.ne.s32.totalorder %s19_s30, %s324_s12  ;;  %p330_p13 = scmp.lt.s32.totalorder %s324_s12, %s324_s12 }
  0x1e   :  { %p331_p0 = por %p330_p13, %p329_p12 }
  0x20   :  { %p332_p1 = pnand %p331_p0, %p325_p11 }
  0x22   :  { %335 = shalt.err (!%p332_p1)
}
  0x23   :  { %s414_s1 = smov 128   ;;  %s415_s13 = smov 8  }
  0x24   :  { %24 = dma.hbm_to_vmem [thread:$0]  %s511_s0, 256, %s19_s30, [#allocation4], %s414_s1, %s414_s1, %s415_s13  }
  0x25   :  { %s416_s16 = smov [#allocation8]   ;;  %s417_s18 = smov [#allocation9]  }
  0x26   :  { %s43_s17 = sshll.u32 %s416_s16, 4  ;;  %s53_s19 = sshll.u32 %s417_s18, 4  ;;  %s44_s17 = int_to_ptr.vmem [resolvable:$true] %s43_s17  ;;  %s54_s19 = int_to_ptr.vmem [resolvable:$true] %s53_s19 }
  0x27   :  { %s336_s22 = scalar_lea.hbm %s513_s2, 16 }
  0x28   :  { %p337_p2 = scmp.ne.s32.totalorder %s513_s2, %s336_s22  ;;  %p340_p3 = scmp.lt.u32.totalorder %s336_s22, %s513_s2 }
  0x2a   :  { %p342_p4 = pnand %p340_p3, %p337_p2 }
  0x2c   :  { %345 = shalt.err (!%p342_p4)
}
  0x2d   :  { %s346_s0 = scalar_lea.vmem %s44_s17, 16  ;;  %s350_s27 = scalar_lea.vmem %s44_s17, 32 }
  0x2e   :  { %p347_p5 = scmp.ne.s32.totalorder %s44_s17, %s346_s0  ;;  %p351_p6 = scmp.lt.s32.totalorder %s44_s17, %s44_s17 }
  0x2f   :  { %p352_p7 = scmp.lt.s32.totalorder %s350_s27, %s346_s0 }
  0x31   :  { %p353_p8 = por %p352_p7, %p351_p6 }
  0x33   :  { %p354_p9 = pnand %p353_p8, %p347_p5 }
  0x35   :  { %357 = shalt.err (!%p354_p9)
}
  0x36   :  { %46 = dma.hbm_to_vmem [thread:$0]  %s513_s2, 16, %s44_s17, [#allocation7]  }
  0x37   :  { %s358_s6 = scalar_lea.hbm %s514_s3, 16 }
  0x38   :  { %p359_p10 = scmp.ne.s32.totalorder %s514_s3, %s358_s6  ;;  %p362_p11 = scmp.lt.u32.totalorder %s358_s6, %s514_s3 }
  0x3a   :  { %p364_p12 = pnand %p362_p11, %p359_p10 }
  0x3c   :  { %367 = shalt.err (!%p364_p12)
}
  0x3d   :  { %s368_s11 = scalar_lea.vmem %s54_s19, 16  ;;  %s372_s12 = scalar_lea.vmem %s54_s19, 32 }
  0x3e   :  { %p369_p13 = scmp.ne.s32.totalorder %s54_s19, %s368_s11  ;;  %p373_p0 = scmp.lt.s32.totalorder %s54_s19, %s54_s19 }
  0x3f   :  { %p374_p1 = scmp.lt.s32.totalorder %s372_s12, %s368_s11 }
  0x41   :  { %p375_p2 = por %p374_p1, %p373_p0 }
  0x43   :  { %p376_p3 = pnand %p375_p2, %p369_p13 }
  0x45   :  { %379 = shalt.err (!%p376_p3)
}
  0x46   :  { %56 = dma.hbm_to_vmem [thread:$0]  %s514_s3, 16, %s54_s19, [#allocation10]  }
  0x47   :  { %402 = dma.done.wait [#allocation4], 256  }
  0x48   :  { %403 = vsyncadd [#allocation4], 4294967040 }
  0x49   :  { %404 = dma.done.wait [#allocation7], 1168  }
  0x4a   :  { %405 = vsyncadd [#allocation7], 4294966128 }
  0x4b   :  { %406 = dma.done.wait [#allocation10], 16  }
  0x4c   :  { %407 = vsyncadd [#allocation10], 4294967280  ;;  %v418_v0 = vmov 0   ;;  %v280_v1 = vld [vmem:[#allocation6] sm:$0xff]   ;;  %v281_v2 = vld [vmem:[#allocation6 + $0x8] sm:$0xff]   ;;  %vm161_vm0 = vcmask 130048  }
  0x4d   :  { %165 = vmatprep.subr.bf16.mxu0 %v418_v0  ;;  %v282_v3 = vld [vmem:[#allocation6 + $0x10] sm:$0xff]   ;;  %v283_v4 = vld [vmem:[#allocation6 + $0x18] sm:$0xff]   ;;  %v284_v6 = vld [vmem:[#allocation6 + $0x20] sm:$0xff]   ;;  %s419_s3 = smov [#allocation11]  }
  0x4e   :  { %166 = vmatpush1.bf16.msra.mxu0 %v280_v1  ;;  %v291_v5 = vld [vmem:[#allocation3 + $0x4] ss:$8 sps:$4 sm:$0xff]   ;;  %v285_v7 = vld [vmem:[#allocation6 + $0x28] sm:$0xff]   ;;  %v288_v10 = vld [vmem:[#allocation6 + $0x40] sm:$0xff]   ;;  %s242_s15 = sshll.u32 %s419_s3, 4  ;;  %s243_s15 = int_to_ptr.vmem [resolvable:$true] %s242_s15 }
  0x4f   :  { %167 = vmatprep.subr.bf16.mxu0 %v418_v0  ;;  %267 = vmatprep.mubr.msk.bf16.mxu0 %vm161_vm0, %v291_v5  ;;  %v286_v8 = vld [vmem:[#allocation6 + $0x30] sm:$0xff]   ;;  %v287_v9 = vld [vmem:[#allocation6 + $0x38] sm:$0xff]   ;;  %v268_v12 = vld [vmem:[#allocation8] ss:$0 sm:$0xff]  ;;  %s380_s16 = scalar_lea.vmem %s243_s15, 256  ;;  %p385_p5 = scmp.lt.s32.totalorder %s243_s15, %s243_s15 }
  0x50   :  { %v289_v11 = vld [vmem:[#allocation3] ss:$8 sps:$4 sm:$0xff]   ;;  %v269_v14 = vld [vmem:[#allocation9] ss:$0 sm:$0xff]  ;;  %p381_p4 = scmp.ne.s32.totalorder %s243_s15, %s380_s16  ;;  %p386_p6 = scmp.lt.s32.totalorder %s380_s16, %s380_s16 }
  0x52   :  { %168 = vmatpush1.bf16.msra.mxu0 %v281_v2  ;;  %p387_p7 = por %p386_p6, %p385_p5 }
  0x53   :  { %169 = vmatprep.subr.bf16.mxu0 %v418_v0 }
  0x54   :  { %p388_p8 = pnand %p387_p7, %p381_p4 }
  0x56   :  { %170 = vmatpush1.bf16.msra.mxu0 %v282_v3 }
  0x57   :  { %171 = vmatprep.subr.bf16.mxu0 %v418_v0 }
  0x5a   :  { %172 = vmatpush1.bf16.msra.mxu0 %v283_v4 }
  0x5b   :  { %173 = vmatprep.subr.bf16.mxu0 %v418_v0 }
  0x5e   :  { %174 = vmatpush1.bf16.msra.mxu0 %v284_v6 }
  0x5f   :  { %175 = vmatprep.subr.bf16.mxu0 %v418_v0 }
  0x62   :  { %176 = vmatpush1.bf16.msra.mxu0 %v285_v7 }
  0x63   :  { %177 = vmatprep.subr.bf16.mxu0 %v418_v0 }
  0x66   :  { %178 = vmatpush1.bf16.msra.mxu0 %v286_v8 }
  0x67   :  { %179 = vmatprep.subr.bf16.mxu0 %v418_v0 }
  0x6a   :  { %180 = vmatpush1.bf16.msra.mxu0 %v287_v9 }
  0x6b   :  { %181 = vmatprep.subr.bf16.mxu0 %v418_v0 }
  0x6e   :  { %182 = vmatpush1.bf16.msra.mxu0 %v288_v10 }
  0x71   :  { %198 = vmatmul.mubr.bf16.vlgmr.msra.gmra.mrb[0].mxu0 %v289_v11 }
 0x144   :  { %v199_v13 = vpop.f32.mrb[0].mxu0 }
 0x145   :  { %v222_v15 = vmul.f32 %v268_v12, %v199_v13  ;;  %v201_v16 = vpop.f32.mrb[1].mxu0 }
 0x146   :  { %v202_v17 = vpop.f32.mrb[2].mxu0 }
 0x147   :  { %v231_v18 = vadd.f32 %v269_v14, %v222_v15  ;;  %v223_v19 = vmul.f32 %v268_v12, %v202_v17  ;;  %v204_v20 = vpop.f32.mrb[3].mxu0 }
 0x149   :  { %v233_v21 = vmax.f32 %v231_v18, 0.0  ;;  %v232_v22 = vadd.f32 %v269_v14, %v223_v19 }
 0x14b   :  { %235 = vst [vmem:[#allocation11] sm:$0xff] %v233_v21  ;;  %v234_v23 = vmax.f32 %v232_v22, 0.0 }
 0x14d   :  { %236 = vst [vmem:[#allocation11 + $0x8] sm:$0xff] %v234_v23 }
 0x14e   :  { %391 = shalt.err (!%p388_p8)
}
 0x14f   :  { %s392_s19 = scalar_lea.hbm %s515_s4, 256 }
 0x150   :  { %p393_p9 = scmp.ne.s32.totalorder %s515_s4, %s392_s19  ;;  %p396_p10 = scmp.lt.u32.totalorder %s392_s19, %s515_s4 }
 0x152   :  { %p398_p11 = pnand %p396_p10, %p393_p9 }
 0x154   :  { %401 = shalt.err (!%p398_p11)
}
 0x155   :  { %248 = dma.vmem_to_hbm [thread:$0]  %s243_s15, 256, %s515_s4, [#allocation5], %s414_s1, %s414_s1, %s415_s13  }
 0x156   :  { %408 = dma.done.wait [#allocation5], 256  }
 0x157   :  { %409 = vsyncadd [#allocation5], 4294967040 }
 0x158   :  { %252 = vsyncpa [#allocation4], 1 }
 0x159   :  { %253 = vsyncpa [#allocation7], 1 }
 0x15a   :  { %254 = vsyncpa [#allocation10], 1 }
 0x15b   :  { %255 = vsyncpa [#allocation5], 1 }

// kernel: _lambda_.33
= control target key start
LH: loop header
LB: loop body
LE: loop exit
PB: predicated region body
PF: predicated region fallthrough
CT: control target
= control target key end

     0   :  { %9 = vsyncpa [#allocation4], 0  ;;  %s446_s0 = inlined_call_operand.hbm [shape: bf16[16,32], index: 0, kind: input, shape index: {}]   ;;  %s447_s1 = inlined_call_operand.hbm [shape: bf16[32,128], index: 1, kind: input, shape index: {}]   ;;  %s448_s2 = inlined_call_operand.hbm [shape: f32[1,128], index: 2, kind: input, shape index: {}]   ;;  %s449_s3 = inlined_call_operand.hbm [shape: f32[1,128], index: 3, kind: input, shape index: {}]   ;;  %s450_s4 = inlined_call_operand.hbm [shape: f32[16,128], index: 4, kind: output, shape index: {}]  }
   0x1   :  { %10 = vsyncpa [#allocation7], 0 }
   0x2   :  { %11 = vsyncpa [#allocation10], 0 }
   0x3   :  { %12 = vsyncpa [#allocation5], 0  ;;  %s343_s15 = smov [#allocation6]   ;;  %s344_s17 = smov [#allocation3]  }
   0x4   :  { %s30_s16 = sshll.u32 %s343_s15, 4  ;;  %s18_s18 = sshll.u32 %s344_s17, 4  ;;  %s31_s16 = int_to_ptr.vmem [resolvable:$true] %s30_s16  ;;  %s379_s18 = int_to_ptr.vmem [resolvable:$true] %s18_s18 }
   0x5   :  { %s225_s21 = scalar_lea.hbm %s447_s1, 256 }
   0x6   :  { %p226_p0 = scmp.ne.s32.totalorder %s447_s1, %s225_s21  ;;  %p229_p1 = scmp.lt.u32.totalorder %s225_s21, %s447_s1 }
   0x8   :  { %p231_p2 = pnand %p229_p1, %p226_p0 }
   0xa   :  { %234 = shalt.err (!%p231_p2)
}
   0xb   :  { %s235_s26 = scalar_lea.vmem %s31_s16, 256  ;;  %p240_p4 = scmp.lt.s32.totalorder %s31_s16, %s31_s16 }
   0xc   :  { %p236_p3 = scmp.ne.s32.totalorder %s31_s16, %s235_s26  ;;  %p241_p5 = scmp.lt.s32.totalorder %s235_s26, %s235_s26 }
   0xe   :  { %p242_p6 = por %p241_p5, %p240_p4 }
  0x10   :  { %p243_p7 = pnand %p242_p6, %p236_p3 }
  0x12   :  { %246 = shalt.err (!%p243_p7)
}
  0x13   :  { %s345_s27 = smov 64   ;;  %s346_s28 = smov 4  }
  0x14   :  { %36 = dma.hbm_to_vmem [thread:$0]  %s447_s1, 256, %s31_s16, [#allocation7], %s345_s27, %s345_s27, %s346_s28  }
  0x15   :  { %s247_s7 = scalar_lea.hbm %s446_s0, 128 }
  0x16   :  { %p248_p8 = scmp.ne.s32.totalorder %s446_s0, %s247_s7  ;;  %p251_p9 = scmp.lt.u32.totalorder %s247_s7, %s446_s0 }
  0x18   :  { %p253_p10 = pnand %p251_p9, %p248_p8 }
  0x1a   :  { %256 = shalt.err (!%p253_p10)
}
  0x1b   :  { %s257_s12 = scalar_lea.vmem %s379_s18, 128  ;;  %p262_p12 = scmp.lt.s32.totalorder %s379_s18, %s379_s18 }
  0x1c   :  { %p258_p11 = scmp.ne.s32.totalorder %s379_s18, %s257_s12  ;;  %p263_p13 = scmp.lt.s32.totalorder %s257_s12, %s257_s12 }
  0x1e   :  { %p264_p0 = por %p263_p13, %p262_p12 }
  0x20   :  { %p265_p1 = pnand %p264_p0, %p258_p11 }
  0x22   :  { %268 = shalt.err (!%p265_p1)
}
  0x23   :  { %24 = dma.hbm_to_vmem [thread:$0]  %s446_s0, 128, %s379_s18, [#allocation4], %s345_s27, %s345_s27, %s346_s28  }
  0x24   :  { %s347_s14 = smov [#allocation8]   ;;  %s348_s16 = smov [#allocation9]  }
  0x25   :  { %s43_s15 = sshll.u32 %s347_s14, 4  ;;  %s53_s17 = sshll.u32 %s348_s16, 4  ;;  %s44_s15 = int_to_ptr.vmem [resolvable:$true] %s43_s15  ;;  %s54_s17 = int_to_ptr.vmem [resolvable:$true] %s53_s17 }
  0x26   :  { %s269_s21 = scalar_lea.hbm %s448_s2, 16 }
  0x27   :  { %p270_p2 = scmp.ne.s32.totalorder %s448_s2, %s269_s21  ;;  %p273_p3 = scmp.lt.u32.totalorder %s269_s21, %s448_s2 }
  0x29   :  { %p275_p4 = pnand %p273_p3, %p270_p2 }
  0x2b   :  { %278 = shalt.err (!%p275_p4)
}
  0x2c   :  { %s279_s0 = scalar_lea.vmem %s44_s15, 16  ;;  %s283_s18 = scalar_lea.vmem %s44_s15, 32 }
  0x2d   :  { %p280_p5 = scmp.ne.s32.totalorder %s44_s15, %s279_s0  ;;  %p284_p6 = scmp.lt.s32.totalorder %s44_s15, %s44_s15 }
  0x2e   :  { %p285_p7 = scmp.lt.s32.totalorder %s283_s18, %s279_s0 }
  0x30   :  { %p286_p8 = por %p285_p7, %p284_p6 }
  0x32   :  { %p287_p9 = pnand %p286_p8, %p280_p5 }
  0x34   :  { %290 = shalt.err (!%p287_p9)
}
  0x35   :  { %46 = dma.hbm_to_vmem [thread:$0]  %s448_s2, 16, %s44_s15, [#allocation7]  }
  0x36   :  { %s291_s30 = scalar_lea.hbm %s449_s3, 16 }
  0x37   :  { %p292_p10 = scmp.ne.s32.totalorder %s449_s3, %s291_s30  ;;  %p295_p11 = scmp.lt.u32.totalorder %s291_s30, %s449_s3 }
  0x39   :  { %p297_p12 = pnand %p295_p11, %p292_p10 }
  0x3b   :  { %300 = shalt.err (!%p297_p12)
}
  0x3c   :  { %s301_s9 = scalar_lea.vmem %s54_s17, 16  ;;  %s305_s10 = scalar_lea.vmem %s54_s17, 32 }
  0x3d   :  { %p302_p13 = scmp.ne.s32.totalorder %s54_s17, %s301_s9  ;;  %p306_p0 = scmp.lt.s32.totalorder %s54_s17, %s54_s17 }
  0x3e   :  { %p307_p1 = scmp.lt.s32.totalorder %s305_s10, %s301_s9 }
  0x40   :  { %p308_p2 = por %p307_p1, %p306_p0 }
  0x42   :  { %p309_p3 = pnand %p308_p2, %p302_p13 }
  0x44   :  { %312 = shalt.err (!%p309_p3)
}
  0x45   :  { %56 = dma.hbm_to_vmem [thread:$0]  %s449_s3, 16, %s54_s17, [#allocation10]  }
  0x46   :  { %335 = dma.done.wait [#allocation4], 128  }
  0x47   :  { %336 = vsyncadd [#allocation4], 4294967168 }
  0x48   :  { %337 = dma.done.wait [#allocation7], 272  }
  0x49   :  { %338 = vsyncadd [#allocation7], 4294967024 }
  0x4a   :  { %339 = dma.done.wait [#allocation10], 16  }
  0x4b   :  { %340 = vsyncadd [#allocation10], 4294967280  ;;  %v349_v0 = vmov 0.0   ;;  %vm350_vm0 = vmmov 0   ;;  %v222_v1 = vld [vmem:[#allocation6] sm:$0xff]   ;;  %v223_v2 = vld [vmem:[#allocation6 + $0x8] sm:$0xff]  }
  0x4c   :  { %203 = vmatprep.subr.bf16.mxu0 %v349_v0  ;;  %207 = vmatprep.mubr.msk.bf16.mxu0 %vm350_vm0, %v349_v0  ;;  %v224_v3 = vld [vmem:[#allocation3] sm:$0xff]   ;;  %vm101_vm1 = vcmask 261120   ;;  %v198_v4 = vld [vmem:[#allocation8] ss:$0 sm:$0xff]  ;;  %v199_v6 = vld [vmem:[#allocation9] ss:$0 sm:$0xff] }
  0x4d   :  { %204 = vmatpush3.bf16.msra.mxu0 %v222_v1  ;;  %s351_s3 = smov [#allocation11]  }
  0x4e   :  { %205 = vmatprep.subr.bf16.mxu0 %v349_v0  ;;  %s180_s12 = sshll.u32 %s351_s3, 4  ;;  %s181_s12 = int_to_ptr.vmem [resolvable:$true] %s180_s12 }
  0x4f   :  { %s313_s1 = scalar_lea.vmem %s181_s12, 256  ;;  %p318_p5 = scmp.lt.s32.totalorder %s181_s12, %s181_s12 }
  0x50   :  { %p314_p4 = scmp.ne.s32.totalorder %s181_s12, %s313_s1  ;;  %p319_p6 = scmp.lt.s32.totalorder %s313_s1, %s313_s1 }
  0x51   :  { %206 = vmatpush3.bf16.msra.mxu0 %v223_v2 }
  0x52   :  { %p320_p7 = por %p319_p6, %p318_p5 }
  0x54   :  { %208 = vmatmul.mubr.msk.bf16.vlgmr.msra.gmra.mrb[0].mxu0 %vm101_vm1, %v224_v3  ;;  %p321_p8 = pnand %p320_p7, %p314_p4 }
 0x127   :  { %v139_v5 = vpop.f32.mrb[0].mxu0 }
 0x128   :  { %v162_v7 = vmul.f32 %v198_v4, %v139_v5  ;;  %v209_v8 = vpop.f32.mrb[1].mxu0 }
 0x129   :  { %v142_v9 = vpop.f32.mrb[2].mxu0 }
 0x12a   :  { %v171_v10 = vadd.f32 %v199_v6, %v162_v7  ;;  %v163_v11 = vmul.f32 %v198_v4, %v142_v9  ;;  %v210_v12 = vpop.f32.mrb[3].mxu0 }
 0x12c   :  { %173 = vst [vmem:[#allocation11] sm:$0xff] %v171_v10  ;;  %v172_v13 = vadd.f32 %v199_v6, %v163_v11 }
 0x12e   :  { %174 = vst [vmem:[#allocation11 + $0x8] sm:$0xff] %v172_v13 }
 0x12f   :  { %324 = shalt.err (!%p321_p8)
}
 0x130   :  { %s325_s15 = scalar_lea.hbm %s450_s4, 256 }
 0x131   :  { %p326_p9 = scmp.ne.s32.totalorder %s450_s4, %s325_s15  ;;  %p329_p10 = scmp.lt.u32.totalorder %s325_s15, %s450_s4 }
 0x133   :  { %p331_p11 = pnand %p329_p10, %p326_p9 }
 0x135   :  { %334 = shalt.err (!%p331_p11)
}
 0x136   :  { %s352_s21 = smov 128   ;;  %s353_s22 = smov 8  }
 0x137   :  { %186 = dma.vmem_to_hbm [thread:$0]  %s181_s12, 256, %s450_s4, [#allocation5], %s352_s21, %s352_s21, %s353_s22  }
 0x138   :  { %341 = dma.done.wait [#allocation5], 256  }
 0x139   :  { %342 = vsyncadd [#allocation5], 4294967040 }
 0x13a   :  { %190 = vsyncpa [#allocation4], 1 }
 0x13b   :  { %191 = vsyncpa [#allocation7], 1 }
 0x13c   :  { %192 = vsyncpa [#allocation10], 1 }
 0x13d   :  { %193 = vsyncpa [#allocation5], 1 }

// kernel: _lambda_.34
= control target key start
LH: loop header
LB: loop body
LE: loop exit
PB: predicated region body
PF: predicated region fallthrough
CT: control target
= control target key end

     0   :  { %10 = vsyncpa [#allocation4], 0  ;;  %s509_s0 = inlined_call_operand.hbm [shape: bf16[16,16], index: 0, kind: input, shape index: {}]   ;;  %s510_s1 = inlined_call_operand.hbm [shape: bf16[16,128], index: 1, kind: input, shape index: {}]   ;;  %s511_s2 = inlined_call_operand.hbm [shape: f32[1,128], index: 2, kind: input, shape index: {}]   ;;  %s512_s3 = inlined_call_operand.hbm [shape: f32[1,128], index: 3, kind: input, shape index: {}]   ;;  %s513_s4 = inlined_call_operand.hbm [shape: f32[16,128], index: 4, kind: input, shape index: {}]   ;;  %s514_s5 = inlined_call_operand.hbm [shape: f32[16,128], index: 5, kind: output, shape index: {}]  }
   0x1   :  { %11 = vsyncpa [#allocation7], 0 }
   0x2   :  { %12 = vsyncpa [#allocation10], 0 }
   0x3   :  { %13 = vsyncpa [#allocation5], 0  ;;  %s375_s18 = smov [#allocation6]   ;;  %s376_s20 = smov [#allocation9]  }
   0x4   :  { %s31_s19 = sshll.u32 %s375_s18, 4  ;;  %s54_s21 = sshll.u32 %s376_s20, 4  ;;  %s32_s19 = int_to_ptr.vmem [resolvable:$true] %s31_s19  ;;  %s417_s21 = int_to_ptr.vmem [resolvable:$true] %s54_s21 }
   0x5   :  { %s235_s24 = scalar_lea.hbm %s510_s1, 128 }
   0x6   :  { %p236_p0 = scmp.ne.s32.totalorder %s510_s1, %s235_s24  ;;  %p239_p1 = scmp.lt.u32.totalorder %s235_s24, %s510_s1 }
   0x8   :  { %p241_p2 = pnand %p239_p1, %p236_p0 }
   0xa   :  { %244 = shalt.err (!%p241_p2)
}
   0xb   :  { %s245_s29 = scalar_lea.vmem %s32_s19, 128  ;;  %p250_p4 = scmp.lt.s32.totalorder %s32_s19, %s32_s19 }
   0xc   :  { %p246_p3 = scmp.ne.s32.totalorder %s32_s19, %s245_s29  ;;  %p251_p5 = scmp.lt.s32.totalorder %s245_s29, %s245_s29 }
   0xe   :  { %p252_p6 = por %p251_p5, %p250_p4 }
  0x10   :  { %p253_p7 = pnand %p252_p6, %p246_p3 }
  0x12   :  { %256 = shalt.err (!%p253_p7)
}
  0x13   :  { %s377_s30 = smov 64   ;;  %s378_s6 = smov 4  }
  0x14   :  { %37 = dma.hbm_to_vmem [thread:$0]  %s510_s1, 128, %s32_s19, [#allocation7], %s377_s30, %s377_s30, %s378_s6  }
  0x15   :  { %s257_s11 = scalar_lea.hbm %s512_s3, 16 }
  0x16   :  { %p258_p8 = scmp.ne.s32.totalorder %s512_s3, %s257_s11  ;;  %p261_p9 = scmp.lt.u32.totalorder %s257_s11, %s512_s3 }
  0x18   :  { %p263_p10 = pnand %p261_p9, %p258_p8 }
  0x1a   :  { %266 = shalt.err (!%p263_p10)
}
  0x1b   :  { %s267_s16 = scalar_lea.vmem %s417_s21, 16  ;;  %s271_s1 = scalar_lea.vmem %s417_s21, 32 }
  0x1c   :  { %p268_p11 = scmp.ne.s32.totalorder %s417_s21, %s267_s16  ;;  %p272_p12 = scmp.lt.s32.totalorder %s417_s21, %s417_s21 }
  0x1d   :  { %p273_p13 = scmp.lt.s32.totalorder %s271_s1, %s267_s16 }
  0x1f   :  { %p274_p0 = por %p273_p13, %p272_p12 }
  0x21   :  { %p275_p1 = pnand %p274_p0, %p268_p11 }
  0x23   :  { %278 = shalt.err (!%p275_p1)
}
  0x24   :  { %57 = dma.hbm_to_vmem [thread:$0]  %s512_s3, 16, %s417_s21, [#allocation10]  }
  0x25   :  { %s379_s19 = smov [#allocation3]   ;;  %s380_s22 = smov [#allocation8]  }
  0x26   :  { %s19_s20 = sshll.u32 %s379_s19, 4  ;;  %s44_s23 = sshll.u32 %s380_s22, 4  ;;  %s20_s20 = int_to_ptr.vmem [resolvable:$true] %s19_s20  ;;  %s45_s23 = int_to_ptr.vmem [resolvable:$true] %s44_s23 }
  0x27   :  { %s279_s26 = scalar_lea.hbm %s509_s0, 128 }
  0x28   :  { %p280_p2 = scmp.ne.s32.totalorder %s509_s0, %s279_s26  ;;  %p283_p3 = scmp.lt.u32.totalorder %s279_s26, %s509_s0 }
  0x2a   :  { %p285_p4 = pnand %p283_p3, %p280_p2 }
  0x2c   :  { %288 = shalt.err (!%p285_p4)
}
  0x2d   :  { %s289_s3 = scalar_lea.vmem %s20_s20, 128  ;;  %p294_p6 = scmp.lt.s32.totalorder %s20_s20, %s20_s20 }
  0x2e   :  { %p290_p5 = scmp.ne.s32.totalorder %s20_s20, %s289_s3  ;;  %p295_p7 = scmp.lt.s32.totalorder %s289_s3, %s289_s3 }
  0x30   :  { %p296_p8 = por %p295_p7, %p294_p6 }
  0x32   :  { %p297_p9 = pnand %p296_p8, %p290_p5 }
  0x34   :  { %300 = shalt.err (!%p297_p9)
}
  0x35   :  { %25 = dma.hbm_to_vmem [thread:$0]  %s509_s0, 128, %s20_s20, [#allocation4], %s377_s30, %s377_s30, %s378_s6  }
  0x36   :  { %s301_s11 = scalar_lea.hbm %s511_s2, 16 }
  0x37   :  { %p302_p10 = scmp.ne.s32.totalorder %s511_s2, %s301_s11  ;;  %p305_p11 = scmp.lt.u32.totalorder %s301_s11, %s511_s2 }
  0x39   :  { %p307_p12 = pnand %p305_p11, %p302_p10 }
  0x3b   :  { %310 = shalt.err (!%p307_p12)
}
  0x3c   :  { %s311_s16 = scalar_lea.vmem %s45_s23, 16  ;;  %s315_s1 = scalar_lea.vmem %s45_s23, 32 }
  0x3d   :  { %p312_p13 = scmp.ne.s32.totalorder %s45_s23, %s311_s16  ;;  %p316_p0 = scmp.lt.s32.totalorder %s45_s23, %s45_s23 }
  0x3e   :  { %p317_p1 = scmp.lt.s32.totalorder %s315_s1, %s311_s16 }
  0x40   :  { %p318_p2 = por %p317_p1, %p316_p0 }
  0x42   :  { %p319_p3 = pnand %p318_p2, %p312_p13 }
  0x44   :  { %322 = shalt.err (!%p319_p3)
}
  0x45   :  { %47 = dma.hbm_to_vmem [thread:$0]  %s511_s2, 16, %s45_s23, [#allocation7]  }
  0x46   :  { %s381_s6 = smov [#allocation11]   ;;  %s323_s20 = scalar_lea.hbm %s513_s4, 256 }
  0x47   :  { %s63_s17 = sshll.u32 %s381_s6, 4  ;;  %p324_p4 = scmp.ne.s32.totalorder %s513_s4, %s323_s20  ;;  %s64_s17 = int_to_ptr.vmem [resolvable:$true] %s63_s17 }
  0x48   :  { %p327_p5 = scmp.lt.u32.totalorder %s323_s20, %s513_s4 }
  0x4a   :  { %p329_p6 = pnand %p327_p5, %p324_p4 }
  0x4c   :  { %332 = shalt.err (!%p329_p6)
}
  0x4d   :  { %s333_s27 = scalar_lea.vmem %s64_s17, 256  ;;  %p338_p8 = scmp.lt.s32.totalorder %s64_s17, %s64_s17 }
  0x4e   :  { %p334_p7 = scmp.ne.s32.totalorder %s64_s17, %s333_s27  ;;  %p339_p9 = scmp.lt.s32.totalorder %s333_s27, %s333_s27 }
  0x50   :  { %p340_p10 = por %p339_p9, %p338_p8 }
  0x52   :  { %p341_p11 = pnand %p340_p10, %p334_p7 }
  0x54   :  { %344 = shalt.err (!%p341_p11)
}
  0x55   :  { %s382_s2 = smov 128   ;;  %s383_s23 = smov 8  }
  0x56   :  { %69 = dma.hbm_to_vmem [thread:$0]  %s513_s4, 256, %s64_s17, [#allocation10], %s382_s2, %s382_s2, %s383_s23  }
  0x57   :  { %367 = dma.done.wait [#allocation4], 128  }
  0x58   :  { %368 = vsyncadd [#allocation4], 4294967168 }
  0x59   :  { %369 = dma.done.wait [#allocation7], 144  }
  0x5a   :  { %370 = vsyncadd [#allocation7], 4294967152 }
  0x5b   :  { %371 = dma.done.wait [#allocation10], 272  }
  0x5c   :  { %372 = vsyncadd [#allocation10], 4294967024  ;;  %v384_v0 = vmov 0.0   ;;  %vm385_vm0 = vmmov 0   ;;  %v233_v1 = vld [vmem:[#allocation6] sm:$0xff]   ;;  %v234_v2 = vld [vmem:[#allocation3] sm:$0xff]  }
  0x5d   :  { %215 = vmatprep.subr.bf16.mxu0 %v384_v0  ;;  %217 = vmatprep.mubr.msk.bf16.mxu0 %vm385_vm0, %v384_v0  ;;  %vm109_vm1 = vcmask 130048   ;;  %v211_v3 = vld [vmem:[#allocation8] ss:$0 sm:$0xff]  ;;  %v212_v5 = vld [vmem:[#allocation9] ss:$0 sm:$0xff]  ;;  %v181_v8 = vld [vmem:[#allocation11] sm:$0xff] }
  0x5e   :  { %216 = vmatpush3.bf16.msra.mxu0 %v233_v1  ;;  %v182_v13 = vld [vmem:[#allocation11 + $0x8] sm:$0xff]  ;;  %s386_s4 = smov [#allocation12]  }
  0x5f   :  { %s194_s7 = sshll.u32 %s386_s4, 4  ;;  %s195_s7 = int_to_ptr.vmem [resolvable:$true] %s194_s7 }
  0x60   :  { %s345_s3 = scalar_lea.vmem %s195_s7, 256  ;;  %p350_p13 = scmp.lt.s32.totalorder %s195_s7, %s195_s7 }
  0x61   :  { %218 = vmatmul.mubr.msk.bf16.vlgmr.msra.gmra.mrb[0].mxu0 %vm109_vm1, %v234_v2  ;;  %p346_p12 = scmp.ne.s32.totalorder %s195_s7, %s345_s3  ;;  %p351_p0 = scmp.lt.s32.totalorder %s345_s3, %s345_s3 }
  0x63   :  { %p352_p1 = por %p351_p0, %p350_p13 }
  0x65   :  { %p353_p2 = pnand %p352_p1, %p346_p12 }
 0x134   :  { %v147_v4 = vpop.f32.mrb[0].mxu0 }
 0x135   :  { %v170_v6 = vmul.f32 %v211_v3, %v147_v4  ;;  %v219_v7 = vpop.f32.mrb[1].mxu0 }
 0x136   :  { %v150_v9 = vpop.f32.mrb[2].mxu0 }
 0x137   :  { %v179_v10 = vadd.f32 %v212_v5, %v170_v6  ;;  %v171_v11 = vmul.f32 %v211_v3, %v150_v9  ;;  %v220_v12 = vpop.f32.mrb[3].mxu0 }
 0x139   :  { %v183_v14 = vadd.f32 %v181_v8, %v179_v10  ;;  %v180_v15 = vadd.f32 %v212_v5, %v171_v11 }
 0x13b   :  { %v185_v16 = vmax.f32 %v183_v14, 0.0  ;;  %v184_v17 = vadd.f32 %v182_v13, %v180_v15 }
 0x13d   :  { %187 = vst [vmem:[#allocation12] sm:$0xff] %v185_v16  ;;  %v186_v18 = vmax.f32 %v184_v17, 0.0 }
 0x13f   :  { %188 = vst [vmem:[#allocation12 + $0x8] sm:$0xff] %v186_v18 }
 0x140   :  { %356 = shalt.err (!%p353_p2)
}
 0x141   :  { %s357_s9 = scalar_lea.hbm %s514_s5, 256 }
 0x142   :  { %p358_p3 = scmp.ne.s32.totalorder %s514_s5, %s357_s9  ;;  %p361_p4 = scmp.lt.u32.totalorder %s357_s9, %s514_s5 }
 0x144   :  { %p363_p5 = pnand %p361_p4, %p358_p3 }
 0x146   :  { %366 = shalt.err (!%p363_p5)
}
 0x147   :  { %200 = dma.vmem_to_hbm [thread:$0]  %s195_s7, 256, %s514_s5, [#allocation5], %s382_s2, %s382_s2, %s383_s23  }
 0x148   :  { %373 = dma.done.wait [#allocation5], 256  }
 0x149   :  { %374 = vsyncadd [#allocation5], 4294967040 }
 0x14a   :  { %204 = vsyncpa [#allocation4], 1 }
 0x14b   :  { %205 = vsyncpa [#allocation7], 1 }
 0x14c   :  { %206 = vsyncpa [#allocation10], 1 }
 0x14d   :  { %207 = vsyncpa [#allocation5], 1 }

// kernel: _lambda_.35
= control target key start
LH: loop header
LB: loop body
LE: loop exit
PB: predicated region body
PF: predicated region fallthrough
CT: control target
= control target key end

     0   :  { %9 = vsyncpa [#allocation4], 0  ;;  %s474_s0 = inlined_call_operand.hbm [shape: bf16[16,64], index: 0, kind: input, shape index: {}]   ;;  %s475_s1 = inlined_call_operand.hbm [shape: bf16[64,128], index: 1, kind: input, shape index: {}]   ;;  %s476_s2 = inlined_call_operand.hbm [shape: f32[1,128], index: 2, kind: input, shape index: {}]   ;;  %s477_s3 = inlined_call_operand.hbm [shape: f32[1,128], index: 3, kind: input, shape index: {}]   ;;  %s478_s4 = inlined_call_operand.hbm [shape: f32[16,128], index: 4, kind: output, shape index: {}]  }
   0x1   :  { %10 = vsyncpa [#allocation7], 0 }
   0x2   :  { %11 = vsyncpa [#allocation10], 0 }
   0x3   :  { %12 = vsyncpa [#allocation5], 0  ;;  %s371_s15 = smov [#allocation6]   ;;  %s372_s17 = smov [#allocation3]  }
   0x4   :  { %s30_s16 = sshll.u32 %s371_s15, 4  ;;  %s18_s18 = sshll.u32 %s372_s17, 4  ;;  %s31_s16 = int_to_ptr.vmem [resolvable:$true] %s30_s16  ;;  %s407_s18 = int_to_ptr.vmem [resolvable:$true] %s18_s18 }
   0x5   :  { %s253_s21 = scalar_lea.hbm %s475_s1, 512 }
   0x6   :  { %p254_p0 = scmp.ne.s32.totalorder %s475_s1, %s253_s21  ;;  %p257_p1 = scmp.lt.u32.totalorder %s253_s21, %s475_s1 }
   0x8   :  { %p259_p2 = pnand %p257_p1, %p254_p0 }
   0xa   :  { %262 = shalt.err (!%p259_p2)
}
   0xb   :  { %s263_s26 = scalar_lea.vmem %s31_s16, 512  ;;  %p268_p4 = scmp.lt.s32.totalorder %s31_s16, %s31_s16 }
   0xc   :  { %p264_p3 = scmp.ne.s32.totalorder %s31_s16, %s263_s26  ;;  %p269_p5 = scmp.lt.s32.totalorder %s263_s26, %s263_s26 }
   0xe   :  { %p270_p6 = por %p269_p5, %p268_p4 }
  0x10   :  { %p271_p7 = pnand %p270_p6, %p264_p3 }
  0x12   :  { %274 = shalt.err (!%p271_p7)
}
  0x13   :  { %s373_s27 = smov 64   ;;  %s374_s28 = smov 4  }
  0x14   :  { %36 = dma.hbm_to_vmem [thread:$0]  %s475_s1, 512, %s31_s16, [#allocation7], %s373_s27, %s373_s27, %s374_s28  }
  0x15   :  { %s275_s7 = scalar_lea.hbm %s474_s0, 128 }
  0x16   :  { %p276_p8 = scmp.ne.s32.totalorder %s474_s0, %s275_s7  ;;  %p279_p9 = scmp.lt.u32.totalorder %s275_s7, %s474_s0 }
  0x18   :  { %p281_p10 = pnand %p279_p9, %p276_p8 }
  0x1a   :  { %284 = shalt.err (!%p281_p10)
}
  0x1b   :  { %s285_s12 = scalar_lea.vmem %s407_s18, 128  ;;  %p290_p12 = scmp.lt.s32.totalorder %s407_s18, %s407_s18 }
  0x1c   :  { %p286_p11 = scmp.ne.s32.totalorder %s407_s18, %s285_s12  ;;  %p291_p13 = scmp.lt.s32.totalorder %s285_s12, %s285_s12 }
  0x1e   :  { %p292_p0 = por %p291_p13, %p290_p12 }
  0x20   :  { %p293_p1 = pnand %p292_p0, %p286_p11 }
  0x22   :  { %296 = shalt.err (!%p293_p1)
}
  0x23   :  { %24 = dma.hbm_to_vmem [thread:$0]  %s474_s0, 128, %s407_s18, [#allocation4], %s373_s27, %s373_s27, %s374_s28  }
  0x24   :  { %s375_s14 = smov [#allocation8]   ;;  %s376_s16 = smov [#allocation9]  }
  0x25   :  { %s43_s15 = sshll.u32 %s375_s14, 4  ;;  %s53_s17 = sshll.u32 %s376_s16, 4  ;;  %s44_s15 = int_to_ptr.vmem [resolvable:$true] %s43_s15  ;;  %s54_s17 = int_to_ptr.vmem [resolvable:$true] %s53_s17 }
  0x26   :  { %s297_s21 = scalar_lea.hbm %s476_s2, 16 }
  0x27   :  { %p298_p2 = scmp.ne.s32.totalorder %s476_s2, %s297_s21  ;;  %p301_p3 = scmp.lt.u32.totalorder %s297_s21, %s476_s2 }
  0x29   :  { %p303_p4 = pnand %p301_p3, %p298_p2 }
  0x2b   :  { %306 = shalt.err (!%p303_p4)
}
  0x2c   :  { %s307_s0 = scalar_lea.vmem %s44_s15, 16  ;;  %s311_s18 = scalar_lea.vmem %s44_s15, 32 }
  0x2d   :  { %p308_p5 = scmp.ne.s32.totalorder %s44_s15, %s307_s0  ;;  %p312_p6 = scmp.lt.s32.totalorder %s44_s15, %s44_s15 }
  0x2e   :  { %p313_p7 = scmp.lt.s32.totalorder %s311_s18, %s307_s0 }
  0x30   :  { %p314_p8 = por %p313_p7, %p312_p6 }
  0x32   :  { %p315_p9 = pnand %p314_p8, %p308_p5 }
  0x34   :  { %318 = shalt.err (!%p315_p9)
}
  0x35   :  { %46 = dma.hbm_to_vmem [thread:$0]  %s476_s2, 16, %s44_s15, [#allocation7]  }
  0x36   :  { %s319_s30 = scalar_lea.hbm %s477_s3, 16 }
  0x37   :  { %p320_p10 = scmp.ne.s32.totalorder %s477_s3, %s319_s30  ;;  %p323_p11 = scmp.lt.u32.totalorder %s319_s30, %s477_s3 }
  0x39   :  { %p325_p12 = pnand %p323_p11, %p320_p10 }
  0x3b   :  { %328 = shalt.err (!%p325_p12)
}
  0x3c   :  { %s329_s9 = scalar_lea.vmem %s54_s17, 16  ;;  %s333_s10 = scalar_lea.vmem %s54_s17, 32 }
  0x3d   :  { %p330_p13 = scmp.ne.s32.totalorder %s54_s17, %s329_s9  ;;  %p334_p0 = scmp.lt.s32.totalorder %s54_s17, %s54_s17 }
  0x3e   :  { %p335_p1 = scmp.lt.s32.totalorder %s333_s10, %s329_s9 }
  0x40   :  { %p336_p2 = por %p335_p1, %p334_p0 }
  0x42   :  { %p337_p3 = pnand %p336_p2, %p330_p13 }
  0x44   :  { %340 = shalt.err (!%p337_p3)
}
  0x45   :  { %56 = dma.hbm_to_vmem [thread:$0]  %s477_s3, 16, %s54_s17, [#allocation10]  }
  0x46   :  { %363 = dma.done.wait [#allocation4], 128  }
  0x47   :  { %364 = vsyncadd [#allocation4], 4294967168 }
  0x48   :  { %365 = dma.done.wait [#allocation7], 528  }
  0x49   :  { %366 = vsyncadd [#allocation7], 4294966768 }
  0x4a   :  { %367 = dma.done.wait [#allocation10], 16  }
  0x4b   :  { %368 = vsyncadd [#allocation10], 4294967280  ;;  %v377_v0 = vmov 0.0   ;;  %vm378_vm0 = vmmov 0   ;;  %v248_v1 = vld [vmem:[#allocation6] sm:$0xff]   ;;  %v249_v2 = vld [vmem:[#allocation6 + $0x8] sm:$0xff]  }
  0x4c   :  { %225 = vmatprep.subr.bf16.mxu0 %v377_v0  ;;  %233 = vmatprep.mubr.msk.bf16.mxu0 %vm378_vm0, %v377_v0  ;;  %v250_v3 = vld [vmem:[#allocation6 + $0x10] sm:$0xff]   ;;  %v251_v4 = vld [vmem:[#allocation6 + $0x18] sm:$0xff]   ;;  %vm117_vm1 = vcmask 523264   ;;  %v218_v6 = vld [vmem:[#allocation8] ss:$0 sm:$0xff]  ;;  %s379_s3 = smov [#allocation11]  }
  0x4d   :  { %226 = vmatpush3.bf16.msra.mxu0 %v248_v1  ;;  %v252_v5 = vld [vmem:[#allocation3] sm:$0xff]   ;;  %v219_v8 = vld [vmem:[#allocation9] ss:$0 sm:$0xff]  ;;  %s198_s12 = sshll.u32 %s379_s3, 4  ;;  %s199_s12 = int_to_ptr.vmem [resolvable:$true] %s198_s12 }
  0x4e   :  { %227 = vmatprep.subr.bf16.mxu0 %v377_v0  ;;  %s341_s1 = scalar_lea.vmem %s199_s12, 256  ;;  %p346_p5 = scmp.lt.s32.totalorder %s199_s12, %s199_s12 }
  0x4f   :  { %p342_p4 = scmp.ne.s32.totalorder %s199_s12, %s341_s1  ;;  %p347_p6 = scmp.lt.s32.totalorder %s341_s1, %s341_s1 }
  0x51   :  { %228 = vmatpush3.bf16.msra.mxu0 %v249_v2  ;;  %p348_p7 = por %p347_p6, %p346_p5 }
  0x52   :  { %229 = vmatprep.subr.bf16.mxu0 %v377_v0 }
  0x53   :  { %p349_p8 = pnand %p348_p7, %p342_p4 }
  0x55   :  { %230 = vmatpush3.bf16.msra.mxu0 %v250_v3 }
  0x56   :  { %231 = vmatprep.subr.bf16.mxu0 %v377_v0 }
  0x59   :  { %232 = vmatpush3.bf16.msra.mxu0 %v251_v4 }
  0x5c   :  { %234 = vmatmul.mubr.msk.bf16.vlgmr.msra.gmra.mrb[0].mxu0 %vm117_vm1, %v252_v5 }
 0x12f   :  { %v155_v7 = vpop.f32.mrb[0].mxu0 }
 0x130   :  { %v178_v9 = vmul.f32 %v218_v6, %v155_v7  ;;  %v235_v10 = vpop.f32.mrb[1].mxu0 }
 0x131   :  { %v158_v11 = vpop.f32.mrb[2].mxu0 }
 0x132   :  { %v187_v12 = vadd.f32 %v219_v8, %v178_v9  ;;  %v179_v13 = vmul.f32 %v218_v6, %v158_v11  ;;  %v236_v14 = vpop.f32.mrb[3].mxu0 }
 0x134   :  { %v189_v15 = vmax.f32 %v187_v12, 0.0  ;;  %v188_v16 = vadd.f32 %v219_v8, %v179_v13 }
 0x136   :  { %191 = vst [vmem:[#allocation11] sm:$0xff] %v189_v15  ;;  %v190_v17 = vmax.f32 %v188_v16, 0.0 }
 0x138   :  { %192 = vst [vmem:[#allocation11 + $0x8] sm:$0xff] %v190_v17 }
 0x139   :  { %352 = shalt.err (!%p349_p8)
}
 0x13a   :  { %s353_s15 = scalar_lea.hbm %s478_s4, 256 }
 0x13b   :  { %p354_p9 = scmp.ne.s32.totalorder %s478_s4, %s353_s15  ;;  %p357_p10 = scmp.lt.u32.totalorder %s353_s15, %s478_s4 }
 0x13d   :  { %p359_p11 = pnand %p357_p10, %p354_p9 }
 0x13f   :  { %362 = shalt.err (!%p359_p11)
}
 0x140   :  { %s380_s21 = smov 128   ;;  %s381_s22 = smov 8  }
 0x141   :  { %204 = dma.vmem_to_hbm [thread:$0]  %s199_s12, 256, %s478_s4, [#allocation5], %s380_s21, %s380_s21, %s381_s22  }
 0x142   :  { %369 = dma.done.wait [#allocation5], 256  }
 0x143   :  { %370 = vsyncadd [#allocation5], 4294967040 }
 0x144   :  { %208 = vsyncpa [#allocation4], 1 }
 0x145   :  { %209 = vsyncpa [#allocation7], 1 }
 0x146   :  { %210 = vsyncpa [#allocation10], 1 }
 0x147   :  { %211 = vsyncpa [#allocation5], 1 }

// kernel: _lambda_.37
= control target key start
LH: loop header
LB: loop body
LE: loop exit
PB: predicated region body
PF: predicated region fallthrough
CT: control target
= control target key end

     0   :  { %9 = vsyncpa [#allocation4], 0  ;;  %s472_s0 = inlined_call_operand.hbm [shape: bf16[16,64], index: 0, kind: input, shape index: {}]   ;;  %s473_s1 = inlined_call_operand.hbm [shape: bf16[64,128], index: 1, kind: input, shape index: {}]   ;;  %s474_s2 = inlined_call_operand.hbm [shape: f32[1,128], index: 2, kind: input, shape index: {}]   ;;  %s475_s3 = inlined_call_operand.hbm [shape: f32[1,128], index: 3, kind: input, shape index: {}]   ;;  %s476_s4 = inlined_call_operand.hbm [shape: f32[16,128], index: 4, kind: output, shape index: {}]  }
   0x1   :  { %10 = vsyncpa [#allocation7], 0 }
   0x2   :  { %11 = vsyncpa [#allocation10], 0 }
   0x3   :  { %12 = vsyncpa [#allocation5], 0  ;;  %s369_s15 = smov [#allocation6]   ;;  %s370_s17 = smov [#allocation3]  }
   0x4   :  { %s30_s16 = sshll.u32 %s369_s15, 4  ;;  %s18_s18 = sshll.u32 %s370_s17, 4  ;;  %s31_s16 = int_to_ptr.vmem [resolvable:$true] %s30_s16  ;;  %s405_s18 = int_to_ptr.vmem [resolvable:$true] %s18_s18 }
   0x5   :  { %s251_s21 = scalar_lea.hbm %s473_s1, 512 }
   0x6   :  { %p252_p0 = scmp.ne.s32.totalorder %s473_s1, %s251_s21  ;;  %p255_p1 = scmp.lt.u32.totalorder %s251_s21, %s473_s1 }
   0x8   :  { %p257_p2 = pnand %p255_p1, %p252_p0 }
   0xa   :  { %260 = shalt.err (!%p257_p2)
}
   0xb   :  { %s261_s26 = scalar_lea.vmem %s31_s16, 512  ;;  %p266_p4 = scmp.lt.s32.totalorder %s31_s16, %s31_s16 }
   0xc   :  { %p262_p3 = scmp.ne.s32.totalorder %s31_s16, %s261_s26  ;;  %p267_p5 = scmp.lt.s32.totalorder %s261_s26, %s261_s26 }
   0xe   :  { %p268_p6 = por %p267_p5, %p266_p4 }
  0x10   :  { %p269_p7 = pnand %p268_p6, %p262_p3 }
  0x12   :  { %272 = shalt.err (!%p269_p7)
}
  0x13   :  { %s371_s27 = smov 64   ;;  %s372_s28 = smov 4  }
  0x14   :  { %36 = dma.hbm_to_vmem [thread:$0]  %s473_s1, 512, %s31_s16, [#allocation7], %s371_s27, %s371_s27, %s372_s28  }
  0x15   :  { %s273_s7 = scalar_lea.hbm %s472_s0, 128 }
  0x16   :  { %p274_p8 = scmp.ne.s32.totalorder %s472_s0, %s273_s7  ;;  %p277_p9 = scmp.lt.u32.totalorder %s273_s7, %s472_s0 }
  0x18   :  { %p279_p10 = pnand %p277_p9, %p274_p8 }
  0x1a   :  { %282 = shalt.err (!%p279_p10)
}
  0x1b   :  { %s283_s12 = scalar_lea.vmem %s405_s18, 128  ;;  %p288_p12 = scmp.lt.s32.totalorder %s405_s18, %s405_s18 }
  0x1c   :  { %p284_p11 = scmp.ne.s32.totalorder %s405_s18, %s283_s12  ;;  %p289_p13 = scmp.lt.s32.totalorder %s283_s12, %s283_s12 }
  0x1e   :  { %p290_p0 = por %p289_p13, %p288_p12 }
  0x20   :  { %p291_p1 = pnand %p290_p0, %p284_p11 }
  0x22   :  { %294 = shalt.err (!%p291_p1)
}
  0x23   :  { %24 = dma.hbm_to_vmem [thread:$0]  %s472_s0, 128, %s405_s18, [#allocation4], %s371_s27, %s371_s27, %s372_s28  }
  0x24   :  { %s373_s14 = smov [#allocation8]   ;;  %s374_s16 = smov [#allocation9]  }
  0x25   :  { %s43_s15 = sshll.u32 %s373_s14, 4  ;;  %s53_s17 = sshll.u32 %s374_s16, 4  ;;  %s44_s15 = int_to_ptr.vmem [resolvable:$true] %s43_s15  ;;  %s54_s17 = int_to_ptr.vmem [resolvable:$true] %s53_s17 }
  0x26   :  { %s295_s21 = scalar_lea.hbm %s474_s2, 16 }
  0x27   :  { %p296_p2 = scmp.ne.s32.totalorder %s474_s2, %s295_s21  ;;  %p299_p3 = scmp.lt.u32.totalorder %s295_s21, %s474_s2 }
  0x29   :  { %p301_p4 = pnand %p299_p3, %p296_p2 }
  0x2b   :  { %304 = shalt.err (!%p301_p4)
}
  0x2c   :  { %s305_s0 = scalar_lea.vmem %s44_s15, 16  ;;  %s309_s18 = scalar_lea.vmem %s44_s15, 32 }
  0x2d   :  { %p306_p5 = scmp.ne.s32.totalorder %s44_s15, %s305_s0  ;;  %p310_p6 = scmp.lt.s32.totalorder %s44_s15, %s44_s15 }
  0x2e   :  { %p311_p7 = scmp.lt.s32.totalorder %s309_s18, %s305_s0 }
  0x30   :  { %p312_p8 = por %p311_p7, %p310_p6 }
  0x32   :  { %p313_p9 = pnand %p312_p8, %p306_p5 }
  0x34   :  { %316 = shalt.err (!%p313_p9)
}
  0x35   :  { %46 = dma.hbm_to_vmem [thread:$0]  %s474_s2, 16, %s44_s15, [#allocation7]  }
  0x36   :  { %s317_s30 = scalar_lea.hbm %s475_s3, 16 }
  0x37   :  { %p318_p10 = scmp.ne.s32.totalorder %s475_s3, %s317_s30  ;;  %p321_p11 = scmp.lt.u32.totalorder %s317_s30, %s475_s3 }
  0x39   :  { %p323_p12 = pnand %p321_p11, %p318_p10 }
  0x3b   :  { %326 = shalt.err (!%p323_p12)
}
  0x3c   :  { %s327_s9 = scalar_lea.vmem %s54_s17, 16  ;;  %s331_s10 = scalar_lea.vmem %s54_s17, 32 }
  0x3d   :  { %p328_p13 = scmp.ne.s32.totalorder %s54_s17, %s327_s9  ;;  %p332_p0 = scmp.lt.s32.totalorder %s54_s17, %s54_s17 }
  0x3e   :  { %p333_p1 = scmp.lt.s32.totalorder %s331_s10, %s327_s9 }
  0x40   :  { %p334_p2 = por %p333_p1, %p332_p0 }
  0x42   :  { %p335_p3 = pnand %p334_p2, %p328_p13 }
  0x44   :  { %338 = shalt.err (!%p335_p3)
}
  0x45   :  { %56 = dma.hbm_to_vmem [thread:$0]  %s475_s3, 16, %s54_s17, [#allocation10]  }
  0x46   :  { %361 = dma.done.wait [#allocation4], 128  }
  0x47   :  { %362 = vsyncadd [#allocation4], 4294967168 }
  0x48   :  { %363 = dma.done.wait [#allocation7], 528  }
  0x49   :  { %364 = vsyncadd [#allocation7], 4294966768 }
  0x4a   :  { %365 = dma.done.wait [#allocation10], 16  }
  0x4b   :  { %366 = vsyncadd [#allocation10], 4294967280  ;;  %v375_v0 = vmov 0.0   ;;  %vm376_vm0 = vmmov 0   ;;  %v246_v1 = vld [vmem:[#allocation6] sm:$0xff]   ;;  %v247_v2 = vld [vmem:[#allocation6 + $0x8] sm:$0xff]  }
  0x4c   :  { %223 = vmatprep.subr.bf16.mxu0 %v375_v0  ;;  %231 = vmatprep.mubr.msk.bf16.mxu0 %vm376_vm0, %v375_v0  ;;  %v248_v3 = vld [vmem:[#allocation6 + $0x10] sm:$0xff]   ;;  %v249_v4 = vld [vmem:[#allocation6 + $0x18] sm:$0xff]   ;;  %vm117_vm1 = vcmask 523264   ;;  %v216_v6 = vld [vmem:[#allocation8] ss:$0 sm:$0xff]  ;;  %s377_s3 = smov [#allocation11]  }
  0x4d   :  { %224 = vmatpush3.bf16.msra.mxu0 %v246_v1  ;;  %v250_v5 = vld [vmem:[#allocation3] sm:$0xff]   ;;  %v217_v8 = vld [vmem:[#allocation9] ss:$0 sm:$0xff]  ;;  %s196_s12 = sshll.u32 %s377_s3, 4  ;;  %s197_s12 = int_to_ptr.vmem [resolvable:$true] %s196_s12 }
  0x4e   :  { %225 = vmatprep.subr.bf16.mxu0 %v375_v0  ;;  %s339_s1 = scalar_lea.vmem %s197_s12, 256  ;;  %p344_p5 = scmp.lt.s32.totalorder %s197_s12, %s197_s12 }
  0x4f   :  { %p340_p4 = scmp.ne.s32.totalorder %s197_s12, %s339_s1  ;;  %p345_p6 = scmp.lt.s32.totalorder %s339_s1, %s339_s1 }
  0x51   :  { %226 = vmatpush3.bf16.msra.mxu0 %v247_v2  ;;  %p346_p7 = por %p345_p6, %p344_p5 }
  0x52   :  { %227 = vmatprep.subr.bf16.mxu0 %v375_v0 }
  0x53   :  { %p347_p8 = pnand %p346_p7, %p340_p4 }
  0x55   :  { %228 = vmatpush3.bf16.msra.mxu0 %v248_v3 }
  0x56   :  { %229 = vmatprep.subr.bf16.mxu0 %v375_v0 }
  0x59   :  { %230 = vmatpush3.bf16.msra.mxu0 %v249_v4 }
  0x5c   :  { %232 = vmatmul.mubr.msk.bf16.vlgmr.msra.gmra.mrb[0].mxu0 %vm117_vm1, %v250_v5 }
 0x12f   :  { %v155_v7 = vpop.f32.mrb[0].mxu0 }
 0x130   :  { %v178_v9 = vmul.f32 %v216_v6, %v155_v7  ;;  %v233_v10 = vpop.f32.mrb[1].mxu0 }
 0x131   :  { %v158_v11 = vpop.f32.mrb[2].mxu0 }
 0x132   :  { %v187_v12 = vadd.f32 %v217_v8, %v178_v9  ;;  %v179_v13 = vmul.f32 %v216_v6, %v158_v11  ;;  %v234_v14 = vpop.f32.mrb[3].mxu0 }
 0x134   :  { %189 = vst [vmem:[#allocation11] sm:$0xff] %v187_v12  ;;  %v188_v15 = vadd.f32 %v217_v8, %v179_v13 }
 0x136   :  { %190 = vst [vmem:[#allocation11 + $0x8] sm:$0xff] %v188_v15 }
 0x137   :  { %350 = shalt.err (!%p347_p8)
}
 0x138   :  { %s351_s15 = scalar_lea.hbm %s476_s4, 256 }
 0x139   :  { %p352_p9 = scmp.ne.s32.totalorder %s476_s4, %s351_s15  ;;  %p355_p10 = scmp.lt.u32.totalorder %s351_s15, %s476_s4 }
 0x13b   :  { %p357_p11 = pnand %p355_p10, %p352_p9 }
 0x13d   :  { %360 = shalt.err (!%p357_p11)
}
 0x13e   :  { %s378_s21 = smov 128   ;;  %s379_s22 = smov 8  }
 0x13f   :  { %202 = dma.vmem_to_hbm [thread:$0]  %s197_s12, 256, %s476_s4, [#allocation5], %s378_s21, %s378_s21, %s379_s22  }
 0x140   :  { %367 = dma.done.wait [#allocation5], 256  }
 0x141   :  { %368 = vsyncadd [#allocation5], 4294967040 }
 0x142   :  { %206 = vsyncpa [#allocation4], 1 }
 0x143   :  { %207 = vsyncpa [#allocation7], 1 }
 0x144   :  { %208 = vsyncpa [#allocation10], 1 }
 0x145   :  { %209 = vsyncpa [#allocation5], 1 }

// kernel: _lambda_.38
= control target key start
LH: loop header
LB: loop body
LE: loop exit
PB: predicated region body
PF: predicated region fallthrough
CT: control target
= control target key end

     0   :  { %10 = vsyncpa [#allocation4], 0  ;;  %s522_s0 = inlined_call_operand.hbm [shape: bf16[16,32], index: 0, kind: input, shape index: {}]   ;;  %s523_s1 = inlined_call_operand.hbm [shape: bf16[32,128], index: 1, kind: input, shape index: {}]   ;;  %s524_s2 = inlined_call_operand.hbm [shape: f32[1,128], index: 2, kind: input, shape index: {}]   ;;  %s525_s3 = inlined_call_operand.hbm [shape: f32[1,128], index: 3, kind: input, shape index: {}]   ;;  %s526_s4 = inlined_call_operand.hbm [shape: f32[16,128], index: 4, kind: input, shape index: {}]   ;;  %s527_s5 = inlined_call_operand.hbm [shape: f32[16,128], index: 5, kind: output, shape index: {}]  }
   0x1   :  { %11 = vsyncpa [#allocation7], 0 }
   0x2   :  { %12 = vsyncpa [#allocation10], 0 }
   0x3   :  { %13 = vsyncpa [#allocation5], 0  ;;  %s388_s18 = smov [#allocation6]   ;;  %s389_s20 = smov [#allocation9]  }
   0x4   :  { %s31_s19 = sshll.u32 %s388_s18, 4  ;;  %s54_s21 = sshll.u32 %s389_s20, 4  ;;  %s32_s19 = int_to_ptr.vmem [resolvable:$true] %s31_s19  ;;  %s430_s21 = int_to_ptr.vmem [resolvable:$true] %s54_s21 }
   0x5   :  { %s248_s24 = scalar_lea.hbm %s523_s1, 256 }
   0x6   :  { %p249_p0 = scmp.ne.s32.totalorder %s523_s1, %s248_s24  ;;  %p252_p1 = scmp.lt.u32.totalorder %s248_s24, %s523_s1 }
   0x8   :  { %p254_p2 = pnand %p252_p1, %p249_p0 }
   0xa   :  { %257 = shalt.err (!%p254_p2)
}
   0xb   :  { %s258_s29 = scalar_lea.vmem %s32_s19, 256  ;;  %p263_p4 = scmp.lt.s32.totalorder %s32_s19, %s32_s19 }
   0xc   :  { %p259_p3 = scmp.ne.s32.totalorder %s32_s19, %s258_s29  ;;  %p264_p5 = scmp.lt.s32.totalorder %s258_s29, %s258_s29 }
   0xe   :  { %p265_p6 = por %p264_p5, %p263_p4 }
  0x10   :  { %p266_p7 = pnand %p265_p6, %p259_p3 }
  0x12   :  { %269 = shalt.err (!%p266_p7)
}
  0x13   :  { %s390_s30 = smov 64   ;;  %s391_s6 = smov 4  }
  0x14   :  { %37 = dma.hbm_to_vmem [thread:$0]  %s523_s1, 256, %s32_s19, [#allocation7], %s390_s30, %s390_s30, %s391_s6  }
  0x15   :  { %s270_s11 = scalar_lea.hbm %s525_s3, 16 }
  0x16   :  { %p271_p8 = scmp.ne.s32.totalorder %s525_s3, %s270_s11  ;;  %p274_p9 = scmp.lt.u32.totalorder %s270_s11, %s525_s3 }
  0x18   :  { %p276_p10 = pnand %p274_p9, %p271_p8 }
  0x1a   :  { %279 = shalt.err (!%p276_p10)
}
  0x1b   :  { %s280_s16 = scalar_lea.vmem %s430_s21, 16  ;;  %s284_s1 = scalar_lea.vmem %s430_s21, 32 }
  0x1c   :  { %p281_p11 = scmp.ne.s32.totalorder %s430_s21, %s280_s16  ;;  %p285_p12 = scmp.lt.s32.totalorder %s430_s21, %s430_s21 }
  0x1d   :  { %p286_p13 = scmp.lt.s32.totalorder %s284_s1, %s280_s16 }
  0x1f   :  { %p287_p0 = por %p286_p13, %p285_p12 }
  0x21   :  { %p288_p1 = pnand %p287_p0, %p281_p11 }
  0x23   :  { %291 = shalt.err (!%p288_p1)
}
  0x24   :  { %57 = dma.hbm_to_vmem [thread:$0]  %s525_s3, 16, %s430_s21, [#allocation10]  }
  0x25   :  { %s392_s19 = smov [#allocation3]   ;;  %s393_s22 = smov [#allocation8]  }
  0x26   :  { %s19_s20 = sshll.u32 %s392_s19, 4  ;;  %s44_s23 = sshll.u32 %s393_s22, 4  ;;  %s20_s20 = int_to_ptr.vmem [resolvable:$true] %s19_s20  ;;  %s45_s23 = int_to_ptr.vmem [resolvable:$true] %s44_s23 }
  0x27   :  { %s292_s26 = scalar_lea.hbm %s522_s0, 128 }
  0x28   :  { %p293_p2 = scmp.ne.s32.totalorder %s522_s0, %s292_s26  ;;  %p296_p3 = scmp.lt.u32.totalorder %s292_s26, %s522_s0 }
  0x2a   :  { %p298_p4 = pnand %p296_p3, %p293_p2 }
  0x2c   :  { %301 = shalt.err (!%p298_p4)
}
  0x2d   :  { %s302_s3 = scalar_lea.vmem %s20_s20, 128  ;;  %p307_p6 = scmp.lt.s32.totalorder %s20_s20, %s20_s20 }
  0x2e   :  { %p303_p5 = scmp.ne.s32.totalorder %s20_s20, %s302_s3  ;;  %p308_p7 = scmp.lt.s32.totalorder %s302_s3, %s302_s3 }
  0x30   :  { %p309_p8 = por %p308_p7, %p307_p6 }
  0x32   :  { %p310_p9 = pnand %p309_p8, %p303_p5 }
  0x34   :  { %313 = shalt.err (!%p310_p9)
}
  0x35   :  { %25 = dma.hbm_to_vmem [thread:$0]  %s522_s0, 128, %s20_s20, [#allocation4], %s390_s30, %s390_s30, %s391_s6  }
  0x36   :  { %s314_s11 = scalar_lea.hbm %s524_s2, 16 }
  0x37   :  { %p315_p10 = scmp.ne.s32.totalorder %s524_s2, %s314_s11  ;;  %p318_p11 = scmp.lt.u32.totalorder %s314_s11, %s524_s2 }
  0x39   :  { %p320_p12 = pnand %p318_p11, %p315_p10 }
  0x3b   :  { %323 = shalt.err (!%p320_p12)
}
  0x3c   :  { %s324_s16 = scalar_lea.vmem %s45_s23, 16  ;;  %s328_s1 = scalar_lea.vmem %s45_s23, 32 }
  0x3d   :  { %p325_p13 = scmp.ne.s32.totalorder %s45_s23, %s324_s16  ;;  %p329_p0 = scmp.lt.s32.totalorder %s45_s23, %s45_s23 }
  0x3e   :  { %p330_p1 = scmp.lt.s32.totalorder %s328_s1, %s324_s16 }
  0x40   :  { %p331_p2 = por %p330_p1, %p329_p0 }
  0x42   :  { %p332_p3 = pnand %p331_p2, %p325_p13 }
  0x44   :  { %335 = shalt.err (!%p332_p3)
}
  0x45   :  { %47 = dma.hbm_to_vmem [thread:$0]  %s524_s2, 16, %s45_s23, [#allocation7]  }
  0x46   :  { %s394_s6 = smov [#allocation11]   ;;  %s336_s20 = scalar_lea.hbm %s526_s4, 256 }
  0x47   :  { %s63_s17 = sshll.u32 %s394_s6, 4  ;;  %p337_p4 = scmp.ne.s32.totalorder %s526_s4, %s336_s20  ;;  %s64_s17 = int_to_ptr.vmem [resolvable:$true] %s63_s17 }
  0x48   :  { %p340_p5 = scmp.lt.u32.totalorder %s336_s20, %s526_s4 }
  0x4a   :  { %p342_p6 = pnand %p340_p5, %p337_p4 }
  0x4c   :  { %345 = shalt.err (!%p342_p6)
}
  0x4d   :  { %s346_s27 = scalar_lea.vmem %s64_s17, 256  ;;  %p351_p8 = scmp.lt.s32.totalorder %s64_s17, %s64_s17 }
  0x4e   :  { %p347_p7 = scmp.ne.s32.totalorder %s64_s17, %s346_s27  ;;  %p352_p9 = scmp.lt.s32.totalorder %s346_s27, %s346_s27 }
  0x50   :  { %p353_p10 = por %p352_p9, %p351_p8 }
  0x52   :  { %p354_p11 = pnand %p353_p10, %p347_p7 }
  0x54   :  { %357 = shalt.err (!%p354_p11)
}
  0x55   :  { %s395_s2 = smov 128   ;;  %s396_s23 = smov 8  }
  0x56   :  { %69 = dma.hbm_to_vmem [thread:$0]  %s526_s4, 256, %s64_s17, [#allocation10], %s395_s2, %s395_s2, %s396_s23  }
  0x57   :  { %380 = dma.done.wait [#allocation4], 128  }
  0x58   :  { %381 = vsyncadd [#allocation4], 4294967168 }
  0x59   :  { %382 = dma.done.wait [#allocation7], 272  }
  0x5a   :  { %383 = vsyncadd [#allocation7], 4294967024 }
  0x5b   :  { %384 = dma.done.wait [#allocation10], 272  }
  0x5c   :  { %385 = vsyncadd [#allocation10], 4294967024  ;;  %v397_v0 = vmov 0.0   ;;  %vm398_vm0 = vmmov 0   ;;  %v245_v1 = vld [vmem:[#allocation6] sm:$0xff]   ;;  %v246_v2 = vld [vmem:[#allocation6 + $0x8] sm:$0xff]  }
  0x5d   :  { %225 = vmatprep.subr.bf16.mxu0 %v397_v0  ;;  %229 = vmatprep.mubr.msk.bf16.mxu0 %vm398_vm0, %v397_v0  ;;  %v247_v3 = vld [vmem:[#allocation3] sm:$0xff]   ;;  %vm117_vm1 = vcmask 261120   ;;  %v220_v4 = vld [vmem:[#allocation8] ss:$0 sm:$0xff]  ;;  %v221_v6 = vld [vmem:[#allocation9] ss:$0 sm:$0xff] }
  0x5e   :  { %226 = vmatpush3.bf16.msra.mxu0 %v245_v1  ;;  %v189_v9 = vld [vmem:[#allocation11] sm:$0xff]  ;;  %v190_v14 = vld [vmem:[#allocation11 + $0x8] sm:$0xff]  ;;  %s399_s4 = smov [#allocation12]  }
  0x5f   :  { %227 = vmatprep.subr.bf16.mxu0 %v397_v0  ;;  %s202_s7 = sshll.u32 %s399_s4, 4  ;;  %s203_s7 = int_to_ptr.vmem [resolvable:$true] %s202_s7 }
  0x60   :  { %s358_s3 = scalar_lea.vmem %s203_s7, 256  ;;  %p363_p13 = scmp.lt.s32.totalorder %s203_s7, %s203_s7 }
  0x61   :  { %p359_p12 = scmp.ne.s32.totalorder %s203_s7, %s358_s3  ;;  %p364_p0 = scmp.lt.s32.totalorder %s358_s3, %s358_s3 }
  0x62   :  { %228 = vmatpush3.bf16.msra.mxu0 %v246_v2 }
  0x63   :  { %p365_p1 = por %p364_p0, %p363_p13 }
  0x65   :  { %230 = vmatmul.mubr.msk.bf16.vlgmr.msra.gmra.mrb[0].mxu0 %vm117_vm1, %v247_v3  ;;  %p366_p2 = pnand %p365_p1, %p359_p12 }
 0x138   :  { %v155_v5 = vpop.f32.mrb[0].mxu0 }
 0x139   :  { %v178_v7 = vmul.f32 %v220_v4, %v155_v5  ;;  %v231_v8 = vpop.f32.mrb[1].mxu0 }
 0x13a   :  { %v158_v10 = vpop.f32.mrb[2].mxu0 }
 0x13b   :  { %v187_v11 = vadd.f32 %v221_v6, %v178_v7  ;;  %v179_v12 = vmul.f32 %v220_v4, %v158_v10  ;;  %v232_v13 = vpop.f32.mrb[3].mxu0 }
 0x13d   :  { %v191_v15 = vadd.f32 %v189_v9, %v187_v11  ;;  %v188_v16 = vadd.f32 %v221_v6, %v179_v12 }
 0x13f   :  { %v193_v17 = vmax.f32 %v191_v15, 0.0  ;;  %v192_v18 = vadd.f32 %v190_v14, %v188_v16 }
 0x141   :  { %195 = vst [vmem:[#allocation12] sm:$0xff] %v193_v17  ;;  %v194_v19 = vmax.f32 %v192_v18, 0.0 }
 0x143   :  { %196 = vst [vmem:[#allocation12 + $0x8] sm:$0xff] %v194_v19 }
 0x144   :  { %369 = shalt.err (!%p366_p2)
}
 0x145   :  { %s370_s9 = scalar_lea.hbm %s527_s5, 256 }
 0x146   :  { %p371_p3 = scmp.ne.s32.totalorder %s527_s5, %s370_s9  ;;  %p374_p4 = scmp.lt.u32.totalorder %s370_s9, %s527_s5 }
 0x148   :  { %p376_p5 = pnand %p374_p4, %p371_p3 }
 0x14a   :  { %379 = shalt.err (!%p376_p5)
}
 0x14b   :  { %208 = dma.vmem_to_hbm [thread:$0]  %s203_s7, 256, %s527_s5, [#allocation5], %s395_s2, %s395_s2, %s396_s23  }
 0x14c   :  { %386 = dma.done.wait [#allocation5], 256  }
 0x14d   :  { %387 = vsyncadd [#allocation5], 4294967040 }
 0x14e   :  { %212 = vsyncpa [#allocation4], 1 }
 0x14f   :  { %213 = vsyncpa [#allocation7], 1 }
 0x150   :  { %214 = vsyncpa [#allocation10], 1 }
 0x151   :  { %215 = vsyncpa [#allocation5], 1 }

// kernel: _lambda_.36
= control target key start
LH: loop header
LB: loop body
LE: loop exit
PB: predicated region body
PF: predicated region fallthrough
CT: control target
= control target key end

     0   :  { %9 = vsyncpa [#allocation4], 0  ;;  %s685_s0 = inlined_call_operand.hbm [shape: bf16[16,288], index: 0, kind: input, shape index: {}]   ;;  %s686_s1 = inlined_call_operand.hbm [shape: bf16[288,128], index: 1, kind: input, shape index: {}]   ;;  %s687_s2 = inlined_call_operand.hbm [shape: f32[1,128], index: 2, kind: input, shape index: {}]   ;;  %s688_s3 = inlined_call_operand.hbm [shape: f32[1,128], index: 3, kind: input, shape index: {}]   ;;  %s689_s4 = inlined_call_operand.hbm [shape: f32[16,128], index: 4, kind: output, shape index: {}]  }
   0x1   :  { %10 = vsyncpa [#allocation7], 0 }
   0x2   :  { %11 = vsyncpa [#allocation10], 0 }
   0x3   :  { %12 = vsyncpa [#allocation5], 0  ;;  %s587_s15 = smov [#allocation6]   ;;  %s469_s19 = scalar_lea.hbm %s686_s1, 2304 }
   0x4   :  { %s30_s16 = sshll.u32 %s587_s15, 4  ;;  %p470_p0 = scmp.ne.s32.totalorder %s686_s1, %s469_s19  ;;  %s31_s16 = int_to_ptr.vmem [resolvable:$true] %s30_s16 }
   0x5   :  { %p473_p1 = scmp.lt.u32.totalorder %s469_s19, %s686_s1 }
   0x7   :  { %p475_p2 = pnand %p473_p1, %p470_p0 }
   0x9   :  { %478 = shalt.err (!%p475_p2)
}
   0xa   :  { %s479_s24 = scalar_lea.vmem %s31_s16, 2304  ;;  %p484_p4 = scmp.lt.s32.totalorder %s31_s16, %s31_s16 }
   0xb   :  { %p480_p3 = scmp.ne.s32.totalorder %s31_s16, %s479_s24  ;;  %p485_p5 = scmp.lt.s32.totalorder %s479_s24, %s479_s24 }
   0xd   :  { %p486_p6 = por %p485_p5, %p484_p4 }
   0xf   :  { %p487_p7 = pnand %p486_p6, %p480_p3 }
  0x11   :  { %490 = shalt.err (!%p487_p7)
}
  0x12   :  { %s588_s25 = smov 64   ;;  %s589_s26 = smov 4  }
  0x13   :  { %36 = dma.hbm_to_vmem [thread:$0]  %s686_s1, 2304, %s31_s16, [#allocation7], %s588_s25, %s588_s25, %s589_s26  }
  0x14   :  { %s590_s29 = smov [#allocation3]   ;;  %s491_s7 = scalar_lea.hbm %s685_s0, 384 }
  0x15   :  { %s18_s30 = sshll.u32 %s590_s29, 4  ;;  %p492_p8 = scmp.ne.s32.totalorder %s685_s0, %s491_s7  ;;  %s19_s30 = int_to_ptr.vmem [resolvable:$true] %s18_s30 }
  0x16   :  { %p495_p9 = scmp.lt.u32.totalorder %s491_s7, %s685_s0 }
  0x18   :  { %p497_p10 = pnand %p495_p9, %p492_p8 }
  0x1a   :  { %500 = shalt.err (!%p497_p10)
}
  0x1b   :  { %s501_s12 = scalar_lea.vmem %s19_s30, 384  ;;  %p506_p12 = scmp.lt.s32.totalorder %s19_s30, %s19_s30 }
  0x1c   :  { %p502_p11 = scmp.ne.s32.totalorder %s19_s30, %s501_s12  ;;  %p507_p13 = scmp.lt.s32.totalorder %s501_s12, %s501_s12 }
  0x1e   :  { %p508_p0 = por %p507_p13, %p506_p12 }
  0x20   :  { %p509_p1 = pnand %p508_p0, %p502_p11 }
  0x22   :  { %512 = shalt.err (!%p509_p1)
}
  0x23   :  { %s591_s1 = smov 192   ;;  %s592_s13 = smov 12  }
  0x24   :  { %24 = dma.hbm_to_vmem [thread:$0]  %s685_s0, 384, %s19_s30, [#allocation4], %s591_s1, %s591_s1, %s592_s13  }
  0x25   :  { %s593_s16 = smov [#allocation8]   ;;  %s594_s18 = smov [#allocation9]  }
  0x26   :  { %s43_s17 = sshll.u32 %s593_s16, 4  ;;  %s53_s19 = sshll.u32 %s594_s18, 4  ;;  %s44_s17 = int_to_ptr.vmem [resolvable:$true] %s43_s17  ;;  %s54_s19 = int_to_ptr.vmem [resolvable:$true] %s53_s19 }
  0x27   :  { %s513_s22 = scalar_lea.hbm %s687_s2, 16 }
  0x28   :  { %p514_p2 = scmp.ne.s32.totalorder %s687_s2, %s513_s22  ;;  %p517_p3 = scmp.lt.u32.totalorder %s513_s22, %s687_s2 }
  0x2a   :  { %p519_p4 = pnand %p517_p3, %p514_p2 }
  0x2c   :  { %522 = shalt.err (!%p519_p4)
}
  0x2d   :  { %s523_s0 = scalar_lea.vmem %s44_s17, 16  ;;  %s527_s27 = scalar_lea.vmem %s44_s17, 32 }
  0x2e   :  { %p524_p5 = scmp.ne.s32.totalorder %s44_s17, %s523_s0  ;;  %p528_p6 = scmp.lt.s32.totalorder %s44_s17, %s44_s17 }
  0x2f   :  { %p529_p7 = scmp.lt.s32.totalorder %s527_s27, %s523_s0 }
  0x31   :  { %p530_p8 = por %p529_p7, %p528_p6 }
  0x33   :  { %p531_p9 = pnand %p530_p8, %p524_p5 }
  0x35   :  { %534 = shalt.err (!%p531_p9)
}
  0x36   :  { %46 = dma.hbm_to_vmem [thread:$0]  %s687_s2, 16, %s44_s17, [#allocation7]  }
  0x37   :  { %s535_s6 = scalar_lea.hbm %s688_s3, 16 }
  0x38   :  { %p536_p10 = scmp.ne.s32.totalorder %s688_s3, %s535_s6  ;;  %p539_p11 = scmp.lt.u32.totalorder %s535_s6, %s688_s3 }
  0x3a   :  { %p541_p12 = pnand %p539_p11, %p536_p10 }
  0x3c   :  { %544 = shalt.err (!%p541_p12)
}
  0x3d   :  { %s545_s11 = scalar_lea.vmem %s54_s19, 16  ;;  %s549_s12 = scalar_lea.vmem %s54_s19, 32 }
  0x3e   :  { %p546_p13 = scmp.ne.s32.totalorder %s54_s19, %s545_s11  ;;  %p550_p0 = scmp.lt.s32.totalorder %s54_s19, %s54_s19 }
  0x3f   :  { %p551_p1 = scmp.lt.s32.totalorder %s549_s12, %s545_s11 }
  0x41   :  { %p552_p2 = por %p551_p1, %p550_p0 }
  0x43   :  { %p553_p3 = pnand %p552_p2, %p546_p13 }
  0x45   :  { %556 = shalt.err (!%p553_p3)
}
  0x46   :  { %56 = dma.hbm_to_vmem [thread:$0]  %s688_s3, 16, %s54_s19, [#allocation10]  }
  0x47   :  { %579 = dma.done.wait [#allocation4], 384  }
  0x48   :  { %580 = vsyncadd [#allocation4], 4294966912 }
  0x49   :  { %581 = dma.done.wait [#allocation7], 2320  }
  0x4a   :  { %582 = vsyncadd [#allocation7], 4294964976 }
  0x4b   :  { %583 = dma.done.wait [#allocation10], 16  }
  0x4c   :  { %584 = vsyncadd [#allocation10], 4294967280  ;;  %v595_v0 = vmov 0.0   ;;  %vm596_vm0 = vmmov 0   ;;  %v447_v1 = vld [vmem:[#allocation6 + $0x40] sm:$0xff]   ;;  %v449_v3 = vld [vmem:[#allocation6 + $0x48] sm:$0xff]  }
  0x4d   :  { %426 = vmatprep.subr.bf16.mxu1 %v595_v0  ;;  %430 = vmatprep.mubr.msk.bf16.mxu1 %vm596_vm0, %v595_v0  ;;  %v448_v2 = vld [vmem:[#allocation6] sm:$0xff]   ;;  %v450_v4 = vld [vmem:[#allocation6 + $0x8] sm:$0xff]   ;;  %v451_v5 = vld [vmem:[#allocation6 + $0x50] sm:$0xff]   ;;  %vm241_vm1 = vcmask 261120   ;;  %s597_s3 = smov [#allocation11]  }
  0x4e   :  { %401 = vmatprep.subr.bf16.mxu0 %v447_v1  ;;  %v452_v6 = vld [vmem:[#allocation6 + $0x10] sm:$0xff]   ;;  %v453_v7 = vld [vmem:[#allocation6 + $0x58] sm:$0xff]   ;;  %v455_v9 = vld [vmem:[#allocation6 + $0x60] sm:$0xff]   ;;  %s363_s13 = sshll.u32 %s597_s3, 4  ;;  %s364_s13 = int_to_ptr.vmem [resolvable:$true] %s363_s13 }
  0x4f   :  { %402 = vmatpush3.bf16.msra.mxu0 %v448_v2  ;;  %v454_v8 = vld [vmem:[#allocation6 + $0x18] sm:$0xff]   ;;  %v461_v10 = vld [vmem:[#allocation6 + $0x80] sm:$0xff]   ;;  %v457_v12 = vld [vmem:[#allocation6 + $0x68] sm:$0xff]   ;;  %s557_s14 = scalar_lea.vmem %s364_s13, 256  ;;  %p562_p5 = scmp.lt.s32.totalorder %s364_s13, %s364_s13 }
  0x50   :  { %403 = vmatprep.subr.bf16.mxu0 %v449_v3  ;;  %v456_v11 = vld [vmem:[#allocation6 + $0x20] sm:$0xff]   ;;  %427 = vmatpush3.bf16.msra.mxu1 %v461_v10  ;;  %v464_v13 = vld [vmem:[#allocation6 + $0x88] sm:$0xff]   ;;  %v459_v16 = vld [vmem:[#allocation6 + $0x70] sm:$0xff]   ;;  %p558_p4 = scmp.ne.s32.totalorder %s364_s13, %s557_s14  ;;  %p563_p6 = scmp.lt.s32.totalorder %s557_s14, %s557_s14 }
  0x51   :  { %428 = vmatprep.subr.bf16.mxu1 %v595_v0  ;;  %v458_v14 = vld [vmem:[#allocation6 + $0x28] sm:$0xff]   ;;  %v468_v17 = vld [vmem:[#allocation3 + $0x8] ss:$12 sps:$4 sm:$0xff]  }
  0x52   :  { %v467_v15 = vld [vmem:[#allocation3 + $0x4] ss:$12 sps:$4 sm:$0xff]   ;;  %v460_v18 = vld [vmem:[#allocation6 + $0x30] sm:$0xff]   ;;  %p564_p7 = por %p563_p6, %p562_p5 }
  0x53   :  { %404 = vmatpush3.bf16.msra.mxu0 %v450_v4  ;;  %277 = vmatprep.mubr.bf16.mxu0 %v467_v15  ;;  %v462_v19 = vld [vmem:[#allocation6 + $0x78] sm:$0xff]   ;;  %v465_v21 = vld [vmem:[#allocation3] ss:$12 sps:$4 sm:$0xff]   ;;  %v399_v30 = vld [vmem:[#allocation8] ss:$0 sm:$0xff] }
  0x54   :  { %405 = vmatprep.subr.bf16.mxu0 %v451_v5  ;;  %429 = vmatpush3.bf16.msra.mxu1 %v464_v13  ;;  %v463_v20 = vld [vmem:[#allocation6 + $0x38] sm:$0xff]   ;;  %v400_v34 = vld [vmem:[#allocation9] ss:$0 sm:$0xff]  ;;  %p565_p8 = pnand %p564_p7, %p558_p4 }
  0x57   :  { %406 = vmatpush3.bf16.msra.mxu0 %v452_v6  ;;  %431 = vmatmul.mubr.msk.bf16.vlgmr.msra.gmra.mrb[0].mxu1 %vm241_vm1, %v468_v17 }
  0x58   :  { %407 = vmatprep.subr.bf16.mxu0 %v453_v7 }
  0x5b   :  { %408 = vmatpush3.bf16.msra.mxu0 %v454_v8 }
  0x5c   :  { %409 = vmatprep.subr.bf16.mxu0 %v455_v9 }
  0x5f   :  { %410 = vmatpush3.bf16.msra.mxu0 %v456_v11 }
  0x60   :  { %411 = vmatprep.subr.bf16.mxu0 %v457_v12 }
  0x63   :  { %412 = vmatpush3.bf16.msra.mxu0 %v458_v14 }
  0x64   :  { %413 = vmatprep.subr.bf16.mxu0 %v459_v16 }
  0x67   :  { %414 = vmatpush3.bf16.msra.mxu0 %v460_v18 }
  0x68   :  { %415 = vmatprep.subr.bf16.mxu0 %v462_v19 }
  0x6b   :  { %416 = vmatpush3.bf16.msra.mxu0 %v463_v20 }
  0x6e   :  { %278 = vmatmul.mubr.bf16.vlgmr.msra.gmra.mrb[0].mxu0 %v465_v21 }
 0x12a   :  { %v320_v22 = vpop.f32.mrb[0].mxu1 }
 0x12b   :  { %v432_v23 = vpop.f32.mrb[1].mxu1 }
 0x12c   :  { %v323_v24 = vpop.f32.mrb[2].mxu1 }
 0x12d   :  { %v433_v25 = vpop.f32.mrb[3].mxu1 }
 0x141   :  { %v417_v26 = vpop.f32.mrb[0].mxu0 }
 0x142   :  { %v418_v27 = vpop.f32.mrb[1].mxu0 }
 0x143   :  { %v419_v28 = vadd.f32 %v418_v27, %v417_v26  ;;  %v420_v29 = vpop.f32.mrb[2].mxu0 }
 0x144   :  { %v421_v31 = vpop.f32.mrb[3].mxu0 }
 0x145   :  { %v321_v32 = vadd.f32 %v419_v28, %v320_v22  ;;  %v422_v33 = vadd.f32 %v421_v31, %v420_v29 }
 0x147   :  { %v343_v35 = vmul.f32 %v399_v30, %v321_v32  ;;  %v324_v36 = vadd.f32 %v422_v33, %v323_v24 }
 0x149   :  { %v352_v37 = vadd.f32 %v400_v34, %v343_v35  ;;  %v344_v38 = vmul.f32 %v399_v30, %v324_v36 }
 0x14b   :  { %v354_v39 = vmax.f32 %v352_v37, 0.0  ;;  %v353_v40 = vadd.f32 %v400_v34, %v344_v38 }
 0x14d   :  { %356 = vst [vmem:[#allocation11] sm:$0xff] %v354_v39  ;;  %v355_v41 = vmax.f32 %v353_v40, 0.0 }
 0x14f   :  { %357 = vst [vmem:[#allocation11 + $0x8] sm:$0xff] %v355_v41 }
 0x150   :  { %568 = shalt.err (!%p565_p8)
}
 0x151   :  { %s569_s17 = scalar_lea.hbm %s689_s4, 256 }
 0x152   :  { %p570_p9 = scmp.ne.s32.totalorder %s689_s4, %s569_s17  ;;  %p573_p10 = scmp.lt.u32.totalorder %s569_s17, %s689_s4 }
 0x154   :  { %p575_p11 = pnand %p573_p10, %p570_p9 }
 0x156   :  { %578 = shalt.err (!%p575_p11)
}
 0x157   :  { %s598_s22 = smov 128   ;;  %s599_s23 = smov 8  }
 0x158   :  { %369 = dma.vmem_to_hbm [thread:$0]  %s364_s13, 256, %s689_s4, [#allocation5], %s598_s22, %s598_s22, %s599_s23  }
 0x159   :  { %585 = dma.done.wait [#allocation5], 256  }
 0x15a   :  { %586 = vsyncadd [#allocation5], 4294967040 }
 0x15b   :  { %373 = vsyncpa [#allocation4], 1 }
 0x15c   :  { %374 = vsyncpa [#allocation7], 1 }
 0x15d   :  { %375 = vsyncpa [#allocation10], 1 }
 0x15e   :  { %376 = vsyncpa [#allocation5], 1 }

// kernel: _lambda_.41
= control target key start
LH: loop header
LB: loop body
LE: loop exit
PB: predicated region body
PF: predicated region fallthrough
CT: control target
= control target key end

     0   :  { %s1360_s0 = inlined_call_operand.hbm [shape: bf16[16,128], index: 0, kind: input, shape index: {}]   ;;  %s1361_s1 = inlined_call_operand.hbm [shape: bf16[128,256], index: 1, kind: input, shape index: {}]   ;;  %s1362_s2 = inlined_call_operand.hbm [shape: f32[1,256], index: 2, kind: input, shape index: {}]   ;;  %s1363_s3 = inlined_call_operand.hbm [shape: f32[1,256], index: 3, kind: input, shape index: {}]   ;;  %s1364_s4 = inlined_call_operand.hbm [shape: f32[16,256], index: 4, kind: output, shape index: {}]  }
   0x1   :  { %1380 = sst [smem:[#allocation19_spill]] %s1361_s1 }
   0x2   :  { %9 = vsyncpa [#allocation4], 0 }
   0x3   :  { %10 = vsyncpa [#allocation7], 0 }
   0x4   :  { %12 = vsyncpa [#allocation7 + $0x1], 0 }
   0x5   :  { %13 = vsyncpa [#allocation10], 0 }
   0x6   :  { %15 = vsyncpa [#allocation10 + $0x1], 0 }
   0x7   :  { %16 = vsyncpa [#allocation5], 0 }
   0x8   :  { %18 = vsyncpa [#allocation5 + $0x1], 0  ;;  %s1048_s15 = smov 0   ;;  %s1050_s16 = smov 0  }
   0x9   :  { %s1052_s17 = smov 0   ;;  %s1054_s18 = smov 0  }
   0xa   :  { %s1056_s19 = smov 0   ;;  %s1058_s20 = smov 0  }
   0xb LB: > { %1381 = sst [smem:[#allocation16_spill]] %s996_s17  ;;  %s39_s21 = sadd.s32 1, %s1004_s19  ;;  %s1008_s20 = sphi %s1058_s20, %s24_s20   ;;  %s1004_s19 = sphi %s1056_s19, %s1414_s19   ;;  %s1000_s18 = sphi %s1054_s18, %s1413_s18   ;;  %s996_s17 = sphi %s1052_s17, %s1409_s17   ;;  %s992_s16 = sphi %s1050_s16, %s1412_s16   ;;  %s988_s15 = sphi %s1048_s15, %s1411_s15  }
   0xc   : > { %s80_s22 = sadd.s32 1, %s996_s17  ;;  %p41_p0 = scmp.ge.s32.totalorder %s39_s21, 2 }
   0xd   : > { %p1365_p1 = scmp.ne.s32.totalorder %s996_s17, %s992_s16  ;;  %p88_p2 = scmp.eq.s32.totalorder %s1008_s20, 0 }
   0xe   : > { %s1416_s21 = smov (%p41_p0, %s39_s21), 0  ;;  %p731_p6 = scmp.lt.s32.totalorder %s1008_s20, 2 }
   0xf   : > { %1382 = sst [smem:[#allocation17_spill]] %s1416_s21  ;;  %p1088_p3 = por %p88_p2, %p1365_p1 }
  0x10   : > { %s76_s24 = ssub.s32 %s1004_s19, %s1416_s21  ;;  %s214_s25 = sand.u32 1, %s1008_s20  }
  0x11   : > { %p78_p5 = scmp.eq.s32.totalorder %s76_s24, 0  ;;  %s1098_s26 = sand.u32 1, %s996_s17  }
  0x12   : > { %s648_s28 = sshll.u32 %s1098_s26, 6  ;;  %s649_s29 = sshll.u32 %s1004_s19, 6 }
  0x13   : > { %s1101_s27 = scalar_select %p78_p5, %s996_s17, %s80_s22  }
  0x14   : > { %s1385_s1 = sld [smem:[#allocation19_spill]]  ;;  %s218_s7 = scalar_lea.vmem [#allocation6], %s648_s28 }
  0x15   : > { %1384 = sst [smem:[#allocation18_spill]] %s1101_s27  ;;  %s227_s8 = sshll.u32 %s218_s7, 4  ;;  %s1110_s8 = int_to_ptr.vmem [resolvable:$true] %s227_s8 }
  0x16   : > { %p1114_p7 = pnand %p731_p6, %p1088_p3  ;;  %s1118_s10 = scalar_lea.sflag [#allocation7], %s214_s25 }
  0x18   : > { %s1386_s9 = scalar_select %p1114_p7, 1, 0 }
  0x19   : > { %p1124_p9 = pneg %p1114_p7 }
  0x1a   : > { %s1108_s6 = scalar_lea.hbm %s1385_s1, %s649_s29  ;;  %s805_s22 = scalar_lea.hbm %s1385_s1, 2048 }
  0x1b   : > { %s800_s11 = scalar_lea.hbm %s1108_s6, 1024  ;;  %p806_p12 = scmp.lt.u32.totalorder %s1108_s6, %s1385_s1 }
  0x1c   : > { %p801_p8 = scmp.ne.s32.totalorder %s1108_s6, %s800_s11  ;;  %p807_p13 = scmp.lt.u32.totalorder %s805_s22, %s800_s11 }
  0x1d   : > { %s1387_s12 = scalar_select %p1124_p9, 1, 0 }
  0x1e   : > { %p803_p10 = pnand %p1124_p9, %p801_p8  ;;  %p808_p0 = por %p807_p13, %p806_p12 }
  0x1f   : > { %p809_p2 = scmp.lt.u32.totalorder %s800_s11, %s1108_s6 }
  0x20   : > { %p804_p11 = pneg %p803_p10 }
  0x21   : > { %p810_p3 = por %p809_p2, %p808_p0 }
  0x23   : > { %p811_p5 = pnand %p810_p3, %p804_p11 }
  0x25   : > { %814 = shalt.err (!%p811_p5)
}
  0x26   : > { %s815_s25 = scalar_lea.vmem %s1110_s8, 1024  ;;  %s1010_s28 = smov [#allocation6]  }
  0x27   : > { %p816_p6 = scmp.ne.s32.totalorder %s1110_s8, %s815_s25  ;;  %s820_s29 = sshll.u32 %s1010_s28, 4  ;;  %s821_s29 = int_to_ptr.vmem [resolvable:$false] %s820_s29 }
  0x28   : > { %s822_s30 = scalar_lea.vmem %s821_s29, 2048  ;;  %p823_p4 = scmp.lt.s32.totalorder %s1110_s8, %s821_s29 }
  0x29   : > { %p818_p8 = pnand %p816_p6, %p1124_p9  ;;  %p824_p1 = scmp.lt.s32.totalorder %s822_s30, %s815_s25 }
  0x2b   : > { %p819_p10 = pneg %p818_p8  ;;  %p825_p12 = por %p824_p1, %p823_p4 }
  0x2d   : > { %p826_p13 = pnand %p825_p12, %p819_p10 }
  0x2f   : > { %829 = shalt.err (!%p826_p13)
}
  0x30   : > { %s1011_s5 = smov 128   ;;  %s1366_s7 = smov 64  }
  0x31   : > { %s1367_s11 = smov 4   ;;  %s1151_s13 = sadd.s32 4294967295, %s1008_s20  }
  0x32   : > { %719 = dma.hbm_to_vmem [thread:$0]  (!%p1114_p7), %s1108_s6, 1024, %s1110_s8, %s1118_s10, %s1011_s5, %s1366_s7, %s1367_s11  }
  0x33   : > { %s644_s14 = sadd.s32 4294967294, %s1008_s20   ;;  %p93_p1 = scmp.ne.s32.totalorder %s992_s16, %s988_s15 }
  0x34   : > { %p1370_p4 = scmp.eq.s32.totalorder %s1151_s13, 0  ;;  %p171_p11 = scmp.eq.s32.totalorder %s1151_s13, 1 }
  0x35   : > { %p177_p0 = scmp.eq.s32.totalorder %s644_s14, 1  ;;  %p645_p3 = scmp.ge.s32.totalorder %s1008_s20, 1 }
  0x36   : > { %p1160_p2 = por %p1370_p4, %p93_p1  ;;  %p1389_p5 = scmp.ne.s32.totalorder %s996_s17, %s992_s16 }
  0x37   : > { %p1172_p8 = por %p177_p0, %p93_p1  ;;  %p184_p10 = scmp.lt.s32.totalorder %s1008_s20, 3 }
  0x38   : > { %s1388_s22 = scalar_select %p1160_p2, 1, 0 }
  0x39   : > { %p1168_p6 = por %p171_p11, %p1389_p5  ;;  %p1177_p12 = pnand %p645_p3, %p184_p10 }
  0x3a   : > { %s1391_s8 = scalar_select %p1172_p8, 1, 0 }
  0x3b   : > { %s1390_s6 = scalar_select %p1168_p6, 1, 0 }
  0x3c   : > { %s1392_s23 = scalar_select %p1177_p12, 1, 0 }
  0x3d   : > { %s1014_s24 = smov [#allocation3]   ;;  %s1368_s28 = sshll.u32 %s1004_s19, 4 }
  0x3e   : > { %s200_s25 = sshll.u32 %s1014_s24, 4  ;;  %p712_p13 = pneg %p1177_p12  ;;  %s1181_s25 = int_to_ptr.vmem [resolvable:$true] %s200_s25 }
  0x3f   : > { %s1191_s5 = scalar_lea.hbm %s1362_s2, %s1368_s28  ;;  %s240_s14 = scalar_lea.vmem [#allocation8], %s1098_s26 }
  0x40   : > { %s247_s7 = sshll.u32 %s240_s14, 4  ;;  %p1196_p1 = pnand %p712_p13, %p1370_p4  ;;  %s248_s7 = int_to_ptr.vmem [resolvable:$true] %s247_s7 }
  0x41   : > { %s830_s11 = scalar_lea.hbm %s1191_s5, 16  ;;  %s835_s28 = scalar_lea.hbm %s1362_s2, 32 }
  0x42   : > { %s1393_s24 = scalar_select %p1196_p1, 1, 0 }
  0x43   : > { %p831_p11 = scmp.ne.s32.totalorder %s1191_s5, %s830_s11  ;;  %p836_p5 = scmp.lt.u32.totalorder %s1191_s5, %s1362_s2 }
  0x44   : > { %p837_p10 = scmp.lt.u32.totalorder %s835_s28, %s830_s11  ;;  %p839_p13 = scmp.lt.u32.totalorder %s830_s11, %s1191_s5 }
  0x45   : > { %p833_p0 = pnand %p831_p11, %p1124_p9 }
  0x46   : > { %p838_p8 = por %p837_p10, %p836_p5 }
  0x47   : > { %p834_p3 = pneg %p833_p0 }
  0x48   : > { %p840_p4 = por %p839_p13, %p838_p8 }
  0x4a   : > { %p841_p6 = pnand %p840_p4, %p834_p3 }
  0x4c   : > { %844 = shalt.err (!%p841_p6)
}
  0x4d   : > { %s845_s14 = scalar_lea.vmem %s248_s7, 16  ;;  %s1015_s27 = smov [#allocation8]  }
  0x4e   : > { %p846_p2 = scmp.ne.s32.totalorder %s248_s7, %s845_s14  ;;  %s850_s17 = sshll.u32 %s1015_s27, 4  ;;  %s851_s17 = int_to_ptr.vmem [resolvable:$false] %s850_s17 }
  0x4f   : > { %s852_s29 = scalar_lea.vmem %s851_s17, 32  ;;  %p853_p12 = scmp.lt.s32.totalorder %s248_s7, %s851_s17 }
  0x50   : > { %p848_p11 = pnand %p846_p2, %p1124_p9  ;;  %p854_p1 = scmp.lt.s32.totalorder %s852_s29, %s845_s14 }
  0x52   : > { %p849_p0 = pneg %p848_p11  ;;  %p855_p7 = por %p854_p1, %p853_p12 }
  0x54   : > { %p856_p5 = pnand %p855_p7, %p849_p0 }
  0x56   : > { %859 = shalt.err (!%p856_p5)
}
  0x57   : > { %p1394_p10 = scmp.ne.s32.totalorder %s1386_s9, 0  ;;  %s860_s11 = scalar_lea.hbm %s1360_s0, 128 }
  0x58   : > { %p861_p4 = scmp.ne.s32.totalorder %s1360_s0, %s860_s11  ;;  %p1395_p2 = scmp.ne.s32.totalorder %s1393_s24, 0 }
  0x59   : > { %722 = dma.hbm_to_vmem [thread:$0]  (!%p1394_p10), %s1191_s5, 16, %s248_s7, %s1118_s10  }
  0x5a   : > { %p862_p6 = pneg %p1395_p2  ;;  %p867_p7 = scmp.lt.u32.totalorder %s860_s11, %s1360_s0 }
  0x5c   : > { %p863_p8 = pnand %p862_p6, %p861_p4 }
  0x5e   : > { %p864_p12 = pneg %p863_p8 }
  0x60   : > { %p869_p1 = pnand %p867_p7, %p864_p12 }
  0x62   : > { %872 = shalt.err (!%p869_p1)
}
  0x63   : > { %s873_s10 = scalar_lea.vmem %s1181_s25, 128  ;;  %p881_p0 = scmp.lt.s32.totalorder %s1181_s25, %s1181_s25 }
  0x64   : > { %p874_p3 = scmp.ne.s32.totalorder %s1181_s25, %s873_s10  ;;  %p882_p5 = scmp.lt.s32.totalorder %s873_s10, %s873_s10 }
  0x66   : > { %p876_p13 = pnand %p874_p3, %p862_p6  ;;  %p883_p10 = por %p882_p5, %p881_p0 }
  0x68   : > { %p877_p11 = pneg %p876_p13 }
  0x6a   : > { %p884_p9 = pnand %p883_p10, %p877_p11 }
  0x6c   : > { %887 = shalt.err (!%p884_p9)
}
  0x6d   : > { %s1396_s7 = smov 4   ;;  %s1397_s5 = smov 64  }
  0x6e   : > { %715 = dma.hbm_to_vmem [thread:$0]  (!%p1395_p2), %s1360_s0, 128, %s1181_s25, [#allocation4], %s1397_s5, %s1397_s5, %s1396_s7  }
  0x6f   : > { %s1398_s1 = sshll.u32 %s1004_s19, 4  ;;  %s257_s24 = scalar_lea.vmem [#allocation9], %s1098_s26 }
  0x70   : > { %s1247_s28 = scalar_lea.hbm %s1363_s3, %s1398_s1  ;;  %s264_s30 = sshll.u32 %s257_s24, 4  ;;  %s265_s30 = int_to_ptr.vmem [resolvable:$true] %s264_s30 }
  0x71   : > { %s255_s17 = scalar_lea.sflag [#allocation10], %s1098_s26  ;;  %s888_s27 = scalar_lea.hbm %s1247_s28, 16 }
  0x72   : > { %p889_p9 = scmp.ne.s32.totalorder %s1247_s28, %s888_s27  ;;  %p1399_p10 = scmp.ne.s32.totalorder %s1387_s12, 0 }
  0x73   : > { %s893_s7 = scalar_lea.hbm %s1363_s3, 32  ;;  %p894_p2 = scmp.lt.u32.totalorder %s1247_s28, %s1363_s3 }
  0x74   : > { %p891_p4 = pnand %p889_p9, %p1399_p10  ;;  %p895_p8 = scmp.lt.u32.totalorder %s893_s7, %s888_s27 }
  0x75   : > { %p897_p7 = scmp.lt.u32.totalorder %s888_s27, %s1247_s28 }
  0x76   : > { %p892_p6 = pneg %p891_p4  ;;  %p896_p12 = por %p895_p8, %p894_p2 }
  0x78   : > { %p898_p1 = por %p897_p7, %p896_p12 }
  0x7a   : > { %p899_p3 = pnand %p898_p1, %p892_p6 }
  0x7c   : > { %902 = shalt.err (!%p899_p3)
}
  0x7d   : > { %s903_s26 = scalar_lea.vmem %s265_s30, 16  ;;  %s1016_s29 = smov [#allocation9]  }
  0x7e   : > { %p904_p13 = scmp.ne.s32.totalorder %s265_s30, %s903_s26  ;;  %s908_s1 = sshll.u32 %s1016_s29, 4  ;;  %s909_s1 = int_to_ptr.vmem [resolvable:$false] %s908_s1 }
  0x7f   : > { %s910_s21 = scalar_lea.vmem %s909_s1, 32  ;;  %p911_p5 = scmp.lt.s32.totalorder %s265_s30, %s909_s1 }
  0x80   : > { %p906_p11 = pnand %p904_p13, %p1399_p10  ;;  %p912_p9 = scmp.lt.s32.totalorder %s910_s21, %s903_s26 }
  0x82   : > { %p907_p0 = pneg %p906_p11  ;;  %p913_p4 = por %p912_p9, %p911_p5 }
  0x84   : > { %p914_p2 = pnand %p913_p4, %p907_p0 }
  0x86   : > { %917 = shalt.err (!%p914_p2)
}
  0x87   : > { %p1400_p8 = scmp.ne.s32.totalorder %s1386_s9, 0  ;;  %p1401_p6 = scmp.ne.s32.totalorder %s1392_s23, 0 }
  0x88   : > { %p1402_p12 = scmp.eq.s32.totalorder (!%p1401_p6), %s1151_s13, 0 }
  0x89   : > { %725 = dma.hbm_to_vmem [thread:$0]  (!%p1400_p8), %s1247_s28, 16, %s265_s30, %s255_s17  }
  0x8a   : > { %273 = sbr.rel (%p1401_p6) target bundleno = 421 (0x1a5), region = 36 }
  0x91   : > { %971 = dma.done.wait (%p1402_p12), [#allocation4], 128   ;;  %p1403_p10 = pmov %p1402_p12 }
  0x92   : > { %s279_s12 = sand.u32 1, %s1151_s13   ;;  %s1276_s11 = sand.u32 1, %s992_s16  }
  0x93   : > { %973 = vsyncadd (%p1403_p10), [#allocation4], 4294967168  ;;  %s654_s24 = sshll.u32 %s1276_s11, 6  ;;  %s280_s9 = scalar_lea.sflag [#allocation7], %s279_s12 }
  0x94   : > { %s1279_s27 = scalar_lea.vmem [#allocation6], %s654_s24  ;;  %p1404_p7 = scmp.ne.s32.totalorder %s1388_s22, 0 }
  0x96   : > { %975 = dma.done.wait (%p1404_p7), %s280_s9, 1040  }
  0x97   : > { %977 = vsyncadd (%p1404_p7), %s280_s9, 4294966256  ;;  %s291_s23 = scalar_lea.vmem [#allocation8], %s1276_s11  ;;  %s297_s28 = scalar_lea.sflag [#allocation10], %s1276_s11 }
  0x98   : > { %s299_s30 = scalar_lea.vmem [#allocation9], %s1276_s11 }
  0x99   : > { %979 = dma.done.wait (%p1404_p7), %s297_s28, 16  }
  0x9a   : > { %981 = vsyncadd (%p1404_p7), %s297_s28, 4294967280  ;;  %v1017_v0 = vmov 0.0   ;;  %vm1018_vm0 = vmmov 0   ;;  %v791_v1 = vld [vmem:[%s1279_s27] sm:$0xff]   ;;  %v792_v2 = vld [vmem:[%s1279_s27 + $0x8] sm:$0xff]   ;;  %s655_s13 = sshll.u32 %s1276_s11, 4 }
  0x9b   : > { %680 = vmatprep.subr.bf16.mxu0 %v1017_v0  ;;  %696 = vmatprep.mubr.msk.bf16.mxu0 %vm1018_vm0, %v1017_v0  ;;  %v793_v3 = vld [vmem:[%s1279_s27 + $0x10] sm:$0xff]   ;;  %v794_v4 = vld [vmem:[%s1279_s27 + $0x18] sm:$0xff]   ;;  %v795_v5 = vld [vmem:[%s1279_s27 + $0x20] sm:$0xff]   ;;  %s331_s22 = scalar_lea.vmem [#allocation11], %s655_s13  ;;  %s668_s25 = sshll.u32 %s1000_s18, 7 }
  0x9c   : > { %681 = vmatpush3.bf16.msra.mxu0 %v791_v1  ;;  %v796_v6 = vld [vmem:[%s1279_s27 + $0x28] sm:$0xff]   ;;  %v797_v7 = vld [vmem:[%s1279_s27 + $0x30] sm:$0xff]   ;;  %v798_v8 = vld [vmem:[%s1279_s27 + $0x38] sm:$0xff]   ;;  %s502_s17 = sshll.u32 %s331_s22, 4  ;;  %s1311_s5 = scalar_lea.hbm %s1364_s4, %s668_s25  ;;  %s1306_s17 = int_to_ptr.vmem [resolvable:$true] %s502_s17 }
  0x9d   : > { %682 = vmatprep.subr.bf16.mxu0 %v1017_v0  ;;  %v799_v9 = vld [vmem:[#allocation3] sm:$0xff]   ;;  %s487_s14 = scalar_lea.sflag [#allocation5], %s1276_s11  ;;  %s918_s26 = scalar_lea.vmem %s1306_s17, 256 }
  0x9e   : > { %v665_v10 = vld [vmem:[%s291_s23] ss:$0 sm:$0xff]  ;;  %p919_p1 = scmp.ne.s32.totalorder %s1306_s17, %s918_s26  ;;  %p1405_p3 = scmp.ne.s32.totalorder %s1390_s6, 0 }
  0x9f   : > { %v666_v12 = vld [vmem:[%s299_s30] ss:$0 sm:$0xff]  ;;  %s1019_s18 = smov [#allocation11]  }
  0xa0   : > { %683 = vmatpush3.bf16.msra.mxu0 %v792_v2  ;;  %p920_p13 = pnand %p919_p1, %p1405_p3  ;;  %s922_s29 = sshll.u32 %s1019_s18, 4  ;;  %s923_s29 = int_to_ptr.vmem [resolvable:$false] %s922_s29 }
  0xa1   : > { %684 = vmatprep.subr.bf16.mxu0 %v1017_v0  ;;  %s924_s1 = scalar_lea.vmem %s923_s29, 512  ;;  %p925_p0 = scmp.lt.s32.totalorder %s1306_s17, %s923_s29 }
  0xa2   : > { %p921_p11 = pneg %p920_p13  ;;  %p926_p5 = scmp.lt.s32.totalorder %s924_s1, %s918_s26 }
  0xa4   : > { %685 = vmatpush3.bf16.msra.mxu0 %v793_v3  ;;  %p927_p9 = por %p926_p5, %p925_p0 }
  0xa5   : > { %686 = vmatprep.subr.bf16.mxu0 %v1017_v0 }
  0xa6   : > { %p928_p4 = pnand %p927_p9, %p921_p11 }
  0xa8   : > { %687 = vmatpush3.bf16.msra.mxu0 %v794_v4 }
  0xa9   : > { %688 = vmatprep.subr.bf16.mxu0 %v1017_v0 }
  0xac   : > { %689 = vmatpush3.bf16.msra.mxu0 %v795_v5 }
  0xad   : > { %690 = vmatprep.subr.bf16.mxu0 %v1017_v0 }
  0xb0   : > { %691 = vmatpush3.bf16.msra.mxu0 %v796_v6 }
  0xb1   : > { %692 = vmatprep.subr.bf16.mxu0 %v1017_v0 }
  0xb4   : > { %693 = vmatpush3.bf16.msra.mxu0 %v797_v7 }
  0xb5   : > { %694 = vmatprep.subr.bf16.mxu0 %v1017_v0 }
  0xb8   : > { %695 = vmatpush3.bf16.msra.mxu0 %v798_v8 }
  0xbb   : > { %697 = vmatmul.mubr.bf16.vlgmr.msra.gmra.mrb[0].mxu0 %v799_v9 }
 0x18e   : > { %v450_v11 = vpop.f32.mrb[0].mxu0 }
 0x18f   : > { %v473_v13 = vmul.f32 %v665_v10, %v450_v11  ;;  %v698_v14 = vpop.f32.mrb[1].mxu0 }
 0x190   : > { %v453_v15 = vpop.f32.mrb[2].mxu0 }
 0x191   : > { %v482_v16 = vadd.f32 %v666_v12, %v473_v13  ;;  %v474_v17 = vmul.f32 %v665_v10, %v453_v15  ;;  %v699_v18 = vpop.f32.mrb[3].mxu0 }
 0x193   : > { %484 = vst [vmem:[%s331_s22] sm:$0xff] %v482_v16  ;;  %v483_v19 = vadd.f32 %v666_v12, %v474_v17 }
 0x195   : > { %485 = vst [vmem:[%s331_s22 + $0x8] sm:$0xff] %v483_v19 }
 0x196   : > { %931 = shalt.err (!%p928_p4)
}
 0x197   : > { %s932_s21 = scalar_lea.hbm %s1311_s5, 256  ;;  %s936_s9 = scalar_lea.hbm %s1364_s4, 512 }
 0x198   : > { %p933_p2 = scmp.ne.s32.totalorder %s1311_s5, %s932_s21  ;;  %p937_p12 = scmp.lt.u32.totalorder %s1311_s5, %s1364_s4 }
 0x199   : > { %p938_p10 = scmp.lt.u32.totalorder %s936_s9, %s932_s21  ;;  %p940_p1 = scmp.lt.u32.totalorder %s932_s21, %s1311_s5 }
 0x19a   : > { %p934_p8 = pnand %p933_p2, %p1405_p3 }
 0x19b   : > { %p939_p7 = por %p938_p10, %p937_p12 }
 0x19c   : > { %p935_p6 = pneg %p934_p8 }
 0x19d   : > { %p941_p13 = por %p940_p1, %p939_p7 }
 0x19f   : > { %p942_p11 = pnand %p941_p13, %p935_p6 }
 0x1a1   : > { %945 = shalt.err (!%p942_p11)
}
 0x1a2   : > { %s1020_s28 = smov 128   ;;  %s1021_s30 = smov 256  }
 0x1a3   : > { %s1022_s13 = smov 8  }
 0x1a4   : > { %710 = dma.vmem_to_hbm [thread:$0]  (%p1405_p3), %s1306_s17, 256, %s1311_s5, %s487_s14, %s1020_s28, %s1021_s30, %s1022_s13  }
 0x1a5 PF: > { %s517_s22 = sand.u32 1, %s988_s15   ;;  %p1406_p0 = scmp.ne.s32.totalorder %s1391_s8, 0 }
 0x1a6   : > { %p1407_p5 = scmp.ge.s32.totalorder %s1008_s20, 2  ;;  %s518_s25 = scalar_lea.sflag [#allocation5], %s517_s22 }
 0x1a8   : > { %p727_p9 = pnand %p1407_p5, %p1406_p0 }
 0x1aa   : > { %983 = dma.done.wait (!%p727_p9), %s518_s25, 256  }
 0x1ab   : > { %985 = vsyncadd (!%p727_p9), %s518_s25, 4294967040  ;;  %s24_s20 = sadd.s32 1, %s1008_s20   ;;  %s1408_s10 = sld [smem:[#allocation16_spill]] }
 0x1ac   : > { %p21_p4 = scmp.ge.s32.totalorder %s24_s20, 4   ;;  %s1409_s17 = sld [smem:[#allocation18_spill]] }
 0x1ad   : > { %s1410_s6 = sld [smem:[#allocation17_spill]]  ;;  %s1411_s15 = smov %s992_s16 }
 0x1ae   : > { %s1413_s18 = smov %s1004_s19  ;;  %23 = sbr.rel (!%p21_p4) target bundleno = 11 (0xb), region = 119 }
 0x1b1   : > { %s1412_s16 = smov %s1408_s10 }
 0x1b3   : > { %s1414_s19 = smov %s1410_s6 }
 0x1b5   :  { %523 = vsyncpa [#allocation4], 1 }
 0x1b6   :  { %525 = vsyncpa [#allocation4 + $0x1], 1 }
 0x1b7   :  { %526 = vsyncpa [#allocation7], 1 }
 0x1b8   :  { %528 = vsyncpa [#allocation7 + $0x1], 1 }
 0x1b9   :  { %529 = vsyncpa [#allocation10], 1 }
 0x1ba   :  { %531 = vsyncpa [#allocation10 + $0x1], 1 }
 0x1bb   :  { %532 = vsyncpa [#allocation5], 1 }
 0x1bc   :  { %534 = vsyncpa [#allocation5 + $0x1], 1 }

// kernel: _lambda_.39
= control target key start
LH: loop header
LB: loop body
LE: loop exit
PB: predicated region body
PF: predicated region fallthrough
CT: control target
= control target key end

     0   :  { %9 = vsyncpa [#allocation4], 0  ;;  %s522_s0 = inlined_call_operand.hbm [shape: bf16[16,128], index: 0, kind: input, shape index: {}]   ;;  %s523_s1 = inlined_call_operand.hbm [shape: bf16[128,128], index: 1, kind: input, shape index: {}]   ;;  %s524_s2 = inlined_call_operand.hbm [shape: f32[1,128], index: 2, kind: input, shape index: {}]   ;;  %s525_s3 = inlined_call_operand.hbm [shape: f32[1,128], index: 3, kind: input, shape index: {}]   ;;  %s526_s4 = inlined_call_operand.hbm [shape: f32[16,128], index: 4, kind: output, shape index: {}]  }
   0x1   :  { %10 = vsyncpa [#allocation7], 0 }
   0x2   :  { %11 = vsyncpa [#allocation10], 0 }
   0x3   :  { %12 = vsyncpa [#allocation5], 0  ;;  %s419_s15 = smov [#allocation6]   ;;  %s420_s17 = smov [#allocation3]  }
   0x4   :  { %s30_s16 = sshll.u32 %s419_s15, 4  ;;  %s18_s18 = sshll.u32 %s420_s17, 4  ;;  %s31_s16 = int_to_ptr.vmem [resolvable:$true] %s30_s16  ;;  %s455_s18 = int_to_ptr.vmem [resolvable:$true] %s18_s18 }
   0x5   :  { %s301_s21 = scalar_lea.hbm %s523_s1, 1024 }
   0x6   :  { %p302_p0 = scmp.ne.s32.totalorder %s523_s1, %s301_s21  ;;  %p305_p1 = scmp.lt.u32.totalorder %s301_s21, %s523_s1 }
   0x8   :  { %p307_p2 = pnand %p305_p1, %p302_p0 }
   0xa   :  { %310 = shalt.err (!%p307_p2)
}
   0xb   :  { %s311_s26 = scalar_lea.vmem %s31_s16, 1024  ;;  %p316_p4 = scmp.lt.s32.totalorder %s31_s16, %s31_s16 }
   0xc   :  { %p312_p3 = scmp.ne.s32.totalorder %s31_s16, %s311_s26  ;;  %p317_p5 = scmp.lt.s32.totalorder %s311_s26, %s311_s26 }
   0xe   :  { %p318_p6 = por %p317_p5, %p316_p4 }
  0x10   :  { %p319_p7 = pnand %p318_p6, %p312_p3 }
  0x12   :  { %322 = shalt.err (!%p319_p7)
}
  0x13   :  { %s421_s27 = smov 64   ;;  %s422_s28 = smov 4  }
  0x14   :  { %36 = dma.hbm_to_vmem [thread:$0]  %s523_s1, 1024, %s31_s16, [#allocation7], %s421_s27, %s421_s27, %s422_s28  }
  0x15   :  { %s323_s7 = scalar_lea.hbm %s522_s0, 128 }
  0x16   :  { %p324_p8 = scmp.ne.s32.totalorder %s522_s0, %s323_s7  ;;  %p327_p9 = scmp.lt.u32.totalorder %s323_s7, %s522_s0 }
  0x18   :  { %p329_p10 = pnand %p327_p9, %p324_p8 }
  0x1a   :  { %332 = shalt.err (!%p329_p10)
}
  0x1b   :  { %s333_s12 = scalar_lea.vmem %s455_s18, 128  ;;  %p338_p12 = scmp.lt.s32.totalorder %s455_s18, %s455_s18 }
  0x1c   :  { %p334_p11 = scmp.ne.s32.totalorder %s455_s18, %s333_s12  ;;  %p339_p13 = scmp.lt.s32.totalorder %s333_s12, %s333_s12 }
  0x1e   :  { %p340_p0 = por %p339_p13, %p338_p12 }
  0x20   :  { %p341_p1 = pnand %p340_p0, %p334_p11 }
  0x22   :  { %344 = shalt.err (!%p341_p1)
}
  0x23   :  { %24 = dma.hbm_to_vmem [thread:$0]  %s522_s0, 128, %s455_s18, [#allocation4], %s421_s27, %s421_s27, %s422_s28  }
  0x24   :  { %s423_s14 = smov [#allocation8]   ;;  %s424_s16 = smov [#allocation9]  }
  0x25   :  { %s43_s15 = sshll.u32 %s423_s14, 4  ;;  %s53_s17 = sshll.u32 %s424_s16, 4  ;;  %s44_s15 = int_to_ptr.vmem [resolvable:$true] %s43_s15  ;;  %s54_s17 = int_to_ptr.vmem [resolvable:$true] %s53_s17 }
  0x26   :  { %s345_s21 = scalar_lea.hbm %s524_s2, 16 }
  0x27   :  { %p346_p2 = scmp.ne.s32.totalorder %s524_s2, %s345_s21  ;;  %p349_p3 = scmp.lt.u32.totalorder %s345_s21, %s524_s2 }
  0x29   :  { %p351_p4 = pnand %p349_p3, %p346_p2 }
  0x2b   :  { %354 = shalt.err (!%p351_p4)
}
  0x2c   :  { %s355_s0 = scalar_lea.vmem %s44_s15, 16  ;;  %s359_s18 = scalar_lea.vmem %s44_s15, 32 }
  0x2d   :  { %p356_p5 = scmp.ne.s32.totalorder %s44_s15, %s355_s0  ;;  %p360_p6 = scmp.lt.s32.totalorder %s44_s15, %s44_s15 }
  0x2e   :  { %p361_p7 = scmp.lt.s32.totalorder %s359_s18, %s355_s0 }
  0x30   :  { %p362_p8 = por %p361_p7, %p360_p6 }
  0x32   :  { %p363_p9 = pnand %p362_p8, %p356_p5 }
  0x34   :  { %366 = shalt.err (!%p363_p9)
}
  0x35   :  { %46 = dma.hbm_to_vmem [thread:$0]  %s524_s2, 16, %s44_s15, [#allocation7]  }
  0x36   :  { %s367_s30 = scalar_lea.hbm %s525_s3, 16 }
  0x37   :  { %p368_p10 = scmp.ne.s32.totalorder %s525_s3, %s367_s30  ;;  %p371_p11 = scmp.lt.u32.totalorder %s367_s30, %s525_s3 }
  0x39   :  { %p373_p12 = pnand %p371_p11, %p368_p10 }
  0x3b   :  { %376 = shalt.err (!%p373_p12)
}
  0x3c   :  { %s377_s9 = scalar_lea.vmem %s54_s17, 16  ;;  %s381_s10 = scalar_lea.vmem %s54_s17, 32 }
  0x3d   :  { %p378_p13 = scmp.ne.s32.totalorder %s54_s17, %s377_s9  ;;  %p382_p0 = scmp.lt.s32.totalorder %s54_s17, %s54_s17 }
  0x3e   :  { %p383_p1 = scmp.lt.s32.totalorder %s381_s10, %s377_s9 }
  0x40   :  { %p384_p2 = por %p383_p1, %p382_p0 }
  0x42   :  { %p385_p3 = pnand %p384_p2, %p378_p13 }
  0x44   :  { %388 = shalt.err (!%p385_p3)
}
  0x45   :  { %56 = dma.hbm_to_vmem [thread:$0]  %s525_s3, 16, %s54_s17, [#allocation10]  }
  0x46   :  { %411 = dma.done.wait [#allocation4], 128  }
  0x47   :  { %412 = vsyncadd [#allocation4], 4294967168 }
  0x48   :  { %413 = dma.done.wait [#allocation7], 1040  }
  0x49   :  { %414 = vsyncadd [#allocation7], 4294966256 }
  0x4a   :  { %415 = dma.done.wait [#allocation10], 16  }
  0x4b   :  { %416 = vsyncadd [#allocation10], 4294967280  ;;  %v425_v0 = vmov 0.0   ;;  %vm426_vm0 = vmmov 0   ;;  %v292_v1 = vld [vmem:[#allocation6] sm:$0xff]   ;;  %v293_v2 = vld [vmem:[#allocation6 + $0x8] sm:$0xff]  }
  0x4c   :  { %261 = vmatprep.subr.bf16.mxu0 %v425_v0  ;;  %277 = vmatprep.mubr.msk.bf16.mxu0 %vm426_vm0, %v425_v0  ;;  %v294_v3 = vld [vmem:[#allocation6 + $0x10] sm:$0xff]   ;;  %v295_v4 = vld [vmem:[#allocation6 + $0x18] sm:$0xff]   ;;  %v296_v5 = vld [vmem:[#allocation6 + $0x20] sm:$0xff]   ;;  %s427_s3 = smov [#allocation11]  }
  0x4d   :  { %262 = vmatpush3.bf16.msra.mxu0 %v292_v1  ;;  %v297_v6 = vld [vmem:[#allocation6 + $0x28] sm:$0xff]   ;;  %v298_v7 = vld [vmem:[#allocation6 + $0x30] sm:$0xff]   ;;  %v299_v8 = vld [vmem:[#allocation6 + $0x38] sm:$0xff]   ;;  %s227_s12 = sshll.u32 %s427_s3, 4  ;;  %s228_s12 = int_to_ptr.vmem [resolvable:$true] %s227_s12 }
  0x4e   :  { %263 = vmatprep.subr.bf16.mxu0 %v425_v0  ;;  %v300_v9 = vld [vmem:[#allocation3] sm:$0xff]   ;;  %v250_v10 = vld [vmem:[#allocation8] ss:$0 sm:$0xff]  ;;  %v251_v12 = vld [vmem:[#allocation9] ss:$0 sm:$0xff]  ;;  %s389_s1 = scalar_lea.vmem %s228_s12, 256  ;;  %p394_p5 = scmp.lt.s32.totalorder %s228_s12, %s228_s12 }
  0x4f   :  { %p390_p4 = scmp.ne.s32.totalorder %s228_s12, %s389_s1  ;;  %p395_p6 = scmp.lt.s32.totalorder %s389_s1, %s389_s1 }
  0x51   :  { %264 = vmatpush3.bf16.msra.mxu0 %v293_v2  ;;  %p396_p7 = por %p395_p6, %p394_p5 }
  0x52   :  { %265 = vmatprep.subr.bf16.mxu0 %v425_v0 }
  0x53   :  { %p397_p8 = pnand %p396_p7, %p390_p4 }
  0x55   :  { %266 = vmatpush3.bf16.msra.mxu0 %v294_v3 }
  0x56   :  { %267 = vmatprep.subr.bf16.mxu0 %v425_v0 }
  0x59   :  { %268 = vmatpush3.bf16.msra.mxu0 %v295_v4 }
  0x5a   :  { %269 = vmatprep.subr.bf16.mxu0 %v425_v0 }
  0x5d   :  { %270 = vmatpush3.bf16.msra.mxu0 %v296_v5 }
  0x5e   :  { %271 = vmatprep.subr.bf16.mxu0 %v425_v0 }
  0x61   :  { %272 = vmatpush3.bf16.msra.mxu0 %v297_v6 }
  0x62   :  { %273 = vmatprep.subr.bf16.mxu0 %v425_v0 }
  0x65   :  { %274 = vmatpush3.bf16.msra.mxu0 %v298_v7 }
  0x66   :  { %275 = vmatprep.subr.bf16.mxu0 %v425_v0 }
  0x69   :  { %276 = vmatpush3.bf16.msra.mxu0 %v299_v8 }
  0x6c   :  { %278 = vmatmul.mubr.bf16.vlgmr.msra.gmra.mrb[0].mxu0 %v300_v9 }
 0x13f   :  { %v184_v11 = vpop.f32.mrb[0].mxu0 }
 0x140   :  { %v207_v13 = vmul.f32 %v250_v10, %v184_v11  ;;  %v279_v14 = vpop.f32.mrb[1].mxu0 }
 0x141   :  { %v187_v15 = vpop.f32.mrb[2].mxu0 }
 0x142   :  { %v216_v16 = vadd.f32 %v251_v12, %v207_v13  ;;  %v208_v17 = vmul.f32 %v250_v10, %v187_v15  ;;  %v280_v18 = vpop.f32.mrb[3].mxu0 }
 0x144   :  { %v218_v19 = vmax.f32 %v216_v16, 0.0  ;;  %v217_v20 = vadd.f32 %v251_v12, %v208_v17 }
 0x146   :  { %220 = vst [vmem:[#allocation11] sm:$0xff] %v218_v19  ;;  %v219_v21 = vmax.f32 %v217_v20, 0.0 }
 0x148   :  { %221 = vst [vmem:[#allocation11 + $0x8] sm:$0xff] %v219_v21 }
 0x149   :  { %400 = shalt.err (!%p397_p8)
}
 0x14a   :  { %s401_s15 = scalar_lea.hbm %s526_s4, 256 }
 0x14b   :  { %p402_p9 = scmp.ne.s32.totalorder %s526_s4, %s401_s15  ;;  %p405_p10 = scmp.lt.u32.totalorder %s401_s15, %s526_s4 }
 0x14d   :  { %p407_p11 = pnand %p405_p10, %p402_p9 }
 0x14f   :  { %410 = shalt.err (!%p407_p11)
}
 0x150   :  { %s428_s21 = smov 128   ;;  %s429_s22 = smov 8  }
 0x151   :  { %233 = dma.vmem_to_hbm [thread:$0]  %s228_s12, 256, %s526_s4, [#allocation5], %s428_s21, %s428_s21, %s429_s22  }
 0x152   :  { %417 = dma.done.wait [#allocation5], 256  }
 0x153   :  { %418 = vsyncadd [#allocation5], 4294967040 }
 0x154   :  { %237 = vsyncpa [#allocation4], 1 }
 0x155   :  { %238 = vsyncpa [#allocation7], 1 }
 0x156   :  { %239 = vsyncpa [#allocation10], 1 }
 0x157   :  { %240 = vsyncpa [#allocation5], 1 }

// kernel: _lambda_.43
= control target key start
LH: loop header
LB: loop body
LE: loop exit
PB: predicated region body
PF: predicated region fallthrough
CT: control target
= control target key end

     0   :  { %s94_s0 = inlined_call_operand.vmem [shape: f32[2,1,256], index: 0, kind: input, shape index: {}]   ;;  %s95_s1 = inlined_call_operand.hbm [shape: f32[2,256], index: 1, kind: output, shape index: {}]  }
   0x1   :  { %v9_v0 = vld [vmem:[%s94_s0] sm:$0x3]  ;;  %v10_v1 = vld [vmem:[%s94_s0 + $0x2] sm:$0x3] }
   0x2   :  { %6 = vsyncpa [#allocation3], 0  ;;  %v15_v2 = vcombine.low %v9_v0, %v10_v1  ;;  %s65_s10 = smov [#allocation2]  }
   0x3   :  { %s31_s11 = sshll.u32 %s65_s10, 4  ;;  %s32_s11 = int_to_ptr.vmem [resolvable:$true] %s31_s11 }
   0x4   :  { %39 = vst.sshfl [vmem:[#allocation2] sm:$0x33 pattern:$0x75316420] %v15_v2  ;;  %s41_s12 = scalar_lea.vmem %s32_s11, 64  ;;  %p46_p1 = scmp.lt.s32.totalorder %s32_s11, %s32_s11 }
   0x5   :  { %p42_p0 = scmp.ne.s32.totalorder %s32_s11, %s41_s12  ;;  %p47_p2 = scmp.lt.s32.totalorder %s41_s12, %s41_s12 }
   0x7   :  { %p48_p3 = por %p47_p2, %p46_p1 }
   0x9   :  { %p49_p4 = pnand %p48_p3, %p42_p0 }
   0xb   :  { %52 = shalt.err (!%p49_p4)
}
   0xc   :  { %s53_s15 = scalar_lea.hbm %s95_s1, 64 }
   0xd   :  { %p54_p5 = scmp.ne.s32.totalorder %s95_s1, %s53_s15  ;;  %p57_p6 = scmp.lt.u32.totalorder %s53_s15, %s95_s1 }
   0xf   :  { %p59_p7 = pnand %p57_p6, %p54_p5 }
  0x11   :  { %62 = shalt.err (!%p59_p7)
}
  0x12   :  { %34 = dma.vmem_to_hbm [thread:$0]  %s32_s11, 64, %s95_s1, [#allocation3]  }
  0x13   :  { %63 = dma.done.wait [#allocation3], 64  }
  0x14   :  { %64 = vsyncadd [#allocation3], 4294967232 }
  0x15   :  { %38 = vsyncpa [#allocation3], 1 }

// kernel: _lambda_.42
= control target key start
LH: loop header
LB: loop body
LE: loop exit
PB: predicated region body
PF: predicated region fallthrough
CT: control target
= control target key end

     0   :  { %s1489_s0 = inlined_call_operand.hbm [shape: bf16[16,64], index: 0, kind: input, shape index: {}]   ;;  %s1490_s1 = inlined_call_operand.hbm [shape: bf16[64,256], index: 1, kind: input, shape index: {}]   ;;  %s1491_s2 = inlined_call_operand.hbm [shape: f32[1,256], index: 2, kind: input, shape index: {}]   ;;  %s1492_s3 = inlined_call_operand.hbm [shape: f32[1,256], index: 3, kind: input, shape index: {}]   ;;  %s1493_s4 = inlined_call_operand.hbm [shape: f32[16,256], index: 4, kind: input, shape index: {}]   ;;  %s1494_s5 = inlined_call_operand.hbm [shape: f32[16,256], index: 5, kind: output, shape index: {}]  }
   0x1   :  { %1511 = sst [smem:[#allocation20_spill]] %s1490_s1 }
   0x2   :  { %1512 = sst [smem:[#allocation21_spill]] %s1491_s2 }
   0x3   :  { %1513 = sst [smem:[#allocation22_spill]] %s1492_s3 }
   0x4   :  { %10 = vsyncpa [#allocation4], 0 }
   0x5   :  { %11 = vsyncpa [#allocation7], 0 }
   0x6   :  { %13 = vsyncpa [#allocation7 + $0x1], 0 }
   0x7   :  { %14 = vsyncpa [#allocation10], 0 }
   0x8   :  { %16 = vsyncpa [#allocation10 + $0x1], 0 }
   0x9   :  { %17 = vsyncpa [#allocation5], 0 }
   0xa   :  { %19 = vsyncpa [#allocation5 + $0x1], 0  ;;  %s1145_s18 = smov 0   ;;  %s1147_s19 = smov 0  }
   0xb   :  { %s1149_s20 = smov 0   ;;  %s1151_s21 = smov 0  }
   0xc   :  { %s1153_s22 = smov 0   ;;  %s1155_s23 = smov 0  }
   0xd LB: > { %1514 = sst [smem:[#allocation17_spill]] %s1085_s20  ;;  %s40_s24 = sadd.s32 1, %s1093_s22  ;;  %s1097_s23 = sphi %s1155_s23, %s25_s23   ;;  %s1093_s22 = sphi %s1153_s22, %s1550_s22   ;;  %s1089_s21 = sphi %s1151_s21, %s1549_s21   ;;  %s1085_s20 = sphi %s1149_s20, %s1545_s20   ;;  %s1081_s19 = sphi %s1147_s19, %s1548_s19   ;;  %s1077_s18 = sphi %s1145_s18, %s1547_s18  }
   0xe   : > { %s81_s25 = sadd.s32 1, %s1085_s20  ;;  %p42_p0 = scmp.ge.s32.totalorder %s40_s24, 2 }
   0xf   : > { %p1495_p1 = scmp.ne.s32.totalorder %s1085_s20, %s1081_s19  ;;  %p89_p2 = scmp.eq.s32.totalorder %s1097_s23, 0 }
  0x10   : > { %s1552_s24 = smov (%p42_p0, %s40_s24), 0  ;;  %p792_p6 = scmp.lt.s32.totalorder %s1097_s23, 2 }
  0x11   : > { %1515 = sst [smem:[#allocation18_spill]] %s1552_s24  ;;  %p1185_p3 = por %p89_p2, %p1495_p1 }
  0x12   : > { %s77_s27 = ssub.s32 %s1093_s22, %s1552_s24  ;;  %s243_s28 = sand.u32 1, %s1097_s23  }
  0x13   : > { %p79_p5 = scmp.eq.s32.totalorder %s77_s27, 0  ;;  %s1195_s29 = sand.u32 1, %s1085_s20  }
  0x14   : > { %s716_s6 = sshll.u32 %s1195_s29, 5  ;;  %s717_s7 = sshll.u32 %s1093_s22, 6 }
  0x15   : > { %s1198_s30 = scalar_select %p79_p5, %s1085_s20, %s81_s25  }
  0x16   : > { %s1518_s1 = sld [smem:[#allocation20_spill]]  ;;  %s247_s11 = scalar_lea.vmem [#allocation6], %s716_s6 }
  0x17   : > { %1517 = sst [smem:[#allocation19_spill]] %s1198_s30  ;;  %s256_s12 = sshll.u32 %s247_s11, 4  ;;  %s1207_s12 = int_to_ptr.vmem [resolvable:$true] %s256_s12 }
  0x18   : > { %p1211_p7 = pnand %p792_p6, %p1185_p3  ;;  %s718_s14 = sshll.u32 %s1093_s22, 4 }
  0x19   : > { %s1520_s2 = sld [smem:[#allocation21_spill]]  ;;  %s1225_s25 = scalar_lea.sflag [#allocation7], %s243_s28 }
  0x1a   : > { %s1519_s13 = scalar_select %p1211_p7, 1, 0 }
  0x1b   : > { %p1231_p9 = pneg %p1211_p7 }
  0x1c   : > { %s1205_s10 = scalar_lea.hbm %s1518_s1, %s717_s7  ;;  %s864_s8 = scalar_lea.hbm %s1518_s1, 1024 }
  0x1d   : > { %s859_s27 = scalar_lea.hbm %s1205_s10, 512  ;;  %p865_p12 = scmp.lt.u32.totalorder %s1205_s10, %s1518_s1 }
  0x1e   : > { %p860_p8 = scmp.ne.s32.totalorder %s1205_s10, %s859_s27  ;;  %p866_p13 = scmp.lt.u32.totalorder %s864_s8, %s859_s27 }
  0x1f   : > { %s1221_s17 = scalar_lea.hbm %s1520_s2, %s718_s14  ;;  %p868_p2 = scmp.lt.u32.totalorder %s859_s27, %s1205_s10 }
  0x20   : > { %s1521_s26 = scalar_select %p1231_p9, 1, 0 }
  0x21   : > { %p862_p10 = pnand %p1231_p9, %p860_p8  ;;  %p867_p0 = por %p866_p13, %p865_p12 }
  0x23   : > { %p863_p11 = pneg %p862_p10  ;;  %p869_p3 = por %p868_p2, %p867_p0 }
  0x25   : > { %p870_p5 = pnand %p869_p3, %p863_p11 }
  0x27   : > { %873 = shalt.err (!%p870_p5)
}
  0x28   : > { %s874_s15 = scalar_lea.vmem %s1207_s12, 512  ;;  %s1099_s16 = smov [#allocation6]  }
  0x29   : > { %p875_p6 = scmp.ne.s32.totalorder %s1207_s12, %s874_s15  ;;  %s879_s6 = sshll.u32 %s1099_s16, 4  ;;  %s880_s6 = int_to_ptr.vmem [resolvable:$false] %s879_s6 }
  0x2a   : > { %s881_s7 = scalar_lea.vmem %s880_s6, 1024  ;;  %p882_p4 = scmp.lt.s32.totalorder %s1207_s12, %s880_s6 }
  0x2b   : > { %p877_p8 = pnand %p875_p6, %p1231_p9  ;;  %p883_p1 = scmp.lt.s32.totalorder %s881_s7, %s874_s15 }
  0x2d   : > { %p878_p10 = pneg %p877_p8  ;;  %p884_p12 = por %p883_p1, %p882_p4 }
  0x2f   : > { %p885_p13 = pnand %p884_p12, %p878_p10 }
  0x31   : > { %888 = shalt.err (!%p885_p13)
}
  0x32   : > { %s1497_s27 = smov 128   ;;  %s1500_s8 = smov 64  }
  0x33   : > { %s1501_s9 = smov 4   ;;  %s1522_s3 = sld [smem:[#allocation22_spill]] }
  0x34   : > { %777 = dma.hbm_to_vmem [thread:$0]  (!%p1211_p7), %s1205_s10, 512, %s1207_s12, %s1225_s25, %s1497_s27, %s1500_s8, %s1501_s9  }
  0x35   : > { %s286_s6 = scalar_lea.vmem [#allocation9], %s1195_s29  ;;  %s1268_s1 = scalar_lea.sflag [#allocation10], %s243_s28 }
  0x36   : > { %s293_s7 = sshll.u32 %s286_s6, 4  ;;  %s294_s7 = int_to_ptr.vmem [resolvable:$true] %s293_s7 }
  0x39   : > { %s1263_s16 = scalar_lea.hbm %s1522_s3, %s718_s14  ;;  %s894_s14 = scalar_lea.hbm %s1522_s3, 32 }
  0x3a   : > { %s889_s24 = scalar_lea.hbm %s1263_s16, 16  ;;  %p895_p0 = scmp.lt.u32.totalorder %s1263_s16, %s1522_s3 }
  0x3b   : > { %p890_p1 = scmp.ne.s32.totalorder %s1263_s16, %s889_s24  ;;  %p896_p2 = scmp.lt.u32.totalorder %s894_s14, %s889_s24 }
  0x3c   : > { %p898_p5 = scmp.lt.u32.totalorder %s889_s24, %s1263_s16 }
  0x3d   : > { %p892_p4 = pnand %p890_p1, %p1231_p9  ;;  %p897_p3 = por %p896_p2, %p895_p0 }
  0x3f   : > { %p893_p11 = pneg %p892_p4  ;;  %p899_p6 = por %p898_p5, %p897_p3 }
  0x41   : > { %p900_p8 = pnand %p899_p6, %p893_p11 }
  0x43   : > { %903 = shalt.err (!%p900_p8)
}
  0x44   : > { %s904_s28 = scalar_lea.vmem %s294_s7, 16  ;;  %s1103_s6 = smov [#allocation9]  }
  0x45   : > { %p905_p10 = scmp.ne.s32.totalorder %s294_s7, %s904_s28  ;;  %s909_s27 = sshll.u32 %s1103_s6, 4  ;;  %s910_s27 = int_to_ptr.vmem [resolvable:$false] %s909_s27 }
  0x46   : > { %s911_s10 = scalar_lea.vmem %s910_s27, 32  ;;  %p912_p1 = scmp.lt.s32.totalorder %s294_s7, %s910_s27 }
  0x47   : > { %p907_p12 = pnand %p905_p10, %p1231_p9  ;;  %p913_p4 = scmp.lt.s32.totalorder %s911_s10, %s904_s28 }
  0x49   : > { %p908_p13 = pneg %p907_p12  ;;  %p914_p7 = por %p913_p4, %p912_p1 }
  0x4b   : > { %p915_p0 = pnand %p914_p7, %p908_p13 }
  0x4d   : > { %918 = shalt.err (!%p915_p0)
}
  0x4e   : > { %p1523_p2 = scmp.ne.s32.totalorder %s1519_s13, 0  ;;  %s1289_s24 = sadd.s32 4294967295, %s1097_s23  }
  0x4f   : > { %s712_s27 = sadd.s32 4294967294, %s1097_s23   ;;  %p94_p7 = scmp.ne.s32.totalorder %s1081_s19, %s1077_s18 }
  0x50   : > { %783 = dma.hbm_to_vmem [thread:$0]  (!%p1523_p2), %s1263_s16, 16, %s294_s7, %s1268_s1  }
  0x51   : > { %p1504_p11 = scmp.eq.s32.totalorder %s1289_s24, 0  ;;  %p200_p3 = scmp.eq.s32.totalorder %s1289_s24, 1 }
  0x52   : > { %p206_p5 = scmp.eq.s32.totalorder %s712_s27, 1  ;;  %p713_p6 = scmp.ge.s32.totalorder %s1097_s23, 1 }
  0x53   : > { %p1299_p8 = por %p1504_p11, %p94_p7  ;;  %p1525_p10 = scmp.ne.s32.totalorder %s1085_s20, %s1081_s19 }
  0x54   : > { %p1310_p13 = por %p206_p5, %p94_p7  ;;  %p213_p1 = scmp.lt.s32.totalorder %s1097_s23, 3 }
  0x55   : > { %s1524_s12 = scalar_select %p1299_p8, 1, 0 }
  0x56   : > { %p1306_p12 = por %p200_p3, %p1525_p10  ;;  %p1315_p4 = pnand %p713_p6, %p213_p1 }
  0x57   : > { %s1527_s7 = scalar_select %p1310_p13, 1, 0 }
  0x58   : > { %s1526_s16 = scalar_select %p1306_p12, 1, 0 }
  0x59   : > { %s1528_s14 = scalar_select %p1315_p4, 1, 0 }
  0x5a   : > { %s1104_s11 = smov [#allocation3]   ;;  %p770_p0 = pneg %p1315_p4 }
  0x5b   : > { %s229_s15 = sshll.u32 %s1104_s11, 4  ;;  %s269_s28 = scalar_lea.vmem [#allocation8], %s1195_s29  ;;  %s1319_s15 = int_to_ptr.vmem [resolvable:$true] %s229_s15 }
  0x5c   : > { %s276_s6 = sshll.u32 %s269_s28, 4  ;;  %p1329_p7 = pnand %p770_p0, %p1504_p11  ;;  %s1324_s6 = int_to_ptr.vmem [resolvable:$true] %s276_s6 }
  0x5d   : > { %s919_s8 = scalar_lea.hbm %s1221_s17, 16  ;;  %s924_s3 = scalar_lea.hbm %s1520_s2, 32 }
  0x5e   : > { %s1529_s27 = scalar_select %p1329_p7, 1, 0 }
  0x5f   : > { %p920_p3 = scmp.ne.s32.totalorder %s1221_s17, %s919_s8  ;;  %p925_p10 = scmp.lt.u32.totalorder %s1221_s17, %s1520_s2 }
  0x60   : > { %p926_p1 = scmp.lt.u32.totalorder %s924_s3, %s919_s8  ;;  %p928_p12 = scmp.lt.u32.totalorder %s919_s8, %s1221_s17 }
  0x61   : > { %p922_p5 = pnand %p920_p3, %p1231_p9 }
  0x62   : > { %p927_p13 = por %p926_p1, %p925_p10 }
  0x63   : > { %p923_p6 = pneg %p922_p5 }
  0x64   : > { %p929_p0 = por %p928_p12, %p927_p13 }
  0x66   : > { %p930_p11 = pnand %p929_p0, %p923_p6 }
  0x68   : > { %933 = shalt.err (!%p930_p11)
}
  0x69   : > { %s934_s28 = scalar_lea.vmem %s1324_s6, 16  ;;  %s1105_s9 = smov [#allocation8]  }
  0x6a   : > { %p935_p3 = scmp.ne.s32.totalorder %s1324_s6, %s934_s28  ;;  %s939_s11 = sshll.u32 %s1105_s9, 4  ;;  %s940_s11 = int_to_ptr.vmem [resolvable:$false] %s939_s11 }
  0x6b   : > { %s941_s20 = scalar_lea.vmem %s940_s11, 32  ;;  %p942_p4 = scmp.lt.s32.totalorder %s1324_s6, %s940_s11 }
  0x6c   : > { %p937_p5 = pnand %p935_p3, %p1231_p9  ;;  %p943_p7 = scmp.lt.s32.totalorder %s941_s20, %s934_s28 }
  0x6e   : > { %p938_p8 = pneg %p937_p5  ;;  %p944_p10 = por %p943_p7, %p942_p4 }
  0x70   : > { %p945_p1 = pnand %p944_p10, %p938_p8 }
  0x72   : > { %948 = shalt.err (!%p945_p1)
}
  0x73   : > { %780 = dma.hbm_to_vmem [thread:$0]  (!%p1523_p2), %s1221_s17, 16, %s1324_s6, %s1225_s25  }
  0x74   : > { %s721_s3 = sshll.u32 %s1093_s22, 7  ;;  %s949_s9 = scalar_lea.hbm %s1489_s0, 128 }
  0x75   : > { %p950_p11 = scmp.ne.s32.totalorder %s1489_s0, %s949_s9  ;;  %p1530_p12 = scmp.ne.s32.totalorder %s1529_s27, 0 }
  0x76   : > { %p956_p7 = scmp.lt.u32.totalorder %s949_s9, %s1489_s0 }
  0x77   : > { %p951_p8 = pneg %p1530_p12 }
  0x79   : > { %p952_p13 = pnand %p951_p8, %p950_p11 }
  0x7b   : > { %p953_p4 = pneg %p952_p13 }
  0x7d   : > { %p958_p6 = pnand %p956_p7, %p953_p4 }
  0x7f   : > { %961 = shalt.err (!%p958_p6)
}
  0x80   : > { %s962_s17 = scalar_lea.vmem %s1319_s15, 128  ;;  %p970_p10 = scmp.lt.s32.totalorder %s1319_s15, %s1319_s15 }
  0x81   : > { %p963_p0 = scmp.ne.s32.totalorder %s1319_s15, %s962_s17  ;;  %p971_p1 = scmp.lt.s32.totalorder %s962_s17, %s962_s17 }
  0x83   : > { %p965_p3 = pnand %p963_p0, %p951_p8  ;;  %p972_p2 = por %p971_p1, %p970_p10 }
  0x85   : > { %p966_p5 = pneg %p965_p3 }
  0x87   : > { %p973_p9 = pnand %p972_p2, %p966_p5 }
  0x89   : > { %976 = shalt.err (!%p973_p9)
}
  0x8a   : > { %s1531_s2 = smov 4   ;;  %s1532_s25 = smov 64  }
  0x8b   : > { %773 = dma.hbm_to_vmem [thread:$0]  (!%p1530_p12), %s1489_s0, 128, %s1319_s15, [#allocation4], %s1532_s25, %s1532_s25, %s1531_s2  }
  0x8c   : > { %s1383_s8 = scalar_lea.hbm %s1493_s4, %s721_s3  ;;  %s1533_s9 = sshll.u32 %s1195_s29, 4 }
  0x8d   : > { %s304_s27 = scalar_lea.vmem [#allocation11], %s1533_s9  ;;  %s977_s11 = scalar_lea.hbm %s1383_s8, 256 }
  0x8e   : > { %s313_s28 = sshll.u32 %s304_s27, 4  ;;  %p978_p9 = scmp.ne.s32.totalorder %s1383_s8, %s977_s11  ;;  %s1387_s28 = int_to_ptr.vmem [resolvable:$true] %s313_s28 }
  0x8f   : > { %p1534_p2 = scmp.ne.s32.totalorder %s1521_s26, 0  ;;  %s982_s2 = scalar_lea.hbm %s1493_s4, 512 }
  0x90   : > { %p983_p12 = scmp.lt.u32.totalorder %s1383_s8, %s1493_s4  ;;  %p984_p13 = scmp.lt.u32.totalorder %s982_s2, %s977_s11 }
  0x91   : > { %p980_p11 = pnand %p978_p9, %p1534_p2  ;;  %p986_p7 = scmp.lt.u32.totalorder %s977_s11, %s1383_s8 }
  0x92   : > { %p985_p4 = por %p984_p13, %p983_p12 }
  0x93   : > { %p981_p8 = pneg %p980_p11 }
  0x94   : > { %p987_p6 = por %p986_p7, %p985_p4 }
  0x96   : > { %p988_p0 = pnand %p987_p6, %p981_p8 }
  0x98   : > { %991 = shalt.err (!%p988_p0)
}
  0x99   : > { %s992_s29 = scalar_lea.vmem %s1387_s28, 256  ;;  %s1106_s6 = smov [#allocation11]  }
  0x9a   : > { %p993_p3 = scmp.ne.s32.totalorder %s1387_s28, %s992_s29  ;;  %s997_s10 = sshll.u32 %s1106_s6, 4  ;;  %s998_s10 = int_to_ptr.vmem [resolvable:$false] %s997_s10 }
  0x9b   : > { %s999_s20 = scalar_lea.vmem %s998_s10, 512  ;;  %p1000_p1 = scmp.lt.s32.totalorder %s1387_s28, %s998_s10 }
  0x9c   : > { %p995_p5 = pnand %p993_p3, %p1534_p2  ;;  %p1001_p9 = scmp.lt.s32.totalorder %s999_s20, %s992_s29 }
  0x9e   : > { %p996_p10 = pneg %p995_p5  ;;  %p1002_p11 = por %p1001_p9, %p1000_p1 }
  0xa0   : > { %p1003_p12 = pnand %p1002_p11, %p996_p10 }
  0xa2   : > { %1006 = shalt.err (!%p1003_p12)
}
  0xa3   : > { %s1107_s30 = smov 256   ;;  %s1108_s9 = smov 8  }
  0xa4   : > { %p1535_p8 = scmp.ne.s32.totalorder %s1519_s13, 0  ;;  %s1536_s27 = smov 128  }
  0xa5   : > { %p1537_p2 = scmp.ne.s32.totalorder %s1528_s14, 0 }
  0xa6   : > { %786 = dma.hbm_to_vmem [thread:$0]  (!%p1535_p8), %s1383_s8, 256, %s1387_s28, %s1268_s1, %s1107_s30, %s1536_s27, %s1108_s9  }
  0xa7   : > { %325 = sbr.rel (%p1537_p2) target bundleno = 438 (0x1b6), region = 40  ;;  %p1538_p13 = scmp.eq.s32.totalorder (!%p1537_p2), %s1289_s24, 0 }
  0xae   : > { %1060 = dma.done.wait (%p1538_p13), [#allocation4], 128   ;;  %p1539_p4 = pmov %p1538_p13 }
  0xaf   : > { %s331_s26 = sand.u32 1, %s1289_s24   ;;  %s1420_s11 = sand.u32 1, %s1081_s19  }
  0xb0   : > { %1062 = vsyncadd (%p1539_p4), [#allocation4], 4294967168  ;;  %s724_s15 = sshll.u32 %s1420_s11, 5  ;;  %s332_s13 = scalar_lea.sflag [#allocation7], %s331_s26 }
  0xb1   : > { %s335_s17 = scalar_lea.vmem [#allocation6], %s724_s15  ;;  %p1540_p7 = scmp.ne.s32.totalorder %s1524_s12, 0 }
  0xb3   : > { %1064 = dma.done.wait (%p1540_p7), %s332_s13, 528  }
  0xb4   : > { %1066 = vsyncadd (%p1540_p7), %s332_s13, 4294966768  ;;  %s343_s1 = scalar_lea.vmem [#allocation8], %s1420_s11  ;;  %s349_s14 = scalar_lea.sflag [#allocation10], %s331_s26 }
  0xb5   : > { %s351_s8 = scalar_lea.vmem [#allocation9], %s1420_s11 }
  0xb6   : > { %1068 = dma.done.wait (%p1540_p7), %s349_s14, 272  }
  0xb7   : > { %1070 = vsyncadd (%p1540_p7), %s349_s14, 4294967024  ;;  %v1109_v0 = vmov 0.0   ;;  %vm1110_vm0 = vmmov 0   ;;  %v854_v1 = vld [vmem:[%s335_s17] sm:$0xff]   ;;  %v855_v2 = vld [vmem:[%s335_s17 + $0x8] sm:$0xff]   ;;  %vm452_vm1 = vcmask 523264  }
  0xb8   : > { %744 = vmatprep.subr.bf16.mxu0 %v1109_v0  ;;  %752 = vmatprep.mubr.msk.bf16.mxu0 %vm1110_vm0, %v1109_v0  ;;  %v856_v3 = vld [vmem:[%s335_s17 + $0x10] sm:$0xff]   ;;  %v857_v4 = vld [vmem:[%s335_s17 + $0x18] sm:$0xff]   ;;  %s725_s24 = sshll.u32 %s1420_s11, 4  ;;  %s736_s3 = sshll.u32 %s1089_s21, 7 }
  0xb9   : > { %745 = vmatpush3.bf16.msra.mxu0 %v854_v1  ;;  %v858_v5 = vld [vmem:[#allocation3] sm:$0xff]   ;;  %s360_s12 = scalar_lea.vmem [#allocation11], %s725_s24  ;;  %s399_s28 = scalar_lea.vmem [#allocation12], %s725_s24 }
  0xba   : > { %746 = vmatprep.subr.bf16.mxu0 %v1109_v0  ;;  %v733_v6 = vld [vmem:[%s343_s1] ss:$0 sm:$0xff]  ;;  %s548_s2 = sshll.u32 %s399_s28, 4  ;;  %v525_v16 = vld [vmem:[%s360_s12 + $0x8] sm:$0xff]  ;;  %s1440_s6 = scalar_lea.hbm %s1494_s5, %s736_s3  ;;  %s1435_s2 = int_to_ptr.vmem [resolvable:$true] %s548_s2 }
  0xbb   : > { %v734_v8 = vld [vmem:[%s351_s8] ss:$0 sm:$0xff]  ;;  %s533_s10 = scalar_lea.sflag [#allocation5], %s1420_s11  ;;  %s1007_s20 = scalar_lea.vmem %s1435_s2, 256 }
  0xbc   : > { %v524_v11 = vld [vmem:[%s360_s12] sm:$0xff]  ;;  %p1008_p6 = scmp.ne.s32.totalorder %s1435_s2, %s1007_s20  ;;  %p1541_p0 = scmp.ne.s32.totalorder %s1526_s16, 0 }
  0xbd   : > { %747 = vmatpush3.bf16.msra.mxu0 %v855_v2  ;;  %s1111_s21 = smov [#allocation12]  }
  0xbe   : > { %748 = vmatprep.subr.bf16.mxu0 %v1109_v0  ;;  %p1009_p3 = pnand %p1008_p6, %p1541_p0  ;;  %s1011_s30 = sshll.u32 %s1111_s21, 4  ;;  %s1012_s30 = int_to_ptr.vmem [resolvable:$false] %s1011_s30 }
  0xbf   : > { %s1013_s9 = scalar_lea.vmem %s1012_s30, 512  ;;  %p1014_p10 = scmp.lt.s32.totalorder %s1435_s2, %s1012_s30 }
  0xc0   : > { %p1010_p5 = pneg %p1009_p3  ;;  %p1015_p1 = scmp.lt.s32.totalorder %s1013_s9, %s1007_s20 }
  0xc1   : > { %749 = vmatpush3.bf16.msra.mxu0 %v856_v3 }
  0xc2   : > { %750 = vmatprep.subr.bf16.mxu0 %v1109_v0  ;;  %p1016_p9 = por %p1015_p1, %p1014_p10 }
  0xc4   : > { %p1017_p11 = pnand %p1016_p9, %p1010_p5 }
  0xc5   : > { %751 = vmatpush3.bf16.msra.mxu0 %v857_v4 }
  0xc8   : > { %753 = vmatmul.mubr.msk.bf16.vlgmr.msra.gmra.mrb[0].mxu0 %vm452_vm1, %v858_v5 }
 0x19b   : > { %v490_v7 = vpop.f32.mrb[0].mxu0 }
 0x19c   : > { %v513_v9 = vmul.f32 %v733_v6, %v490_v7  ;;  %v754_v10 = vpop.f32.mrb[1].mxu0 }
 0x19d   : > { %v493_v12 = vpop.f32.mrb[2].mxu0 }
 0x19e   : > { %v522_v13 = vadd.f32 %v734_v8, %v513_v9  ;;  %v514_v14 = vmul.f32 %v733_v6, %v493_v12  ;;  %v755_v15 = vpop.f32.mrb[3].mxu0 }
 0x1a0   : > { %v526_v17 = vadd.f32 %v524_v11, %v522_v13  ;;  %v523_v18 = vadd.f32 %v734_v8, %v514_v14 }
 0x1a2   : > { %v528_v19 = vmax.f32 %v526_v17, 0.0  ;;  %v527_v20 = vadd.f32 %v525_v16, %v523_v18 }
 0x1a4   : > { %530 = vst [vmem:[%s399_s28] sm:$0xff] %v528_v19  ;;  %v529_v21 = vmax.f32 %v527_v20, 0.0 }
 0x1a6   : > { %531 = vst [vmem:[%s399_s28 + $0x8] sm:$0xff] %v529_v21 }
 0x1a7   : > { %1020 = shalt.err (!%p1017_p11)
}
 0x1a8   : > { %s1021_s27 = scalar_lea.hbm %s1440_s6, 256  ;;  %s1025_s13 = scalar_lea.hbm %s1494_s5, 512 }
 0x1a9   : > { %p1022_p12 = scmp.ne.s32.totalorder %s1440_s6, %s1021_s27  ;;  %p1026_p13 = scmp.lt.u32.totalorder %s1440_s6, %s1494_s5 }
 0x1aa   : > { %p1027_p4 = scmp.lt.u32.totalorder %s1025_s13, %s1021_s27  ;;  %p1029_p6 = scmp.lt.u32.totalorder %s1021_s27, %s1440_s6 }
 0x1ab   : > { %p1023_p8 = pnand %p1022_p12, %p1541_p0 }
 0x1ac   : > { %p1028_p7 = por %p1027_p4, %p1026_p13 }
 0x1ad   : > { %p1024_p2 = pneg %p1023_p8 }
 0x1ae   : > { %p1030_p3 = por %p1029_p6, %p1028_p7 }
 0x1b0   : > { %p1031_p5 = pnand %p1030_p3, %p1024_p2 }
 0x1b2   : > { %1034 = shalt.err (!%p1031_p5)
}
 0x1b3   : > { %s1112_s14 = smov 128   ;;  %s1113_s8 = smov 256  }
 0x1b4   : > { %s1114_s24 = smov 8  }
 0x1b5   : > { %768 = dma.vmem_to_hbm [thread:$0]  (%p1541_p0), %s1435_s2, 256, %s1440_s6, %s533_s10, %s1112_s14, %s1113_s8, %s1114_s24  }
 0x1b6 PF: > { %s563_s12 = sand.u32 1, %s1077_s18   ;;  %p1542_p10 = scmp.ne.s32.totalorder %s1527_s7, 0 }
 0x1b7   : > { %p1543_p1 = scmp.ge.s32.totalorder %s1097_s23, 2  ;;  %s564_s28 = scalar_lea.sflag [#allocation5], %s563_s12 }
 0x1b9   : > { %p788_p9 = pnand %p1543_p1, %p1542_p10 }
 0x1bb   : > { %1072 = dma.done.wait (!%p788_p9), %s564_s28, 256  }
 0x1bc   : > { %1074 = vsyncadd (!%p788_p9), %s564_s28, 4294967040  ;;  %s25_s23 = sadd.s32 1, %s1097_s23   ;;  %s1544_s3 = sld [smem:[#allocation17_spill]] }
 0x1bd   : > { %p22_p11 = scmp.ge.s32.totalorder %s25_s23, 4   ;;  %s1545_s20 = sld [smem:[#allocation19_spill]] }
 0x1be   : > { %s1546_s16 = sld [smem:[#allocation18_spill]]  ;;  %s1547_s18 = smov %s1081_s19 }
 0x1bf   : > { %s1549_s21 = smov %s1093_s22  ;;  %24 = sbr.rel (!%p22_p11) target bundleno = 13 (0xd), region = 134 }
 0x1c2   : > { %s1548_s19 = smov %s1544_s3 }
 0x1c4   : > { %s1550_s22 = smov %s1546_s16 }
 0x1c6   :  { %569 = vsyncpa [#allocation4], 1 }
 0x1c7   :  { %571 = vsyncpa [#allocation4 + $0x1], 1 }
 0x1c8   :  { %572 = vsyncpa [#allocation7], 1 }
 0x1c9   :  { %574 = vsyncpa [#allocation7 + $0x1], 1 }
 0x1ca   :  { %575 = vsyncpa [#allocation10], 1 }
 0x1cb   :  { %577 = vsyncpa [#allocation10 + $0x1], 1 }
 0x1cc   :  { %578 = vsyncpa [#allocation5], 1 }
 0x1cd   :  { %580 = vsyncpa [#allocation5 + $0x1], 1 }

// kernel: _lambda_.40
= control target key start
LH: loop header
LB: loop body
LE: loop exit
PB: predicated region body
PF: predicated region fallthrough
CT: control target
= control target key end

     0   :  { %s1635_s0 = inlined_call_operand.hbm [shape: bf16[16,1024], index: 0, kind: input, shape index: {}]   ;;  %s1636_s1 = inlined_call_operand.hbm [shape: bf16[1024,128], index: 1, kind: input, shape index: {}]   ;;  %s1637_s2 = inlined_call_operand.hbm [shape: f32[1,128], index: 2, kind: input, shape index: {}]   ;;  %s1638_s3 = inlined_call_operand.hbm [shape: f32[1,128], index: 3, kind: input, shape index: {}]   ;;  %s1639_s4 = inlined_call_operand.hbm [shape: f32[16,128], index: 4, kind: output, shape index: {}]  }
   0x1   :  { %1644 = sst [smem:[#allocation17_spill]] %s1635_s0 }
   0x2   :  { %1645 = sst [smem:[#allocation18_spill]] %s1637_s2 }
   0x3   :  { %9 = vsyncpa [#allocation4], 0 }
   0x4   :  { %11 = vsyncpa [#allocation4 + $0x1], 0 }
   0x5   :  { %12 = vsyncpa [#allocation7], 0 }
   0x6   :  { %14 = vsyncpa [#allocation7 + $0x1], 0 }
   0x7   :  { %15 = vsyncpa [#allocation10], 0 }
   0x8   :  { %16 = vsyncpa [#allocation5], 0  ;;  %s1342_s15 = smov 0   ;;  %s1344_s16 = smov 0  }
   0x9   :  { %s1346_s17 = smov 0   ;;  %s1348_s18 = smov 0  }
   0xa   :  { %s1350_s19 = smov 0   ;;  %s1352_s20 = smov 0  }
   0xb LB: > { %s1371_s21 = sadd.s32 4294967295, %s1302_s20   ;;  %s50_s22 = sadd.s32 1, %s1290_s17  ;;  %s1302_s20 = sphi %s1352_s20, %s22_s20   ;;  %s1298_s19 = sphi %s1350_s19, %s1663_s19   ;;  %s1294_s18 = sphi %s1348_s18, %s1662_s18   ;;  %s1290_s17 = sphi %s1346_s17, %s1661_s17   ;;  %s1286_s16 = sphi %s1344_s16, %s1660_s16   ;;  %s1282_s15 = sphi %s1342_s15, %s1659_s15  }
   0xc   : > { %p57_p0 = scmp.ne.s32.totalorder %s1290_s17, %s1286_s16  ;;  %p58_p1 = scmp.eq.s32.totalorder %s1302_s20, 0 }
   0xd   : > { %p63_p2 = scmp.ne.s32.totalorder %s1286_s16, %s1282_s15  ;;  %p1640_p3 = scmp.eq.s32.totalorder %s1371_s21, 0 }
   0xe   : > { %p59_p4 = por %p58_p1, %p57_p0  ;;  %p855_p5 = scmp.ge.s32.totalorder %s1302_s20, 1 }
   0xf   : > { %p1382_p6 = por %p1640_p3, %p63_p2  ;;  %p182_p7 = scmp.lt.s32.totalorder %s1302_s20, 3 }
  0x10   : > { %s1304_s25 = smov [#allocation8]   ;;  %p992_p10 = scmp.lt.s32.totalorder %s1302_s20, 2 }
  0x11   : > { %s1646_s23 = scalar_select %p1382_p6, 1, 0 }
  0x12   : > { %p1387_p8 = pnand %p855_p5, %p182_p7  ;;  %s197_s26 = sshll.u32 %s1304_s25, 4  ;;  %s198_s26 = int_to_ptr.vmem [resolvable:$true] %s197_s26 }
  0x13   : > { %p1400_p12 = pnand %p992_p10, %p59_p4  ;;  %s1305_s29 = smov [#allocation9]  }
  0x14   : > { %s1647_s24 = scalar_select %p1387_p8, 1, 0 }
  0x15   : > { %p976_p9 = pneg %p1387_p8  ;;  %s210_s30 = sshll.u32 %s1305_s29, 4  ;;  %s211_s30 = int_to_ptr.vmem [resolvable:$true] %s210_s30 }
  0x16   : > { %s1649_s28 = scalar_select %p1400_p12, 1, 0 }
  0x17   : > { %p1396_p11 = pnand %p976_p9, %p1640_p3  ;;  %s1650_s2 = sld [smem:[#allocation18_spill]] }
  0x19   : > { %p1096_p0 = pneg %p1396_p11 }
  0x1d   : > { %s1094_s7 = scalar_lea.hbm %s1650_s2, 16 }
  0x1e   : > { %p1095_p13 = scmp.ne.s32.totalorder %s1650_s2, %s1094_s7  ;;  %p1101_p4 = scmp.lt.u32.totalorder %s1094_s7, %s1650_s2 }
  0x20   : > { %p1097_p1 = pnand %p1096_p0, %p1095_p13 }
  0x22   : > { %p1098_p2 = pneg %p1097_p1 }
  0x24   : > { %p1103_p5 = pnand %p1101_p4, %p1098_p2 }
  0x26   : > { %1106 = shalt.err (!%p1103_p5)
}
  0x27   : > { %s1107_s12 = scalar_lea.vmem %s198_s26, 16  ;;  %s1114_s13 = scalar_lea.vmem %s198_s26, 32 }
  0x28   : > { %p1108_p7 = scmp.ne.s32.totalorder %s198_s26, %s1107_s12  ;;  %p1115_p3 = scmp.lt.s32.totalorder %s198_s26, %s198_s26 }
  0x29   : > { %p1116_p6 = scmp.lt.s32.totalorder %s1114_s13, %s1107_s12 }
  0x2a   : > { %p1110_p9 = pnand %p1108_p7, %p1096_p0 }
  0x2b   : > { %p1117_p8 = por %p1116_p6, %p1115_p3 }
  0x2c   : > { %p1111_p10 = pneg %p1110_p9 }
  0x2e   : > { %p1118_p12 = pnand %p1117_p8, %p1111_p10 }
  0x30   : > { %1121 = shalt.err (!%p1118_p12)
}
  0x31   : > { %979 = dma.hbm_to_vmem [thread:$0]  (!%p1396_p11), %s1650_s2, 16, %s198_s26, [#allocation7]  }
  0x32   : > { %s34_s25 = sadd.s32 1, %s1298_s19  ;;  %s1122_s6 = scalar_lea.hbm %s1638_s3, 16 }
  0x33   : > { %p1123_p3 = scmp.ne.s32.totalorder %s1638_s3, %s1122_s6  ;;  %p1129_p12 = scmp.lt.u32.totalorder %s1122_s6, %s1638_s3 }
  0x35   : > { %p1125_p6 = pnand %p1123_p3, %p1096_p0 }
  0x37   : > { %p1126_p8 = pneg %p1125_p6 }
  0x39   : > { %p1131_p13 = pnand %p1129_p12, %p1126_p8 }
  0x3b   : > { %1134 = shalt.err (!%p1131_p13)
}
  0x3c   : > { %s1135_s26 = scalar_lea.vmem %s211_s30, 16  ;;  %s1142_s11 = scalar_lea.vmem %s211_s30, 32 }
  0x3d   : > { %p1136_p1 = scmp.ne.s32.totalorder %s211_s30, %s1135_s26  ;;  %p1143_p5 = scmp.lt.s32.totalorder %s211_s30, %s211_s30 }
  0x3e   : > { %p1144_p7 = scmp.lt.s32.totalorder %s1142_s11, %s1135_s26 }
  0x3f   : > { %p1138_p2 = pnand %p1136_p1, %p1096_p0 }
  0x40   : > { %p1145_p9 = por %p1144_p7, %p1143_p5 }
  0x41   : > { %p1139_p4 = pneg %p1138_p2 }
  0x43   : > { %p1146_p10 = pnand %p1145_p9, %p1139_p4 }
  0x45   : > { %1149 = shalt.err (!%p1146_p10)
}
  0x46   : > { %982 = dma.hbm_to_vmem [thread:$0]  (!%p1396_p11), %s1638_s3, 16, %s211_s30, [#allocation10]  }
  0x47   : > { %p35_p0 = scmp.ge.s32.totalorder %s34_s25, 2  ;;  %s1448_s14 = sand.u32 1, %s1290_s17  }
  0x48   : > { %s859_s15 = sshll.u32 %s1448_s14, 5  ;;  %s914_s27 = sshll.u32 %s1298_s19, 8 }
  0x49   : > { %s1665_s25 = smov (%p35_p0, %s34_s25), 0  ;;  %s1651_s0 = sld [smem:[#allocation17_spill]] }
  0x4a   : > { %s46_s29 = ssub.s32 %s1298_s19, %s1665_s25  ;;  %s225_s30 = scalar_lea.vmem [#allocation3], %s859_s15 }
  0x4b   : > { %p48_p11 = scmp.eq.s32.totalorder %s46_s29, 0  ;;  %s235_s8 = sshll.u32 %s225_s30, 4  ;;  %s1461_s8 = int_to_ptr.vmem [resolvable:$true] %s235_s8 }
  0x4c   : > { %s222_s10 = scalar_lea.sflag [#allocation4], %s1448_s14  ;;  %p1652_p6 = scmp.ne.s32.totalorder %s1649_s28, 0 }
  0x4d   : > { %s1466_s9 = scalar_select %p48_p11, %s1290_s17, %s50_s22  }
  0x4e   : > { %p1152_p8 = pneg %p1652_p6 }
  0x4f   : > { %s1459_s7 = scalar_lea.hbm %s1651_s0, %s914_s27  ;;  %s1155_s13 = scalar_lea.hbm %s1651_s0, 1024 }
  0x50   : > { %s1150_s26 = scalar_lea.hbm %s1459_s7, 512  ;;  %p1156_p1 = scmp.lt.u32.totalorder %s1459_s7, %s1651_s0 }
  0x51   : > { %p1151_p3 = scmp.ne.s32.totalorder %s1459_s7, %s1150_s26  ;;  %p1157_p2 = scmp.lt.u32.totalorder %s1155_s13, %s1150_s26 }
  0x52   : > { %p1159_p5 = scmp.lt.u32.totalorder %s1150_s26, %s1459_s7 }
  0x53   : > { %p1153_p12 = pnand %p1152_p8, %p1151_p3  ;;  %p1158_p4 = por %p1157_p2, %p1156_p1 }
  0x55   : > { %p1154_p13 = pneg %p1153_p12  ;;  %p1160_p7 = por %p1159_p5, %p1158_p4 }
  0x57   : > { %p1161_p9 = pnand %p1160_p7, %p1154_p13 }
  0x59   : > { %1164 = shalt.err (!%p1161_p9)
}
  0x5a   : > { %s1165_s22 = scalar_lea.vmem %s1461_s8, 512  ;;  %s1306_s29 = smov [#allocation3]  }
  0x5b   : > { %p1166_p10 = scmp.ne.s32.totalorder %s1461_s8, %s1165_s22  ;;  %s1170_s5 = sshll.u32 %s1306_s29, 4  ;;  %s1171_s5 = int_to_ptr.vmem [resolvable:$false] %s1170_s5 }
  0x5c   : > { %s1172_s6 = scalar_lea.vmem %s1171_s5, 1024  ;;  %p1173_p3 = scmp.lt.s32.totalorder %s1461_s8, %s1171_s5 }
  0x5d   : > { %p1168_p0 = pnand %p1166_p10, %p1152_p8  ;;  %p1174_p12 = scmp.lt.s32.totalorder %s1172_s6, %s1165_s22 }
  0x5f   : > { %p1169_p11 = pneg %p1168_p0  ;;  %p1175_p1 = por %p1174_p12, %p1173_p3 }
  0x61   : > { %p1176_p2 = pnand %p1175_p1, %p1169_p11 }
  0x63   : > { %1179 = shalt.err (!%p1176_p2)
}
  0x64   : > { %s1307_s30 = smov 512   ;;  %s1308_s26 = smov 256  }
  0x65   : > { %s1309_s11 = smov 16   ;;  %s245_s12 = sand.u32 1, %s1302_s20  }
  0x66   : > { %986 = dma.hbm_to_vmem [thread:$0]  (!%p1652_p6), %s1459_s7, 512, %s1461_s8, %s222_s10, %s1307_s30, %s1308_s26, %s1309_s11  }
  0x67   : > { %s862_s13 = sshll.u32 %s1448_s14, 8  ;;  %s915_s15 = sshll.u32 %s1298_s19, 12 }
  0x68   : > { %s249_s27 = scalar_lea.vmem [#allocation6], %s862_s13  ;;  %s1502_s6 = scalar_lea.hbm %s1636_s1, %s915_s15 }
  0x69   : > { %s257_s22 = sshll.u32 %s249_s27, 4  ;;  %s1506_s0 = scalar_lea.sflag [#allocation7], %s245_s12  ;;  %s1504_s22 = int_to_ptr.vmem [resolvable:$true] %s257_s22 }
  0x6a   : > { %s1180_s2 = scalar_lea.hbm %s1502_s6, 4096  ;;  %s1185_s8 = scalar_lea.hbm %s1636_s1, 8192 }
  0x6b   : > { %p1181_p13 = scmp.ne.s32.totalorder %s1502_s6, %s1180_s2  ;;  %p1186_p7 = scmp.lt.u32.totalorder %s1502_s6, %s1636_s1 }
  0x6c   : > { %p1187_p9 = scmp.lt.u32.totalorder %s1185_s8, %s1180_s2  ;;  %p1189_p0 = scmp.lt.u32.totalorder %s1180_s2, %s1502_s6 }
  0x6d   : > { %p1183_p4 = pnand %p1181_p13, %p1152_p8 }
  0x6e   : > { %p1188_p10 = por %p1187_p9, %p1186_p7 }
  0x6f   : > { %p1184_p5 = pneg %p1183_p4 }
  0x70   : > { %p1190_p11 = por %p1189_p0, %p1188_p10 }
  0x72   : > { %p1191_p3 = pnand %p1190_p11, %p1184_p5 }
  0x74   : > { %1194 = shalt.err (!%p1191_p3)
}
  0x75   : > { %s1195_s26 = scalar_lea.vmem %s1504_s22, 4096  ;;  %s1310_s11 = smov [#allocation6]  }
  0x76   : > { %p1196_p12 = scmp.ne.s32.totalorder %s1504_s22, %s1195_s26  ;;  %s1200_s12 = sshll.u32 %s1310_s11, 4  ;;  %s1201_s12 = int_to_ptr.vmem [resolvable:$false] %s1200_s12 }
  0x77   : > { %s1202_s13 = scalar_lea.vmem %s1201_s12, 8192  ;;  %p1203_p13 = scmp.lt.s32.totalorder %s1504_s22, %s1201_s12 }
  0x78   : > { %p1198_p1 = pnand %p1196_p12, %p1152_p8  ;;  %p1204_p4 = scmp.lt.s32.totalorder %s1202_s13, %s1195_s26 }
  0x7a   : > { %p1199_p2 = pneg %p1198_p1  ;;  %p1205_p7 = por %p1204_p4, %p1203_p13 }
  0x7c   : > { %p1206_p9 = pnand %p1205_p7, %p1199_p2 }
  0x7e   : > { %1209 = shalt.err (!%p1206_p9)
}
  0x7f   : > { %s1311_s2 = smov 64   ;;  %s1312_s15 = smov 4  }
  0x80   : > { %989 = dma.hbm_to_vmem [thread:$0]  (!%p1652_p6), %s1502_s6, 4096, %s1504_s22, %s1506_s0, %s1311_s2, %s1311_s2, %s1312_s15  }
  0x81   : > { %p1653_p8 = scmp.ne.s32.totalorder %s1647_s24, 0 }
  0x82   : > { %s271_s27 = sand.u32 (!%p1653_p8), 1, %s1286_s16   ;;  %p1654_p5 = scmp.ne.s32.totalorder (!%p1653_p8), %s1646_s23, 0 }
  0x83   : > { %269 = sbr.rel (%p1653_p8) target bundleno = 454 (0x1c6), region = 36  ;;  %s866_s29 = sshll.u32 (!%p1653_p8), %s271_s27, 5 }
  0x84   : > { %s272_s5 = scalar_lea.sflag (!%p1653_p8), [#allocation4], %s271_s27  ;;  %s1535_s14 = scalar_lea.vmem (!%p1653_p8), [#allocation3], %s866_s29 }
  0x8a   : > { %1261 = dma.done.wait (%p1654_p5), %s272_s5, 512  }
  0x8b   : > { %1263 = vsyncadd (%p1654_p5), %s272_s5, 4294966784  ;;  %s280_s7 = sand.u32 1, %s1371_s21   ;;  %s867_s28 = sshll.u32 %s271_s27, 8 }
  0x8c   : > { %s281_s0 = scalar_lea.sflag [#allocation7], %s280_s7  ;;  %s1542_s22 = scalar_lea.vmem [#allocation6], %s867_s28 }
  0x8d   : > { %1265 = dma.done.wait (%p1654_p5), %s281_s0, 4096  }
  0x8e   : > { %1267 = vsyncadd (%p1654_p5), %s281_s0, 4294963200  ;;  %p1655_p6 = scmp.eq.s32.totalorder %s1371_s21, 0 }
  0x90   : > { %1269 = dma.done.wait (%p1655_p6), [#allocation7], 16   ;;  %p1656_p10 = pmov %p1655_p6 }
  0x91   : > { %p1657_p0 = pmov %p1655_p6 }
  0x92   : > { %1271 = vsyncadd (%p1656_p10), [#allocation7], 4294967280 }
  0x93   : > { %1273 = dma.done.wait (%p1657_p0), [#allocation10], 16   ;;  %p1658_p11 = pmov %p1657_p0 }
  0x94   : > { %p870_p3 = scmp.ne.s32.totalorder %s1294_s18, 0 }
  0x95   : > { %1275 = vsyncadd (%p1658_p11), [#allocation10], 4294967280  ;;  %v1313_v0 = vmov (!%p870_p3), 0.0  }
  0x96   : > { %325 = sbr.rel (%p870_p3) target bundleno = 157 (0x9d), region = 56  ;;  %326 = vst [vmem:[#allocation2] sm:$0xff] (!%p870_p3), %v1313_v0  ;;  %327 = vst [vmem:[#allocation2 + $0x8] sm:$0xff] (!%p870_p3), %v1313_v0 }
  0x9d PF: > { %v1056_v1 = vld [vmem:[%s1542_s22 + $0x40] sm:$0xff]   ;;  %v1060_v5 = vld [vmem:[%s1542_s22 + $0x48] sm:$0xff]   ;;  %v1064_v9 = vld [vmem:[%s1542_s22 + $0x50] sm:$0xff]   ;;  %p907_p12 = scmp.ne.s32.totalorder %s1294_s18, 1 }
  0x9e   : > { %v1057_v2 = vld [vmem:[%s1542_s22 + $0xc0] sm:$0xff]   ;;  %916 = vmatprep.subr.bf16.mxu0 %v1056_v1  ;;  %v1061_v6 = vld [vmem:[%s1542_s22 + $0xc8] sm:$0xff]   ;;  %v1065_v10 = vld [vmem:[%s1542_s22 + $0xd0] sm:$0xff]  }
  0x9f   : > { %v1058_v3 = vld [vmem:[%s1542_s22] sm:$0xff]   ;;  %938 = vmatprep.subr.bf16.mxu1 %v1057_v2  ;;  %v1062_v7 = vld [vmem:[%s1542_s22 + $0x8] sm:$0xff]   ;;  %v1066_v11 = vld [vmem:[%s1542_s22 + $0x10] sm:$0xff]  }
  0xa0   : > { %v1059_v4 = vld [vmem:[%s1542_s22 + $0x80] sm:$0xff]   ;;  %917 = vmatpush3.bf16.msra.mxu0 %v1058_v3  ;;  %v1063_v8 = vld [vmem:[%s1542_s22 + $0x88] sm:$0xff]   ;;  %v1067_v12 = vld [vmem:[%s1542_s22 + $0x90] sm:$0xff]  }
  0xa1   : > { %939 = vmatpush3.bf16.msra.mxu1 %v1059_v4  ;;  %918 = vmatprep.subr.bf16.mxu0 %v1060_v5  ;;  %v1068_v13 = vld [vmem:[%s1542_s22 + $0x58] sm:$0xff]   ;;  %v1072_v17 = vld [vmem:[%s1542_s22 + $0x60] sm:$0xff]   ;;  %v1076_v21 = vld [vmem:[%s1542_s22 + $0x68] sm:$0xff]  }
  0xa2   : > { %940 = vmatprep.subr.bf16.mxu1 %v1061_v6  ;;  %v1069_v14 = vld [vmem:[%s1542_s22 + $0xd8] sm:$0xff]   ;;  %v1073_v18 = vld [vmem:[%s1542_s22 + $0xe0] sm:$0xff]   ;;  %v1077_v22 = vld [vmem:[%s1542_s22 + $0xe8] sm:$0xff]  }
  0xa3   : > { %v1070_v15 = vld [vmem:[%s1542_s22 + $0x18] sm:$0xff]   ;;  %v1074_v19 = vld [vmem:[%s1542_s22 + $0x20] sm:$0xff]   ;;  %v1078_v23 = vld [vmem:[%s1542_s22 + $0x28] sm:$0xff]  }
  0xa4   : > { %919 = vmatpush3.bf16.msra.mxu0 %v1062_v7  ;;  %v1071_v16 = vld [vmem:[%s1542_s22 + $0x98] sm:$0xff]   ;;  %v1075_v20 = vld [vmem:[%s1542_s22 + $0xa0] sm:$0xff]   ;;  %v1079_v24 = vld [vmem:[%s1542_s22 + $0xa8] sm:$0xff]  }
  0xa5   : > { %941 = vmatpush3.bf16.msra.mxu1 %v1063_v8  ;;  %920 = vmatprep.subr.bf16.mxu0 %v1064_v9  ;;  %v1080_v25 = vld [vmem:[%s1542_s22 + $0x70] sm:$0xff]   ;;  %v1084_v29 = vld [vmem:[%s1542_s22 + $0x78] sm:$0xff]   ;;  %v908_v56 = vld [vmem:[#allocation8] ss:$0 sm:$0xff] (!%p907_p12) }
  0xa6   : > { %942 = vmatprep.subr.bf16.mxu1 %v1065_v10  ;;  %v1081_v26 = vld [vmem:[%s1542_s22 + $0xf0] sm:$0xff]   ;;  %v1085_v30 = vld [vmem:[%s1542_s22 + $0xf8] sm:$0xff]   ;;  %v909_v57 = vld [vmem:[#allocation9] ss:$0 sm:$0xff] (!%p907_p12) }
  0xa7   : > { %v1082_v27 = vld [vmem:[%s1542_s22 + $0x30] sm:$0xff]   ;;  %v1086_v31 = vld [vmem:[%s1542_s22 + $0x38] sm:$0xff]  }
  0xa8   : > { %921 = vmatpush3.bf16.msra.mxu0 %v1066_v11  ;;  %v1083_v28 = vld [vmem:[%s1542_s22 + $0xb0] sm:$0xff]   ;;  %v1087_v32 = vld [vmem:[%s1542_s22 + $0xb8] sm:$0xff]  }
  0xa9   : > { %943 = vmatpush3.bf16.msra.mxu1 %v1067_v12  ;;  %922 = vmatprep.subr.bf16.mxu0 %v1068_v13  ;;  %v1088_v33 = vld [vmem:[%s1535_s14] ss:$16 sps:$4 sm:$0xff]   ;;  %v1090_v34 = vld [vmem:[%s1535_s14 + $0x4] ss:$16 sps:$4 sm:$0xff]   ;;  %v1091_v35 = vld [vmem:[%s1535_s14 + $0x8] ss:$16 sps:$4 sm:$0xff]  }
  0xaa   : > { %944 = vmatprep.subr.bf16.mxu1 %v1069_v14  ;;  %v1093_v36 = vld [vmem:[%s1535_s14 + $0xc] ss:$16 sps:$4 sm:$0xff]   ;;  %642 = vmatprep.mubr.bf16.mxu0 %v1090_v34  ;;  %v328_v46 = vld [vmem:[#allocation2] sm:$0xff] }
  0xab   : > { %683 = vmatprep.mubr.bf16.mxu1 %v1093_v36  ;;  %v329_v51 = vld [vmem:[#allocation2 + $0x8] sm:$0xff] }
  0xac   : > { %923 = vmatpush3.bf16.msra.mxu0 %v1070_v15 }
  0xad   : > { %945 = vmatpush3.bf16.msra.mxu1 %v1071_v16  ;;  %924 = vmatprep.subr.bf16.mxu0 %v1072_v17 }
  0xae   : > { %946 = vmatprep.subr.bf16.mxu1 %v1073_v18 }
  0xb0   : > { %925 = vmatpush3.bf16.msra.mxu0 %v1074_v19 }
  0xb1   : > { %947 = vmatpush3.bf16.msra.mxu1 %v1075_v20  ;;  %926 = vmatprep.subr.bf16.mxu0 %v1076_v21 }
  0xb2   : > { %948 = vmatprep.subr.bf16.mxu1 %v1077_v22 }
  0xb4   : > { %927 = vmatpush3.bf16.msra.mxu0 %v1078_v23 }
  0xb5   : > { %949 = vmatpush3.bf16.msra.mxu1 %v1079_v24  ;;  %928 = vmatprep.subr.bf16.mxu0 %v1080_v25 }
  0xb6   : > { %950 = vmatprep.subr.bf16.mxu1 %v1081_v26 }
  0xb8   : > { %929 = vmatpush3.bf16.msra.mxu0 %v1082_v27 }
  0xb9   : > { %951 = vmatpush3.bf16.msra.mxu1 %v1083_v28  ;;  %930 = vmatprep.subr.bf16.mxu0 %v1084_v29 }
  0xba   : > { %952 = vmatprep.subr.bf16.mxu1 %v1085_v30 }
  0xbc   : > { %931 = vmatpush3.bf16.msra.mxu0 %v1086_v31 }
  0xbd   : > { %953 = vmatpush3.bf16.msra.mxu1 %v1087_v32 }
  0xbf   : > { %643 = vmatmul.mubr.bf16.vlgmr.msra.gmra.mrb[0].mxu0 %v1088_v33 }
  0xc0   : > { %684 = vmatmul.mubr.bf16.vlgmr.msra.gmra.mrb[0].mxu1 %v1091_v35 }
 0x192   : > { %v932_v37 = vpop.f32.mrb[0].mxu0 }
 0x193   : > { %v954_v38 = vpop.f32.mrb[0].mxu1  ;;  %v933_v39 = vpop.f32.mrb[1].mxu0 }
 0x194   : > { %v934_v40 = vadd.f32 %v933_v39, %v932_v37  ;;  %v955_v41 = vpop.f32.mrb[1].mxu1  ;;  %v935_v42 = vpop.f32.mrb[2].mxu0 }
 0x195   : > { %v956_v43 = vadd.f32 %v955_v41, %v954_v38  ;;  %v957_v44 = vpop.f32.mrb[2].mxu1  ;;  %v936_v45 = vpop.f32.mrb[3].mxu0 }
 0x196   : > { %v937_v47 = vadd.f32 %v936_v45, %v935_v42  ;;  %v958_v48 = vpop.f32.mrb[3].mxu1 }
 0x197   : > { %v686_v49 = vadd.f32 %v956_v43, %v934_v40  ;;  %v959_v50 = vadd.f32 %v958_v48, %v957_v44  ;;  %699 = sbr.rel (%p907_p12) target bundleno = 428 (0x1ac), region = 60 }
 0x199   : > { %v692_v52 = vadd.f32 %v686_v49, %v328_v46  ;;  %v689_v53 = vadd.f32 %v959_v50, %v937_v47 }
 0x19b   : > { %694 = vst [vmem:[#allocation2] sm:$0xff] %v692_v52  ;;  %v693_v54 = vadd.f32 %v689_v53, %v329_v51 }
 0x19d   : > { %695 = vst [vmem:[#allocation2 + $0x8] sm:$0xff] %v693_v54 }
 0x1a2   : > { %v700_v55 = vld [vmem:[#allocation2] sm:$0xff] }
 0x1a3   : > { %v709_v58 = vmul.f32 %v908_v56, %v700_v55 }
 0x1a4   : > { %v701_v59 = vld [vmem:[#allocation2 + $0x8] sm:$0xff] }
 0x1a5   : > { %v710_v60 = vmul.f32 %v908_v56, %v701_v59  ;;  %v718_v61 = vadd.f32 %v909_v57, %v709_v58 }
 0x1a7   : > { %v719_v62 = vadd.f32 %v909_v57, %v710_v60  ;;  %v720_v63 = vmax.f32 %v718_v61, 0.0 }
 0x1a9   : > { %v721_v0 = vmax.f32 %v719_v62, 0.0  ;;  %722 = vst [vmem:[#allocation11] sm:$0xff] %v720_v63 }
 0x1ab   : > { %723 = vst [vmem:[#allocation11 + $0x8] sm:$0xff] %v721_v0 }
 0x1ac PF: > { %p995_p1 = scmp.eq.s32.totalorder %s1371_s21, 1  ;;  %s1314_s23 = smov [#allocation11]  }
 0x1ad   : > { %s734_s24 = sshll.u32 %s1314_s23, 4  ;;  %s735_s24 = int_to_ptr.vmem [resolvable:$true] %s734_s24 }
 0x1ae   : > { %s1210_s18 = scalar_lea.vmem %s735_s24, 256  ;;  %p1217_p7 = scmp.lt.s32.totalorder %s735_s24, %s735_s24 }
 0x1af   : > { %p1211_p2 = scmp.ne.s32.totalorder %s735_s24, %s1210_s18  ;;  %p1218_p9 = scmp.lt.s32.totalorder %s1210_s18, %s1210_s18 }
 0x1b1   : > { %p1212_p13 = pnand %p1211_p2, %p995_p1  ;;  %p1219_p8 = por %p1218_p9, %p1217_p7 }
 0x1b3   : > { %p1213_p4 = pneg %p1212_p13 }
 0x1b5   : > { %p1220_p5 = pnand %p1219_p8, %p1213_p4 }
 0x1b7   : > { %1223 = shalt.err (!%p1220_p5)
}
 0x1b8   : > { %s1224_s10 = scalar_lea.hbm %s1639_s4, 256 }
 0x1b9   : > { %p1225_p6 = scmp.ne.s32.totalorder %s1639_s4, %s1224_s10  ;;  %p1230_p11 = scmp.lt.u32.totalorder %s1224_s10, %s1639_s4 }
 0x1bb   : > { %p1226_p10 = pnand %p1225_p6, %p995_p1 }
 0x1bd   : > { %p1227_p0 = pneg %p1226_p10 }
 0x1bf   : > { %p1232_p3 = pnand %p1230_p11, %p1227_p0 }
 0x1c1   : > { %1235 = shalt.err (!%p1232_p3)
}
 0x1c2   : > { %s1315_s13 = smov 128   ;;  %s1316_s2 = smov 8  }
 0x1c3   : > { %973 = dma.vmem_to_hbm [thread:$0]  (%p995_p1), %s735_s24, 256, %s1639_s4, [#allocation5], %s1315_s13, %s1315_s13, %s1316_s2  }
 0x1c4   : > { %1277 = dma.done.wait (%p995_p1), [#allocation5], 256  }
 0x1c5   : > { %1279 = vsyncadd (%p995_p1), [#allocation5], 4294967040 }
 0x1c6 PF: > { %s22_s20 = sadd.s32 1, %s1302_s20   ;;  %s1659_s15 = smov %s1286_s16 }
 0x1c7   : > { %p19_p12 = scmp.ge.s32.totalorder %s22_s20, 4   ;;  %s1660_s16 = smov %s1290_s17 }
 0x1c8   : > { %s1661_s17 = smov %s1466_s9  ;;  %s1662_s18 = smov %s1298_s19 }
 0x1c9   : > { %s1663_s19 = smov %s1665_s25  ;;  %21 = sbr.rel (!%p19_p12) target bundleno = 11 (0xb), region = 105 }
 0x1d0   :  { %750 = vsyncpa [#allocation4], 1 }
 0x1d1   :  { %752 = vsyncpa [#allocation4 + $0x1], 1 }
 0x1d2   :  { %753 = vsyncpa [#allocation7], 1 }
 0x1d3   :  { %755 = vsyncpa [#allocation7 + $0x1], 1 }
 0x1d4   :  { %756 = vsyncpa [#allocation10], 1 }
 0x1d5   :  { %757 = vsyncpa [#allocation5], 1 }
 0x1d6   :  { %759 = vsyncpa [#allocation5 + $0x1], 1 }

</bundles_post_ra>
